<compile_context>
chip_gen: v7x
topology: tpu7x:2x2x1
jax: 0.10.0
libtpu: 0.0.40
codegen_flags: <defaults>
</compile_context>

<pallas_src>
import numpy as np
import jax
import jax.numpy as jnp
from jax import lax
from jax.experimental import pallas as pl
from jax.experimental.pallas import tpu as pltpu

LEXICON = (['START', 'END', 'circle', 'rectangle', 'line', 'arrow = True', 'arrow = False',
            'solid = True', 'solid = False', 'for', 'reflect', 'x', 'y', '}', 'if', 'i', 'j',
            'k', 'None'] + list(map(str, list(range(-5, 20)))))
VOCAB = len(LEXICON)            # 44
VPAD = 128                      # lane-dense padded vocab for the prediction head
BPAD = 8                        # batch padded to one full sublane tile

# scaled-down hyper-parameters (structure identical to the nn.Module)
IMAGEFEATURESIZE = 256          # original: 2560
EMBEDDINGSIZE = 64              # original: 64
INPUTSIZE = IMAGEFEATURESIZE + EMBEDDINGSIZE
HIDDEN = 128                    # original: 1024
LAYERS = 2                      # original: 2


# ---------------------------------------------------------------------------
# Fused Pallas kernel: hoisted input projection (feat gate folded in) +
# skewed-wavefront 2-layer LSTM recurrence + lane-dense prediction head.
# ---------------------------------------------------------------------------
def _caption_decoder_kernel(e_ref, feat_ref,
                            wih0e_ref, wih0f_ref, b0_ref,
                            wwave_ref, b1_ref,
                            wpred_ref, bpred_ref,
                            out_ref,
                            xproj, hall):
    B = feat_ref.shape[0]                # padded batch (8)
    H = hall.shape[1]
    G = 4 * H
    TB = out_ref.shape[0]
    T = TB // B                          # static Python int

    # ---- phase 1: hoisted layer-0 input projection for ALL timesteps, with the
    #      time-invariant image-feature gate and b0 folded in (off the serial path) ----
    xproj[...] = jnp.dot(e_ref[...], wih0e_ref[...],
                         preferred_element_type=jnp.float32)              # (T*B, 4H)
    feat_gate = (jnp.dot(feat_ref[...], wih0f_ref[...],
                         preferred_element_type=jnp.float32)
                 + b0_ref[...])                                           # (B, 4H)
    for t in range(T):
        xproj[pl.ds(t * B, B), :] = xproj[pl.ds(t * B, B), :] + feat_gate

    b1_gate = jnp.broadcast_to(b1_ref[...], (B, G))                       # hoisted broadcast

    def cell(gates, c_prev):
        # PyTorch gate order: i, f, g, o ; slices are 128-lane aligned.
        # sigmoid(x) == 0.5*tanh(0.5*x) + 0.5  -> single EUP op per gate.
        i = 0.5 * jnp.tanh(0.5 * gates[:, 0 * H:1 * H]) + 0.5
        f = 0.5 * jnp.tanh(0.5 * gates[:, 1 * H:2 * H]) + 0.5
        g = jnp.tanh(gates[:, 2 * H:3 * H])
        o = 0.5 * jnp.tanh(0.5 * gates[:, 3 * H:4 * H]) + 0.5
        c = f * c_prev + i * g
        return o * jnp.tanh(c), c

    # ---- phase 2: skewed wavefront. Layer 1 runs one step behind layer 0, so at
    #      wavefront step s both cells only need previous state -> ONE fused
    #      (B,2H) x (2H,8H) matmul per step on the serial dependency chain.
    #      wwave = [[W_hh0, W_ih1], [0, W_hh1]]  (built in the wrapper).
    h0 = jnp.zeros((B, H), jnp.float32)
    c0 = jnp.zeros((B, H), jnp.float32)
    h1 = jnp.zeros((B, H), jnp.float32)
    c1 = jnp.zeros((B, H), jnp.float32)

    for s in range(T + 1):               # static, fully unrolled
        gg = jnp.dot(jnp.concatenate([h0, h1], axis=1), wwave_ref[...],
                     preferred_element_type=jnp.float32)                  # (B, 8H)
        if s >= 1:
            # layer 1 at time t = s-1: uses h0_{s-1} (old h0, via gg) and h1_{s-2}.
            h1, c1 = cell(gg[:, G:] + b1_gate, c1)
            hall[pl.ds((s - 1) * B, B), :] = h1
        if s < T:
            # layer 0 at time t = s: uses x_s (xproj, feat gate folded) and h0_{s-1}.
            h0, c0 = cell(xproj[pl.ds(s * B, B), :] + gg[:, :G], c0)

    # ---- phase 3: fused lane-dense prediction head (M = T*B, N = 128) ----
    out_ref[...] = (jnp.dot(hall[...], wpred_ref[...],
                            preferred_element_type=jnp.float32)
                    + bpred_ref[...])


def fused_caption_decoder(e_flat, feat, w_ih0_emb, w_ih0_feat, b0,
                          w_wave, b1, w_pred_pad, b_pred_pad):
    """e_flat: (T*BPAD, E) time-major rows; feat: (BPAD, F); returns padded logits
    (T*BPAD, VPAD)."""
    TB, E = e_flat.shape
    B, F = feat.shape
    H = w_pred_pad.shape[0]
    G = 4 * H
    V = w_pred_pad.shape[1]

    return pl.pallas_call(
        _caption_decoder_kernel,
        out_shape=jax.ShapeDtypeStruct((TB, V), jnp.float32),
        grid=(1,),
        in_specs=[
            pl.BlockSpec((TB, E), lambda i: (0, 0)),        # embedding rows (time-major)
            pl.BlockSpec((B, F), lambda i: (0, 0)),         # image features (padded batch)
            pl.BlockSpec((E, G), lambda i: (0, 0)),         # W_ih layer 0, embedding slice
            pl.BlockSpec((F, G), lambda i: (0, 0)),         # W_ih layer 0, feature slice
            pl.BlockSpec((1, G), lambda i: (0, 0)),         # b layer 0 (b_ih + b_hh)
            pl.BlockSpec((2 * H, 2 * G), lambda i: (0, 0)),  # fused [[Whh0,Wih1],[0,Whh1]]
            pl.BlockSpec((1, G), lambda i: (0, 0)),         # b layer 1
            pl.BlockSpec((H, V), lambda i: (0, 0)),         # W_pred (padded to 128 lanes)
            pl.BlockSpec((1, V), lambda i: (0, 0)),         # b_pred (padded)
        ],
        out_specs=pl.BlockSpec((TB, V), lambda i: (0, 0)),
        scratch_shapes=[
            pltpu.VMEM((TB, G), jnp.float32),   # precomputed input projection (+feat gate)
            pltpu.VMEM((TB, H), jnp.float32),   # all layer-1 hidden states
        ],
        compiler_params=pltpu.CompilerParams(dimension_semantics=("arbitrary",)),
    )(e_flat, feat, w_ih0_emb, w_ih0_feat, b0, w_wave, b1, w_pred_pad, b_pred_pad)


# ---------------------------------------------------------------------------
# Parameters (deterministic init) and forward wrapper
# ---------------------------------------------------------------------------
def init_params(key):
    ks = jax.random.split(key, 9)
    s = 1.0 / np.sqrt(HIDDEN)
    u = lambda k, shape: jax.random.uniform(k, shape, jnp.float32, -s, s)
    return {
        "embedding":  u(ks[0], (VOCAB, EMBEDDINGSIZE)),
        # W_ih of layer 0 stored transposed vs torch and split into [feature | embedding] rows
        "w_ih0_feat": u(ks[1], (IMAGEFEATURESIZE, 4 * HIDDEN)),
        "w_ih0_emb":  u(ks[2], (EMBEDDINGSIZE, 4 * HIDDEN)),
        "w_hh_l0":    u(ks[3], (HIDDEN, 4 * HIDDEN)),
        "b_l0":       u(ks[4], (1, 4 * HIDDEN)),           # b_ih + b_hh combined
        "w_ih_l1":    u(ks[5], (HIDDEN, 4 * HIDDEN)),
        "w_hh_l1":    u(ks[6], (HIDDEN, 4 * HIDDEN)),
        "b_l1":       u(ks[7], (1, 4 * HIDDEN)),
        "w_pred":     u(ks[8], (HIDDEN, VOCAB)),
        "b_pred":     jnp.zeros((1, VOCAB), jnp.float32),
    }


def packed_indices(lengths):
    """Indices reproducing torch.nn.utils.rnn.pack_padded_sequence data ordering."""
    ts, bs = [], []
    for t in range(max(lengths)):
        for b in range(len(lengths)):
            if lengths[b] > t:
                ts.append(t)
                bs.append(b)
    return np.asarray(ts, np.int32), np.asarray(bs, np.int32)


def caption_decoder_forward(params, features, captions, lengths):
    """features: (B, F...) -> flattened to (B, IMAGEFEATURESIZE); captions: (B, T) int32;
    lengths: python list, sorted descending.  Returns (sum(lengths), VOCAB)."""
    B = features.shape[0]
    T = captions.shape[1]
    H = HIDDEN

    # batch padded to one full sublane tile (zero rows, dropped after the kernel)
    feat = features.reshape(B, -1).astype(jnp.float32)                    # (B, F)
    feat_pad = jnp.pad(feat, ((0, BPAD - B), (0, 0)))                     # (BPAD, F)
    e = params["embedding"][captions]                                     # (B, T, E)
    e_pad = jnp.pad(e, ((0, BPAD - B), (0, 0), (0, 0)))                   # (BPAD, T, E)
    e_flat = jnp.transpose(e_pad, (1, 0, 2)).reshape(T * BPAD, EMBEDDINGSIZE)

    # fused wavefront hidden-state weight: [[W_hh0, W_ih1], [0, W_hh1]] -> (2H, 8H)
    w_wave = jnp.concatenate([
        jnp.concatenate([params["w_hh_l0"], params["w_ih_l1"]], axis=1),
        jnp.concatenate([jnp.zeros((H, 4 * H), jnp.float32), params["w_hh_l1"]], axis=1),
    ], axis=0)

    # lane-dense prediction weights: pad V = 44 -> 128 (sliced back after the kernel)
    w_pred_pad = jnp.pad(params["w_pred"], ((0, 0), (0, VPAD - VOCAB)))
    b_pred_pad = jnp.pad(params["b_pred"], ((0, 0), (0, VPAD - VOCAB)))

    logits_pad = fused_caption_decoder(
        e_flat, feat_pad,
        params["w_ih0_emb"], params["w_ih0_feat"], params["b_l0"],
        w_wave, params["b_l1"],
        w_pred_pad, b_pred_pad)                                           # (T*BPAD, 128)

    idx_t, idx_b = packed_indices(lengths)                                # pack_padded order
    flat_idx = idx_t.astype(np.int32) * BPAD + idx_b.astype(np.int32)
    return logits_pad[flat_idx][:, :VOCAB]                                # (sum(lengths), V)


# ---------------------------------------------------------------------------
# pure-JAX reference (for a correctness check against the Pallas path)
# ---------------------------------------------------------------------------
def _lstm_ref(x, w_ih, w_hh, b):
    T, B, _ = x.shape
    H = w_hh.shape[0]

    def step(carry, x_t):
        h, c = carry
        gates = x_t @ w_ih + h @ w_hh + b[0]
        i = jax.nn.sigmoid(gates[:, :H])
        f = jax.nn.sigmoid(gates[:, H:2 * H])
        g = jnp.tanh(gates[:, 2 * H:3 * H])
        o = jax.nn.sigmoid(gates[:, 3 * H:])
        c = f * c + i * g
        h = o * jnp.tanh(c)
        return (h, c), h

    (_, _), hs = lax.scan(step, (jnp.zeros((B, H)), jnp.zeros((B, H))), x)
    return hs


def caption_decoder_ref(params, features, captions, lengths):
    B = features.shape[0]
    feat = features.reshape(B, -1).astype(jnp.float32)
    e = params["embedding"][captions]
    T = captions.shape[1]
    w_ih_l0 = jnp.concatenate([params["w_ih0_feat"], params["w_ih0_emb"]], axis=0)
    x = jnp.concatenate(
        [jnp.broadcast_to(feat[:, None, :], (B, T, feat.shape[1])), e], axis=2)
    x = jnp.transpose(x, (1, 0, 2))
    h1 = _lstm_ref(x, w_ih_l0, params["w_hh_l0"], params["b_l0"])
    h2 = _lstm_ref(h1, params["w_ih_l1"], params["w_hh_l1"], params["b_l1"])
    idx_t, idx_b = packed_indices(lengths)
    packed_h = h2[idx_t, idx_b]
    return packed_h @ params["w_pred"] + params["b_pred"]


# ---------------------------------------------------------------------------
if __name__ == "__main__":
    key = jax.random.PRNGKey(0)
    k_param, k_feat, k_cap = jax.random.split(key, 3)

    params = init_params(k_param)

    B, T = 2, 6
    lengths = [6, 4]                                   # sorted descending (pack requirement)
    features = jax.random.normal(k_feat, (B, IMAGEFEATURESIZE), jnp.float32)
    captions = jax.random.randint(k_cap, (B, T), 0, VOCAB, jnp.int32)

    out = caption_decoder_forward(params, features, captions, lengths)
    out = jax.block_until_ready(out)

    ref = jax.block_until_ready(caption_decoder_ref(params, features, captions, lengths))
    assert out.shape == (sum(lengths), VOCAB), out.shape
    # tolerance covers the tanh-based sigmoid identity and fused-matmul summation order
    np.testing.assert_allclose(np.asarray(out), np.asarray(ref), rtol=1e-3, atol=1e-3)

    print("KERNEL_OK")
</pallas_src>

<mosaic_0001>
module attributes {stable_mosaic.version = 11 : i64} {
  func.func @_caption_decoder_kernel(%arg0: i32, %arg1: memref<48x64xf32, #tpu.memory_space<vmem>>, %arg2: memref<8x256xf32, #tpu.memory_space<vmem>>, %arg3: memref<64x512xf32, #tpu.memory_space<vmem>>, %arg4: memref<256x512xf32, #tpu.memory_space<vmem>>, %arg5: memref<1x512xf32, #tpu.memory_space<vmem>>, %arg6: memref<256x1024xf32, #tpu.memory_space<vmem>>, %arg7: memref<1x512xf32, #tpu.memory_space<vmem>>, %arg8: memref<128x128xf32, #tpu.memory_space<vmem>>, %arg9: memref<1x128xf32, #tpu.memory_space<vmem>>, %arg10: memref<48x128xf32, #tpu.memory_space<vmem>>, %arg11: memref<48x512xf32, #tpu.memory_space<vmem>>, %arg12: memref<48x128xf32, #tpu.memory_space<vmem>>) attributes {dimension_semantics = [#tpu.dimension_semantics<arbitrary>], iteration_bounds = array<i64: 1>, scalar_prefetch = 0 : i64, scratch_operands = 2 : i64, tpu.core_type = #tpu.core_type<tc>, window_params = [{pipeline_mode = #tpu.pipeline_mode<synchronous>, transform_indices = @transform_0, window_bounds = array<i64: 48, 64>}, {pipeline_mode = #tpu.pipeline_mode<synchronous>, transform_indices = @transform_1, window_bounds = array<i64: 8, 256>}, {pipeline_mode = #tpu.pipeline_mode<synchronous>, transform_indices = @transform_2, window_bounds = array<i64: 64, 512>}, {pipeline_mode = #tpu.pipeline_mode<synchronous>, transform_indices = @transform_3, window_bounds = array<i64: 256, 512>}, {pipeline_mode = #tpu.pipeline_mode<synchronous>, transform_indices = @transform_4, window_bounds = array<i64: 1, 512>}, {pipeline_mode = #tpu.pipeline_mode<synchronous>, transform_indices = @transform_5, window_bounds = array<i64: 256, 1024>}, {pipeline_mode = #tpu.pipeline_mode<synchronous>, transform_indices = @transform_6, window_bounds = array<i64: 1, 512>}, {pipeline_mode = #tpu.pipeline_mode<synchronous>, transform_indices = @transform_7, window_bounds = array<i64: 128, 128>}, {pipeline_mode = #tpu.pipeline_mode<synchronous>, transform_indices = @transform_8, window_bounds = array<i64: 1, 128>}, {pipeline_mode = #tpu.pipeline_mode<synchronous>, transform_indices = @transform_9, window_bounds = array<i64: 48, 128>}]} {
    %c0 = arith.constant 0 : index
    %c0_0 = arith.constant 0 : index
    %0 = vector.load %arg1[%c0, %c0_0] : memref<48x64xf32, #tpu.memory_space<vmem>>, vector<48x64xf32>
    %c0_1 = arith.constant 0 : index
    %c0_2 = arith.constant 0 : index
    %1 = vector.load %arg3[%c0_1, %c0_2] : memref<64x512xf32, #tpu.memory_space<vmem>>, vector<64x512xf32>
    %cst = arith.constant dense<0.000000e+00> : vector<48x512xf32>
    %2 = tpu.matmul %0, %1, %cst {dimension_numbers = #tpu.dot_dimension_numbers<[1], [0], [0], [1], [0, 0, 1, 1], [], []>} : vector<48x64xf32>, vector<64x512xf32>, vector<48x512xf32> -> vector<48x512xf32>
    %c0_3 = arith.constant 0 : index
    %c0_4 = arith.constant 0 : index
    %3 = vector.load %arg11[%c0_3, %c0_4] : memref<48x512xf32, #tpu.memory_space<vmem>>, vector<48x512xf32>
    tpu.vector_store %arg11[%c0_3, %c0_4], %2 {strides = array<i32>} : memref<48x512xf32, #tpu.memory_space<vmem>>, vector<48x512xf32>,
    %c0_5 = arith.constant 0 : index
    %c0_6 = arith.constant 0 : index
    %4 = vector.load %arg2[%c0_5, %c0_6] : memref<8x256xf32, #tpu.memory_space<vmem>>, vector<8x256xf32>
    %c0_7 = arith.constant 0 : index
    %c0_8 = arith.constant 0 : index
    %5 = vector.load %arg4[%c0_7, %c0_8] : memref<256x512xf32, #tpu.memory_space<vmem>>, vector<256x512xf32>
    %cst_9 = arith.constant dense<0.000000e+00> : vector<8x512xf32>
    %6 = tpu.matmul %4, %5, %cst_9 {dimension_numbers = #tpu.dot_dimension_numbers<[1], [0], [0], [1], [0, 0, 1, 1], [], []>} : vector<8x256xf32>, vector<256x512xf32>, vector<8x512xf32> -> vector<8x512xf32>
    %c0_10 = arith.constant 0 : index
    %c0_11 = arith.constant 0 : index
    %7 = vector.load %arg5[%c0_10, %c0_11] : memref<1x512xf32, #tpu.memory_space<vmem>>, vector<1x512xf32>
    %8 = vector.broadcast %7 : vector<1x512xf32> to vector<8x512xf32>
    %9 = arith.addf %6, %8 : vector<8x512xf32>
    %c0_12 = arith.constant 0 : index
    %c0_13 = arith.constant 0 : index
    %10 = vector.load %arg11[%c0_12, %c0_13] : memref<48x512xf32, #tpu.memory_space<vmem>>, vector<8x512xf32>
    %11 = arith.addf %10, %9 : vector<8x512xf32>
    %c0_14 = arith.constant 0 : index
    %c0_15 = arith.constant 0 : index
    %12 = vector.load %arg11[%c0_14, %c0_15] : memref<48x512xf32, #tpu.memory_space<vmem>>, vector<8x512xf32>
    tpu.vector_store %arg11[%c0_14, %c0_15], %11 {strides = array<i32>} : memref<48x512xf32, #tpu.memory_space<vmem>>, vector<8x512xf32>,
    %c8 = arith.constant 8 : index
    %c0_16 = arith.constant 0 : index
    %13 = vector.load %arg11[%c8, %c0_16] : memref<48x512xf32, #tpu.memory_space<vmem>>, vector<8x512xf32>
    %14 = arith.addf %13, %9 : vector<8x512xf32>
    %c8_17 = arith.constant 8 : index
    %c0_18 = arith.constant 0 : index
    %15 = vector.load %arg11[%c8_17, %c0_18] : memref<48x512xf32, #tpu.memory_space<vmem>>, vector<8x512xf32>
    tpu.vector_store %arg11[%c8_17, %c0_18], %14 {strides = array<i32>} : memref<48x512xf32, #tpu.memory_space<vmem>>, vector<8x512xf32>,
    %c16 = arith.constant 16 : index
    %c0_19 = arith.constant 0 : index
    %16 = vector.load %arg11[%c16, %c0_19] : memref<48x512xf32, #tpu.memory_space<vmem>>, vector<8x512xf32>
    %17 = arith.addf %16, %9 : vector<8x512xf32>
    %c16_20 = arith.constant 16 : index
    %c0_21 = arith.constant 0 : index
    %18 = vector.load %arg11[%c16_20, %c0_21] : memref<48x512xf32, #tpu.memory_space<vmem>>, vector<8x512xf32>
    tpu.vector_store %arg11[%c16_20, %c0_21], %17 {strides = array<i32>} : memref<48x512xf32, #tpu.memory_space<vmem>>, vector<8x512xf32>,
    %c24 = arith.constant 24 : index
    %c0_22 = arith.constant 0 : index
    %19 = vector.load %arg11[%c24, %c0_22] : memref<48x512xf32, #tpu.memory_space<vmem>>, vector<8x512xf32>
    %20 = arith.addf %19, %9 : vector<8x512xf32>
    %c24_23 = arith.constant 24 : index
    %c0_24 = arith.constant 0 : index
    %21 = vector.load %arg11[%c24_23, %c0_24] : memref<48x512xf32, #tpu.memory_space<vmem>>, vector<8x512xf32>
    tpu.vector_store %arg11[%c24_23, %c0_24], %20 {strides = array<i32>} : memref<48x512xf32, #tpu.memory_space<vmem>>, vector<8x512xf32>,
    %c32 = arith.constant 32 : index
    %c0_25 = arith.constant 0 : index
    %22 = vector.load %arg11[%c32, %c0_25] : memref<48x512xf32, #tpu.memory_space<vmem>>, vector<8x512xf32>
    %23 = arith.addf %22, %9 : vector<8x512xf32>
    %c32_26 = arith.constant 32 : index
    %c0_27 = arith.constant 0 : index
    %24 = vector.load %arg11[%c32_26, %c0_27] : memref<48x512xf32, #tpu.memory_space<vmem>>, vector<8x512xf32>
    tpu.vector_store %arg11[%c32_26, %c0_27], %23 {strides = array<i32>} : memref<48x512xf32, #tpu.memory_space<vmem>>, vector<8x512xf32>,
    %c40 = arith.constant 40 : index
    %c0_28 = arith.constant 0 : index
    %25 = vector.load %arg11[%c40, %c0_28] : memref<48x512xf32, #tpu.memory_space<vmem>>, vector<8x512xf32>
    %26 = arith.addf %25, %9 : vector<8x512xf32>
    %c40_29 = arith.constant 40 : index
    %c0_30 = arith.constant 0 : index
    %27 = vector.load %arg11[%c40_29, %c0_30] : memref<48x512xf32, #tpu.memory_space<vmem>>, vector<8x512xf32>
    tpu.vector_store %arg11[%c40_29, %c0_30], %26 {strides = array<i32>} : memref<48x512xf32, #tpu.memory_space<vmem>>, vector<8x512xf32>,
    %c0_31 = arith.constant 0 : index
    %c0_32 = arith.constant 0 : index
    %28 = vector.load %arg7[%c0_31, %c0_32] : memref<1x512xf32, #tpu.memory_space<vmem>>, vector<1x512xf32>
    %29 = vector.shape_cast %28 : vector<1x512xf32> to vector<1x512xf32>
    %30 = vector.broadcast %29 : vector<1x512xf32> to vector<8x512xf32>
    %cst_33 = arith.constant 0.000000e+00 : f32
    %31 = vector.broadcast %cst_33 : f32 to vector<8x128xf32>
    %cst_34 = arith.constant 0.000000e+00 : f32
    %32 = vector.broadcast %cst_34 : f32 to vector<8x128xf32>
    %cst_35 = arith.constant 0.000000e+00 : f32
    %33 = vector.broadcast %cst_35 : f32 to vector<8x128xf32>
    %cst_36 = arith.constant 0.000000e+00 : f32
    %34 = vector.broadcast %cst_36 : f32 to vector<8x128xf32>
    %35 = tpu.concatenate %31, %33 in 1 : vector<8x128xf32>, vector<8x128xf32> -> vector<8x256xf32>
    %c0_37 = arith.constant 0 : index
    %c0_38 = arith.constant 0 : index
    %36 = vector.load %arg6[%c0_37, %c0_38] : memref<256x1024xf32, #tpu.memory_space<vmem>>, vector<256x1024xf32>
    %cst_39 = arith.constant dense<0.000000e+00> : vector<8x1024xf32>
    %37 = tpu.matmul %35, %36, %cst_39 {dimension_numbers = #tpu.dot_dimension_numbers<[1], [0], [0], [1], [0, 0, 1, 1], [], []>} : vector<8x256xf32>, vector<256x1024xf32>, vector<8x1024xf32> -> vector<8x1024xf32>
    %c0_40 = arith.constant 0 : index
    %c0_41 = arith.constant 0 : index
    %38 = vector.load %arg11[%c0_40, %c0_41] : memref<48x512xf32, #tpu.memory_space<vmem>>, vector<8x512xf32>
    %39 = vector.extract_strided_slice %37 {offsets = [0, 0], sizes = [8, 512], strides = [1, 1]} : vector<8x1024xf32> to vector<8x512xf32>
    %40 = arith.addf %38, %39 : vector<8x512xf32>
    %41 = vector.extract_strided_slice %40 {offsets = [0, 0], sizes = [8, 128], strides = [1, 1]} : vector<8x512xf32> to vector<8x128xf32>
    %cst_42 = arith.constant 5.000000e-01 : f32
    %42 = vector.broadcast %cst_42 : f32 to vector<8x128xf32>
    %43 = arith.mulf %42, %41 : vector<8x128xf32>
    %44 = math.tanh %43 : vector<8x128xf32>
    %cst_43 = arith.constant 5.000000e-01 : f32
    %45 = vector.broadcast %cst_43 : f32 to vector<8x128xf32>
    %46 = arith.mulf %45, %44 : vector<8x128xf32>
    %cst_44 = arith.constant 5.000000e-01 : f32
    %47 = vector.broadcast %cst_44 : f32 to vector<8x128xf32>
    %48 = arith.addf %46, %47 : vector<8x128xf32>
    %49 = vector.extract_strided_slice %40 {offsets = [0, 128], sizes = [8, 128], strides = [1, 1]} : vector<8x512xf32> to vector<8x128xf32>
    %cst_45 = arith.constant 5.000000e-01 : f32
    %50 = vector.broadcast %cst_45 : f32 to vector<8x128xf32>
    %51 = arith.mulf %50, %49 : vector<8x128xf32>
    %52 = math.tanh %51 : vector<8x128xf32>
    %cst_46 = arith.constant 5.000000e-01 : f32
    %53 = vector.broadcast %cst_46 : f32 to vector<8x128xf32>
    %54 = arith.mulf %53, %52 : vector<8x128xf32>
    %cst_47 = arith.constant 5.000000e-01 : f32
    %55 = vector.broadcast %cst_47 : f32 to vector<8x128xf32>
    %56 = arith.addf %54, %55 : vector<8x128xf32>
    %57 = vector.extract_strided_slice %40 {offsets = [0, 256], sizes = [8, 128], strides = [1, 1]} : vector<8x512xf32> to vector<8x128xf32>
    %58 = math.tanh %57 : vector<8x128xf32>
    %59 = vector.extract_strided_slice %40 {offsets = [0, 384], sizes = [8, 128], strides = [1, 1]} : vector<8x512xf32> to vector<8x128xf32>
    %cst_48 = arith.constant 5.000000e-01 : f32
    %60 = vector.broadcast %cst_48 : f32 to vector<8x128xf32>
    %61 = arith.mulf %60, %59 : vector<8x128xf32>
    %62 = math.tanh %61 : vector<8x128xf32>
    %cst_49 = arith.constant 5.000000e-01 : f32
    %63 = vector.broadcast %cst_49 : f32 to vector<8x128xf32>
    %64 = arith.mulf %63, %62 : vector<8x128xf32>
    %cst_50 = arith.constant 5.000000e-01 : f32
    %65 = vector.broadcast %cst_50 : f32 to vector<8x128xf32>
    %66 = arith.addf %64, %65 : vector<8x128xf32>
    %67 = arith.mulf %56, %32 : vector<8x128xf32>
    %68 = arith.mulf %48, %58 : vector<8x128xf32>
    %69 = arith.addf %67, %68 : vector<8x128xf32>
    %70 = math.tanh %69 : vector<8x128xf32>
    %71 = arith.mulf %66, %70 : vector<8x128xf32>
    %72 = tpu.concatenate %71, %33 in 1 : vector<8x128xf32>, vector<8x128xf32> -> vector<8x256xf32>
    %c0_51 = arith.constant 0 : index
    %c0_52 = arith.constant 0 : index
    %73 = vector.load %arg6[%c0_51, %c0_52] : memref<256x1024xf32, #tpu.memory_space<vmem>>, vector<256x1024xf32>
    %cst_53 = arith.constant dense<0.000000e+00> : vector<8x1024xf32>
    %74 = tpu.matmul %72, %73, %cst_53 {dimension_numbers = #tpu.dot_dimension_numbers<[1], [0], [0], [1], [0, 0, 1, 1], [], []>} : vector<8x256xf32>, vector<256x1024xf32>, vector<8x1024xf32> -> vector<8x1024xf32>
    %75 = vector.extract_strided_slice %74 {offsets = [0, 512], sizes = [8, 512], strides = [1, 1]} : vector<8x1024xf32> to vector<8x512xf32>
    %76 = arith.addf %75, %30 : vector<8x512xf32>
    %77 = vector.extract_strided_slice %76 {offsets = [0, 0], sizes = [8, 128], strides = [1, 1]} : vector<8x512xf32> to vector<8x128xf32>
    %cst_54 = arith.constant 5.000000e-01 : f32
    %78 = vector.broadcast %cst_54 : f32 to vector<8x128xf32>
    %79 = arith.mulf %78, %77 : vector<8x128xf32>
    %80 = math.tanh %79 : vector<8x128xf32>
    %cst_55 = arith.constant 5.000000e-01 : f32
    %81 = vector.broadcast %cst_55 : f32 to vector<8x128xf32>
    %82 = arith.mulf %81, %80 : vector<8x128xf32>
    %cst_56 = arith.constant 5.000000e-01 : f32
    %83 = vector.broadcast %cst_56 : f32 to vector<8x128xf32>
    %84 = arith.addf %82, %83 : vector<8x128xf32>
    %85 = vector.extract_strided_slice %76 {offsets = [0, 128], sizes = [8, 128], strides = [1, 1]} : vector<8x512xf32> to vector<8x128xf32>
    %cst_57 = arith.constant 5.000000e-01 : f32
    %86 = vector.broadcast %cst_57 : f32 to vector<8x128xf32>
    %87 = arith.mulf %86, %85 : vector<8x128xf32>
    %88 = math.tanh %87 : vector<8x128xf32>
    %cst_58 = arith.constant 5.000000e-01 : f32
    %89 = vector.broadcast %cst_58 : f32 to vector<8x128xf32>
    %90 = arith.mulf %89, %88 : vector<8x128xf32>
    %cst_59 = arith.constant 5.000000e-01 : f32
    %91 = vector.broadcast %cst_59 : f32 to vector<8x128xf32>
    %92 = arith.addf %90, %91 : vector<8x128xf32>
    %93 = vector.extract_strided_slice %76 {offsets = [0, 256], sizes = [8, 128], strides = [1, 1]} : vector<8x512xf32> to vector<8x128xf32>
    %94 = math.tanh %93 : vector<8x128xf32>
    %95 = vector.extract_strided_slice %76 {offsets = [0, 384], sizes = [8, 128], strides = [1, 1]} : vector<8x512xf32> to vector<8x128xf32>
    %cst_60 = arith.constant 5.000000e-01 : f32
    %96 = vector.broadcast %cst_60 : f32 to vector<8x128xf32>
    %97 = arith.mulf %96, %95 : vector<8x128xf32>
    %98 = math.tanh %97 : vector<8x128xf32>
    %cst_61 = arith.constant 5.000000e-01 : f32
    %99 = vector.broadcast %cst_61 : f32 to vector<8x128xf32>
    %100 = arith.mulf %99, %98 : vector<8x128xf32>
    %cst_62 = arith.constant 5.000000e-01 : f32
    %101 = vector.broadcast %cst_62 : f32 to vector<8x128xf32>
    %102 = arith.addf %100, %101 : vector<8x128xf32>
    %103 = arith.mulf %92, %34 : vector<8x128xf32>
    %104 = arith.mulf %84, %94 : vector<8x128xf32>
    %105 = arith.addf %103, %104 : vector<8x128xf32>
    %106 = math.tanh %105 : vector<8x128xf32>
    %107 = arith.mulf %102, %106 : vector<8x128xf32>
    %c0_63 = arith.constant 0 : index
    %c0_64 = arith.constant 0 : index
    %108 = vector.load %arg12[%c0_63, %c0_64] : memref<48x128xf32, #tpu.memory_space<vmem>>, vector<8x128xf32>
    tpu.vector_store %arg12[%c0_63, %c0_64], %107 {strides = array<i32>} : memref<48x128xf32, #tpu.memory_space<vmem>>, vector<8x128xf32>,
    %c8_65 = arith.constant 8 : index
    %c0_66 = arith.constant 0 : index
    %109 = vector.load %arg11[%c8_65, %c0_66] : memref<48x512xf32, #tpu.memory_space<vmem>>, vector<8x512xf32>
    %110 = vector.extract_strided_slice %74 {offsets = [0, 0], sizes = [8, 512], strides = [1, 1]} : vector<8x1024xf32> to vector<8x512xf32>
    %111 = arith.addf %109, %110 : vector<8x512xf32>
    %112 = vector.extract_strided_slice %111 {offsets = [0, 0], sizes = [8, 128], strides = [1, 1]} : vector<8x512xf32> to vector<8x128xf32>
    %cst_67 = arith.constant 5.000000e-01 : f32
    %113 = vector.broadcast %cst_67 : f32 to vector<8x128xf32>
    %114 = arith.mulf %113, %112 : vector<8x128xf32>
    %115 = math.tanh %114 : vector<8x128xf32>
    %cst_68 = arith.constant 5.000000e-01 : f32
    %116 = vector.broadcast %cst_68 : f32 to vector<8x128xf32>
    %117 = arith.mulf %116, %115 : vector<8x128xf32>
    %cst_69 = arith.constant 5.000000e-01 : f32
    %118 = vector.broadcast %cst_69 : f32 to vector<8x128xf32>
    %119 = arith.addf %117, %118 : vector<8x128xf32>
    %120 = vector.extract_strided_slice %111 {offsets = [0, 128], sizes = [8, 128], strides = [1, 1]} : vector<8x512xf32> to vector<8x128xf32>
    %cst_70 = arith.constant 5.000000e-01 : f32
    %121 = vector.broadcast %cst_70 : f32 to vector<8x128xf32>
    %122 = arith.mulf %121, %120 : vector<8x128xf32>
    %123 = math.tanh %122 : vector<8x128xf32>
    %cst_71 = arith.constant 5.000000e-01 : f32
    %124 = vector.broadcast %cst_71 : f32 to vector<8x128xf32>
    %125 = arith.mulf %124, %123 : vector<8x128xf32>
    %cst_72 = arith.constant 5.000000e-01 : f32
    %126 = vector.broadcast %cst_72 : f32 to vector<8x128xf32>
    %127 = arith.addf %125, %126 : vector<8x128xf32>
    %128 = vector.extract_strided_slice %111 {offsets = [0, 256], sizes = [8, 128], strides = [1, 1]} : vector<8x512xf32> to vector<8x128xf32>
    %129 = math.tanh %128 : vector<8x128xf32>
    %130 = vector.extract_strided_slice %111 {offsets = [0, 384], sizes = [8, 128], strides = [1, 1]} : vector<8x512xf32> to vector<8x128xf32>
    %cst_73 = arith.constant 5.000000e-01 : f32
    %131 = vector.broadcast %cst_73 : f32 to vector<8x128xf32>
    %132 = arith.mulf %131, %130 : vector<8x128xf32>
    %133 = math.tanh %132 : vector<8x128xf32>
    %cst_74 = arith.constant 5.000000e-01 : f32
    %134 = vector.broadcast %cst_74 : f32 to vector<8x128xf32>
    %135 = arith.mulf %134, %133 : vector<8x128xf32>
    %cst_75 = arith.constant 5.000000e-01 : f32
    %136 = vector.broadcast %cst_75 : f32 to vector<8x128xf32>
    %137 = arith.addf %135, %136 : vector<8x128xf32>
    %138 = arith.mulf %127, %69 : vector<8x128xf32>
    %139 = arith.mulf %119, %129 : vector<8x128xf32>
    %140 = arith.addf %138, %139 : vector<8x128xf32>
    %141 = math.tanh %140 : vector<8x128xf32>
    %142 = arith.mulf %137, %141 : vector<8x128xf32>
    %143 = tpu.concatenate %142, %107 in 1 : vector<8x128xf32>, vector<8x128xf32> -> vector<8x256xf32>
    %c0_76 = arith.constant 0 : index
    %c0_77 = arith.constant 0 : index
    %144 = vector.load %arg6[%c0_76, %c0_77] : memref<256x1024xf32, #tpu.memory_space<vmem>>, vector<256x1024xf32>
    %cst_78 = arith.constant dense<0.000000e+00> : vector<8x1024xf32>
    %145 = tpu.matmul %143, %144, %cst_78 {dimension_numbers = #tpu.dot_dimension_numbers<[1], [0], [0], [1], [0, 0, 1, 1], [], []>} : vector<8x256xf32>, vector<256x1024xf32>, vector<8x1024xf32> -> vector<8x1024xf32>
    %146 = vector.extract_strided_slice %145 {offsets = [0, 512], sizes = [8, 512], strides = [1, 1]} : vector<8x1024xf32> to vector<8x512xf32>
    %147 = arith.addf %146, %30 : vector<8x512xf32>
    %148 = vector.extract_strided_slice %147 {offsets = [0, 0], sizes = [8, 128], strides = [1, 1]} : vector<8x512xf32> to vector<8x128xf32>
    %cst_79 = arith.constant 5.000000e-01 : f32
    %149 = vector.broadcast %cst_79 : f32 to vector<8x128xf32>
    %150 = arith.mulf %149, %148 : vector<8x128xf32>
    %151 = math.tanh %150 : vector<8x128xf32>
    %cst_80 = arith.constant 5.000000e-01 : f32
    %152 = vector.broadcast %cst_80 : f32 to vector<8x128xf32>
    %153 = arith.mulf %152, %151 : vector<8x128xf32>
    %cst_81 = arith.constant 5.000000e-01 : f32
    %154 = vector.broadcast %cst_81 : f32 to vector<8x128xf32>
    %155 = arith.addf %153, %154 : vector<8x128xf32>
    %156 = vector.extract_strided_slice %147 {offsets = [0, 128], sizes = [8, 128], strides = [1, 1]} : vector<8x512xf32> to vector<8x128xf32>
    %cst_82 = arith.constant 5.000000e-01 : f32
    %157 = vector.broadcast %cst_82 : f32 to vector<8x128xf32>
    %158 = arith.mulf %157, %156 : vector<8x128xf32>
    %159 = math.tanh %158 : vector<8x128xf32>
    %cst_83 = arith.constant 5.000000e-01 : f32
    %160 = vector.broadcast %cst_83 : f32 to vector<8x128xf32>
    %161 = arith.mulf %160, %159 : vector<8x128xf32>
    %cst_84 = arith.constant 5.000000e-01 : f32
    %162 = vector.broadcast %cst_84 : f32 to vector<8x128xf32>
    %163 = arith.addf %161, %162 : vector<8x128xf32>
    %164 = vector.extract_strided_slice %147 {offsets = [0, 256], sizes = [8, 128], strides = [1, 1]} : vector<8x512xf32> to vector<8x128xf32>
    %165 = math.tanh %164 : vector<8x128xf32>
    %166 = vector.extract_strided_slice %147 {offsets = [0, 384], sizes = [8, 128], strides = [1, 1]} : vector<8x512xf32> to vector<8x128xf32>
    %cst_85 = arith.constant 5.000000e-01 : f32
    %167 = vector.broadcast %cst_85 : f32 to vector<8x128xf32>
    %168 = arith.mulf %167, %166 : vector<8x128xf32>
    %169 = math.tanh %168 : vector<8x128xf32>
    %cst_86 = arith.constant 5.000000e-01 : f32
    %170 = vector.broadcast %cst_86 : f32 to vector<8x128xf32>
    %171 = arith.mulf %170, %169 : vector<8x128xf32>
    %cst_87 = arith.constant 5.000000e-01 : f32
    %172 = vector.broadcast %cst_87 : f32 to vector<8x128xf32>
    %173 = arith.addf %171, %172 : vector<8x128xf32>
    %174 = arith.mulf %163, %105 : vector<8x128xf32>
    %175 = arith.mulf %155, %165 : vector<8x128xf32>
    %176 = arith.addf %174, %175 : vector<8x128xf32>
    %177 = math.tanh %176 : vector<8x128xf32>
    %178 = arith.mulf %173, %177 : vector<8x128xf32>
    %c8_88 = arith.constant 8 : index
    %c0_89 = arith.constant 0 : index
    %179 = vector.load %arg12[%c8_88, %c0_89] : memref<48x128xf32, #tpu.memory_space<vmem>>, vector<8x128xf32>
    tpu.vector_store %arg12[%c8_88, %c0_89], %178 {strides = array<i32>} : memref<48x128xf32, #tpu.memory_space<vmem>>, vector<8x128xf32>,
    %c16_90 = arith.constant 16 : index
    %c0_91 = arith.constant 0 : index
    %180 = vector.load %arg11[%c16_90, %c0_91] : memref<48x512xf32, #tpu.memory_space<vmem>>, vector<8x512xf32>
    %181 = vector.extract_strided_slice %145 {offsets = [0, 0], sizes = [8, 512], strides = [1, 1]} : vector<8x1024xf32> to vector<8x512xf32>
    %182 = arith.addf %180, %181 : vector<8x512xf32>
    %183 = vector.extract_strided_slice %182 {offsets = [0, 0], sizes = [8, 128], strides = [1, 1]} : vector<8x512xf32> to vector<8x128xf32>
    %cst_92 = arith.constant 5.000000e-01 : f32
    %184 = vector.broadcast %cst_92 : f32 to vector<8x128xf32>
    %185 = arith.mulf %184, %183 : vector<8x128xf32>
    %186 = math.tanh %185 : vector<8x128xf32>
    %cst_93 = arith.constant 5.000000e-01 : f32
    %187 = vector.broadcast %cst_93 : f32 to vector<8x128xf32>
    %188 = arith.mulf %187, %186 : vector<8x128xf32>
    %cst_94 = arith.constant 5.000000e-01 : f32
    %189 = vector.broadcast %cst_94 : f32 to vector<8x128xf32>
    %190 = arith.addf %188, %189 : vector<8x128xf32>
    %191 = vector.extract_strided_slice %182 {offsets = [0, 128], sizes = [8, 128], strides = [1, 1]} : vector<8x512xf32> to vector<8x128xf32>
    %cst_95 = arith.constant 5.000000e-01 : f32
    %192 = vector.broadcast %cst_95 : f32 to vector<8x128xf32>
    %193 = arith.mulf %192, %191 : vector<8x128xf32>
    %194 = math.tanh %193 : vector<8x128xf32>
    %cst_96 = arith.constant 5.000000e-01 : f32
    %195 = vector.broadcast %cst_96 : f32 to vector<8x128xf32>
    %196 = arith.mulf %195, %194 : vector<8x128xf32>
    %cst_97 = arith.constant 5.000000e-01 : f32
    %197 = vector.broadcast %cst_97 : f32 to vector<8x128xf32>
    %198 = arith.addf %196, %197 : vector<8x128xf32>
    %199 = vector.extract_strided_slice %182 {offsets = [0, 256], sizes = [8, 128], strides = [1, 1]} : vector<8x512xf32> to vector<8x128xf32>
    %200 = math.tanh %199 : vector<8x128xf32>
    %201 = vector.extract_strided_slice %182 {offsets = [0, 384], sizes = [8, 128], strides = [1, 1]} : vector<8x512xf32> to vector<8x128xf32>
    %cst_98 = arith.constant 5.000000e-01 : f32
    %202 = vector.broadcast %cst_98 : f32 to vector<8x128xf32>
    %203 = arith.mulf %202, %201 : vector<8x128xf32>
    %204 = math.tanh %203 : vector<8x128xf32>
    %cst_99 = arith.constant 5.000000e-01 : f32
    %205 = vector.broadcast %cst_99 : f32 to vector<8x128xf32>
    %206 = arith.mulf %205, %204 : vector<8x128xf32>
    %cst_100 = arith.constant 5.000000e-01 : f32
    %207 = vector.broadcast %cst_100 : f32 to vector<8x128xf32>
    %208 = arith.addf %206, %207 : vector<8x128xf32>
    %209 = arith.mulf %198, %140 : vector<8x128xf32>
    %210 = arith.mulf %190, %200 : vector<8x128xf32>
    %211 = arith.addf %209, %210 : vector<8x128xf32>
    %212 = math.tanh %211 : vector<8x128xf32>
    %213 = arith.mulf %208, %212 : vector<8x128xf32>
    %214 = tpu.concatenate %213, %178 in 1 : vector<8x128xf32>, vector<8x128xf32> -> vector<8x256xf32>
    %c0_101 = arith.constant 0 : index
    %c0_102 = arith.constant 0 : index
    %215 = vector.load %arg6[%c0_101, %c0_102] : memref<256x1024xf32, #tpu.memory_space<vmem>>, vector<256x1024xf32>
    %cst_103 = arith.constant dense<0.000000e+00> : vector<8x1024xf32>
    %216 = tpu.matmul %214, %215, %cst_103 {dimension_numbers = #tpu.dot_dimension_numbers<[1], [0], [0], [1], [0, 0, 1, 1], [], []>} : vector<8x256xf32>, vector<256x1024xf32>, vector<8x1024xf32> -> vector<8x1024xf32>
    %217 = vector.extract_strided_slice %216 {offsets = [0, 512], sizes = [8, 512], strides = [1, 1]} : vector<8x1024xf32> to vector<8x512xf32>
    %218 = arith.addf %217, %30 : vector<8x512xf32>
    %219 = vector.extract_strided_slice %218 {offsets = [0, 0], sizes = [8, 128], strides = [1, 1]} : vector<8x512xf32> to vector<8x128xf32>
    %cst_104 = arith.constant 5.000000e-01 : f32
    %220 = vector.broadcast %cst_104 : f32 to vector<8x128xf32>
    %221 = arith.mulf %220, %219 : vector<8x128xf32>
    %222 = math.tanh %221 : vector<8x128xf32>
    %cst_105 = arith.constant 5.000000e-01 : f32
    %223 = vector.broadcast %cst_105 : f32 to vector<8x128xf32>
    %224 = arith.mulf %223, %222 : vector<8x128xf32>
    %cst_106 = arith.constant 5.000000e-01 : f32
    %225 = vector.broadcast %cst_106 : f32 to vector<8x128xf32>
    %226 = arith.addf %224, %225 : vector<8x128xf32>
    %227 = vector.extract_strided_slice %218 {offsets = [0, 128], sizes = [8, 128], strides = [1, 1]} : vector<8x512xf32> to vector<8x128xf32>
    %cst_107 = arith.constant 5.000000e-01 : f32
    %228 = vector.broadcast %cst_107 : f32 to vector<8x128xf32>
    %229 = arith.mulf %228, %227 : vector<8x128xf32>
    %230 = math.tanh %229 : vector<8x128xf32>
    %cst_108 = arith.constant 5.000000e-01 : f32
    %231 = vector.broadcast %cst_108 : f32 to vector<8x128xf32>
    %232 = arith.mulf %231, %230 : vector<8x128xf32>
    %cst_109 = arith.constant 5.000000e-01 : f32
    %233 = vector.broadcast %cst_109 : f32 to vector<8x128xf32>
    %234 = arith.addf %232, %233 : vector<8x128xf32>
    %235 = vector.extract_strided_slice %218 {offsets = [0, 256], sizes = [8, 128], strides = [1, 1]} : vector<8x512xf32> to vector<8x128xf32>
    %236 = math.tanh %235 : vector<8x128xf32>
    %237 = vector.extract_strided_slice %218 {offsets = [0, 384], sizes = [8, 128], strides = [1, 1]} : vector<8x512xf32> to vector<8x128xf32>
    %cst_110 = arith.constant 5.000000e-01 : f32
    %238 = vector.broadcast %cst_110 : f32 to vector<8x128xf32>
    %239 = arith.mulf %238, %237 : vector<8x128xf32>
    %240 = math.tanh %239 : vector<8x128xf32>
    %cst_111 = arith.constant 5.000000e-01 : f32
    %241 = vector.broadcast %cst_111 : f32 to vector<8x128xf32>
    %242 = arith.mulf %241, %240 : vector<8x128xf32>
    %cst_112 = arith.constant 5.000000e-01 : f32
    %243 = vector.broadcast %cst_112 : f32 to vector<8x128xf32>
    %244 = arith.addf %242, %243 : vector<8x128xf32>
    %245 = arith.mulf %234, %176 : vector<8x128xf32>
    %246 = arith.mulf %226, %236 : vector<8x128xf32>
    %247 = arith.addf %245, %246 : vector<8x128xf32>
    %248 = math.tanh %247 : vector<8x128xf32>
    %249 = arith.mulf %244, %248 : vector<8x128xf32>
    %c16_113 = arith.constant 16 : index
    %c0_114 = arith.constant 0 : index
    %250 = vector.load %arg12[%c16_113, %c0_114] : memref<48x128xf32, #tpu.memory_space<vmem>>, vector<8x128xf32>
    tpu.vector_store %arg12[%c16_113, %c0_114], %249 {strides = array<i32>} : memref<48x128xf32, #tpu.memory_space<vmem>>, vector<8x128xf32>,
    %c24_115 = arith.constant 24 : index
    %c0_116 = arith.constant 0 : index
    %251 = vector.load %arg11[%c24_115, %c0_116] : memref<48x512xf32, #tpu.memory_space<vmem>>, vector<8x512xf32>
    %252 = vector.extract_strided_slice %216 {offsets = [0, 0], sizes = [8, 512], strides = [1, 1]} : vector<8x1024xf32> to vector<8x512xf32>
    %253 = arith.addf %251, %252 : vector<8x512xf32>
    %254 = vector.extract_strided_slice %253 {offsets = [0, 0], sizes = [8, 128], strides = [1, 1]} : vector<8x512xf32> to vector<8x128xf32>
    %cst_117 = arith.constant 5.000000e-01 : f32
    %255 = vector.broadcast %cst_117 : f32 to vector<8x128xf32>
    %256 = arith.mulf %255, %254 : vector<8x128xf32>
    %257 = math.tanh %256 : vector<8x128xf32>
    %cst_118 = arith.constant 5.000000e-01 : f32
    %258 = vector.broadcast %cst_118 : f32 to vector<8x128xf32>
    %259 = arith.mulf %258, %257 : vector<8x128xf32>
    %cst_119 = arith.constant 5.000000e-01 : f32
    %260 = vector.broadcast %cst_119 : f32 to vector<8x128xf32>
    %261 = arith.addf %259, %260 : vector<8x128xf32>
    %262 = vector.extract_strided_slice %253 {offsets = [0, 128], sizes = [8, 128], strides = [1, 1]} : vector<8x512xf32> to vector<8x128xf32>
    %cst_120 = arith.constant 5.000000e-01 : f32
    %263 = vector.broadcast %cst_120 : f32 to vector<8x128xf32>
    %264 = arith.mulf %263, %262 : vector<8x128xf32>
    %265 = math.tanh %264 : vector<8x128xf32>
    %cst_121 = arith.constant 5.000000e-01 : f32
    %266 = vector.broadcast %cst_121 : f32 to vector<8x128xf32>
    %267 = arith.mulf %266, %265 : vector<8x128xf32>
    %cst_122 = arith.constant 5.000000e-01 : f32
    %268 = vector.broadcast %cst_122 : f32 to vector<8x128xf32>
    %269 = arith.addf %267, %268 : vector<8x128xf32>
    %270 = vector.extract_strided_slice %253 {offsets = [0, 256], sizes = [8, 128], strides = [1, 1]} : vector<8x512xf32> to vector<8x128xf32>
    %271 = math.tanh %270 : vector<8x128xf32>
    %272 = vector.extract_strided_slice %253 {offsets = [0, 384], sizes = [8, 128], strides = [1, 1]} : vector<8x512xf32> to vector<8x128xf32>
    %cst_123 = arith.constant 5.000000e-01 : f32
    %273 = vector.broadcast %cst_123 : f32 to vector<8x128xf32>
    %274 = arith.mulf %273, %272 : vector<8x128xf32>
    %275 = math.tanh %274 : vector<8x128xf32>
    %cst_124 = arith.constant 5.000000e-01 : f32
    %276 = vector.broadcast %cst_124 : f32 to vector<8x128xf32>
    %277 = arith.mulf %276, %275 : vector<8x128xf32>
    %cst_125 = arith.constant 5.000000e-01 : f32
    %278 = vector.broadcast %cst_125 : f32 to vector<8x128xf32>
    %279 = arith.addf %277, %278 : vector<8x128xf32>
    %280 = arith.mulf %269, %211 : vector<8x128xf32>
    %281 = arith.mulf %261, %271 : vector<8x128xf32>
    %282 = arith.addf %280, %281 : vector<8x128xf32>
    %283 = math.tanh %282 : vector<8x128xf32>
    %284 = arith.mulf %279, %283 : vector<8x128xf32>
    %285 = tpu.concatenate %284, %249 in 1 : vector<8x128xf32>, vector<8x128xf32> -> vector<8x256xf32>
    %c0_126 = arith.constant 0 : index
    %c0_127 = arith.constant 0 : index
    %286 = vector.load %arg6[%c0_126, %c0_127] : memref<256x1024xf32, #tpu.memory_space<vmem>>, vector<256x1024xf32>
    %cst_128 = arith.constant dense<0.000000e+00> : vector<8x1024xf32>
    %287 = tpu.matmul %285, %286, %cst_128 {dimension_numbers = #tpu.dot_dimension_numbers<[1], [0], [0], [1], [0, 0, 1, 1], [], []>} : vector<8x256xf32>, vector<256x1024xf32>, vector<8x1024xf32> -> vector<8x1024xf32>
    %288 = vector.extract_strided_slice %287 {offsets = [0, 512], sizes = [8, 512], strides = [1, 1]} : vector<8x1024xf32> to vector<8x512xf32>
    %289 = arith.addf %288, %30 : vector<8x512xf32>
    %290 = vector.extract_strided_slice %289 {offsets = [0, 0], sizes = [8, 128], strides = [1, 1]} : vector<8x512xf32> to vector<8x128xf32>
    %cst_129 = arith.constant 5.000000e-01 : f32
    %291 = vector.broadcast %cst_129 : f32 to vector<8x128xf32>
    %292 = arith.mulf %291, %290 : vector<8x128xf32>
    %293 = math.tanh %292 : vector<8x128xf32>
    %cst_130 = arith.constant 5.000000e-01 : f32
    %294 = vector.broadcast %cst_130 : f32 to vector<8x128xf32>
    %295 = arith.mulf %294, %293 : vector<8x128xf32>
    %cst_131 = arith.constant 5.000000e-01 : f32
    %296 = vector.broadcast %cst_131 : f32 to vector<8x128xf32>
    %297 = arith.addf %295, %296 : vector<8x128xf32>
    %298 = vector.extract_strided_slice %289 {offsets = [0, 128], sizes = [8, 128], strides = [1, 1]} : vector<8x512xf32> to vector<8x128xf32>
    %cst_132 = arith.constant 5.000000e-01 : f32
    %299 = vector.broadcast %cst_132 : f32 to vector<8x128xf32>
    %300 = arith.mulf %299, %298 : vector<8x128xf32>
    %301 = math.tanh %300 : vector<8x128xf32>
    %cst_133 = arith.constant 5.000000e-01 : f32
    %302 = vector.broadcast %cst_133 : f32 to vector<8x128xf32>
    %303 = arith.mulf %302, %301 : vector<8x128xf32>
    %cst_134 = arith.constant 5.000000e-01 : f32
    %304 = vector.broadcast %cst_134 : f32 to vector<8x128xf32>
    %305 = arith.addf %303, %304 : vector<8x128xf32>
    %306 = vector.extract_strided_slice %289 {offsets = [0, 256], sizes = [8, 128], strides = [1, 1]} : vector<8x512xf32> to vector<8x128xf32>
    %307 = math.tanh %306 : vector<8x128xf32>
    %308 = vector.extract_strided_slice %289 {offsets = [0, 384], sizes = [8, 128], strides = [1, 1]} : vector<8x512xf32> to vector<8x128xf32>
    %cst_135 = arith.constant 5.000000e-01 : f32
    %309 = vector.broadcast %cst_135 : f32 to vector<8x128xf32>
    %310 = arith.mulf %309, %308 : vector<8x128xf32>
    %311 = math.tanh %310 : vector<8x128xf32>
    %cst_136 = arith.constant 5.000000e-01 : f32
    %312 = vector.broadcast %cst_136 : f32 to vector<8x128xf32>
    %313 = arith.mulf %312, %311 : vector<8x128xf32>
    %cst_137 = arith.constant 5.000000e-01 : f32
    %314 = vector.broadcast %cst_137 : f32 to vector<8x128xf32>
    %315 = arith.addf %313, %314 : vector<8x128xf32>
    %316 = arith.mulf %305, %247 : vector<8x128xf32>
    %317 = arith.mulf %297, %307 : vector<8x128xf32>
    %318 = arith.addf %316, %317 : vector<8x128xf32>
    %319 = math.tanh %318 : vector<8x128xf32>
    %320 = arith.mulf %315, %319 : vector<8x128xf32>
    %c24_138 = arith.constant 24 : index
    %c0_139 = arith.constant 0 : index
    %321 = vector.load %arg12[%c24_138, %c0_139] : memref<48x128xf32, #tpu.memory_space<vmem>>, vector<8x128xf32>
    tpu.vector_store %arg12[%c24_138, %c0_139], %320 {strides = array<i32>} : memref<48x128xf32, #tpu.memory_space<vmem>>, vector<8x128xf32>,
    %c32_140 = arith.constant 32 : index
    %c0_141 = arith.constant 0 : index
    %322 = vector.load %arg11[%c32_140, %c0_141] : memref<48x512xf32, #tpu.memory_space<vmem>>, vector<8x512xf32>
    %323 = vector.extract_strided_slice %287 {offsets = [0, 0], sizes = [8, 512], strides = [1, 1]} : vector<8x1024xf32> to vector<8x512xf32>
    %324 = arith.addf %322, %323 : vector<8x512xf32>
    %325 = vector.extract_strided_slice %324 {offsets = [0, 0], sizes = [8, 128], strides = [1, 1]} : vector<8x512xf32> to vector<8x128xf32>
    %cst_142 = arith.constant 5.000000e-01 : f32
    %326 = vector.broadcast %cst_142 : f32 to vector<8x128xf32>
    %327 = arith.mulf %326, %325 : vector<8x128xf32>
    %328 = math.tanh %327 : vector<8x128xf32>
    %cst_143 = arith.constant 5.000000e-01 : f32
    %329 = vector.broadcast %cst_143 : f32 to vector<8x128xf32>
    %330 = arith.mulf %329, %328 : vector<8x128xf32>
    %cst_144 = arith.constant 5.000000e-01 : f32
    %331 = vector.broadcast %cst_144 : f32 to vector<8x128xf32>
    %332 = arith.addf %330, %331 : vector<8x128xf32>
    %333 = vector.extract_strided_slice %324 {offsets = [0, 128], sizes = [8, 128], strides = [1, 1]} : vector<8x512xf32> to vector<8x128xf32>
    %cst_145 = arith.constant 5.000000e-01 : f32
    %334 = vector.broadcast %cst_145 : f32 to vector<8x128xf32>
    %335 = arith.mulf %334, %333 : vector<8x128xf32>
    %336 = math.tanh %335 : vector<8x128xf32>
    %cst_146 = arith.constant 5.000000e-01 : f32
    %337 = vector.broadcast %cst_146 : f32 to vector<8x128xf32>
    %338 = arith.mulf %337, %336 : vector<8x128xf32>
    %cst_147 = arith.constant 5.000000e-01 : f32
    %339 = vector.broadcast %cst_147 : f32 to vector<8x128xf32>
    %340 = arith.addf %338, %339 : vector<8x128xf32>
    %341 = vector.extract_strided_slice %324 {offsets = [0, 256], sizes = [8, 128], strides = [1, 1]} : vector<8x512xf32> to vector<8x128xf32>
    %342 = math.tanh %341 : vector<8x128xf32>
    %343 = vector.extract_strided_slice %324 {offsets = [0, 384], sizes = [8, 128], strides = [1, 1]} : vector<8x512xf32> to vector<8x128xf32>
    %cst_148 = arith.constant 5.000000e-01 : f32
    %344 = vector.broadcast %cst_148 : f32 to vector<8x128xf32>
    %345 = arith.mulf %344, %343 : vector<8x128xf32>
    %346 = math.tanh %345 : vector<8x128xf32>
    %cst_149 = arith.constant 5.000000e-01 : f32
    %347 = vector.broadcast %cst_149 : f32 to vector<8x128xf32>
    %348 = arith.mulf %347, %346 : vector<8x128xf32>
    %cst_150 = arith.constant 5.000000e-01 : f32
    %349 = vector.broadcast %cst_150 : f32 to vector<8x128xf32>
    %350 = arith.addf %348, %349 : vector<8x128xf32>
    %351 = arith.mulf %340, %282 : vector<8x128xf32>
    %352 = arith.mulf %332, %342 : vector<8x128xf32>
    %353 = arith.addf %351, %352 : vector<8x128xf32>
    %354 = math.tanh %353 : vector<8x128xf32>
    %355 = arith.mulf %350, %354 : vector<8x128xf32>
    %356 = tpu.concatenate %355, %320 in 1 : vector<8x128xf32>, vector<8x128xf32> -> vector<8x256xf32>
    %c0_151 = arith.constant 0 : index
    %c0_152 = arith.constant 0 : index
    %357 = vector.load %arg6[%c0_151, %c0_152] : memref<256x1024xf32, #tpu.memory_space<vmem>>, vector<256x1024xf32>
    %cst_153 = arith.constant dense<0.000000e+00> : vector<8x1024xf32>
    %358 = tpu.matmul %356, %357, %cst_153 {dimension_numbers = #tpu.dot_dimension_numbers<[1], [0], [0], [1], [0, 0, 1, 1], [], []>} : vector<8x256xf32>, vector<256x1024xf32>, vector<8x1024xf32> -> vector<8x1024xf32>
    %359 = vector.extract_strided_slice %358 {offsets = [0, 512], sizes = [8, 512], strides = [1, 1]} : vector<8x1024xf32> to vector<8x512xf32>
    %360 = arith.addf %359, %30 : vector<8x512xf32>
    %361 = vector.extract_strided_slice %360 {offsets = [0, 0], sizes = [8, 128], strides = [1, 1]} : vector<8x512xf32> to vector<8x128xf32>
    %cst_154 = arith.constant 5.000000e-01 : f32
    %362 = vector.broadcast %cst_154 : f32 to vector<8x128xf32>
    %363 = arith.mulf %362, %361 : vector<8x128xf32>
    %364 = math.tanh %363 : vector<8x128xf32>
    %cst_155 = arith.constant 5.000000e-01 : f32
    %365 = vector.broadcast %cst_155 : f32 to vector<8x128xf32>
    %366 = arith.mulf %365, %364 : vector<8x128xf32>
    %cst_156 = arith.constant 5.000000e-01 : f32
    %367 = vector.broadcast %cst_156 : f32 to vector<8x128xf32>
    %368 = arith.addf %366, %367 : vector<8x128xf32>
    %369 = vector.extract_strided_slice %360 {offsets = [0, 128], sizes = [8, 128], strides = [1, 1]} : vector<8x512xf32> to vector<8x128xf32>
    %cst_157 = arith.constant 5.000000e-01 : f32
    %370 = vector.broadcast %cst_157 : f32 to vector<8x128xf32>
    %371 = arith.mulf %370, %369 : vector<8x128xf32>
    %372 = math.tanh %371 : vector<8x128xf32>
    %cst_158 = arith.constant 5.000000e-01 : f32
    %373 = vector.broadcast %cst_158 : f32 to vector<8x128xf32>
    %374 = arith.mulf %373, %372 : vector<8x128xf32>
    %cst_159 = arith.constant 5.000000e-01 : f32
    %375 = vector.broadcast %cst_159 : f32 to vector<8x128xf32>
    %376 = arith.addf %374, %375 : vector<8x128xf32>
    %377 = vector.extract_strided_slice %360 {offsets = [0, 256], sizes = [8, 128], strides = [1, 1]} : vector<8x512xf32> to vector<8x128xf32>
    %378 = math.tanh %377 : vector<8x128xf32>
    %379 = vector.extract_strided_slice %360 {offsets = [0, 384], sizes = [8, 128], strides = [1, 1]} : vector<8x512xf32> to vector<8x128xf32>
    %cst_160 = arith.constant 5.000000e-01 : f32
    %380 = vector.broadcast %cst_160 : f32 to vector<8x128xf32>
    %381 = arith.mulf %380, %379 : vector<8x128xf32>
    %382 = math.tanh %381 : vector<8x128xf32>
    %cst_161 = arith.constant 5.000000e-01 : f32
    %383 = vector.broadcast %cst_161 : f32 to vector<8x128xf32>
    %384 = arith.mulf %383, %382 : vector<8x128xf32>
    %cst_162 = arith.constant 5.000000e-01 : f32
    %385 = vector.broadcast %cst_162 : f32 to vector<8x128xf32>
    %386 = arith.addf %384, %385 : vector<8x128xf32>
    %387 = arith.mulf %376, %318 : vector<8x128xf32>
    %388 = arith.mulf %368, %378 : vector<8x128xf32>
    %389 = arith.addf %387, %388 : vector<8x128xf32>
    %390 = math.tanh %389 : vector<8x128xf32>
    %391 = arith.mulf %386, %390 : vector<8x128xf32>
    %c32_163 = arith.constant 32 : index
    %c0_164 = arith.constant 0 : index
    %392 = vector.load %arg12[%c32_163, %c0_164] : memref<48x128xf32, #tpu.memory_space<vmem>>, vector<8x128xf32>
    tpu.vector_store %arg12[%c32_163, %c0_164], %391 {strides = array<i32>} : memref<48x128xf32, #tpu.memory_space<vmem>>, vector<8x128xf32>,
    %c40_165 = arith.constant 40 : index
    %c0_166 = arith.constant 0 : index
    %393 = vector.load %arg11[%c40_165, %c0_166] : memref<48x512xf32, #tpu.memory_space<vmem>>, vector<8x512xf32>
    %394 = vector.extract_strided_slice %358 {offsets = [0, 0], sizes = [8, 512], strides = [1, 1]} : vector<8x1024xf32> to vector<8x512xf32>
    %395 = arith.addf %393, %394 : vector<8x512xf32>
    %396 = vector.extract_strided_slice %395 {offsets = [0, 0], sizes = [8, 128], strides = [1, 1]} : vector<8x512xf32> to vector<8x128xf32>
    %cst_167 = arith.constant 5.000000e-01 : f32
    %397 = vector.broadcast %cst_167 : f32 to vector<8x128xf32>
    %398 = arith.mulf %397, %396 : vector<8x128xf32>
    %399 = math.tanh %398 : vector<8x128xf32>
    %cst_168 = arith.constant 5.000000e-01 : f32
    %400 = vector.broadcast %cst_168 : f32 to vector<8x128xf32>
    %401 = arith.mulf %400, %399 : vector<8x128xf32>
    %cst_169 = arith.constant 5.000000e-01 : f32
    %402 = vector.broadcast %cst_169 : f32 to vector<8x128xf32>
    %403 = arith.addf %401, %402 : vector<8x128xf32>
    %404 = vector.extract_strided_slice %395 {offsets = [0, 128], sizes = [8, 128], strides = [1, 1]} : vector<8x512xf32> to vector<8x128xf32>
    %cst_170 = arith.constant 5.000000e-01 : f32
    %405 = vector.broadcast %cst_170 : f32 to vector<8x128xf32>
    %406 = arith.mulf %405, %404 : vector<8x128xf32>
    %407 = math.tanh %406 : vector<8x128xf32>
    %cst_171 = arith.constant 5.000000e-01 : f32
    %408 = vector.broadcast %cst_171 : f32 to vector<8x128xf32>
    %409 = arith.mulf %408, %407 : vector<8x128xf32>
    %cst_172 = arith.constant 5.000000e-01 : f32
    %410 = vector.broadcast %cst_172 : f32 to vector<8x128xf32>
    %411 = arith.addf %409, %410 : vector<8x128xf32>
    %412 = vector.extract_strided_slice %395 {offsets = [0, 256], sizes = [8, 128], strides = [1, 1]} : vector<8x512xf32> to vector<8x128xf32>
    %413 = math.tanh %412 : vector<8x128xf32>
    %414 = vector.extract_strided_slice %395 {offsets = [0, 384], sizes = [8, 128], strides = [1, 1]} : vector<8x512xf32> to vector<8x128xf32>
    %cst_173 = arith.constant 5.000000e-01 : f32
    %415 = vector.broadcast %cst_173 : f32 to vector<8x128xf32>
    %416 = arith.mulf %415, %414 : vector<8x128xf32>
    %417 = math.tanh %416 : vector<8x128xf32>
    %cst_174 = arith.constant 5.000000e-01 : f32
    %418 = vector.broadcast %cst_174 : f32 to vector<8x128xf32>
    %419 = arith.mulf %418, %417 : vector<8x128xf32>
    %cst_175 = arith.constant 5.000000e-01 : f32
    %420 = vector.broadcast %cst_175 : f32 to vector<8x128xf32>
    %421 = arith.addf %419, %420 : vector<8x128xf32>
    %422 = arith.mulf %411, %353 : vector<8x128xf32>
    %423 = arith.mulf %403, %413 : vector<8x128xf32>
    %424 = arith.addf %422, %423 : vector<8x128xf32>
    %425 = math.tanh %424 : vector<8x128xf32>
    %426 = arith.mulf %421, %425 : vector<8x128xf32>
    %427 = tpu.concatenate %426, %391 in 1 : vector<8x128xf32>, vector<8x128xf32> -> vector<8x256xf32>
    %c0_176 = arith.constant 0 : index
    %c0_177 = arith.constant 0 : index
    %428 = vector.load %arg6[%c0_176, %c0_177] : memref<256x1024xf32, #tpu.memory_space<vmem>>, vector<256x1024xf32>
    %cst_178 = arith.constant dense<0.000000e+00> : vector<8x1024xf32>
    %429 = tpu.matmul %427, %428, %cst_178 {dimension_numbers = #tpu.dot_dimension_numbers<[1], [0], [0], [1], [0, 0, 1, 1], [], []>} : vector<8x256xf32>, vector<256x1024xf32>, vector<8x1024xf32> -> vector<8x1024xf32>
    %430 = vector.extract_strided_slice %429 {offsets = [0, 512], sizes = [8, 512], strides = [1, 1]} : vector<8x1024xf32> to vector<8x512xf32>
    %431 = arith.addf %430, %30 : vector<8x512xf32>
    %432 = vector.extract_strided_slice %431 {offsets = [0, 0], sizes = [8, 128], strides = [1, 1]} : vector<8x512xf32> to vector<8x128xf32>
    %cst_179 = arith.constant 5.000000e-01 : f32
    %433 = vector.broadcast %cst_179 : f32 to vector<8x128xf32>
    %434 = arith.mulf %433, %432 : vector<8x128xf32>
    %435 = math.tanh %434 : vector<8x128xf32>
    %cst_180 = arith.constant 5.000000e-01 : f32
    %436 = vector.broadcast %cst_180 : f32 to vector<8x128xf32>
    %437 = arith.mulf %436, %435 : vector<8x128xf32>
    %cst_181 = arith.constant 5.000000e-01 : f32
    %438 = vector.broadcast %cst_181 : f32 to vector<8x128xf32>
    %439 = arith.addf %437, %438 : vector<8x128xf32>
    %440 = vector.extract_strided_slice %431 {offsets = [0, 128], sizes = [8, 128], strides = [1, 1]} : vector<8x512xf32> to vector<8x128xf32>
    %cst_182 = arith.constant 5.000000e-01 : f32
    %441 = vector.broadcast %cst_182 : f32 to vector<8x128xf32>
    %442 = arith.mulf %441, %440 : vector<8x128xf32>
    %443 = math.tanh %442 : vector<8x128xf32>
    %cst_183 = arith.constant 5.000000e-01 : f32
    %444 = vector.broadcast %cst_183 : f32 to vector<8x128xf32>
    %445 = arith.mulf %444, %443 : vector<8x128xf32>
    %cst_184 = arith.constant 5.000000e-01 : f32
    %446 = vector.broadcast %cst_184 : f32 to vector<8x128xf32>
    %447 = arith.addf %445, %446 : vector<8x128xf32>
    %448 = vector.extract_strided_slice %431 {offsets = [0, 256], sizes = [8, 128], strides = [1, 1]} : vector<8x512xf32> to vector<8x128xf32>
    %449 = math.tanh %448 : vector<8x128xf32>
    %450 = vector.extract_strided_slice %431 {offsets = [0, 384], sizes = [8, 128], strides = [1, 1]} : vector<8x512xf32> to vector<8x128xf32>
    %cst_185 = arith.constant 5.000000e-01 : f32
    %451 = vector.broadcast %cst_185 : f32 to vector<8x128xf32>
    %452 = arith.mulf %451, %450 : vector<8x128xf32>
    %453 = math.tanh %452 : vector<8x128xf32>
    %cst_186 = arith.constant 5.000000e-01 : f32
    %454 = vector.broadcast %cst_186 : f32 to vector<8x128xf32>
    %455 = arith.mulf %454, %453 : vector<8x128xf32>
    %cst_187 = arith.constant 5.000000e-01 : f32
    %456 = vector.broadcast %cst_187 : f32 to vector<8x128xf32>
    %457 = arith.addf %455, %456 : vector<8x128xf32>
    %458 = arith.mulf %447, %389 : vector<8x128xf32>
    %459 = arith.mulf %439, %449 : vector<8x128xf32>
    %460 = arith.addf %458, %459 : vector<8x128xf32>
    %461 = math.tanh %460 : vector<8x128xf32>
    %462 = arith.mulf %457, %461 : vector<8x128xf32>
    %c40_188 = arith.constant 40 : index
    %c0_189 = arith.constant 0 : index
    %463 = vector.load %arg12[%c40_188, %c0_189] : memref<48x128xf32, #tpu.memory_space<vmem>>, vector<8x128xf32>
    tpu.vector_store %arg12[%c40_188, %c0_189], %462 {strides = array<i32>} : memref<48x128xf32, #tpu.memory_space<vmem>>, vector<8x128xf32>,
    %c0_190 = arith.constant 0 : index
    %c0_191 = arith.constant 0 : index
    %464 = vector.load %arg12[%c0_190, %c0_191] : memref<48x128xf32, #tpu.memory_space<vmem>>, vector<48x128xf32>
    %c0_192 = arith.constant 0 : index
    %c0_193 = arith.constant 0 : index
    %465 = vector.load %arg8[%c0_192, %c0_193] : memref<128x128xf32, #tpu.memory_space<vmem>>, vector<128x128xf32>
    %cst_194 = arith.constant dense<0.000000e+00> : vector<48x128xf32>
    %466 = tpu.matmul %464, %465, %cst_194 {dimension_numbers = #tpu.dot_dimension_numbers<[1], [0], [0], [1], [0, 0, 1, 1], [], []>} : vector<48x128xf32>, vector<128x128xf32>, vector<48x128xf32> -> vector<48x128xf32>
    %c0_195 = arith.constant 0 : index
    %c0_196 = arith.constant 0 : index
    %467 = vector.load %arg9[%c0_195, %c0_196] : memref<1x128xf32, #tpu.memory_space<vmem>>, vector<1x128xf32>
    %468 = vector.broadcast %467 : vector<1x128xf32> to vector<48x128xf32>
    %469 = arith.addf %466, %468 : vector<48x128xf32>
    %c0_197 = arith.constant 0 : index
    %c0_198 = arith.constant 0 : index
    %470 = vector.load %arg10[%c0_197, %c0_198] : memref<48x128xf32, #tpu.memory_space<vmem>>, vector<48x128xf32>
    tpu.vector_store %arg10[%c0_197, %c0_198], %469 {strides = array<i32>} : memref<48x128xf32, #tpu.memory_space<vmem>>, vector<48x128xf32>,
    return
  }
  func.func @transform_0(%arg0: i32) -> (i32, i32) {
    %c0_i32 = arith.constant 0 : i32
    %c0_i32_0 = arith.constant 0 : i32
    %c0_i32_1 = arith.constant 0 : i32
    return %c0_i32, %c0_i32_0 : i32, i32
  }
  func.func @transform_1(%arg0: i32) -> (i32, i32) {
    %c0_i32 = arith.constant 0 : i32
    %c0_i32_0 = arith.constant 0 : i32
    %c0_i32_1 = arith.constant 0 : i32
    return %c0_i32, %c0_i32_0 : i32, i32
  }
  func.func @transform_2(%arg0: i32) -> (i32, i32) {
    %c0_i32 = arith.constant 0 : i32
    %c0_i32_0 = arith.constant 0 : i32
    %c0_i32_1 = arith.constant 0 : i32
    return %c0_i32, %c0_i32_0 : i32, i32
  }
  func.func @transform_3(%arg0: i32) -> (i32, i32) {
    %c0_i32 = arith.constant 0 : i32
    %c0_i32_0 = arith.constant 0 : i32
    %c0_i32_1 = arith.constant 0 : i32
    return %c0_i32, %c0_i32_0 : i32, i32
  }
  func.func @transform_4(%arg0: i32) -> (i32, i32) {
    %c0_i32 = arith.constant 0 : i32
    %c0_i32_0 = arith.constant 0 : i32
    %c0_i32_1 = arith.constant 0 : i32
    return %c0_i32, %c0_i32_0 : i32, i32
  }
  func.func @transform_5(%arg0: i32) -> (i32, i32) {
    %c0_i32 = arith.constant 0 : i32
    %c0_i32_0 = arith.constant 0 : i32
    %c0_i32_1 = arith.constant 0 : i32
    return %c0_i32, %c0_i32_0 : i32, i32
  }
  func.func @transform_6(%arg0: i32) -> (i32, i32) {
    %c0_i32 = arith.constant 0 : i32
    %c0_i32_0 = arith.constant 0 : i32
    %c0_i32_1 = arith.constant 0 : i32
    return %c0_i32, %c0_i32_0 : i32, i32
  }
  func.func @transform_7(%arg0: i32) -> (i32, i32) {
    %c0_i32 = arith.constant 0 : i32
    %c0_i32_0 = arith.constant 0 : i32
    %c0_i32_1 = arith.constant 0 : i32
    return %c0_i32, %c0_i32_0 : i32, i32
  }
  func.func @transform_8(%arg0: i32) -> (i32, i32) {
    %c0_i32 = arith.constant 0 : i32
    %c0_i32_0 = arith.constant 0 : i32
    %c0_i32_1 = arith.constant 0 : i32
    return %c0_i32, %c0_i32_0 : i32, i32
  }
  func.func @transform_9(%arg0: i32) -> (i32, i32) {
    %c0_i32 = arith.constant 0 : i32
    %c0_i32_0 = arith.constant 0 : i32
    %c0_i32_1 = arith.constant 0 : i32
    return %c0_i32, %c0_i32_0 : i32, i32
  }
}

</mosaic_0001>

<bundles_post_ra>
// kernel: tpu_custom_call.1
= control target key start
LH: loop header
LB: loop body
LE: loop exit
PB: predicated region body
PF: predicated region fallthrough
CT: control target
= control target key end

     0   :  { %14 = vsyncpa [#allocation5], 0  ;;  %s7428_s0 = inlined_call_operand.hbm [shape: f32[48,64], index: 0, kind: input, shape index: {}]   ;;  %s7429_s1 = inlined_call_operand.hbm [shape: f32[8,256], index: 1, kind: input, shape index: {}]   ;;  %s7430_s2 = inlined_call_operand.hbm [shape: f32[64,512], index: 2, kind: input, shape index: {}]   ;;  %s7431_s3 = inlined_call_operand.hbm [shape: f32[256,512], index: 3, kind: input, shape index: {}]   ;;  %s7432_s4 = inlined_call_operand.vmem [shape: f32[1,512], index: 4, kind: input, shape index: {}]   ;;  %s7433_s5 = inlined_call_operand.hbm [shape: f32[256,1024], index: 5, kind: input, shape index: {}]   ;;  %s7434_s6 = inlined_call_operand.vmem [shape: f32[1,512], index: 6, kind: input, shape index: {}]   ;;  %s7435_s7 = inlined_call_operand.hbm [shape: f32[128,128], index: 7, kind: input, shape index: {}]   ;;  %s7436_s8 = inlined_call_operand.vmem [shape: f32[1,128], index: 8, kind: input, shape index: {}]   ;;  %s7437_s9 = inlined_call_operand.hbm [shape: f32[48,128], index: 9, kind: output, shape index: {}]  }
   0x1   :  { %15 = vsyncpa [#allocation8], 0 }
   0x2   :  { %16 = vsyncpa [#allocation11], 0 }
   0x3   :  { %17 = vsyncpa [#allocation14], 0 }
   0x4   :  { %18 = vsyncpa [#allocation6], 0  ;;  %s6490_s30 = smov [#allocation7]   ;;  %s6326_s13 = scalar_lea.hbm %s7429_s1, 256 }
   0x5   :  { %s37_s10 = sshll.u32 %s6490_s30, 4  ;;  %p6327_p0 = scmp.ne.s32.totalorder %s7429_s1, %s6326_s13  ;;  %s38_s10 = int_to_ptr.vmem [resolvable:$true] %s37_s10 }
   0x6   :  { %p6330_p1 = scmp.lt.u32.totalorder %s6326_s13, %s7429_s1 }
   0x8   :  { %p6332_p2 = pnand %p6330_p1, %p6327_p0 }
   0xa   :  { %6335 = shalt.err (!%p6332_p2)
}
   0xb   :  { %s6336_s18 = scalar_lea.vmem %s38_s10, 256  ;;  %p6341_p4 = scmp.lt.s32.totalorder %s38_s10, %s38_s10 }
   0xc   :  { %p6337_p3 = scmp.ne.s32.totalorder %s38_s10, %s6336_s18  ;;  %p6342_p5 = scmp.lt.s32.totalorder %s6336_s18, %s6336_s18 }
   0xe   :  { %p6343_p6 = por %p6342_p5, %p6341_p4 }
  0x10   :  { %p6344_p7 = pnand %p6343_p6, %p6337_p3 }
  0x12   :  { %6347 = shalt.err (!%p6344_p7)
}
  0x13   :  { %40 = dma.hbm_to_vmem [thread:$0]  %s7429_s1, 256, %s38_s10, [#allocation8]  }
  0x14   :  { %s6491_s21 = smov [#allocation10]   ;;  %s6492_s23 = smov [#allocation4]  }
  0x15   :  { %s58_s22 = sshll.u32 %s6491_s21, 4  ;;  %s24_s24 = sshll.u32 %s6492_s23, 4  ;;  %s59_s22 = int_to_ptr.vmem [resolvable:$true] %s58_s22  ;;  %s25_s24 = int_to_ptr.vmem [resolvable:$true] %s24_s24 }
  0x16   :  { %s6348_s27 = scalar_lea.hbm %s7431_s3, 16384 }
  0x17   :  { %p6349_p8 = scmp.ne.s32.totalorder %s7431_s3, %s6348_s27  ;;  %p6352_p9 = scmp.lt.u32.totalorder %s6348_s27, %s7431_s3 }
  0x19   :  { %p6354_p10 = pnand %p6352_p9, %p6349_p8 }
  0x1b   :  { %6357 = shalt.err (!%p6354_p10)
}
  0x1c   :  { %s6358_s1 = scalar_lea.vmem %s59_s22, 16384  ;;  %p6363_p12 = scmp.lt.s32.totalorder %s59_s22, %s59_s22 }
  0x1d   :  { %p6359_p11 = scmp.ne.s32.totalorder %s59_s22, %s6358_s1  ;;  %p6364_p13 = scmp.lt.s32.totalorder %s6358_s1, %s6358_s1 }
  0x1f   :  { %p6365_p0 = por %p6364_p13, %p6363_p12 }
  0x21   :  { %p6366_p1 = pnand %p6365_p0, %p6359_p11 }
  0x23   :  { %6369 = shalt.err (!%p6366_p1)
}
  0x24   :  { %s6493_s10 = smov 512   ;;  %s6494_s12 = smov 32  }
  0x25   :  { %64 = dma.hbm_to_vmem [thread:$0]  %s7431_s3, 16384, %s59_s22, [#allocation11], %s6493_s10, %s6493_s10, %s6494_s12  }
  0x26   :  { %s6370_s17 = scalar_lea.hbm %s7428_s0, 768 }
  0x27   :  { %p6371_p2 = scmp.ne.s32.totalorder %s7428_s0, %s6370_s17  ;;  %p6374_p3 = scmp.lt.u32.totalorder %s6370_s17, %s7428_s0 }
  0x29   :  { %p6376_p4 = pnand %p6374_p3, %p6371_p2 }
  0x2b   :  { %6379 = shalt.err (!%p6376_p4)
}
  0x2c   :  { %s6380_s23 = scalar_lea.vmem %s25_s24, 768  ;;  %p6385_p6 = scmp.lt.s32.totalorder %s25_s24, %s25_s24 }
  0x2d   :  { %p6381_p5 = scmp.ne.s32.totalorder %s25_s24, %s6380_s23  ;;  %p6386_p7 = scmp.lt.s32.totalorder %s6380_s23, %s6380_s23 }
  0x2f   :  { %p6387_p8 = por %p6386_p7, %p6385_p6 }
  0x31   :  { %p6388_p9 = pnand %p6387_p8, %p6381_p5 }
  0x33   :  { %6391 = shalt.err (!%p6388_p9)
}
  0x34   :  { %s6495_s3 = smov 128   ;;  %s6496_s22 = smov 8  }
  0x35   :  { %30 = dma.hbm_to_vmem [thread:$0]  %s7428_s0, 768, %s25_s24, [#allocation5], %s6495_s3, %s6495_s3, %s6496_s22  }
  0x36   :  { %s6497_s27 = smov [#allocation9]   ;;  %s6498_s29 = smov [#allocation12]  }
  0x37   :  { %s46_s28 = sshll.u32 %s6497_s27, 4  ;;  %s72_s30 = sshll.u32 %s6498_s29, 4  ;;  %s47_s28 = int_to_ptr.vmem [resolvable:$true] %s46_s28  ;;  %s73_s30 = int_to_ptr.vmem [resolvable:$true] %s72_s30 }
  0x38   :  { %s6392_s13 = scalar_lea.hbm %s7430_s2, 4096 }
  0x39   :  { %p6393_p10 = scmp.ne.s32.totalorder %s7430_s2, %s6392_s13  ;;  %p6396_p11 = scmp.lt.u32.totalorder %s6392_s13, %s7430_s2 }
  0x3b   :  { %p6398_p12 = pnand %p6396_p11, %p6393_p10 }
  0x3d   :  { %6401 = shalt.err (!%p6398_p12)
}
  0x3e   :  { %s6402_s0 = scalar_lea.vmem %s47_s28, 4096  ;;  %p6407_p0 = scmp.lt.s32.totalorder %s47_s28, %s47_s28 }
  0x3f   :  { %p6403_p13 = scmp.ne.s32.totalorder %s47_s28, %s6402_s0  ;;  %p6408_p1 = scmp.lt.s32.totalorder %s6402_s0, %s6402_s0 }
  0x41   :  { %p6409_p2 = por %p6408_p1, %p6407_p0 }
  0x43   :  { %p6410_p3 = pnand %p6409_p2, %p6403_p13 }
  0x45   :  { %6413 = shalt.err (!%p6410_p3)
}
  0x46   :  { %52 = dma.hbm_to_vmem [thread:$0]  %s7430_s2, 4096, %s47_s28, [#allocation8], %s6493_s10, %s6493_s10, %s6494_s12  }
  0x47   :  { %s6414_s21 = scalar_lea.hbm %s7433_s5, 32768 }
  0x48   :  { %p6415_p4 = scmp.ne.s32.totalorder %s7433_s5, %s6414_s21  ;;  %p6418_p5 = scmp.lt.u32.totalorder %s6414_s21, %s7433_s5 }
  0x4a   :  { %p6420_p6 = pnand %p6418_p5, %p6415_p4 }
  0x4c   :  { %6423 = shalt.err (!%p6420_p6)
}
  0x4d   :  { %s6424_s29 = scalar_lea.vmem %s73_s30, 32768  ;;  %p6429_p8 = scmp.lt.s32.totalorder %s73_s30, %s73_s30 }
  0x4e   :  { %p6425_p7 = scmp.ne.s32.totalorder %s73_s30, %s6424_s29  ;;  %p6430_p9 = scmp.lt.s32.totalorder %s6424_s29, %s6424_s29 }
  0x50   :  { %p6431_p10 = por %p6430_p9, %p6429_p8 }
  0x52   :  { %p6432_p11 = pnand %p6431_p10, %p6425_p7 }
  0x54   :  { %6435 = shalt.err (!%p6432_p11)
}
  0x55   :  { %s6499_s2 = smov 1024   ;;  %s6500_s10 = smov 64  }
  0x56   :  { %78 = dma.hbm_to_vmem [thread:$0]  %s7433_s5, 32768, %s73_s30, [#allocation11], %s6499_s2, %s6499_s2, %s6500_s10  }
  0x57   :  { %s6501_s11 = smov [#allocation13]   ;;  %s6436_s15 = scalar_lea.hbm %s7435_s7, 2048 }
  0x58   :  { %s86_s1 = sshll.u32 %s6501_s11, 4  ;;  %p6437_p12 = scmp.ne.s32.totalorder %s7435_s7, %s6436_s15  ;;  %s87_s1 = int_to_ptr.vmem [resolvable:$true] %s86_s1 }
  0x59   :  { %p6440_p13 = scmp.lt.u32.totalorder %s6436_s15, %s7435_s7 }
  0x5b   :  { %p6442_p0 = pnand %p6440_p13, %p6437_p12 }
  0x5d   :  { %6445 = shalt.err (!%p6442_p0)
}
  0x5e   :  { %s6446_s18 = scalar_lea.vmem %s87_s1, 2048  ;;  %p6451_p2 = scmp.lt.s32.totalorder %s87_s1, %s87_s1 }
  0x5f   :  { %p6447_p1 = scmp.ne.s32.totalorder %s87_s1, %s6446_s18  ;;  %p6452_p3 = scmp.lt.s32.totalorder %s6446_s18, %s6446_s18 }
  0x61   :  { %p6453_p4 = por %p6452_p3, %p6451_p2 }
  0x63   :  { %p6454_p5 = pnand %p6453_p4, %p6447_p1 }
  0x65   :  { %6457 = shalt.err (!%p6454_p5)
}
  0x66   :  { %92 = dma.hbm_to_vmem [thread:$0]  %s7435_s7, 2048, %s87_s1, [#allocation14], %s6495_s3, %s6495_s3, %s6496_s22  }
  0x67   :  { %6480 = dma.done.wait [#allocation5], 768  }
  0x68   :  { %6481 = vsyncadd [#allocation5], 4294966528 }
  0x69   :  { %6482 = dma.done.wait [#allocation8], 4352  }
  0x6a   :  { %6483 = vsyncadd [#allocation8], 4294962944 }
  0x6b   :  { %6484 = dma.done.wait [#allocation11], 49152  }
  0x6c   :  { %6485 = vsyncadd [#allocation11], 4294918144 }
  0x6d   :  { %6486 = dma.done.wait [#allocation14], 2048  }
  0x6e   :  { %6487 = vsyncadd [#allocation14], 4294965248  ;;  %v6502_v0 = vmov 0.0   ;;  %v120_v1 = vld [vmem:[#allocation9 + $0x8] sm:$0xff]  ;;  %v119_v6 = vld [vmem:[#allocation9] sm:$0xff]  ;;  %vm151_vm0 = vcmask 523264  }
  0x6f   :  { %234 = vmatprep.mubr.f32.mxu1 %v6502_v0  ;;  %v124_v2 = vld [vmem:[#allocation9 + $0x28] sm:$0xff]  ;;  %v123_v7 = vld [vmem:[#allocation9 + $0x20] sm:$0xff]  ;;  %v122_v47 = vld [vmem:[#allocation9 + $0x18] sm:$0xff]  ;;  %s6503_s23 = smov [#allocation15]  }
  0x70   :  { %v399_v3 = vld [vmem:[#allocation10 + $0x8] sm:$0xff]  ;;  %v4416_v4 = vpack.c.bf16 %v124_v2, %v120_v1  ;;  %v4418_v9 = vpack.c.bf16 %v123_v7, %v119_v6  ;;  %v398_v10 = vld [vmem:[#allocation10] sm:$0xff]  ;;  %v126_v48 = vld [vmem:[#allocation9 + $0x38] sm:$0xff]  ;;  %s4325_s25 = sshll.u32 %s6503_s23, 4  ;;  %s4326_s25 = int_to_ptr.vmem [resolvable:$true] %s4325_s25 }
  0x71   :  { %v403_v5 = vld [vmem:[#allocation10 + $0x28] sm:$0xff]  ;;  %v402_v11 = vld [vmem:[#allocation10 + $0x20] sm:$0xff]  ;;  %v4432_v53 = vpack.c.bf16 %v126_v48, %v122_v47  ;;  %v121_v54 = vld [vmem:[#allocation9 + $0x10] sm:$0xff]  ;;  %p6463_p7 = scmp.lt.s32.totalorder %s4326_s25, %s4326_s25 }
  0x72   :  { %v4448_v8 = vpack.c.bf16 %v403_v5, %v399_v3  ;;  %v128_v12 = vld [vmem:[#allocation9 + $0x48] sm:$0xff]  ;;  %4417 = vmatprep.subr.bf16.mxu1 %v4416_v4  ;;  %v4450_v13 = vpack.c.bf16 %v402_v11, %v398_v10  ;;  %v127_v19 = vld [vmem:[#allocation9 + $0x40] sm:$0xff]  ;;  %v125_v55 = vld [vmem:[#allocation9 + $0x30] sm:$0xff] }
  0x73   :  { %v132_v14 = vld [vmem:[#allocation9 + $0x68] sm:$0xff]  ;;  %4419 = vmatpush1.bf16.msra.mxu1 %v4418_v9  ;;  %v131_v20 = vld [vmem:[#allocation9 + $0x60] sm:$0xff]  ;;  %v130_v61 = vld [vmem:[#allocation9 + $0x58] sm:$0xff]  ;;  %v4434_v1 = vpack.c.bf16 %v125_v55, %v121_v54 }
  0x74   :  { %v407_v15 = vld [vmem:[#allocation10 + $0x48] sm:$0xff]  ;;  %4449 = vmatprep.subr.bf16.mxu0 %v4448_v8  ;;  %v4420_v17 = vpack.c.bf16 %v132_v14, %v128_v12  ;;  %v406_v21 = vld [vmem:[#allocation10 + $0x40] sm:$0xff]  ;;  %v4422_v22 = vpack.c.bf16 %v131_v20, %v127_v19  ;;  %v134_v62 = vld [vmem:[#allocation9 + $0x78] sm:$0xff] }
  0x75   :  { %v411_v16 = vld [vmem:[#allocation10 + $0x68] sm:$0xff]  ;;  %4451 = vmatpush1.bf16.msra.mxu0 %v4450_v13  ;;  %v410_v23 = vld [vmem:[#allocation10 + $0x60] sm:$0xff]  ;;  %v4436_v3 = vpack.c.bf16 %v134_v62, %v130_v61  ;;  %v129_v4 = vld [vmem:[#allocation9 + $0x50] sm:$0xff] }
  0x76   :  { %v4452_v18 = vpack.c.bf16 %v411_v16, %v407_v15  ;;  %v136_v24 = vld [vmem:[#allocation9 + $0x88] sm:$0xff]  ;;  %4421 = vmatprep.subr.bf16.mxu1 %v4420_v17  ;;  %v4454_v26 = vpack.c.bf16 %v410_v23, %v406_v21  ;;  %v135_v30 = vld [vmem:[#allocation9 + $0x80] sm:$0xff]  ;;  %v133_v5 = vld [vmem:[#allocation9 + $0x70] sm:$0xff] }
  0x77   :  { %v140_v25 = vld [vmem:[#allocation9 + $0xa8] sm:$0xff]  ;;  %v139_v32 = vld [vmem:[#allocation9 + $0xa0] sm:$0xff]  ;;  %4423 = vmatpush1.bf16.msra.mxu1 %v4422_v22  ;;  %v138_v9 = vld [vmem:[#allocation9 + $0x98] sm:$0xff]  ;;  %v4438_v14 = vpack.c.bf16 %v133_v5, %v129_v4 }
  0x78   :  { %4453 = vmatprep.subr.bf16.mxu0 %v4452_v18  ;;  %v4424_v27 = vpack.c.bf16 %v140_v25, %v136_v24  ;;  %v415_v28 = vld [vmem:[#allocation10 + $0x88] sm:$0xff]  ;;  %v414_v33 = vld [vmem:[#allocation10 + $0x80] sm:$0xff]  ;;  %v4426_v35 = vpack.c.bf16 %v139_v32, %v135_v30  ;;  %v142_v12 = vld [vmem:[#allocation9 + $0xb8] sm:$0xff] }
  0x79   :  { %v419_v29 = vld [vmem:[#allocation10 + $0xa8] sm:$0xff]  ;;  %v418_v34 = vld [vmem:[#allocation10 + $0xa0] sm:$0xff]  ;;  %4455 = vmatpush1.bf16.msra.mxu0 %v4454_v26  ;;  %v4440_v16 = vpack.c.bf16 %v142_v12, %v138_v9  ;;  %v137_v17 = vld [vmem:[#allocation9 + $0x90] sm:$0xff] }
  0x7a   :  { %v4456_v31 = vpack.c.bf16 %v419_v29, %v415_v28  ;;  %v144_v36 = vld [vmem:[#allocation9 + $0xc8] sm:$0xff]  ;;  %4425 = vmatprep.subr.bf16.mxu1 %v4424_v27  ;;  %v4458_v39 = vpack.c.bf16 %v418_v34, %v414_v33  ;;  %v143_v42 = vld [vmem:[#allocation9 + $0xc0] sm:$0xff]  ;;  %v141_v18 = vld [vmem:[#allocation9 + $0xb0] sm:$0xff] }
  0x7b   :  { %v148_v37 = vld [vmem:[#allocation9 + $0xe8] sm:$0xff]  ;;  %v147_v43 = vld [vmem:[#allocation9 + $0xe0] sm:$0xff]  ;;  %4427 = vmatpush1.bf16.msra.mxu1 %v4426_v35  ;;  %v146_v24 = vld [vmem:[#allocation9 + $0xd8] sm:$0xff]  ;;  %v4442_v27 = vpack.c.bf16 %v141_v18, %v137_v17 }
  0x7c   :  { %v423_v38 = vld [vmem:[#allocation10 + $0xc8] sm:$0xff]  ;;  %v4428_v40 = vpack.c.bf16 %v148_v37, %v144_v36  ;;  %4457 = vmatprep.subr.bf16.mxu0 %v4456_v31  ;;  %v422_v45 = vld [vmem:[#allocation10 + $0xc0] sm:$0xff]  ;;  %v4430_v50 = vpack.c.bf16 %v147_v43, %v143_v42  ;;  %v150_v25 = vld [vmem:[#allocation9 + $0xf8] sm:$0xff] }
  0x7d   :  { %v427_v41 = vld [vmem:[#allocation10 + $0xe8] sm:$0xff]  ;;  %v426_v46 = vld [vmem:[#allocation10 + $0xe0] sm:$0xff]  ;;  %4459 = vmatpush1.bf16.msra.mxu0 %v4458_v39  ;;  %v6649_v26 = vld [vmem:[#allocation4 + $0x10] sm:$0xff]  ;;  %v4444_v30 = vpack.c.bf16 %v150_v25, %v146_v24 }
  0x7e   :  { %v4460_v44 = vpack.c.bf16 %v427_v41, %v423_v38  ;;  %v431_v49 = vld [vmem:[#allocation10 + $0x108] sm:$0xff]  ;;  %4429 = vmatprep.subr.bf16.mxu1 %v4428_v40  ;;  %v4462_v52 = vpack.c.bf16 %v426_v46, %v422_v45  ;;  %v430_v57 = vld [vmem:[#allocation10 + $0x100] sm:$0xff]  ;;  %v145_v31 = vld [vmem:[#allocation9 + $0xd0] sm:$0xff] }
  0x7f   :  { %v435_v51 = vld [vmem:[#allocation10 + $0x128] sm:$0xff]  ;;  %v434_v58 = vld [vmem:[#allocation10 + $0x120] sm:$0xff]  ;;  %4431 = vmatpush1.bf16.msra.mxu1 %v4430_v50  ;;  %v149_v32 = vld [vmem:[#allocation9 + $0xf0] sm:$0xff] }
  0x80   :  { %4461 = vmatprep.subr.bf16.mxu0 %v4460_v44  ;;  %v4464_v56 = vpack.c.bf16 %v435_v51, %v431_v49  ;;  %v439_v59 = vld [vmem:[#allocation10 + $0x148] sm:$0xff]  ;;  %v6639_v63 = vld [vmem:[#allocation4] sm:$0xff]  ;;  %4433 = vmatprep.subr.bf16.mxu1 %v4432_v53  ;;  %v4466_v2 = vpack.c.bf16 %v434_v58, %v430_v57  ;;  %v401_v35 = vld [vmem:[#allocation10 + $0x18] sm:$0xff]  ;;  %v4446_v40 = vpack.c.bf16 %v149_v32, %v145_v31 }
  0x81   :  { %v443_v60 = vld [vmem:[#allocation10 + $0x168] sm:$0xff]  ;;  %4463 = vmatpush1.bf16.msra.mxu0 %v4462_v52  ;;  %v438_v7 = vld [vmem:[#allocation10 + $0x140] sm:$0xff]  ;;  %v405_v36 = vld [vmem:[#allocation10 + $0x38] sm:$0xff] }
  0x82   :  { %4465 = vmatprep.subr.bf16.mxu0 %v4464_v56  ;;  %v4468_v6 = vpack.c.bf16 %v443_v60, %v439_v59  ;;  %v442_v8 = vld [vmem:[#allocation10 + $0x160] sm:$0xff]  ;;  %4340 = vmatmul.mubr.msk.f32.vlgmr.msra.gmra.mrb[0].mxu1 %vm151_vm0, %v6639_v63  ;;  %v447_v10 = vld [vmem:[#allocation10 + $0x188] sm:$0xff]  ;;  %v6654_v39 = vld [vmem:[#allocation4 + $0x18] sm:$0xff]  ;;  %v4512_v42 = vpack.c.bf16 %v405_v36, %v401_v35 }
  0x83   :  { %v451_v11 = vld [vmem:[#allocation10 + $0x1a8] sm:$0xff]  ;;  %4435 = vmatpush1.bf16.msra.mxu1 %v4434_v1  ;;  %240 = vmatprep.mubr.f32.mxu1 %v6502_v0  ;;  %v4470_v15 = vpack.c.bf16 %v442_v8, %v438_v7  ;;  %v446_v20 = vld [vmem:[#allocation10 + $0x180] sm:$0xff]  ;;  %v400_v57 = vld [vmem:[#allocation10 + $0x10] sm:$0xff] }
  0x84   :  { %v6644_v13 = vld [vmem:[#allocation4 + $0x8] sm:$0xff]  ;;  %4437 = vmatprep.subr.bf16.mxu1 %v4436_v3  ;;  %v4472_v19 = vpack.c.bf16 %v451_v11, %v447_v10  ;;  %v450_v21 = vld [vmem:[#allocation10 + $0x1a0] sm:$0xff]  ;;  %v404_v58 = vld [vmem:[#allocation10 + $0x30] sm:$0xff] }
  0x85   :  { %4467 = vmatpush1.bf16.msra.mxu0 %v4466_v2  ;;  %v455_v22 = vld [vmem:[#allocation10 + $0x1c8] sm:$0xff]  ;;  %v4474_v28 = vpack.c.bf16 %v450_v21, %v446_v20  ;;  %v454_v29 = vld [vmem:[#allocation10 + $0x1c0] sm:$0xff]  ;;  %v409_v62 = vld [vmem:[#allocation10 + $0x58] sm:$0xff]  ;;  %v4514_v4 = vpack.c.bf16 %v404_v58, %v400_v57 }
  0x86   :  { %4469 = vmatprep.subr.bf16.mxu0 %v4468_v6  ;;  %4341 = vmatmul.mubr.msk.f32.gmra.mrb[2].mxu1 %vm151_vm0, %v6644_v13  ;;  %v459_v23 = vld [vmem:[#allocation10 + $0x1e8] sm:$0xff]  ;;  %v458_v34 = vld [vmem:[#allocation10 + $0x1e0] sm:$0xff]  ;;  %v413_v1 = vld [vmem:[#allocation10 + $0x78] sm:$0xff] }
  0x87   :  { %246 = vmatprep.mubr.f32.mxu1 %v6502_v0  ;;  %4439 = vmatpush1.bf16.msra.mxu1 %v4438_v14  ;;  %v4476_v33 = vpack.c.bf16 %v459_v23, %v455_v22  ;;  %v463_v37 = vld [vmem:[#allocation10 + $0x208] sm:$0xff]  ;;  %v4478_v41 = vpack.c.bf16 %v458_v34, %v454_v29  ;;  %v462_v44 = vld [vmem:[#allocation10 + $0x200] sm:$0xff]  ;;  %v408_v5 = vld [vmem:[#allocation10 + $0x50] sm:$0xff]  ;;  %v4516_v7 = vpack.c.bf16 %v413_v1, %v409_v62 }
  0x88   :  { %4441 = vmatprep.subr.bf16.mxu1 %v4440_v16  ;;  %v467_v38 = vld [vmem:[#allocation10 + $0x228] sm:$0xff]  ;;  %v466_v45 = vld [vmem:[#allocation10 + $0x220] sm:$0xff]  ;;  %v412_v8 = vld [vmem:[#allocation10 + $0x70] sm:$0xff] }
  0x89   :  { %4471 = vmatpush1.bf16.msra.mxu0 %v4470_v15  ;;  %v4480_v43 = vpack.c.bf16 %v467_v38, %v463_v37  ;;  %v471_v46 = vld [vmem:[#allocation10 + $0x248] sm:$0xff]  ;;  %v6659_v48 = vld [vmem:[#allocation4 + $0x20] sm:$0xff]  ;;  %v4482_v49 = vpack.c.bf16 %v466_v45, %v462_v44  ;;  %v417_v12 = vld [vmem:[#allocation10 + $0x98] sm:$0xff]  ;;  %v4518_v18 = vpack.c.bf16 %v412_v8, %v408_v5 }
  0x8a   :  { %4473 = vmatprep.subr.bf16.mxu0 %v4472_v19  ;;  %4342 = vmatmul.mubr.msk.f32.gmra.mrb[4].mxu1 %vm151_vm0, %v6649_v26  ;;  %v475_v47 = vld [vmem:[#allocation10 + $0x268] sm:$0xff]  ;;  %v470_v51 = vld [vmem:[#allocation10 + $0x240] sm:$0xff]  ;;  %v421_v14 = vld [vmem:[#allocation10 + $0xb8] sm:$0xff] }
  0x8b   :  { %252 = vmatprep.mubr.f32.mxu1 %v6502_v0  ;;  %4443 = vmatpush1.bf16.msra.mxu1 %v4442_v27  ;;  %v4484_v50 = vpack.c.bf16 %v475_v47, %v471_v46  ;;  %v474_v52 = vld [vmem:[#allocation10 + $0x260] sm:$0xff]  ;;  %v479_v53 = vld [vmem:[#allocation10 + $0x288] sm:$0xff]  ;;  %v6669_v15 = vld [vmem:[#allocation7 + $0x8] sm:$0xff]  ;;  %v4520_v20 = vpack.c.bf16 %v421_v14, %v417_v12 }
  0x8c   :  { %4445 = vmatprep.subr.bf16.mxu1 %v4444_v30  ;;  %v483_v54 = vld [vmem:[#allocation10 + $0x2a8] sm:$0xff]  ;;  %v4486_v56 = vpack.c.bf16 %v474_v52, %v470_v51  ;;  %v478_v59 = vld [vmem:[#allocation10 + $0x280] sm:$0xff]  ;;  %612 = vmatprep.mubr.f32.mxu0 %v6669_v15  ;;  %v416_v21 = vld [vmem:[#allocation10 + $0x90] sm:$0xff] }
  0x8d   :  { %4475 = vmatpush1.bf16.msra.mxu0 %v4474_v28  ;;  %v6664_v55 = vld [vmem:[#allocation4 + $0x28] sm:$0xff]  ;;  %v4488_v60 = vpack.c.bf16 %v483_v54, %v479_v53  ;;  %v482_v61 = vld [vmem:[#allocation10 + $0x2a0] sm:$0xff]  ;;  %v420_v22 = vld [vmem:[#allocation10 + $0xb0] sm:$0xff] }
  0x8e   :  { %4477 = vmatprep.subr.bf16.mxu0 %v4476_v33  ;;  %4343 = vmatmul.mubr.msk.f32.gmra.mrb[6].mxu1 %vm151_vm0, %v6654_v39  ;;  %v487_v2 = vld [vmem:[#allocation10 + $0x2c8] sm:$0xff]  ;;  %v4490_v6 = vpack.c.bf16 %v482_v61, %v478_v59  ;;  %v486_v9 = vld [vmem:[#allocation10 + $0x2c0] sm:$0xff]  ;;  %v425_v27 = vld [vmem:[#allocation10 + $0xd8] sm:$0xff]  ;;  %v4522_v30 = vpack.c.bf16 %v420_v22, %v416_v21 }
  0x8f   :  { %258 = vmatprep.mubr.f32.mxu1 %v6502_v0  ;;  %4447 = vmatpush1.bf16.msra.mxu1 %v4446_v40  ;;  %v491_v3 = vld [vmem:[#allocation10 + $0x2e8] sm:$0xff]  ;;  %v490_v10 = vld [vmem:[#allocation10 + $0x2e0] sm:$0xff]  ;;  %v424_v33 = vld [vmem:[#allocation10 + $0xd0] sm:$0xff] }
  0x90   :  { %4513 = vmatprep.subr.bf16.mxu1 %v4512_v42  ;;  %v4492_v11 = vpack.c.bf16 %v491_v3, %v487_v2  ;;  %v495_v16 = vld [vmem:[#allocation10 + $0x308] sm:$0xff]  ;;  %v4494_v19 = vpack.c.bf16 %v490_v10, %v486_v9  ;;  %v494_v23 = vld [vmem:[#allocation10 + $0x300] sm:$0xff]  ;;  %v428_v34 = vld [vmem:[#allocation10 + $0xf0] sm:$0xff] }
  0x91   :  { %4479 = vmatpush1.bf16.msra.mxu0 %v4478_v41  ;;  %v499_v17 = vld [vmem:[#allocation10 + $0x328] sm:$0xff]  ;;  %v498_v25 = vld [vmem:[#allocation10 + $0x320] sm:$0xff]  ;;  %v433_v38 = vld [vmem:[#allocation10 + $0x118] sm:$0xff] }
  0x92   :  { %4481 = vmatprep.subr.bf16.mxu0 %v4480_v43  ;;  %4344 = vmatmul.mubr.msk.f32.gmra.mrb[8].mxu1 %vm151_vm0, %v6659_v48  ;;  %v4496_v24 = vpack.c.bf16 %v499_v17, %v495_v16  ;;  %v503_v28 = vld [vmem:[#allocation10 + $0x348] sm:$0xff]  ;;  %v4498_v31 = vpack.c.bf16 %v498_v25, %v494_v23  ;;  %v502_v35 = vld [vmem:[#allocation10 + $0x340] sm:$0xff]  ;;  %v437_v40 = vld [vmem:[#allocation10 + $0x138] sm:$0xff] }
  0x93   :  { %264 = vmatprep.mubr.f32.mxu1 %v6502_v0  ;;  %v507_v29 = vld [vmem:[#allocation10 + $0x368] sm:$0xff]  ;;  %v506_v37 = vld [vmem:[#allocation10 + $0x360] sm:$0xff]  ;;  %v4528_v44 = vpack.c.bf16 %v437_v40, %v433_v38  ;;  %v432_v45 = vld [vmem:[#allocation10 + $0x110] sm:$0xff] }
  0x94   :  { %v4500_v36 = vpack.c.bf16 %v507_v29, %v503_v28  ;;  %v511_v41 = vld [vmem:[#allocation10 + $0x388] sm:$0xff]  ;;  %v4502_v43 = vpack.c.bf16 %v506_v37, %v502_v35  ;;  %v436_v46 = vld [vmem:[#allocation10 + $0x130] sm:$0xff]  ;;  %v510_v47 = vld [vmem:[#allocation10 + $0x380] sm:$0xff] }
  0x95   :  { %4483 = vmatpush1.bf16.msra.mxu0 %v4482_v49  ;;  %v515_v42 = vld [vmem:[#allocation10 + $0x3a8] sm:$0xff]  ;;  %v441_v51 = vld [vmem:[#allocation10 + $0x158] sm:$0xff]  ;;  %v440_v58 = vld [vmem:[#allocation10 + $0x150] sm:$0xff] }
  0x96   :  { %4485 = vmatprep.subr.bf16.mxu0 %v4484_v50  ;;  %4345 = vmatmul.mubr.msk.f32.gmra.mrb[10].mxu1 %vm151_vm0, %v6664_v55  ;;  %v4504_v49 = vpack.c.bf16 %v515_v42, %v511_v41  ;;  %v514_v50 = vld [vmem:[#allocation10 + $0x3a0] sm:$0xff]  ;;  %v445_v52 = vld [vmem:[#allocation10 + $0x178] sm:$0xff]  ;;  %v519_v53 = vld [vmem:[#allocation10 + $0x3c8] sm:$0xff] }
  0x97   :  { %335 = vmatprep.mubr.f32.mxu1 %v6502_v0  ;;  %v523_v54 = vld [vmem:[#allocation10 + $0x3e8] sm:$0xff]  ;;  %v4532_v57 = vpack.c.bf16 %v445_v52, %v441_v51  ;;  %v444_v59 = vld [vmem:[#allocation10 + $0x170] sm:$0xff]  ;;  %v522_v62 = vld [vmem:[#allocation10 + $0x3e0] sm:$0xff] }
  0x98   :  { %v4508_v61 = vpack.c.bf16 %v523_v54, %v519_v53  ;;  %v449_v1 = vld [vmem:[#allocation10 + $0x198] sm:$0xff]  ;;  %v785_v3 = vld [vmem:[#allocation12 + $0x8] sm:$0xff]  ;;  %v452_v8 = vld [vmem:[#allocation10 + $0x1b0] sm:$0xff] }
  0x99   :  { %4487 = vmatpush1.bf16.msra.mxu0 %v4486_v56  ;;  %v4506_v56 = vpack.c.bf16 %v514_v50, %v510_v47  ;;  %v453_v2 = vld [vmem:[#allocation10 + $0x1b8] sm:$0xff]  ;;  %v784_v9 = vld [vmem:[#allocation12] sm:$0xff]  ;;  %v801_v16 = vld [vmem:[#allocation12 + $0x88] sm:$0xff] }
  0x9a   :  { %4489 = vmatprep.subr.bf16.mxu0 %v4488_v60  ;;  %4346 = vmatmul.mubr.msk.f32.vlgmr.msra.gmra.mrb[12].mxu1 %vm151_vm0, %v6639_v63  ;;  %v429_v63 = vld [vmem:[#allocation10 + $0xf8] sm:$0xff]  ;;  %v518_v60 = vld [vmem:[#allocation10 + $0x3c0] sm:$0xff]  ;;  %v809_v17 = vld [vmem:[#allocation12 + $0xc8] sm:$0xff] }
  0x9b   :  { %4515 = vmatpush1.bf16.msra.mxu1 %v4514_v4  ;;  %341 = vmatprep.mubr.f32.mxu1 %v6502_v0  ;;  %v4524_v32 = vpack.c.bf16 %v429_v63, %v425_v27  ;;  %v793_v4 = vld [vmem:[#allocation12 + $0x48] sm:$0xff]  ;;  %v4510_v5 = vpack.c.bf16 %v522_v62, %v518_v60  ;;  %v457_v12 = vld [vmem:[#allocation10 + $0x1d8] sm:$0xff]  ;;  %v456_v21 = vld [vmem:[#allocation10 + $0x1d0] sm:$0xff] }
  0x9c   :  { %4517 = vmatprep.subr.bf16.mxu1 %v4516_v7  ;;  %v448_v7 = vld [vmem:[#allocation10 + $0x190] sm:$0xff]  ;;  %v6687_v10 = vpack.c.bf16 %v793_v4, %v785_v3  ;;  %v461_v14 = vld [vmem:[#allocation10 + $0x1f8] sm:$0xff]  ;;  %v800_v23 = vld [vmem:[#allocation12 + $0x80] sm:$0xff] }
  0x9d   :  { %4491 = vmatpush1.bf16.msra.mxu0 %v4490_v6  ;;  %v4536_v6 = vpack.c.bf16 %v453_v2, %v449_v1  ;;  %v460_v22 = vld [vmem:[#allocation10 + $0x1f0] sm:$0xff]  ;;  %v808_v25 = vld [vmem:[#allocation12 + $0xc0] sm:$0xff]  ;;  %v469_v27 = vld [vmem:[#allocation10 + $0x238] sm:$0xff] }
  0x9e   :  { %4493 = vmatprep.subr.bf16.mxu0 %v4492_v11  ;;  %4347 = vmatmul.mubr.msk.f32.gmra.mrb[14].mxu1 %vm151_vm0, %v6644_v13  ;;  %v4526_v13 = vpack.c.bf16 %v428_v34, %v424_v33  ;;  %v792_v11 = vld [vmem:[#allocation12 + $0x40] sm:$0xff]  ;;  %v817_v63 = vld [vmem:[#allocation12 + $0x108] sm:$0xff]  ;;  %v6701_v29 = vpack.c.bf16 %v808_v25, %v800_v23  ;;  %v477_v37 = vld [vmem:[#allocation10 + $0x278] sm:$0xff] }
  0x9f   :  { %4519 = vmatpush1.bf16.msra.mxu1 %v4518_v18  ;;  %347 = vmatprep.mubr.f32.mxu1 %v6502_v0  ;;  %v4538_v18 = vpack.c.bf16 %v452_v8, %v448_v7  ;;  %v825_v28 = vld [vmem:[#allocation12 + $0x148] sm:$0xff]  ;;  %v816_v33 = vld [vmem:[#allocation12 + $0x100] sm:$0xff]  ;;  %v485_v50 = vld [vmem:[#allocation10 + $0x2b8] sm:$0xff] }
  0xa0   :  { %4521 = vmatprep.subr.bf16.mxu1 %v4520_v20  ;;  %v4540_v20 = vpack.c.bf16 %v461_v14, %v457_v12  ;;  %v6704_v34 = vpack.c.bf16 %v825_v28, %v817_v63  ;;  %v824_v35 = vld [vmem:[#allocation12 + $0x140] sm:$0xff]  ;;  %v833_v38 = vld [vmem:[#allocation12 + $0x188] sm:$0xff]  ;;  %v493_v62 = vld [vmem:[#allocation10 + $0x2f8] sm:$0xff] }
  0xa1   :  { %4495 = vmatpush1.bf16.msra.mxu0 %v4494_v19  ;;  %v6694_v19 = vpack.c.bf16 %v792_v11, %v784_v9  ;;  %v841_v40 = vld [vmem:[#allocation12 + $0x1c8] sm:$0xff]  ;;  %v6708_v42 = vpack.c.bf16 %v824_v35, %v816_v33  ;;  %v840_v47 = vld [vmem:[#allocation12 + $0x1c0] sm:$0xff]  ;;  %v497_v11 = vld [vmem:[#allocation10 + $0x318] sm:$0xff] }
  0xa2   :  { %4497 = vmatprep.subr.bf16.mxu0 %v4496_v24  ;;  %4348 = vmatmul.mubr.msk.f32.gmra.mrb[16].mxu1 %vm151_vm0, %v6649_v26  ;;  %v4530_v26 = vpack.c.bf16 %v436_v46, %v432_v45  ;;  %v6697_v24 = vpack.c.bf16 %v809_v17, %v801_v16  ;;  %v832_v45 = vld [vmem:[#allocation12 + $0x180] sm:$0xff]  ;;  %v6711_v46 = vpack.c.bf16 %v841_v40, %v833_v38  ;;  %v849_v51 = vld [vmem:[#allocation12 + $0x208] sm:$0xff]  ;;  %v501_v12 = vld [vmem:[#allocation10 + $0x338] sm:$0xff] }
  0xa3   :  { %4523 = vmatpush1.bf16.msra.mxu1 %v4522_v30  ;;  %353 = vmatprep.mubr.f32.mxu1 %v6502_v0  ;;  %v857_v52 = vld [vmem:[#allocation12 + $0x248] sm:$0xff]  ;;  %v6714_v54 = vpack.c.bf16 %v840_v47, %v832_v45  ;;  %v856_v60 = vld [vmem:[#allocation12 + $0x240] sm:$0xff]  ;;  %v509_v63 = vld [vmem:[#allocation10 + $0x378] sm:$0xff] }
  0xa4   :  { %4525 = vmatprep.subr.bf16.mxu1 %v4524_v32  ;;  %v468_v32 = vld [vmem:[#allocation10 + $0x230] sm:$0xff]  ;;  %v865_v1 = vld [vmem:[#allocation12 + $0x288] sm:$0xff]  ;;  %v864_v7 = vld [vmem:[#allocation12 + $0x280] sm:$0xff] }
  0xa5   :  { %4499 = vmatpush1.bf16.msra.mxu0 %v4498_v31  ;;  %v464_v31 = vld [vmem:[#allocation10 + $0x210] sm:$0xff]  ;;  %v873_v2 = vld [vmem:[#allocation12 + $0x2c8] sm:$0xff]  ;;  %v872_v9 = vld [vmem:[#allocation12 + $0x2c0] sm:$0xff] }
  0xa6   :  { %4501 = vmatprep.subr.bf16.mxu0 %v4500_v36  ;;  %4349 = vmatmul.mubr.msk.f32.gmra.mrb[18].mxu1 %vm151_vm0, %v6654_v39  ;;  %v4534_v39 = vpack.c.bf16 %v444_v59, %v440_v58  ;;  %v473_v36 = vld [vmem:[#allocation10 + $0x258] sm:$0xff]  ;;  %v4546_v41 = vpack.c.bf16 %v468_v32, %v464_v31  ;;  %v848_v58 = vld [vmem:[#allocation12 + $0x200] sm:$0xff]  ;;  %v6717_v59 = vpack.c.bf16 %v857_v52, %v849_v51  ;;  %v881_v14 = vld [vmem:[#allocation12 + $0x308] sm:$0xff] }
  0xa7   :  { %4527 = vmatpush1.bf16.msra.mxu1 %v4526_v13  ;;  %359 = vmatprep.mubr.f32.mxu1 %v6502_v0  ;;  %v4548_v13 = vpack.c.bf16 %v477_v37, %v473_v36  ;;  %v6720_v4 = vpack.c.bf16 %v856_v60, %v848_v58  ;;  %v6723_v8 = vpack.c.bf16 %v873_v2, %v865_v1  ;;  %v889_v16 = vld [vmem:[#allocation12 + $0x348] sm:$0xff]  ;;  %v880_v23 = vld [vmem:[#allocation12 + $0x300] sm:$0xff]  ;;  %v504_v33 = vld [vmem:[#allocation10 + $0x350] sm:$0xff] }
  0xa8   :  { %4529 = vmatprep.subr.bf16.mxu1 %v4528_v44  ;;  %v476_v44 = vld [vmem:[#allocation10 + $0x270] sm:$0xff]  ;;  %v6729_v25 = vpack.c.bf16 %v889_v16, %v881_v14  ;;  %v897_v28 = vld [vmem:[#allocation12 + $0x388] sm:$0xff]  ;;  %v896_v36 = vld [vmem:[#allocation12 + $0x380] sm:$0xff] }
  0xa9   :  { %4503 = vmatpush1.bf16.msra.mxu0 %v4502_v43  ;;  %v472_v43 = vld [vmem:[#allocation10 + $0x250] sm:$0xff]  ;;  %v904_v38 = vld [vmem:[#allocation12 + $0x3c0] sm:$0xff]  ;;  %v513_v40 = vld [vmem:[#allocation10 + $0x398] sm:$0xff] }
  0xaa   :  { %4505 = vmatprep.subr.bf16.mxu0 %v4504_v49  ;;  %4350 = vmatmul.mubr.msk.f32.gmra.mrb[20].mxu1 %vm151_vm0, %v6659_v48  ;;  %v6691_v48 = vld [vmem:[#allocation7] sm:$0xff]  ;;  %v481_v49 = vld [vmem:[#allocation10 + $0x298] sm:$0xff]  ;;  %v4550_v53 = vpack.c.bf16 %v476_v44, %v472_v43  ;;  %v921_v43 = vld [vmem:[#allocation12 + $0x448] sm:$0xff]  ;;  %v6738_v45 = vpack.c.bf16 %v904_v38, %v896_v36 }
  0xab   :  { %4531 = vmatpush1.bf16.msra.mxu1 %v4530_v26  ;;  %365 = vmatprep.mubr.f32.mxu1 %v6502_v0  ;;  %v4552_v26 = vpack.c.bf16 %v485_v50, %v481_v49  ;;  %v508_v35 = vld [vmem:[#allocation10 + $0x370] sm:$0xff]  ;;  %v912_v51 = vld [vmem:[#allocation12 + $0x400] sm:$0xff]  ;;  %v937_v58 = vld [vmem:[#allocation12 + $0x4c8] sm:$0xff] }
  0xac   :  { %4533 = vmatprep.subr.bf16.mxu1 %v4532_v57  ;;  %v484_v57 = vld [vmem:[#allocation10 + $0x2b0] sm:$0xff]  ;;  %v4566_v44 = vpack.c.bf16 %v508_v35, %v504_v33  ;;  %v960_v36 = vld [vmem:[#allocation12 + $0x580] sm:$0xff] }
  0xad   :  { %4507 = vmatpush1.bf16.msra.mxu0 %v4506_v56  ;;  %v480_v56 = vld [vmem:[#allocation10 + $0x290] sm:$0xff] }
  0xae   :  { %4509 = vmatprep.subr.bf16.mxu0 %v4508_v61  ;;  %4351 = vmatmul.mubr.msk.f32.gmra.mrb[22].mxu1 %vm151_vm0, %v6664_v55  ;;  %v465_v55 = vld [vmem:[#allocation10 + $0x218] sm:$0xff]  ;;  %v4554_v3 = vpack.c.bf16 %v484_v57, %v480_v56  ;;  %v512_v49 = vld [vmem:[#allocation10 + $0x390] sm:$0xff]  ;;  %v929_v57 = vld [vmem:[#allocation12 + $0x488] sm:$0xff] }
  0xaf   :  { %4535 = vmatpush1.bf16.msra.mxu1 %v4534_v39  ;;  %683 = vmatprep.mubr.f32.mxu1 %v6669_v15  ;;  %v4542_v15 = vpack.c.bf16 %v460_v22, %v456_v21  ;;  %v4544_v30 = vpack.c.bf16 %v469_v27, %v465_v55  ;;  %v489_v61 = vld [vmem:[#allocation10 + $0x2d8] sm:$0xff]  ;;  %v496_v21 = vld [vmem:[#allocation10 + $0x310] sm:$0xff]  ;;  %v888_v55 = vld [vmem:[#allocation12 + $0x340] sm:$0xff] }
  0xb0   :  { %4537 = vmatprep.subr.bf16.mxu1 %v4536_v6  ;;  %v4556_v39 = vpack.c.bf16 %v493_v62, %v489_v61  ;;  %v492_v6 = vld [vmem:[#allocation10 + $0x2f0] sm:$0xff]  ;;  %v505_v27 = vld [vmem:[#allocation10 + $0x358] sm:$0xff]  ;;  %v6732_v31 = vpack.c.bf16 %v888_v55, %v880_v23  ;;  %v952_v23 = vld [vmem:[#allocation12 + $0x540] sm:$0xff] }
  0xb1   :  { %4511 = vmatpush1.bf16.msra.mxu0 %v4510_v5  ;;  %v488_v5 = vld [vmem:[#allocation10 + $0x2d0] sm:$0xff]  ;;  %v4564_v32 = vpack.c.bf16 %v509_v63, %v505_v27  ;;  %v525_v56 = vld [vmem:[#allocation10 + $0x3f8] sm:$0xff]  ;;  %v961_v63 = vld [vmem:[#allocation12 + $0x588] sm:$0xff] }
  0xb2   :  { %4577 = vmatprep.subr.bf16.mxu0 %v6687_v10  ;;  %v4558_v17 = vpack.c.bf16 %v492_v6, %v488_v5  ;;  %v500_v22 = vld [vmem:[#allocation10 + $0x330] sm:$0xff]  ;;  %v936_v5 = vld [vmem:[#allocation12 + $0x4c0] sm:$0xff]  ;;  %v787_v6 = vld [vmem:[#allocation12 + $0x18] sm:$0xff] }
  0xb3   :  { %4539 = vmatpush1.bf16.msra.mxu1 %v4538_v18  ;;  %v6726_v18 = vpack.c.bf16 %v872_v9, %v864_v7  ;;  %v516_v50 = vld [vmem:[#allocation10 + $0x3b0] sm:$0xff]  ;;  %v795_v7 = vld [vmem:[#allocation12 + $0x58] sm:$0xff]  ;;  %v945_v9 = vld [vmem:[#allocation12 + $0x508] sm:$0xff] }
  0xb4   :  { %613 = vmatmul.mubr.f32.vlgmr.msra.gmra.mrb[0].mxu0 %v6691_v48  ;;  %4541 = vmatprep.subr.bf16.mxu1 %v4540_v20  ;;  %v4560_v20 = vpack.c.bf16 %v501_v12, %v497_v11  ;;  %v4570_v60 = vpack.c.bf16 %v516_v50, %v512_v49  ;;  %v520_v1 = vld [vmem:[#allocation10 + $0x3d0] sm:$0xff]  ;;  %v953_v11 = vld [vmem:[#allocation12 + $0x548] sm:$0xff]  ;;  %v6752_v16 = vpack.c.bf16 %v795_v7, %v787_v6  ;;  %v803_v55 = vld [vmem:[#allocation12 + $0x98] sm:$0xff] }
  0xb5   :  { %4579 = vmatpush1.bf16.msra.mxu0 %v6694_v19  ;;  %1104 = vmatprep.mubr.f32.mxu0 %v6502_v0  ;;  %v524_v2 = vld [vmem:[#allocation10 + $0x3f0] sm:$0xff]  ;;  %v811_v27 = vld [vmem:[#allocation12 + $0xd8] sm:$0xff]  ;;  %v992_v7 = vld [vmem:[#allocation12 + $0x680] sm:$0xff] }
  0xb6   :  { %4581 = vmatprep.subr.bf16.mxu0 %v6697_v24  ;;  %v4574_v12 = vpack.c.bf16 %v524_v2, %v520_v1  ;;  %v802_v33 = vld [vmem:[#allocation12 + $0x90] sm:$0xff] }
  0xb7   :  { %4543 = vmatpush1.bf16.msra.mxu1 %v4542_v15  ;;  %v905_v15 = vld [vmem:[#allocation12 + $0x3c8] sm:$0xff]  ;;  %v810_v35 = vld [vmem:[#allocation12 + $0xd0] sm:$0xff] }
  0xb8   :  { %4545 = vmatprep.subr.bf16.mxu1 %v4544_v30  ;;  %v4562_v30 = vpack.c.bf16 %v500_v22, %v496_v21  ;;  %v6735_v37 = vpack.c.bf16 %v905_v15, %v897_v28  ;;  %v944_v21 = vld [vmem:[#allocation12 + $0x500] sm:$0xff]  ;;  %v6755_v22 = vpack.c.bf16 %v953_v11, %v945_v9  ;;  %v969_v28 = vld [vmem:[#allocation12 + $0x5c8] sm:$0xff]  ;;  %v842_v6 = vld [vmem:[#allocation12 + $0x1d0] sm:$0xff] }
  0xb9   :  { %4583 = vmatpush1.bf16.msra.mxu0 %v6701_v29  ;;  %v6766_v38 = vpack.c.bf16 %v969_v28, %v961_v63  ;;  %v1000_v11 = vld [vmem:[#allocation12 + $0x6c0] sm:$0xff]  ;;  %v850_v63 = vld [vmem:[#allocation12 + $0x210] sm:$0xff] }
  0xba   :  { %4585 = vmatprep.subr.bf16.mxu0 %v6704_v34  ;;  %v858_v28 = vld [vmem:[#allocation12 + $0x250] sm:$0xff] }
  0xbb   :  { %4547 = vmatpush1.bf16.msra.mxu1 %v4546_v41  ;;  %v517_v41 = vld [vmem:[#allocation10 + $0x3b8] sm:$0xff] }
  0xbc   :  { %4549 = vmatprep.subr.bf16.mxu1 %v4548_v13  ;;  %v913_v13 = vld [vmem:[#allocation12 + $0x408] sm:$0xff]  ;;  %v4568_v47 = vpack.c.bf16 %v517_v41, %v513_v40  ;;  %v968_v40 = vld [vmem:[#allocation12 + $0x5c0] sm:$0xff]  ;;  %v819_v41 = vld [vmem:[#allocation12 + $0x118] sm:$0xff] }
  0xbd   :  { %4587 = vmatpush1.bf16.msra.mxu0 %v6708_v42  ;;  %v6741_v52 = vpack.c.bf16 %v921_v43, %v913_v13  ;;  %v827_v13 = vld [vmem:[#allocation12 + $0x158] sm:$0xff]  ;;  %v977_v43 = vld [vmem:[#allocation12 + $0x608] sm:$0xff]  ;;  %v6775_v49 = vpack.c.bf16 %v968_v40, %v960_v36  ;;  %v1016_v36 = vld [vmem:[#allocation12 + $0x740] sm:$0xff] }
  0xbe   :  { %4589 = vmatprep.subr.bf16.mxu0 %v6711_v46  ;;  %v6777_v50 = vpack.c.bf16 %v827_v13, %v819_v41  ;;  %v867_v40 = vld [vmem:[#allocation12 + $0x298] sm:$0xff]  ;;  %v1025_v13 = vld [vmem:[#allocation12 + $0x788] sm:$0xff] }
  0xbf   :  { %4551 = vmatpush1.bf16.msra.mxu1 %v4550_v53  ;;  %v920_v53 = vld [vmem:[#allocation12 + $0x440] sm:$0xff]  ;;  %v875_v41 = vld [vmem:[#allocation12 + $0x2d8] sm:$0xff] }
  0xc0   :  { %4553 = vmatprep.subr.bf16.mxu1 %v4552_v26  ;;  %v521_v26 = vld [vmem:[#allocation10 + $0x3d8] sm:$0xff]  ;;  %v6744_v61 = vpack.c.bf16 %v920_v53, %v912_v51  ;;  %v818_v51 = vld [vmem:[#allocation12 + $0x110] sm:$0xff] }
  0xc1   :  { %4591 = vmatpush1.bf16.msra.mxu0 %v6714_v54  ;;  %v4572_v62 = vpack.c.bf16 %v525_v56, %v521_v26  ;;  %v826_v53 = vld [vmem:[#allocation12 + $0x150] sm:$0xff]  ;;  %v976_v26 = vld [vmem:[#allocation12 + $0x600] sm:$0xff] }
  0xc2   :  { %4593 = vmatprep.subr.bf16.mxu0 %v6717_v59  ;;  %v984_v56 = vld [vmem:[#allocation12 + $0x640] sm:$0xff]  ;;  %v6783_v1 = vpack.c.bf16 %v826_v53, %v818_v51  ;;  %v6813_v53 = vpack.c.bf16 %v875_v41, %v867_v40  ;;  %v915_v40 = vld [vmem:[#allocation12 + $0x418] sm:$0xff] }
  0xc3   :  { %4555 = vmatpush1.bf16.msra.mxu1 %v4554_v3  ;;  %v928_v3 = vld [vmem:[#allocation12 + $0x480] sm:$0xff]  ;;  %v6787_v2 = vpack.c.bf16 %v984_v56, %v976_v26  ;;  %v866_v26 = vld [vmem:[#allocation12 + $0x290] sm:$0xff]  ;;  %v923_v41 = vld [vmem:[#allocation12 + $0x458] sm:$0xff] }
  0xc4   :  { %4557 = vmatprep.subr.bf16.mxu1 %v4556_v39  ;;  %v6747_v39 = vpack.c.bf16 %v937_v58, %v929_v57  ;;  %v6750_v14 = vpack.c.bf16 %v936_v5, %v928_v3  ;;  %v835_v57 = vld [vmem:[#allocation12 + $0x198] sm:$0xff]  ;;  %v834_v5 = vld [vmem:[#allocation12 + $0x190] sm:$0xff] }
  0xc5   :  { %4595 = vmatpush1.bf16.msra.mxu0 %v6720_v4  ;;  %v843_v58 = vld [vmem:[#allocation12 + $0x1d8] sm:$0xff]  ;;  %v874_v56 = vld [vmem:[#allocation12 + $0x2d0] sm:$0xff] }
  0xc6   :  { %4597 = vmatprep.subr.bf16.mxu0 %v6723_v8  ;;  %v6789_v3 = vpack.c.bf16 %v843_v58, %v835_v57  ;;  %v1024_v57 = vld [vmem:[#allocation12 + $0x780] sm:$0xff] }
  0xc7   :  { %4559 = vmatpush1.bf16.msra.mxu1 %v4558_v17  ;;  %v786_v17 = vld [vmem:[#allocation12 + $0x10] sm:$0xff] }
  0xc8   :  { %4561 = vmatprep.subr.bf16.mxu1 %v4560_v20  ;;  %v794_v20 = vld [vmem:[#allocation12 + $0x50] sm:$0xff] }
  0xc9   :  { %4599 = vmatpush1.bf16.msra.mxu0 %v6726_v18  ;;  %v6757_v15 = vpack.c.bf16 %v794_v20, %v786_v17  ;;  %v859_v17 = vld [vmem:[#allocation12 + $0x258] sm:$0xff]  ;;  %v1009_v20 = vld [vmem:[#allocation12 + $0x708] sm:$0xff] }
  0xca   :  { %4601 = vmatprep.subr.bf16.mxu0 %v6729_v25 }
  0xcb   :  { %4563 = vmatpush1.bf16.msra.mxu1 %v4562_v30  ;;  %v6761_v30 = vpack.c.bf16 %v952_v23, %v944_v21  ;;  %v1017_v21 = vld [vmem:[#allocation12 + $0x748] sm:$0xff]  ;;  %v6795_v23 = vpack.c.bf16 %v842_v6, %v834_v5  ;;  %v891_v5 = vld [vmem:[#allocation12 + $0x358] sm:$0xff]  ;;  %v6819_v6 = vpack.c.bf16 %v874_v56, %v866_v26  ;;  %v914_v26 = vld [vmem:[#allocation12 + $0x410] sm:$0xff] }
  0xcc   :  { %4565 = vmatprep.subr.bf16.mxu1 %v4564_v32  ;;  %v6763_v32 = vpack.c.bf16 %v811_v27, %v803_v55  ;;  %v6799_v55 = vpack.c.bf16 %v1000_v11, %v992_v7  ;;  %v922_v56 = vld [vmem:[#allocation12 + $0x450] sm:$0xff] }
  0xcd   :  { %4603 = vmatpush1.bf16.msra.mxu0 %v6732_v31 }
  0xce   :  { %4605 = vmatprep.subr.bf16.mxu0 %v6735_v37 }
  0xcf   :  { %4567 = vmatpush1.bf16.msra.mxu1 %v4566_v44  ;;  %v985_v44 = vld [vmem:[#allocation12 + $0x648] sm:$0xff] }
  0xd0   :  { %4569 = vmatprep.subr.bf16.mxu1 %v4568_v47  ;;  %v6770_v47 = vpack.c.bf16 %v810_v35, %v802_v33  ;;  %v1008_v33 = vld [vmem:[#allocation12 + $0x700] sm:$0xff]  ;;  %v6804_v35 = vpack.c.bf16 %v1017_v21, %v1009_v20  ;;  %v899_v20 = vld [vmem:[#allocation12 + $0x398] sm:$0xff] }
  0xd1   :  { %4607 = vmatpush1.bf16.msra.mxu0 %v6738_v45  ;;  %v6811_v51 = vpack.c.bf16 %v1016_v36, %v1008_v33  ;;  %v907_v21 = vld [vmem:[#allocation12 + $0x3d8] sm:$0xff]  ;;  %v898_v33 = vld [vmem:[#allocation12 + $0x390] sm:$0xff] }
  0xd2   :  { %4609 = vmatprep.subr.bf16.mxu0 %v6741_v52  ;;  %v906_v36 = vld [vmem:[#allocation12 + $0x3d0] sm:$0xff] }
  0xd3   :  { %4571 = vmatpush1.bf16.msra.mxu1 %v4570_v60  ;;  %v993_v60 = vld [vmem:[#allocation12 + $0x688] sm:$0xff] }
  0xd4   :  { %4573 = vmatprep.subr.bf16.mxu1 %v4572_v62  ;;  %v1001_v62 = vld [vmem:[#allocation12 + $0x6c8] sm:$0xff] }
  0xd5   :  { %4611 = vmatpush1.bf16.msra.mxu0 %v6744_v61  ;;  %v6792_v9 = vpack.c.bf16 %v1001_v62, %v993_v60  ;;  %v1032_v60 = vld [vmem:[#allocation12 + $0x7c0] sm:$0xff]  ;;  %v883_v62 = vld [vmem:[#allocation12 + $0x318] sm:$0xff] }
  0xd6   :  { %4613 = vmatprep.subr.bf16.mxu0 %v6747_v39  ;;  %v6823_v7 = vpack.c.bf16 %v1032_v60, %v1024_v57  ;;  %v6825_v11 = vpack.c.bf16 %v891_v5, %v883_v62  ;;  %v931_v57 = vld [vmem:[#allocation12 + $0x498] sm:$0xff]  ;;  %v930_v5 = vld [vmem:[#allocation12 + $0x490] sm:$0xff] }
  0xd7   :  { %4575 = vmatpush1.bf16.msra.mxu1 %v4574_v12  ;;  %v851_v12 = vld [vmem:[#allocation12 + $0x218] sm:$0xff] }
  0xd8   :  { %4641 = vmatprep.subr.bf16.mxu1 %v6752_v16  ;;  %v6801_v27 = vpack.c.bf16 %v859_v17, %v851_v12  ;;  %v882_v12 = vld [vmem:[#allocation12 + $0x310] sm:$0xff]  ;;  %v939_v60 = vld [vmem:[#allocation12 + $0x4d8] sm:$0xff] }
  0xd9   :  { %4615 = vmatpush1.bf16.msra.mxu0 %v6750_v14  ;;  %v890_v17 = vld [vmem:[#allocation12 + $0x350] sm:$0xff]  ;;  %v6850_v62 = vpack.c.bf16 %v939_v60, %v931_v57  ;;  %v987_v57 = vld [vmem:[#allocation12 + $0x658] sm:$0xff] }
  0xda   :  { %4617 = vmatprep.subr.bf16.mxu0 %v6755_v22  ;;  %684 = vmatmul.mubr.f32.vlgmr.msra.gmra.mrb[24].mxu1 %v6691_v48  ;;  %v6780_v48 = vpack.c.bf16 %v985_v44, %v977_v43  ;;  %v1033_v43 = vld [vmem:[#allocation12 + $0x7c8] sm:$0xff]  ;;  %v6807_v44 = vpack.c.bf16 %v858_v28, %v850_v63  ;;  %v6829_v63 = vpack.c.bf16 %v890_v17, %v882_v12  ;;  %v938_v12 = vld [vmem:[#allocation12 + $0x4d0] sm:$0xff]  ;;  %v947_v17 = vld [vmem:[#allocation12 + $0x518] sm:$0xff] }
  0xdb   :  { %4643 = vmatpush1.bf16.msra.mxu1 %v6757_v15  ;;  %1175 = vmatprep.mubr.f32.mxu1 %v6502_v0  ;;  %v6816_v58 = vpack.c.bf16 %v1033_v43, %v1025_v13  ;;  %v6833_v28 = vpack.c.bf16 %v907_v21, %v899_v20  ;;  %v6838_v13 = vpack.c.bf16 %v906_v36, %v898_v33  ;;  %v946_v21 = vld [vmem:[#allocation12 + $0x510] sm:$0xff]  ;;  %v963_v36 = vld [vmem:[#allocation12 + $0x598] sm:$0xff] }
  0xdc   :  { %4645 = vmatprep.subr.bf16.mxu1 %v6763_v32  ;;  %v6841_v43 = vpack.c.bf16 %v923_v41, %v915_v40  ;;  %v954_v33 = vld [vmem:[#allocation12 + $0x550] sm:$0xff]  ;;  %v971_v40 = vld [vmem:[#allocation12 + $0x5d8] sm:$0xff] }
  0xdd   :  { %4619 = vmatpush1.bf16.msra.mxu0 %v6761_v30  ;;  %v962_v41 = vld [vmem:[#allocation12 + $0x590] sm:$0xff] }
  0xde   :  { %4621 = vmatprep.subr.bf16.mxu0 %v6766_v38  ;;  %v978_v60 = vld [vmem:[#allocation12 + $0x610] sm:$0xff] }
  0xdf   :  { %4647 = vmatpush1.bf16.msra.mxu1 %v6770_v47 }
  0xe0   :  { %4649 = vmatprep.subr.bf16.mxu1 %v6777_v50 }
  0xe1   :  { %4623 = vmatpush1.bf16.msra.mxu0 %v6775_v49 }
  0xe2   :  { %4625 = vmatprep.subr.bf16.mxu0 %v6780_v48 }
  0xe3   :  { %4651 = vmatpush1.bf16.msra.mxu1 %v6783_v1 }
  0xe4   :  { %4653 = vmatprep.subr.bf16.mxu1 %v6789_v3 }
  0xe5   :  { %4627 = vmatpush1.bf16.msra.mxu0 %v6787_v2 }
  0xe6   :  { %4629 = vmatprep.subr.bf16.mxu0 %v6792_v9 }
  0xe7   :  { %4655 = vmatpush1.bf16.msra.mxu1 %v6795_v23 }
  0xe8   :  { %4657 = vmatprep.subr.bf16.mxu1 %v6801_v27 }
  0xe9   :  { %4631 = vmatpush1.bf16.msra.mxu0 %v6799_v55 }
  0xea   :  { %4633 = vmatprep.subr.bf16.mxu0 %v6804_v35 }
  0xeb   :  { %4659 = vmatpush1.bf16.msra.mxu1 %v6807_v44 }
  0xec   :  { %4661 = vmatprep.subr.bf16.mxu1 %v6813_v53 }
  0xed   :  { %4635 = vmatpush1.bf16.msra.mxu0 %v6811_v51 }
  0xee   :  { %4637 = vmatprep.subr.bf16.mxu0 %v6816_v58 }
  0xef   :  { %4663 = vmatpush1.bf16.msra.mxu1 %v6819_v6 }
  0xf0   :  { %4665 = vmatprep.subr.bf16.mxu1 %v6825_v11 }
  0xf1   :  { %4639 = vmatpush1.bf16.msra.mxu0 %v6823_v7 }
  0xf2   :  { %4705 = vmatprep.subr.bf16.mxu0 %v6687_v10  ;;  %v6847_v10 = vpack.c.bf16 %v922_v56, %v914_v26  ;;  %v970_v26 = vld [vmem:[#allocation12 + $0x5d0] sm:$0xff]  ;;  %v979_v56 = vld [vmem:[#allocation12 + $0x618] sm:$0xff] }
  0xf3   :  { %4667 = vmatpush1.bf16.msra.mxu1 %v6829_v63 }
  0xf4   :  { %1105 = vmatmul.mubr.f32.vlgmr.msra.gmra.mrb[2].mxu0 %v6502_v0  ;;  %4669 = vmatprep.subr.bf16.mxu1 %v6833_v28 }
  0xf5   :  { %4707 = vmatpush1.bf16.msra.mxu0 %v6694_v19  ;;  %1272 = vmatprep.mubr.f32.mxu0 %v6502_v0  ;;  %v955_v19 = vld [vmem:[#allocation12 + $0x558] sm:$0xff] }
  0xf6   :  { %4709 = vmatprep.subr.bf16.mxu0 %v6697_v24  ;;  %v6855_v24 = vpack.c.bf16 %v938_v12, %v930_v5  ;;  %v6858_v20 = vpack.c.bf16 %v955_v19, %v947_v17  ;;  %v986_v5 = vld [vmem:[#allocation12 + $0x650] sm:$0xff]  ;;  %v995_v12 = vld [vmem:[#allocation12 + $0x698] sm:$0xff] }
  0xf7   :  { %4671 = vmatpush1.bf16.msra.mxu1 %v6838_v13  ;;  %v1003_v17 = vld [vmem:[#allocation12 + $0x6d8] sm:$0xff]  ;;  %v994_v19 = vld [vmem:[#allocation12 + $0x690] sm:$0xff] }
  0xf8   :  { %4673 = vmatprep.subr.bf16.mxu1 %v6841_v43 }
  0xf9   :  { %4711 = vmatpush1.bf16.msra.mxu0 %v6701_v29  ;;  %v6863_v29 = vpack.c.bf16 %v954_v33, %v946_v21  ;;  %v1002_v21 = vld [vmem:[#allocation12 + $0x6d0] sm:$0xff]  ;;  %v1011_v33 = vld [vmem:[#allocation12 + $0x718] sm:$0xff] }
  0xfa   :  { %4713 = vmatprep.subr.bf16.mxu0 %v6704_v34  ;;  %v6866_v34 = vpack.c.bf16 %v971_v40, %v963_v36  ;;  %v1019_v36 = vld [vmem:[#allocation12 + $0x758] sm:$0xff]  ;;  %v1010_v40 = vld [vmem:[#allocation12 + $0x710] sm:$0xff] }
  0xfb   :  { %4675 = vmatpush1.bf16.msra.mxu1 %v6847_v10 }
  0xfc   :  { %4677 = vmatprep.subr.bf16.mxu1 %v6850_v62 }
  0xfd   :  { %4715 = vmatpush1.bf16.msra.mxu0 %v6708_v42  ;;  %v6871_v42 = vpack.c.bf16 %v970_v26, %v962_v41  ;;  %v1018_v41 = vld [vmem:[#allocation12 + $0x750] sm:$0xff]  ;;  %v1027_v26 = vld [vmem:[#allocation12 + $0x798] sm:$0xff] }
  0xfe   :  { %4717 = vmatprep.subr.bf16.mxu0 %v6711_v46  ;;  %v6874_v46 = vpack.c.bf16 %v987_v57, %v979_v56  ;;  %v1035_v56 = vld [vmem:[#allocation12 + $0x7d8] sm:$0xff]  ;;  %v1026_v57 = vld [vmem:[#allocation12 + $0x790] sm:$0xff] }
  0xff   :  { %4679 = vmatpush1.bf16.msra.mxu1 %v6855_v24 }
 0x100   :  { %4681 = vmatprep.subr.bf16.mxu1 %v6858_v20 }
 0x101   :  { %4719 = vmatpush1.bf16.msra.mxu0 %v6714_v54  ;;  %v6879_v54 = vpack.c.bf16 %v986_v5, %v978_v60  ;;  %v1034_v60 = vld [vmem:[#allocation12 + $0x7d0] sm:$0xff] }
 0x102   :  { %4721 = vmatprep.subr.bf16.mxu0 %v6717_v59  ;;  %v6882_v59 = vpack.c.bf16 %v1003_v17, %v995_v12  ;;  %v4702_v5 = vpack.c.bf16 %v1034_v60, %v1026_v57 }
 0x103   :  { %4683 = vmatpush1.bf16.msra.mxu1 %v6863_v29 }
 0x104   :  { %4685 = vmatprep.subr.bf16.mxu1 %v6866_v34 }
 0x105   :  { %4723 = vmatpush1.bf16.msra.mxu0 %v6720_v4  ;;  %v6887_v4 = vpack.c.bf16 %v1002_v21, %v994_v19 }
 0x106   :  { %4725 = vmatprep.subr.bf16.mxu0 %v6723_v8  ;;  %v6890_v8 = vpack.c.bf16 %v1019_v36, %v1011_v33 }
 0x107   :  { %4687 = vmatpush1.bf16.msra.mxu1 %v6871_v42 }
 0x108   :  { %4689 = vmatprep.subr.bf16.mxu1 %v6874_v46 }
 0x109   :  { %4727 = vmatpush1.bf16.msra.mxu0 %v6726_v18  ;;  %v4698_v18 = vpack.c.bf16 %v1018_v41, %v1010_v40 }
 0x10a   :  { %4729 = vmatprep.subr.bf16.mxu0 %v6729_v25  ;;  %v4700_v25 = vpack.c.bf16 %v1035_v56, %v1027_v26 }
 0x10b   :  { %4691 = vmatpush1.bf16.msra.mxu1 %v6879_v54 }
 0x10c   :  { %4693 = vmatprep.subr.bf16.mxu1 %v6882_v59 }
 0x10d   :  { %4731 = vmatpush1.bf16.msra.mxu0 %v6732_v31 }
 0x10e   :  { %4733 = vmatprep.subr.bf16.mxu0 %v6735_v37 }
 0x10f   :  { %4695 = vmatpush1.bf16.msra.mxu1 %v6887_v4 }
 0x110   :  { %4697 = vmatprep.subr.bf16.mxu1 %v6890_v8 }
 0x111   :  { %4735 = vmatpush1.bf16.msra.mxu0 %v6738_v45 }
 0x112   :  { %4737 = vmatprep.subr.bf16.mxu0 %v6741_v52 }
 0x113   :  { %4699 = vmatpush1.bf16.msra.mxu1 %v4698_v18 }
 0x114   :  { %4701 = vmatprep.subr.bf16.mxu1 %v4700_v25 }
 0x115   :  { %4739 = vmatpush1.bf16.msra.mxu0 %v6744_v61 }
 0x116   :  { %4741 = vmatprep.subr.bf16.mxu0 %v6747_v39 }
 0x117   :  { %4703 = vmatpush1.bf16.msra.mxu1 %v4702_v5 }
 0x118   :  { %4769 = vmatprep.subr.bf16.mxu1 %v6752_v16 }
 0x119   :  { %4743 = vmatpush1.bf16.msra.mxu0 %v6750_v14 }
 0x11a   :  { %4745 = vmatprep.subr.bf16.mxu0 %v6755_v22  ;;  %1176 = vmatmul.mubr.f32.vlgmr.msra.gmra.mrb[12].mxu1 %v6502_v0 }
 0x11b   :  { %4771 = vmatpush1.bf16.msra.mxu1 %v6757_v15  ;;  %1343 = vmatprep.mubr.f32.mxu1 %v6502_v0 }
 0x11c   :  { %4773 = vmatprep.subr.bf16.mxu1 %v6763_v32 }
 0x11d   :  { %4747 = vmatpush1.bf16.msra.mxu0 %v6761_v30 }
 0x11e   :  { %4749 = vmatprep.subr.bf16.mxu0 %v6766_v38  ;;  %v528_v38 = vlaneseq }
 0x11f   :  { %4775 = vmatpush1.bf16.msra.mxu1 %v6770_v47 }
 0x120   :  { %4777 = vmatprep.subr.bf16.mxu1 %v6777_v50  ;;  %v6944_v47 = vshrl.u32 %v528_v38, 7  ;;  %v526_v50 = vld [vmem:[%s7432_s4] sm:$0xf]  ;;  %v798_v38 = vld [vmem:[#allocation12 + $0x70] sm:$0xff] }
 0x121   :  { %4751 = vmatpush1.bf16.msra.mxu0 %v6775_v49 }
 0x122   :  { %4753 = vmatprep.subr.bf16.mxu0 %v6780_v48  ;;  %v530_v49 = vsub.s32 0, %v6944_v47  ;;  %v534_v48 = vsub.s32 1, %v6944_v47  ;;  %v538_v19 = vsub.s32 2, %v6944_v47  ;;  %v542_v33 = vsub.s32 3, %v6944_v47 }
 0x123   :  { %4779 = vmatpush1.bf16.msra.mxu1 %v6783_v1 }
 0x124   :  { %4781 = vmatprep.subr.bf16.mxu1 %v6789_v3  ;;  %v531_v1 = vrot.slane %v526_v50, %v530_v49  ;;  %v539_v36 = vrot.slane %v526_v50, %v538_v19 }
 0x125   :  { %4755 = vmatpush1.bf16.msra.mxu0 %v6787_v2  ;;  %v535_v2 = vrot.slane %v526_v50, %v534_v48 }
 0x126   :  { %4757 = vmatprep.subr.bf16.mxu0 %v6792_v9 }
 0x127   :  { %4783 = vmatpush1.bf16.msra.mxu1 %v6795_v23 }
 0x128   :  { %4785 = vmatprep.subr.bf16.mxu1 %v6801_v27  ;;  %v789_v27 = vld [vmem:[#allocation12 + $0x28] sm:$0xff] }
 0x129   :  { %4759 = vmatpush1.bf16.msra.mxu0 %v6799_v55 }
 0x12a   :  { %4761 = vmatprep.subr.bf16.mxu0 %v6804_v35  ;;  %v797_v35 = vld [vmem:[#allocation12 + $0x68] sm:$0xff] }
 0x12b   :  { %4787 = vmatpush1.bf16.msra.mxu1 %v6807_v44  ;;  %v791_v44 = vld [vmem:[#allocation12 + $0x38] sm:$0xff] }
 0x12c   :  { %4789 = vmatprep.subr.bf16.mxu1 %v6813_v53  ;;  %v4832_v53 = vpack.c.bf16 %v797_v35, %v789_v27  ;;  %v804_v35 = vld [vmem:[#allocation12 + $0xa0] sm:$0xff] }
 0x12d   :  { %4763 = vmatpush1.bf16.msra.mxu0 %v6811_v51 }
 0x12e   :  { %4765 = vmatprep.subr.bf16.mxu0 %v6816_v58  ;;  %v799_v58 = vld [vmem:[#allocation12 + $0x78] sm:$0xff] }
 0x12f   :  { %4791 = vmatpush1.bf16.msra.mxu1 %v6819_v6 }
 0x130   :  { %4793 = vmatprep.subr.bf16.mxu1 %v6825_v11 }
 0x131   :  { %4767 = vmatpush1.bf16.msra.mxu0 %v6823_v7 }
 0x132   :  { %4833 = vmatprep.subr.bf16.mxu0 %v4832_v53 }
 0x133   :  { %4795 = vmatpush1.bf16.msra.mxu1 %v6829_v63  ;;  %v4896_v63 = vpack.c.bf16 %v799_v58, %v791_v44  ;;  %v812_v44 = vld [vmem:[#allocation12 + $0xe0] sm:$0xff] }
 0x134   :  { %4797 = vmatprep.subr.bf16.mxu1 %v6833_v28 }
 0x137   :  { %4799 = vmatpush1.bf16.msra.mxu1 %v6838_v13 }
 0x138   :  { %4801 = vmatprep.subr.bf16.mxu1 %v6841_v43 }
 0x13b   :  { %4803 = vmatpush1.bf16.msra.mxu1 %v6847_v10 }
 0x13c   :  { %4805 = vmatprep.subr.bf16.mxu1 %v6850_v62 }
 0x13f   :  { %4807 = vmatpush1.bf16.msra.mxu1 %v6855_v24 }
 0x140   :  { %4809 = vmatprep.subr.bf16.mxu1 %v6858_v20 }
 0x143   :  { %4811 = vmatpush1.bf16.msra.mxu1 %v6863_v29 }
 0x144   :  { %4813 = vmatprep.subr.bf16.mxu1 %v6866_v34 }
 0x147   :  { %4815 = vmatpush1.bf16.msra.mxu1 %v6871_v42 }
 0x148   :  { %4817 = vmatprep.subr.bf16.mxu1 %v6874_v46 }
 0x14b   :  { %4819 = vmatpush1.bf16.msra.mxu1 %v6879_v54 }
 0x14c   :  { %4821 = vmatprep.subr.bf16.mxu1 %v6882_v59 }
 0x14f   :  { %4823 = vmatpush1.bf16.msra.mxu1 %v6887_v4  ;;  %v543_v4 = vrot.slane %v526_v50, %v542_v33  ;;  %v805_v50 = vld [vmem:[#allocation12 + $0xa8] sm:$0xff] }
 0x150   :  { %4825 = vmatprep.subr.bf16.mxu1 %v6890_v8 }
 0x153   :  { %4827 = vmatpush1.bf16.msra.mxu1 %v4698_v18 }
 0x154   :  { %4829 = vmatprep.subr.bf16.mxu1 %v4700_v25 }
 0x155   :  { %v236_v31 = vpop.f32.mrb[0].mxu1 }
 0x156   :  { %v238_v37 = vpop.f32.mrb[1].mxu1 }
 0x157   :  { %4831 = vmatpush1.bf16.msra.mxu1 %v4702_v5 }
 0x158   :  { %4897 = vmatprep.subr.bf16.mxu1 %v4896_v63  ;;  %v814_v63 = vld [vmem:[#allocation12 + $0xf0] sm:$0xff] }
 0x159   :  { %v242_v45 = vpop.f32.mrb[2].mxu1 }
 0x15a   :  { %v244_v52 = vpop.f32.mrb[3].mxu1 }
 0x15d   :  { %v248_v61 = vpop.f32.mrb[4].mxu1 }
 0x15e   :  { %v250_v39 = vpop.f32.mrb[5].mxu1 }
 0x161   :  { %v254_v14 = vpop.f32.mrb[6].mxu1 }
 0x162   :  { %v256_v16 = vpop.f32.mrb[7].mxu1 }
 0x165   :  { %v260_v22 = vpop.f32.mrb[8].mxu1 }
 0x166   :  { %v262_v15 = vpop.f32.mrb[9].mxu1 }
 0x169   :  { %v266_v30 = vpop.f32.mrb[10].mxu1 }
 0x16a   :  { %v268_v32 = vpop.f32.mrb[11].mxu1 }
 0x187   :  { %v614_v3 = vpop.f32.mrb[0].mxu0 }
 0x188   :  { %v615_v9 = vadd.f32 %v614_v3, %v531_v1  ;;  %v616_v23 = vpop.f32.mrb[1].mxu0  ;;  %v813_v1 = vld [vmem:[#allocation12 + $0xe8] sm:$0xff]  ;;  %v815_v3 = vld [vmem:[#allocation12 + $0xf8] sm:$0xff] }
 0x189   :  { %v617_v55 = vadd.f32 %v616_v23, %v535_v2  ;;  %v807_v2 = vld [vmem:[#allocation12 + $0xb8] sm:$0xff]  ;;  %v4836_v53 = vpack.c.bf16 %v813_v1, %v805_v50  ;;  %v860_v50 = vld [vmem:[#allocation12 + $0x260] sm:$0xff] }
 0x18a   :  { %v694_v51 = vadd.f32 %v615_v9, %v236_v31  ;;  %v6955_v6 = vadd.f32 %v615_v9, %v242_v45  ;;  %v6957_v7 = vadd.f32 %v615_v9, %v248_v61  ;;  %v6963_v43 = vadd.f32 %v615_v9, %v254_v14 }
 0x18b   :  { %v695_v11 = vadd.f32 %v617_v55, %v238_v37  ;;  %v6959_v28 = vadd.f32 %v617_v55, %v244_v52  ;;  %v6961_v13 = vadd.f32 %v617_v55, %v250_v39  ;;  %v6965_v10 = vadd.f32 %v617_v55, %v256_v16 }
 0x18c   :  { %v6967_v62 = vadd.f32 %v615_v9, %v260_v22  ;;  %v6969_v24 = vadd.f32 %v617_v55, %v262_v15  ;;  %v6971_v20 = vadd.f32 %v615_v9, %v266_v30  ;;  %v6973_v29 = vadd.f32 %v617_v55, %v268_v32  ;;  %v788_v15 = vld [vmem:[#allocation12 + $0x20] sm:$0xff]  ;;  %v790_v32 = vld [vmem:[#allocation12 + $0x30] sm:$0xff] }
 0x18d   :  { %v796_v30 = vld [vmem:[#allocation12 + $0x60] sm:$0xff]  ;;  %v4898_v27 = vpack.c.bf16 %v798_v38, %v790_v32  ;;  %v4900_v58 = vpack.c.bf16 %v815_v3, %v807_v2  ;;  %v854_v3 = vld [vmem:[#allocation12 + $0x230] sm:$0xff] }
 0x18e   :  { %7465 = vst [vmem:[#allocation21_spill] sm:$0xff] %v6971_v20  ;;  %7466 = vst [vmem:[#allocation22_spill] sm:$0xff] %v6973_v29  ;;  %v4834_v55 = vpack.c.bf16 %v796_v30, %v788_v15  ;;  %v855_v15 = vld [vmem:[#allocation12 + $0x238] sm:$0xff]  ;;  %v852_v38 = vld [vmem:[#allocation12 + $0x220] sm:$0xff] }
 0x18f   :  { %v863_v30 = vld [vmem:[#allocation12 + $0x278] sm:$0xff]  ;;  %v3521_v20 = vld [vmem:[#allocation12 + $0x6a8] sm:$0xff] }
 0x190   :  { %v4912_v2 = vpack.c.bf16 %v863_v30, %v855_v15  ;;  %v910_v15 = vld [vmem:[#allocation12 + $0x3f0] sm:$0xff]  ;;  %v917_v30 = vld [vmem:[#allocation12 + $0x428] sm:$0xff]  ;;  %v3515_v29 = vld [vmem:[#allocation12 + $0x678] sm:$0xff] }
 0x1ad   :  { %v685_v34 = vpop.f32.mrb[24].mxu1 }
 0x1ae   :  { %v687_v42 = vpop.f32.mrb[25].mxu1  ;;  %v6981_v8 = vadd.f32 %v685_v34, %v539_v36  ;;  %v821_v34 = vld [vmem:[#allocation12 + $0x128] sm:$0xff] }
 0x1af   :  { %v6983_v40 = vadd.f32 %v687_v42, %v543_v4  ;;  %v829_v42 = vld [vmem:[#allocation12 + $0x168] sm:$0xff] }
 0x1b0   :  { %7467 = vst [vmem:[#allocation23_spill] sm:$0xff] %v6981_v8  ;;  %v4840_v36 = vpack.c.bf16 %v829_v42, %v821_v34  ;;  %v870_v42 = vld [vmem:[#allocation12 + $0x2b0] sm:$0xff] }
 0x1b1   :  { %7468 = vst [vmem:[#allocation24_spill] sm:$0xff] %v6983_v40 }
 0x1c7   :  { %v1106_v46 = vpop.f32.mrb[2].mxu0 }
 0x1c8   :  { %v1186_v12 = vadd.f32 %v1106_v46, %v694_v51  ;;  %v1108_v17 = vpop.f32.mrb[3].mxu0  ;;  %v823_v46 = vld [vmem:[#allocation12 + $0x138] sm:$0xff] }
 0x1c9   :  { %v1187_v54 = vadd.f32 %v1108_v17, %v695_v11  ;;  %v806_v11 = vld [vmem:[#allocation12 + $0xb0] sm:$0xff]  ;;  %v4838_v17 = vpack.c.bf16 %v812_v44, %v804_v35  ;;  %v879_v35 = vld [vmem:[#allocation12 + $0x2f8] sm:$0xff]  ;;  %v4850_v44 = vpack.c.bf16 %v860_v50, %v852_v38 }
 0x1ca   :  { %v1190_v21 = vmul.f32 0.5, %v1186_v12  ;;  %v831_v12 = vld [vmem:[#allocation12 + $0x178] sm:$0xff] }
 0x1cb   :  { %v1194_v59 = vmul.f32 0.5, %v1187_v54  ;;  %v4902_v54 = vpack.c.bf16 %v814_v63, %v806_v11  ;;  %v4904_v4 = vpack.c.bf16 %v831_v12, %v823_v46  ;;  %v876_v11 = vld [vmem:[#allocation12 + $0x2e0] sm:$0xff]  ;;  %v878_v46 = vld [vmem:[#allocation12 + $0x2f0] sm:$0xff]  ;;  %v885_v12 = vld [vmem:[#allocation12 + $0x328] sm:$0xff] }
 0x1cc   :  { %v927_v38 = vld [vmem:[#allocation12 + $0x478] sm:$0xff] }
 0x1cd   :  { %6206 = vtanh.f32 %v1194_v59  ;;  %v820_v59 = vld [vmem:[#allocation12 + $0x120] sm:$0xff] }
 0x1ce   :  { %6208 = vtanh.f32 %v1190_v21  ;;  %v828_v21 = vld [vmem:[#allocation12 + $0x160] sm:$0xff] }
 0x1d7   :  { %v6207_v25 = vpop.eup %6206 }
 0x1d8   :  { %v6209_v57 = vpop.eup %6208  ;;  %v1196_v60 = vmul.f32 0.5, %v6207_v25  ;;  %v839_v25 = vld [vmem:[#allocation12 + $0x1b8] sm:$0xff] }
 0x1d9   :  { %v1192_v31 = vmul.f32 0.5, %v6209_v57  ;;  %v847_v57 = vld [vmem:[#allocation12 + $0x1f8] sm:$0xff] }
 0x1da   :  { %v1197_v37 = vadd.f32 0.5, %v1196_v60  ;;  %v4842_v60 = vpack.c.bf16 %v828_v21, %v820_v59  ;;  %v895_v59 = vld [vmem:[#allocation12 + $0x378] sm:$0xff] }
 0x1db   :  { %v1193_v45 = vadd.f32 0.5, %v1192_v31  ;;  %v836_v31 = vld [vmem:[#allocation12 + $0x1a0] sm:$0xff] }
 0x1dc   :  { %v1203_v61 = vmul.f32 0.0, %v1197_v37  ;;  %v844_v37 = vld [vmem:[#allocation12 + $0x1e0] sm:$0xff] }
 0x1dd   :  { %v4846_v32 = vpack.c.bf16 %v844_v37, %v836_v31  ;;  %v911_v31 = vld [vmem:[#allocation12 + $0x3f8] sm:$0xff] }
 0x1ed   :  { %v1177_v41 = vpop.f32.mrb[12].mxu1 }
 0x1ee   :  { %v6168_v26 = vadd.f32 %v1177_v41, %v6981_v8  ;;  %v1179_v56 = vpop.f32.mrb[13].mxu1  ;;  %v822_v41 = vld [vmem:[#allocation12 + $0x130] sm:$0xff] }
 0x1ef   :  { %v6169_v18 = vadd.f32 %v1179_v56, %v6983_v40  ;;  %v837_v56 = vld [vmem:[#allocation12 + $0x1a8] sm:$0xff] }
 0x1f0   :  { %6210 = vtanh.f32 %v6168_v26  ;;  %v830_v26 = vld [vmem:[#allocation12 + $0x170] sm:$0xff] }
 0x1f1   :  { %v1199_v5 = vmul.f32 0.5, %v6169_v18  ;;  %v845_v18 = vld [vmem:[#allocation12 + $0x1e8] sm:$0xff] }
 0x1f3   :  { %6212 = vtanh.f32 %v1199_v5  ;;  %v4906_v5 = vpack.c.bf16 %v830_v26, %v822_v41  ;;  %v892_v41 = vld [vmem:[#allocation12 + $0x360] sm:$0xff] }
 0x1fa   :  { %v6211_v52 = vpop.eup %6210 }
 0x1fb   :  { %v1204_v39 = vmul.f32 %v6211_v52, %v1193_v45  ;;  %v4844_v45 = vpack.c.bf16 %v845_v18, %v837_v56  ;;  %v4908_v52 = vpack.c.bf16 %v847_v57, %v839_v25  ;;  %v886_v18 = vld [vmem:[#allocation12 + $0x330] sm:$0xff]  ;;  %v901_v57 = vld [vmem:[#allocation12 + $0x3a8] sm:$0xff] }
 0x1fc   :  { %v894_v25 = vld [vmem:[#allocation12 + $0x370] sm:$0xff] }
 0x1fd   :  { %v6987_v14 = vadd.f32 %v1204_v39, %v1203_v61  ;;  %v6213_v16 = vpop.eup %6212  ;;  %v838_v61 = vld [vmem:[#allocation12 + $0x1b0] sm:$0xff] }
 0x1fe   :  { %v1201_v22 = vmul.f32 0.5, %v6213_v16  ;;  %v846_v39 = vld [vmem:[#allocation12 + $0x1f0] sm:$0xff]  ;;  %v853_v16 = vld [vmem:[#allocation12 + $0x228] sm:$0xff] }
 0x1ff   :  { %6214 = vtanh.f32 %v6987_v14 }
 0x200   :  { %v1202_v9 = vadd.f32 0.5, %v1201_v22  ;;  %v861_v22 = vld [vmem:[#allocation12 + $0x268] sm:$0xff] }
 0x201   :  { %v4848_v1 = vpack.c.bf16 %v861_v22, %v853_v16  ;;  %v902_v22 = vld [vmem:[#allocation12 + $0x3b0] sm:$0xff] }
 0x209   :  { %v6215_v23 = vpop.eup %6214 }
 0x20a   :  { %v6990_v51 = vmul.f32 %v6215_v23, %v1202_v9  ;;  %v862_v9 = vld [vmem:[#allocation12 + $0x270] sm:$0xff]  ;;  %v869_v23 = vld [vmem:[#allocation12 + $0x2a8] sm:$0xff] }
 0x20c   :  { %1273 = vmatmul.mubr.f32.vlgmr.msra.gmra.mrb[4].mxu0 %v6990_v51  ;;  %1344 = vmatmul.mubr.f32.vlgmr.msra.gmra.mrb[14].mxu1 %v6990_v51 }
 0x20d   :  { %4835 = vmatpush1.bf16.msra.mxu0 %v4834_v55  ;;  %4899 = vmatpush1.bf16.msra.mxu1 %v4898_v27  ;;  %v877_v55 = vld [vmem:[#allocation12 + $0x2e8] sm:$0xff]  ;;  %v871_v27 = vld [vmem:[#allocation12 + $0x2b8] sm:$0xff] }
 0x20e   :  { %4837 = vmatprep.subr.bf16.mxu0 %v4836_v53  ;;  %4901 = vmatprep.subr.bf16.mxu1 %v4900_v58  ;;  %v4914_v53 = vpack.c.bf16 %v862_v9, %v854_v3  ;;  %v868_v58 = vld [vmem:[#allocation12 + $0x2a0] sm:$0xff]  ;;  %v4852_v63 = vpack.c.bf16 %v877_v55, %v869_v23  ;;  %v4916_v34 = vpack.c.bf16 %v879_v35, %v871_v27  ;;  %v918_v55 = vld [vmem:[#allocation12 + $0x430] sm:$0xff]  ;;  %v933_v35 = vld [vmem:[#allocation12 + $0x4a8] sm:$0xff] }
 0x20f   :  { %1414 = vmatprep.mubr.f32.mxu0 %v6502_v0  ;;  %1485 = vmatprep.mubr.f32.mxu1 %v6502_v0  ;;  %v4910_v0 = vpack.c.bf16 %v846_v39, %v838_v61  ;;  %v4854_v21 = vpack.c.bf16 %v876_v11, %v868_v58  ;;  %v908_v61 = vld [vmem:[#allocation12 + $0x3e0] sm:$0xff]  ;;  %v926_v27 = vld [vmem:[#allocation12 + $0x470] sm:$0xff]  ;;  %v943_v58 = vld [vmem:[#allocation12 + $0x4f8] sm:$0xff] }
 0x210   :  { %v924_v3 = vld [vmem:[#allocation12 + $0x460] sm:$0xff] }
 0x211   :  { %4839 = vmatpush1.bf16.msra.mxu0 %v4838_v17  ;;  %4903 = vmatpush1.bf16.msra.mxu1 %v4902_v54  ;;  %v893_v17 = vld [vmem:[#allocation12 + $0x368] sm:$0xff]  ;;  %v887_v54 = vld [vmem:[#allocation12 + $0x338] sm:$0xff] }
 0x212   :  { %4841 = vmatprep.subr.bf16.mxu0 %v4840_v36  ;;  %4905 = vmatprep.subr.bf16.mxu1 %v4904_v4  ;;  %v4918_v36 = vpack.c.bf16 %v878_v46, %v870_v42  ;;  %v884_v4 = vld [vmem:[#allocation12 + $0x320] sm:$0xff]  ;;  %v4856_v26 = vpack.c.bf16 %v893_v17, %v885_v12  ;;  %v4920_v56 = vpack.c.bf16 %v895_v59, %v887_v54  ;;  %v934_v17 = vld [vmem:[#allocation12 + $0x4b0] sm:$0xff]  ;;  %v949_v59 = vld [vmem:[#allocation12 + $0x528] sm:$0xff] }
 0x213   :  { %v4858_v37 = vpack.c.bf16 %v892_v41, %v884_v4  ;;  %v940_v42 = vld [vmem:[#allocation12 + $0x4e0] sm:$0xff]  ;;  %v942_v54 = vld [vmem:[#allocation12 + $0x4f0] sm:$0xff]  ;;  %v959_v4 = vld [vmem:[#allocation12 + $0x578] sm:$0xff] }
 0x215   :  { %4843 = vmatpush1.bf16.msra.mxu0 %v4842_v60  ;;  %4907 = vmatpush1.bf16.msra.mxu1 %v4906_v5  ;;  %v909_v60 = vld [vmem:[#allocation12 + $0x3e8] sm:$0xff]  ;;  %v903_v5 = vld [vmem:[#allocation12 + $0x3b8] sm:$0xff] }
 0x216   :  { %4845 = vmatprep.subr.bf16.mxu0 %v4844_v45  ;;  %4909 = vmatprep.subr.bf16.mxu1 %v4908_v52  ;;  %v4922_v45 = vpack.c.bf16 %v894_v25, %v886_v18  ;;  %v900_v52 = vld [vmem:[#allocation12 + $0x3a0] sm:$0xff]  ;;  %v4860_v39 = vpack.c.bf16 %v909_v60, %v901_v57  ;;  %v4924_v16 = vpack.c.bf16 %v911_v31, %v903_v5  ;;  %v950_v60 = vld [vmem:[#allocation12 + $0x530] sm:$0xff]  ;;  %v965_v31 = vld [vmem:[#allocation12 + $0x5a8] sm:$0xff] }
 0x217   :  { %v4862_v50 = vpack.c.bf16 %v908_v61, %v900_v52  ;;  %v956_v18 = vld [vmem:[#allocation12 + $0x560] sm:$0xff]  ;;  %v958_v5 = vld [vmem:[#allocation12 + $0x570] sm:$0xff]  ;;  %v975_v52 = vld [vmem:[#allocation12 + $0x5f8] sm:$0xff] }
 0x219   :  { %4847 = vmatpush1.bf16.msra.mxu0 %v4846_v32  ;;  %4911 = vmatpush1.bf16.msra.mxu1 %v4910_v0  ;;  %v925_v32 = vld [vmem:[#allocation12 + $0x468] sm:$0xff]  ;;  %v919_v0 = vld [vmem:[#allocation12 + $0x438] sm:$0xff] }
 0x21a   :  { %4849 = vmatprep.subr.bf16.mxu0 %v4848_v1  ;;  %4913 = vmatprep.subr.bf16.mxu1 %v4912_v2  ;;  %v4926_v1 = vpack.c.bf16 %v910_v15, %v902_v22  ;;  %v916_v2 = vld [vmem:[#allocation12 + $0x420] sm:$0xff]  ;;  %v4864_v9 = vpack.c.bf16 %v925_v32, %v917_v30  ;;  %v4928_v23 = vpack.c.bf16 %v927_v38, %v919_v0  ;;  %v966_v32 = vld [vmem:[#allocation12 + $0x5b0] sm:$0xff]  ;;  %v981_v38 = vld [vmem:[#allocation12 + $0x628] sm:$0xff] }
 0x21b   :  { %v4866_v11 = vpack.c.bf16 %v924_v3, %v916_v2  ;;  %v972_v22 = vld [vmem:[#allocation12 + $0x5e0] sm:$0xff]  ;;  %v974_v0 = vld [vmem:[#allocation12 + $0x5f0] sm:$0xff]  ;;  %v991_v2 = vld [vmem:[#allocation12 + $0x678] sm:$0xff] }
 0x21d   :  { %4851 = vmatpush1.bf16.msra.mxu0 %v4850_v44  ;;  %4915 = vmatpush1.bf16.msra.mxu1 %v4914_v53  ;;  %v941_v44 = vld [vmem:[#allocation12 + $0x4e8] sm:$0xff]  ;;  %v935_v53 = vld [vmem:[#allocation12 + $0x4b8] sm:$0xff] }
 0x21e   :  { %4853 = vmatprep.subr.bf16.mxu0 %v4852_v63  ;;  %4917 = vmatprep.subr.bf16.mxu1 %v4916_v34  ;;  %v4930_v63 = vpack.c.bf16 %v926_v27, %v918_v55  ;;  %v932_v34 = vld [vmem:[#allocation12 + $0x4a0] sm:$0xff]  ;;  %v4868_v46 = vpack.c.bf16 %v941_v44, %v933_v35  ;;  %v4932_v12 = vpack.c.bf16 %v943_v58, %v935_v53  ;;  %v982_v44 = vld [vmem:[#allocation12 + $0x630] sm:$0xff]  ;;  %v997_v58 = vld [vmem:[#allocation12 + $0x6a8] sm:$0xff] }
 0x21f   :  { %v4870_v41 = vpack.c.bf16 %v940_v42, %v932_v34  ;;  %v988_v55 = vld [vmem:[#allocation12 + $0x660] sm:$0xff]  ;;  %v990_v53 = vld [vmem:[#allocation12 + $0x670] sm:$0xff]  ;;  %v1007_v34 = vld [vmem:[#allocation12 + $0x6f8] sm:$0xff] }
 0x221   :  { %4855 = vmatpush1.bf16.msra.mxu0 %v4854_v21  ;;  %4919 = vmatpush1.bf16.msra.mxu1 %v4918_v36  ;;  %v957_v21 = vld [vmem:[#allocation12 + $0x568] sm:$0xff]  ;;  %v951_v36 = vld [vmem:[#allocation12 + $0x538] sm:$0xff] }
 0x222   :  { %4857 = vmatprep.subr.bf16.mxu0 %v4856_v26  ;;  %4921 = vmatprep.subr.bf16.mxu1 %v4920_v56  ;;  %v4934_v26 = vpack.c.bf16 %v942_v54, %v934_v17  ;;  %v948_v56 = vld [vmem:[#allocation12 + $0x520] sm:$0xff]  ;;  %v4872_v25 = vpack.c.bf16 %v957_v21, %v949_v59  ;;  %v4936_v57 = vpack.c.bf16 %v959_v4, %v951_v36  ;;  %v998_v21 = vld [vmem:[#allocation12 + $0x6b0] sm:$0xff]  ;;  %v1013_v4 = vld [vmem:[#allocation12 + $0x728] sm:$0xff] }
 0x223   :  { %v4874_v61 = vpack.c.bf16 %v956_v18, %v948_v56  ;;  %v1004_v17 = vld [vmem:[#allocation12 + $0x6e0] sm:$0xff]  ;;  %v1006_v36 = vld [vmem:[#allocation12 + $0x6f0] sm:$0xff]  ;;  %v1023_v56 = vld [vmem:[#allocation12 + $0x778] sm:$0xff] }
 0x225   :  { %4859 = vmatpush1.bf16.msra.mxu0 %v4858_v37  ;;  %4923 = vmatpush1.bf16.msra.mxu1 %v4922_v45  ;;  %v973_v37 = vld [vmem:[#allocation12 + $0x5e8] sm:$0xff]  ;;  %v967_v45 = vld [vmem:[#allocation12 + $0x5b8] sm:$0xff] }
 0x226   :  { %4861 = vmatprep.subr.bf16.mxu0 %v4860_v39  ;;  %4925 = vmatprep.subr.bf16.mxu1 %v4924_v16  ;;  %v4938_v39 = vpack.c.bf16 %v958_v5, %v950_v60  ;;  %v964_v16 = vld [vmem:[#allocation12 + $0x5a0] sm:$0xff]  ;;  %v4876_v15 = vpack.c.bf16 %v973_v37, %v965_v31  ;;  %v4940_v30 = vpack.c.bf16 %v975_v52, %v967_v45  ;;  %v1014_v37 = vld [vmem:[#allocation12 + $0x730] sm:$0xff]  ;;  %v1029_v52 = vld [vmem:[#allocation12 + $0x7a8] sm:$0xff] }
 0x227   :  { %v4878_v3 = vpack.c.bf16 %v972_v22, %v964_v16  ;;  %v1020_v60 = vld [vmem:[#allocation12 + $0x760] sm:$0xff]  ;;  %v1022_v45 = vld [vmem:[#allocation12 + $0x770] sm:$0xff]  ;;  %v1039_v16 = vld [vmem:[#allocation12 + $0x7f8] sm:$0xff] }
 0x229   :  { %4863 = vmatpush1.bf16.msra.mxu0 %v4862_v50  ;;  %4927 = vmatpush1.bf16.msra.mxu1 %v4926_v1  ;;  %v989_v50 = vld [vmem:[#allocation12 + $0x668] sm:$0xff]  ;;  %v983_v1 = vld [vmem:[#allocation12 + $0x638] sm:$0xff] }
 0x22a   :  { %4865 = vmatprep.subr.bf16.mxu0 %v4864_v9  ;;  %4929 = vmatprep.subr.bf16.mxu1 %v4928_v23  ;;  %v4942_v9 = vpack.c.bf16 %v974_v0, %v966_v32  ;;  %v980_v23 = vld [vmem:[#allocation12 + $0x620] sm:$0xff]  ;;  %v4880_v27 = vpack.c.bf16 %v989_v50, %v981_v38  ;;  %v4944_v35 = vpack.c.bf16 %v991_v2, %v983_v1  ;;  %v1030_v50 = vld [vmem:[#allocation12 + $0x7b0] sm:$0xff] }
 0x22b   :  { %v4882_v42 = vpack.c.bf16 %v988_v55, %v980_v23  ;;  %v1036_v38 = vld [vmem:[#allocation12 + $0x7e0] sm:$0xff]  ;;  %v1038_v1 = vld [vmem:[#allocation12 + $0x7f0] sm:$0xff]  ;;  %v1550_v23 = vld [vmem:[#allocation12 + $0x48] sm:$0xff] }
 0x22c   :  { %v1544_v55 = vld [vmem:[#allocation12 + $0x18] sm:$0xff] }
 0x22d   :  { %4867 = vmatpush1.bf16.msra.mxu0 %v4866_v11  ;;  %4931 = vmatpush1.bf16.msra.mxu1 %v4930_v63  ;;  %v1005_v11 = vld [vmem:[#allocation12 + $0x6e8] sm:$0xff]  ;;  %v999_v63 = vld [vmem:[#allocation12 + $0x6b8] sm:$0xff] }
 0x22e   :  { %4869 = vmatprep.subr.bf16.mxu0 %v4868_v46  ;;  %4933 = vmatprep.subr.bf16.mxu1 %v4932_v12  ;;  %v4946_v46 = vpack.c.bf16 %v990_v53, %v982_v44  ;;  %v996_v12 = vld [vmem:[#allocation12 + $0x6a0] sm:$0xff]  ;;  %v4884_v54 = vpack.c.bf16 %v1005_v11, %v997_v58  ;;  %v4948_v59 = vpack.c.bf16 %v1007_v34, %v999_v63  ;;  %v1543_v63 = vld [vmem:[#allocation12 + $0x10] sm:$0xff] }
 0x22f   :  { %v4886_v18 = vpack.c.bf16 %v1004_v17, %v996_v12  ;;  %v1541_v44 = vld [vmem:[#allocation12] sm:$0xff]  ;;  %v1551_v34 = vld [vmem:[#allocation12 + $0x50] sm:$0xff]  ;;  %v1566_v12 = vld [vmem:[#allocation12 + $0xc8] sm:$0xff] }
 0x230   :  { %v1549_v53 = vld [vmem:[#allocation12 + $0x40] sm:$0xff]  ;;  %v1560_v17 = vld [vmem:[#allocation12 + $0x98] sm:$0xff] }
 0x231   :  { %4871 = vmatpush1.bf16.msra.mxu0 %v4870_v41  ;;  %4935 = vmatpush1.bf16.msra.mxu1 %v4934_v26  ;;  %v1021_v41 = vld [vmem:[#allocation12 + $0x768] sm:$0xff]  ;;  %v1015_v26 = vld [vmem:[#allocation12 + $0x738] sm:$0xff]  ;;  %v4962_v11 = vpack.c.bf16 %v1549_v53, %v1541_v44 }
 0x232   :  { %4873 = vmatprep.subr.bf16.mxu0 %v4872_v25  ;;  %4937 = vmatprep.subr.bf16.mxu1 %v4936_v57  ;;  %v4950_v25 = vpack.c.bf16 %v1006_v36, %v998_v21  ;;  %v1012_v57 = vld [vmem:[#allocation12 + $0x720] sm:$0xff]  ;;  %v4888_v5 = vpack.c.bf16 %v1021_v41, %v1013_v4  ;;  %v4952_v31 = vpack.c.bf16 %v1023_v56, %v1015_v26  ;;  %v1559_v4 = vld [vmem:[#allocation12 + $0x90] sm:$0xff]  ;;  %v1574_v56 = vld [vmem:[#allocation12 + $0x108] sm:$0xff] }
 0x233   :  { %v4890_v22 = vpack.c.bf16 %v1020_v60, %v1012_v57  ;;  %v1557_v21 = vld [vmem:[#allocation12 + $0x80] sm:$0xff]  ;;  %v1567_v26 = vld [vmem:[#allocation12 + $0xd0] sm:$0xff]  ;;  %v1576_v60 = vld [vmem:[#allocation12 + $0x118] sm:$0xff] }
 0x234   :  { %v1565_v36 = vld [vmem:[#allocation12 + $0xc0] sm:$0xff] }
 0x235   :  { %4875 = vmatpush1.bf16.msra.mxu0 %v4874_v61  ;;  %4939 = vmatpush1.bf16.msra.mxu1 %v4938_v39  ;;  %v1037_v61 = vld [vmem:[#allocation12 + $0x7e8] sm:$0xff]  ;;  %v1031_v39 = vld [vmem:[#allocation12 + $0x7b8] sm:$0xff]  ;;  %v4966_v41 = vpack.c.bf16 %v1565_v36, %v1557_v21  ;;  %v1621_v36 = vld [vmem:[#allocation12 + $0x280] sm:$0xff] }
 0x236   :  { %4877 = vmatprep.subr.bf16.mxu0 %v4876_v15  ;;  %4941 = vmatprep.subr.bf16.mxu1 %v4940_v30  ;;  %v4954_v15 = vpack.c.bf16 %v1022_v45, %v1014_v37  ;;  %v1028_v30 = vld [vmem:[#allocation12 + $0x7a0] sm:$0xff]  ;;  %v4892_v32 = vpack.c.bf16 %v1037_v61, %v1029_v52  ;;  %v4956_v0 = vpack.c.bf16 %v1039_v16, %v1031_v39  ;;  %v1575_v52 = vld [vmem:[#allocation12 + $0x110] sm:$0xff]  ;;  %v1590_v16 = vld [vmem:[#allocation12 + $0x188] sm:$0xff] }
 0x237   :  { %v4894_v2 = vpack.c.bf16 %v1036_v38, %v1028_v30  ;;  %v1581_v45 = vld [vmem:[#allocation12 + $0x140] sm:$0xff]  ;;  %v1583_v61 = vld [vmem:[#allocation12 + $0x150] sm:$0xff] }
 0x238   :  { %v5034_v30 = vpack.c.bf16 %v1583_v61, %v1575_v52  ;;  %v1589_v38 = vld [vmem:[#allocation12 + $0x180] sm:$0xff] }
 0x239   :  { %4879 = vmatpush1.bf16.msra.mxu0 %v4878_v3  ;;  %4943 = vmatpush1.bf16.msra.mxu1 %v4942_v9  ;;  %v4958_v3 = vpack.c.bf16 %v1038_v1, %v1030_v50  ;;  %v1542_v9 = vld [vmem:[#allocation12 + $0x8] sm:$0xff]  ;;  %v1597_v50 = vld [vmem:[#allocation12 + $0x1c0] sm:$0xff] }
 0x23a   :  { %4881 = vmatprep.subr.bf16.mxu0 %v4880_v27  ;;  %4945 = vmatprep.subr.bf16.mxu1 %v4944_v35  ;;  %v4960_v27 = vpack.c.bf16 %v1550_v23, %v1542_v9  ;;  %v1552_v35 = vld [vmem:[#allocation12 + $0x58] sm:$0xff]  ;;  %v1606_v9 = vld [vmem:[#allocation12 + $0x208] sm:$0xff]  ;;  %v1645_v52 = vld [vmem:[#allocation12 + $0x340] sm:$0xff] }
 0x23b   :  { %v5024_v58 = vpack.c.bf16 %v1552_v35, %v1544_v55  ;;  %v1614_v23 = vld [vmem:[#allocation12 + $0x248] sm:$0xff]  ;;  %v1608_v55 = vld [vmem:[#allocation12 + $0x218] sm:$0xff]  ;;  %v4974_v35 = vpack.c.bf16 %v1597_v50, %v1589_v38 }
 0x23c   :  { %v4976_v53 = vpack.c.bf16 %v1614_v23, %v1606_v9  ;;  %v1664_v50 = vld [vmem:[#allocation12 + $0x3d8] sm:$0xff]  ;;  %v1655_v23 = vld [vmem:[#allocation12 + $0x390] sm:$0xff] }
 0x23d   :  { %4883 = vmatpush1.bf16.msra.mxu0 %v4882_v42  ;;  %4947 = vmatpush1.bf16.msra.mxu1 %v4946_v46  ;;  %v1558_v42 = vld [vmem:[#allocation12 + $0x88] sm:$0xff]  ;;  %v5026_v46 = vpack.c.bf16 %v1551_v34, %v1543_v63  ;;  %v1607_v63 = vld [vmem:[#allocation12 + $0x210] sm:$0xff] }
 0x23e   :  { %4885 = vmatprep.subr.bf16.mxu0 %v4884_v54  ;;  %4949 = vmatprep.subr.bf16.mxu1 %v4948_v59  ;;  %v1568_v54 = vld [vmem:[#allocation12 + $0xd8] sm:$0xff] }
 0x23f   :  { %v5028_v59 = vpack.c.bf16 %v1568_v54, %v1560_v17  ;;  %v1624_v17 = vld [vmem:[#allocation12 + $0x298] sm:$0xff] }
 0x240   :  { %v1632_v54 = vld [vmem:[#allocation12 + $0x2d8] sm:$0xff] }
 0x241   :  { %4887 = vmatpush1.bf16.msra.mxu0 %v4886_v18  ;;  %4951 = vmatpush1.bf16.msra.mxu1 %v4950_v25  ;;  %v1582_v18 = vld [vmem:[#allocation12 + $0x148] sm:$0xff]  ;;  %v5030_v25 = vpack.c.bf16 %v1567_v26, %v1559_v4  ;;  %v1629_v4 = vld [vmem:[#allocation12 + $0x2c0] sm:$0xff]  ;;  %v5044_v26 = vpack.c.bf16 %v1632_v54, %v1624_v17  ;;  %v1679_v17 = vld [vmem:[#allocation12 + $0x450] sm:$0xff] }
 0x242   :  { %4889 = vmatprep.subr.bf16.mxu0 %v4888_v5  ;;  %4953 = vmatprep.subr.bf16.mxu1 %v4952_v31  ;;  %v4968_v57 = vpack.c.bf16 %v1582_v18, %v1574_v56  ;;  %v1584_v5 = vld [vmem:[#allocation12 + $0x158] sm:$0xff]  ;;  %v1573_v31 = vld [vmem:[#allocation12 + $0x100] sm:$0xff]  ;;  %v1631_v56 = vld [vmem:[#allocation12 + $0x2d0] sm:$0xff] }
 0x243   :  { %v5032_v37 = vpack.c.bf16 %v1584_v5, %v1576_v60  ;;  %v4970_v39 = vpack.c.bf16 %v1581_v45, %v1573_v31  ;;  %v1638_v18 = vld [vmem:[#allocation12 + $0x308] sm:$0xff]  ;;  %v1648_v60 = vld [vmem:[#allocation12 + $0x358] sm:$0xff]  ;;  %v4982_v5 = vpack.c.bf16 %v1629_v4, %v1621_v36  ;;  %v1637_v45 = vld [vmem:[#allocation12 + $0x300] sm:$0xff] }
 0x244   :  { %v1696_v4 = vld [vmem:[#allocation12 + $0x4d8] sm:$0xff] }
 0x245   :  { %4891 = vmatpush1.bf16.msra.mxu0 %v4890_v22  ;;  %4955 = vmatpush1.bf16.msra.mxu1 %v4954_v15  ;;  %v1598_v22 = vld [vmem:[#allocation12 + $0x1c8] sm:$0xff]  ;;  %v1592_v15 = vld [vmem:[#allocation12 + $0x198] sm:$0xff] }
 0x246   :  { %4893 = vmatprep.subr.bf16.mxu0 %v4892_v32  ;;  %4957 = vmatprep.subr.bf16.mxu1 %v4956_v0  ;;  %v4972_v32 = vpack.c.bf16 %v1598_v22, %v1590_v16  ;;  %v1600_v0 = vld [vmem:[#allocation12 + $0x1d8] sm:$0xff]  ;;  %v1647_v16 = vld [vmem:[#allocation12 + $0x350] sm:$0xff]  ;;  %v4986_v22 = vpack.c.bf16 %v1645_v52, %v1637_v45 }
 0x247   :  { %v5036_v1 = vpack.c.bf16 %v1600_v0, %v1592_v15  ;;  %v1656_v0 = vld [vmem:[#allocation12 + $0x398] sm:$0xff] }
 0x248   :  { %v1712_v52 = vld [vmem:[#allocation12 + $0x558] sm:$0xff] }
 0x249   :  { %4895 = vmatpush1.bf16.msra.mxu0 %v4894_v2  ;;  %4959 = vmatpush1.bf16.msra.mxu1 %v4958_v3  ;;  %v1591_v2 = vld [vmem:[#allocation12 + $0x190] sm:$0xff] }
 0x24a   :  { %4961 = vmatprep.subr.bf16.mxu0 %v4960_v27  ;;  %5025 = vmatprep.subr.bf16.mxu1 %v5024_v58  ;;  %v1599_v3 = vld [vmem:[#allocation12 + $0x1d0] sm:$0xff]  ;;  %v1616_v27 = vld [vmem:[#allocation12 + $0x258] sm:$0xff]  ;;  %v1605_v58 = vld [vmem:[#allocation12 + $0x200] sm:$0xff] }
 0x24b   :  { %v5038_v44 = vpack.c.bf16 %v1599_v3, %v1591_v2  ;;  %v5040_v34 = vpack.c.bf16 %v1616_v27, %v1608_v55  ;;  %v1661_v2 = vld [vmem:[#allocation12 + $0x3c0] sm:$0xff]  ;;  %v5052_v3 = vpack.c.bf16 %v1664_v50, %v1656_v0  ;;  %v1663_v55 = vld [vmem:[#allocation12 + $0x3d0] sm:$0xff]  ;;  %v1718_v0 = vld [vmem:[#allocation12 + $0x588] sm:$0xff] }
 0x24c   :  { %1415 = vmatmul.mubr.f32.vlgmr.msra.gmra.mrb[6].mxu0 %v6990_v51  ;;  %1486 = vmatmul.mubr.f32.vlgmr.msra.gmra.mrb[26].mxu1 %v6990_v51  ;;  %v4964_v51 = vpack.c.bf16 %v1566_v12, %v1558_v42  ;;  %v1615_v42 = vld [vmem:[#allocation12 + $0x250] sm:$0xff]  ;;  %v1630_v12 = vld [vmem:[#allocation12 + $0x2c8] sm:$0xff]  ;;  %v5054_v27 = vpack.c.bf16 %v1663_v55, %v1655_v23  ;;  %v1720_v50 = vld [vmem:[#allocation12 + $0x598] sm:$0xff] }
 0x24d   :  { %4963 = vmatpush1.bf16.msra.mxu0 %v4962_v11  ;;  %5027 = vmatpush1.bf16.msra.mxu1 %v5026_v46  ;;  %v1613_v11 = vld [vmem:[#allocation12 + $0x240] sm:$0xff]  ;;  %v1622_v46 = vld [vmem:[#allocation12 + $0x288] sm:$0xff] }
 0x24e   :  { %4965 = vmatprep.subr.bf16.mxu0 %v4964_v51  ;;  %5029 = vmatprep.subr.bf16.mxu1 %v5028_v59  ;;  %v4978_v51 = vpack.c.bf16 %v1613_v11, %v1605_v58  ;;  %v5042_v59 = vpack.c.bf16 %v1615_v42, %v1607_v63  ;;  %v4980_v21 = vpack.c.bf16 %v1630_v12, %v1622_v46  ;;  %v1680_v11 = vld [vmem:[#allocation12 + $0x458] sm:$0xff]  ;;  %v1669_v63 = vld [vmem:[#allocation12 + $0x400] sm:$0xff]  ;;  %v1671_v12 = vld [vmem:[#allocation12 + $0x410] sm:$0xff] }
 0x24f   :  { %v5058_v54 = vpack.c.bf16 %v1679_v17, %v1671_v12 }
 0x251   :  { %4967 = vmatpush1.bf16.msra.mxu0 %v4966_v41  ;;  %5031 = vmatpush1.bf16.msra.mxu1 %v5030_v25  ;;  %v1623_v41 = vld [vmem:[#allocation12 + $0x290] sm:$0xff]  ;;  %v1646_v25 = vld [vmem:[#allocation12 + $0x348] sm:$0xff] }
 0x252   :  { %4969 = vmatprep.subr.bf16.mxu0 %v4968_v57  ;;  %5033 = vmatprep.subr.bf16.mxu1 %v5032_v37  ;;  %v1640_v57 = vld [vmem:[#allocation12 + $0x318] sm:$0xff]  ;;  %v5046_v31 = vpack.c.bf16 %v1631_v56, %v1623_v41  ;;  %v4984_v37 = vpack.c.bf16 %v1646_v25, %v1638_v18  ;;  %v1685_v41 = vld [vmem:[#allocation12 + $0x480] sm:$0xff]  ;;  %v1687_v25 = vld [vmem:[#allocation12 + $0x490] sm:$0xff] }
 0x253   :  { %v5048_v61 = vpack.c.bf16 %v1648_v60, %v1640_v57  ;;  %v1695_v57 = vld [vmem:[#allocation12 + $0x4d0] sm:$0xff] }
 0x254   :  { %v5062_v60 = vpack.c.bf16 %v1695_v57, %v1687_v25 }
 0x255   :  { %4971 = vmatpush1.bf16.msra.mxu0 %v4970_v39  ;;  %5035 = vmatpush1.bf16.msra.mxu1 %v5034_v30  ;;  %v1639_v39 = vld [vmem:[#allocation12 + $0x310] sm:$0xff]  ;;  %v1654_v30 = vld [vmem:[#allocation12 + $0x388] sm:$0xff] }
 0x256   :  { %4973 = vmatprep.subr.bf16.mxu0 %v4972_v32  ;;  %5037 = vmatprep.subr.bf16.mxu1 %v5036_v1  ;;  %v5050_v15 = vpack.c.bf16 %v1647_v16, %v1639_v39  ;;  %v1662_v32 = vld [vmem:[#allocation12 + $0x3c8] sm:$0xff]  ;;  %v1653_v1 = vld [vmem:[#allocation12 + $0x380] sm:$0xff] }
 0x257   :  { %v4988_v38 = vpack.c.bf16 %v1662_v32, %v1654_v30  ;;  %v4990_v9 = vpack.c.bf16 %v1661_v2, %v1653_v1  ;;  %v1709_v39 = vld [vmem:[#allocation12 + $0x540] sm:$0xff]  ;;  %v1711_v30 = vld [vmem:[#allocation12 + $0x550] sm:$0xff]  ;;  %v1728_v2 = vld [vmem:[#allocation12 + $0x5d8] sm:$0xff] }
 0x258   :  { %v5068_v23 = vpack.c.bf16 %v1728_v2, %v1720_v50  ;;  %v1782_v50 = vld [vmem:[#allocation12 + $0x788] sm:$0xff]  ;;  %v1784_v2 = vld [vmem:[#allocation12 + $0x798] sm:$0xff] }
 0x259   :  { %4975 = vmatpush1.bf16.msra.mxu0 %v4974_v35  ;;  %5039 = vmatpush1.bf16.msra.mxu1 %v5038_v44  ;;  %v1670_v35 = vld [vmem:[#allocation12 + $0x408] sm:$0xff] }
 0x25a   :  { %4977 = vmatprep.subr.bf16.mxu0 %v4976_v53  ;;  %5041 = vmatprep.subr.bf16.mxu1 %v5040_v34  ;;  %v1678_v44 = vld [vmem:[#allocation12 + $0x448] sm:$0xff]  ;;  %v1672_v53 = vld [vmem:[#allocation12 + $0x418] sm:$0xff]  ;;  %v1677_v34 = vld [vmem:[#allocation12 + $0x440] sm:$0xff] }
 0x25b   :  { %v4992_v58 = vpack.c.bf16 %v1678_v44, %v1670_v35  ;;  %v5056_v42 = vpack.c.bf16 %v1680_v11, %v1672_v53  ;;  %v4994_v46 = vpack.c.bf16 %v1677_v34, %v1669_v63  ;;  %v1727_v35 = vld [vmem:[#allocation12 + $0x5d0] sm:$0xff]  ;;  %v1734_v53 = vld [vmem:[#allocation12 + $0x608] sm:$0xff]  ;;  %v1736_v11 = vld [vmem:[#allocation12 + $0x618] sm:$0xff] }
 0x25c   :  { %v1744_v34 = vld [vmem:[#allocation12 + $0x658] sm:$0xff] }
 0x25d   :  { %4979 = vmatpush1.bf16.msra.mxu0 %v4978_v51  ;;  %5043 = vmatpush1.bf16.msra.mxu1 %v5042_v59  ;;  %v1686_v51 = vld [vmem:[#allocation12 + $0x488] sm:$0xff]  ;;  %v5072_v12 = vpack.c.bf16 %v1744_v34, %v1736_v11  ;;  %v1548_v34 = vld [vmem:[#allocation12 + $0x38] sm:$0xff] }
 0x25e   :  { %4981 = vmatprep.subr.bf16.mxu0 %v4980_v21  ;;  %5045 = vmatprep.subr.bf16.mxu1 %v5044_v26  ;;  %v1694_v59 = vld [vmem:[#allocation12 + $0x4c8] sm:$0xff]  ;;  %v1688_v21 = vld [vmem:[#allocation12 + $0x498] sm:$0xff]  ;;  %v1693_v26 = vld [vmem:[#allocation12 + $0x4c0] sm:$0xff] }
 0x25f   :  { %v4996_v36 = vpack.c.bf16 %v1694_v59, %v1686_v51  ;;  %v5060_v56 = vpack.c.bf16 %v1696_v4, %v1688_v21  ;;  %v4998_v18 = vpack.c.bf16 %v1693_v26, %v1685_v41  ;;  %v1743_v51 = vld [vmem:[#allocation12 + $0x650] sm:$0xff]  ;;  %v1750_v21 = vld [vmem:[#allocation12 + $0x688] sm:$0xff]  ;;  %v1752_v4 = vld [vmem:[#allocation12 + $0x698] sm:$0xff] }
 0x260   :  { %v1760_v26 = vld [vmem:[#allocation12 + $0x6d8] sm:$0xff]  ;;  %v1546_v11 = vld [vmem:[#allocation12 + $0x28] sm:$0xff] }
 0x261   :  { %4983 = vmatpush1.bf16.msra.mxu0 %v4982_v5  ;;  %5047 = vmatpush1.bf16.msra.mxu1 %v5046_v31  ;;  %v1702_v5 = vld [vmem:[#allocation12 + $0x508] sm:$0xff]  ;;  %v5076_v25 = vpack.c.bf16 %v1760_v26, %v1752_v4 }
 0x262   :  { %4985 = vmatprep.subr.bf16.mxu0 %v4984_v37  ;;  %5049 = vmatprep.subr.bf16.mxu1 %v5048_v61  ;;  %v1710_v31 = vld [vmem:[#allocation12 + $0x548] sm:$0xff]  ;;  %v1704_v37 = vld [vmem:[#allocation12 + $0x518] sm:$0xff]  ;;  %v1701_v61 = vld [vmem:[#allocation12 + $0x500] sm:$0xff] }
 0x263   :  { %v5000_v45 = vpack.c.bf16 %v1710_v31, %v1702_v5  ;;  %v5064_v16 = vpack.c.bf16 %v1712_v52, %v1704_v37  ;;  %v1759_v5 = vld [vmem:[#allocation12 + $0x6d0] sm:$0xff]  ;;  %v1766_v37 = vld [vmem:[#allocation12 + $0x708] sm:$0xff]  ;;  %v1768_v52 = vld [vmem:[#allocation12 + $0x718] sm:$0xff] }
 0x265   :  { %4987 = vmatpush1.bf16.msra.mxu0 %v4986_v22  ;;  %5051 = vmatpush1.bf16.msra.mxu1 %v5050_v15  ;;  %v5002_v22 = vpack.c.bf16 %v1709_v39, %v1701_v61  ;;  %v1703_v15 = vld [vmem:[#allocation12 + $0x510] sm:$0xff]  ;;  %v1776_v39 = vld [vmem:[#allocation12 + $0x758] sm:$0xff] }
 0x266   :  { %4989 = vmatprep.subr.bf16.mxu0 %v4988_v38  ;;  %5053 = vmatprep.subr.bf16.mxu1 %v5052_v3  ;;  %v5066_v32 = vpack.c.bf16 %v1711_v30, %v1703_v15  ;;  %v1726_v38 = vld [vmem:[#allocation12 + $0x5c8] sm:$0xff]  ;;  %v1717_v3 = vld [vmem:[#allocation12 + $0x580] sm:$0xff]  ;;  %v5080_v15 = vpack.c.bf16 %v1776_v39, %v1768_v52 }
 0x267   :  { %v5004_v1 = vpack.c.bf16 %v1726_v38, %v1718_v0  ;;  %v1775_v0 = vld [vmem:[#allocation12 + $0x750] sm:$0xff] }
 0x269   :  { %4991 = vmatpush1.bf16.msra.mxu0 %v4990_v9  ;;  %5055 = vmatpush1.bf16.msra.mxu1 %v5054_v27  ;;  %v1725_v9 = vld [vmem:[#allocation12 + $0x5c0] sm:$0xff]  ;;  %v1719_v27 = vld [vmem:[#allocation12 + $0x590] sm:$0xff] }
 0x26a   :  { %4993 = vmatprep.subr.bf16.mxu0 %v4992_v58  ;;  %5057 = vmatprep.subr.bf16.mxu1 %v5056_v42  ;;  %v5006_v55 = vpack.c.bf16 %v1725_v9, %v1717_v3  ;;  %v5070_v44 = vpack.c.bf16 %v1727_v35, %v1719_v27  ;;  %v1742_v58 = vld [vmem:[#allocation12 + $0x648] sm:$0xff]  ;;  %v1733_v42 = vld [vmem:[#allocation12 + $0x600] sm:$0xff]  ;;  %v1792_v9 = vld [vmem:[#allocation12 + $0x7d8] sm:$0xff] }
 0x26b   :  { %v5008_v63 = vpack.c.bf16 %v1742_v58, %v1734_v53  ;;  %v5084_v27 = vpack.c.bf16 %v1792_v9, %v1784_v2  ;;  %v1791_v53 = vld [vmem:[#allocation12 + $0x7d0] sm:$0xff] }
 0x26d   :  { %4995 = vmatpush1.bf16.msra.mxu0 %v4994_v46  ;;  %5059 = vmatpush1.bf16.msra.mxu1 %v5058_v54  ;;  %v1741_v46 = vld [vmem:[#allocation12 + $0x640] sm:$0xff]  ;;  %v1735_v54 = vld [vmem:[#allocation12 + $0x610] sm:$0xff] }
 0x26e   :  { %4997 = vmatprep.subr.bf16.mxu0 %v4996_v36  ;;  %5061 = vmatprep.subr.bf16.mxu1 %v5060_v56  ;;  %v5010_v17 = vpack.c.bf16 %v1741_v46, %v1733_v42  ;;  %v5074_v59 = vpack.c.bf16 %v1743_v51, %v1735_v54  ;;  %v1758_v36 = vld [vmem:[#allocation12 + $0x6c8] sm:$0xff]  ;;  %v1749_v56 = vld [vmem:[#allocation12 + $0x680] sm:$0xff]  ;;  %v1556_v46 = vld [vmem:[#allocation12 + $0x78] sm:$0xff] }
 0x26f   :  { %v5012_v41 = vpack.c.bf16 %v1758_v36, %v1750_v21 }
 0x271   :  { %4999 = vmatpush1.bf16.msra.mxu0 %v4998_v18  ;;  %5063 = vmatpush1.bf16.msra.mxu1 %v5062_v60  ;;  %v1757_v18 = vld [vmem:[#allocation12 + $0x6c0] sm:$0xff]  ;;  %v1751_v60 = vld [vmem:[#allocation12 + $0x690] sm:$0xff] }
 0x272   :  { %5001 = vmatprep.subr.bf16.mxu0 %v5000_v45  ;;  %5065 = vmatprep.subr.bf16.mxu1 %v5064_v16  ;;  %v5014_v57 = vpack.c.bf16 %v1757_v18, %v1749_v56  ;;  %v5078_v31 = vpack.c.bf16 %v1759_v5, %v1751_v60  ;;  %v1774_v45 = vld [vmem:[#allocation12 + $0x748] sm:$0xff]  ;;  %v1765_v16 = vld [vmem:[#allocation12 + $0x700] sm:$0xff] }
 0x273   :  { %v5016_v61 = vpack.c.bf16 %v1774_v45, %v1766_v37 }
 0x275   :  { %5003 = vmatpush1.bf16.msra.mxu0 %v5002_v22  ;;  %5067 = vmatpush1.bf16.msra.mxu1 %v5066_v32  ;;  %v1773_v22 = vld [vmem:[#allocation12 + $0x740] sm:$0xff]  ;;  %v1767_v32 = vld [vmem:[#allocation12 + $0x710] sm:$0xff] }
 0x276   :  { %5005 = vmatprep.subr.bf16.mxu0 %v5004_v1  ;;  %5069 = vmatprep.subr.bf16.mxu1 %v5068_v23  ;;  %v5018_v30 = vpack.c.bf16 %v1773_v22, %v1765_v16  ;;  %v5082_v38 = vpack.c.bf16 %v1775_v0, %v1767_v32  ;;  %v1790_v1 = vld [vmem:[#allocation12 + $0x7c8] sm:$0xff]  ;;  %v1781_v23 = vld [vmem:[#allocation12 + $0x780] sm:$0xff] }
 0x277   :  { %v5020_v3 = vpack.c.bf16 %v1790_v1, %v1782_v50 }
 0x279   :  { %5007 = vmatpush1.bf16.msra.mxu0 %v5006_v55  ;;  %5071 = vmatpush1.bf16.msra.mxu1 %v5070_v44  ;;  %v1789_v55 = vld [vmem:[#allocation12 + $0x7c0] sm:$0xff]  ;;  %v1783_v44 = vld [vmem:[#allocation12 + $0x790] sm:$0xff] }
 0x27a   :  { %5009 = vmatprep.subr.bf16.mxu0 %v5008_v63  ;;  %5073 = vmatprep.subr.bf16.mxu1 %v5072_v12  ;;  %v5022_v35 = vpack.c.bf16 %v1789_v55, %v1781_v23  ;;  %v5086_v58 = vpack.c.bf16 %v1791_v53, %v1783_v44  ;;  %v1554_v63 = vld [vmem:[#allocation12 + $0x68] sm:$0xff]  ;;  %v5152_v12 = vpack.c.bf16 %v1556_v46, %v1548_v34  ;;  %v1553_v46 = vld [vmem:[#allocation12 + $0x60] sm:$0xff] }
 0x27b   :  { %v5088_v42 = vpack.c.bf16 %v1554_v63, %v1546_v11 }
 0x27d   :  { %5011 = vmatpush1.bf16.msra.mxu0 %v5010_v17  ;;  %5075 = vmatpush1.bf16.msra.mxu1 %v5074_v59 }
 0x27e   :  { %5013 = vmatprep.subr.bf16.mxu0 %v5012_v41  ;;  %5077 = vmatprep.subr.bf16.mxu1 %v5076_v25 }
 0x281   :  { %5015 = vmatpush1.bf16.msra.mxu0 %v5014_v57  ;;  %5079 = vmatpush1.bf16.msra.mxu1 %v5078_v31 }
 0x282   :  { %5017 = vmatprep.subr.bf16.mxu0 %v5016_v61  ;;  %5081 = vmatprep.subr.bf16.mxu1 %v5080_v15 }
 0x285   :  { %5019 = vmatpush1.bf16.msra.mxu0 %v5018_v30  ;;  %5083 = vmatpush1.bf16.msra.mxu1 %v5082_v38 }
 0x286   :  { %5021 = vmatprep.subr.bf16.mxu0 %v5020_v3  ;;  %5085 = vmatprep.subr.bf16.mxu1 %v5084_v27 }
 0x289   :  { %5023 = vmatpush1.bf16.msra.mxu0 %v5022_v35  ;;  %5087 = vmatpush1.bf16.msra.mxu1 %v5086_v58 }
 0x28a   :  { %5089 = vmatprep.subr.bf16.mxu0 %v5088_v42  ;;  %5153 = vmatprep.subr.bf16.mxu1 %v5152_v12  ;;  %v1545_v42 = vld [vmem:[#allocation12 + $0x20] sm:$0xff]  ;;  %v1547_v12 = vld [vmem:[#allocation12 + $0x30] sm:$0xff] }
 0x2df   :  { %v1274_v17 = vpop.f32.mrb[4].mxu0  ;;  %v1345_v54 = vpop.f32.mrb[14].mxu1 }
 0x2e0   :  { %v1519_v51 = vadd.f32 %v1274_v17, %v6955_v6  ;;  %v1276_v59 = vpop.f32.mrb[5].mxu0  ;;  %v1347_v21 = vpop.f32.mrb[15].mxu1  ;;  %v6170_v26 = vadd.f32 %v1345_v54, %v6981_v8  ;;  %v1555_v17 = vld [vmem:[#allocation12 + $0x70] sm:$0xff] }
 0x2e1   :  { %v1520_v36 = vadd.f32 %v1276_v59, %v6959_v28  ;;  %v762_v28 = vld [vmem:[%s7434_s6] sm:$0xf]  ;;  %v6171_v50 = vadd.f32 %v1347_v21, %v6983_v40  ;;  %v1562_v59 = vld [vmem:[#allocation12 + $0xa8] sm:$0xff] }
 0x2e2   :  { %v1523_v4 = vmul.f32 0.5, %v1519_v51  ;;  %v7009_v52 = vrot.slane %v762_v28, %v530_v49  ;;  %v7013_v61 = vrot.slane %v762_v28, %v534_v48  ;;  %v7017_v22 = vrot.slane %v762_v28, %v538_v19 }
 0x2e3   :  { %v1527_v41 = vmul.f32 0.5, %v1520_v36  ;;  %v7023_v49 = vrot.slane %v762_v28, %v542_v33  ;;  %v1532_v2 = vmul.f32 0.5, %v6171_v50  ;;  %v1579_v50 = vld [vmem:[#allocation12 + $0x130] sm:$0xff] }
 0x2e4   :  { %6216 = vtanh.f32 %v1523_v4  ;;  %7469 = vst [vmem:[#allocation25_spill] sm:$0xff] %v7009_v52  ;;  %7470 = vst [vmem:[#allocation26_spill] sm:$0xff] %v7013_v61  ;;  %v1570_v4 = vld [vmem:[#allocation12 + $0xe8] sm:$0xff] }
 0x2e5   :  { %6218 = vtanh.f32 %v1527_v41  ;;  %7471 = vst [vmem:[#allocation27_spill] sm:$0xff] %v7017_v22  ;;  %7472 = vst [vmem:[#allocation28_spill] sm:$0xff] %v7023_v49  ;;  %v1564_v41 = vld [vmem:[#allocation12 + $0xb8] sm:$0xff]  ;;  %v5092_v28 = vpack.c.bf16 %v1570_v4, %v1562_v59  ;;  %v1619_v4 = vld [vmem:[#allocation12 + $0x270] sm:$0xff] }
 0x2e6   :  { %6220 = vtanh.f32 %v6170_v26  ;;  %v1572_v26 = vld [vmem:[#allocation12 + $0xf8] sm:$0xff] }
 0x2ee   :  { %v6217_v56 = vpop.eup %6216 }
 0x2ef   :  { %v6219_v18 = vpop.eup %6218  ;;  %v1525_v25 = vmul.f32 0.5, %v6217_v56 }
 0x2f0   :  { %v1529_v57 = vmul.f32 0.5, %v6219_v18  ;;  %v6221_v5 = vpop.eup %6220  ;;  %v5090_v18 = vpack.c.bf16 %v1553_v46, %v1545_v42  ;;  %v1612_v42 = vld [vmem:[#allocation12 + $0x238] sm:$0xff] }
 0x2f1   :  { %v1526_v60 = vadd.f32 0.5, %v1525_v25  ;;  %v5154_v25 = vpack.c.bf16 %v1555_v17, %v1547_v12  ;;  %v1620_v46 = vld [vmem:[#allocation12 + $0x278] sm:$0xff] }
 0x2f2   :  { %v1530_v31 = vadd.f32 0.5, %v1529_v57  ;;  %v1561_v57 = vld [vmem:[#allocation12 + $0xa0] sm:$0xff] }
 0x2f3   :  { %v1537_v37 = vmul.f32 %v6221_v5, %v1526_v60  ;;  %v1569_v60 = vld [vmem:[#allocation12 + $0xe0] sm:$0xff] }
 0x2f4   :  { %v1536_v6 = vmul.f32 %v1530_v31, %v6987_v14  ;;  %v1563_v31 = vld [vmem:[#allocation12 + $0xb0] sm:$0xff] }
 0x2f6   :  { %v7002_v45 = vadd.f32 %v1537_v37, %v1536_v6  ;;  %v1571_v37 = vld [vmem:[#allocation12 + $0xf0] sm:$0xff]  ;;  %v1578_v6 = vld [vmem:[#allocation12 + $0x128] sm:$0xff] }
 0x31f   :  { %v1416_v39 = vpop.f32.mrb[6].mxu0  ;;  %v1487_v16 = vpop.f32.mrb[26].mxu1 }
 0x320   :  { %v1492_v14 = vadd.f32 %v1416_v39, %v7009_v52  ;;  %v1418_v15 = vpop.f32.mrb[7].mxu0  ;;  %v1489_v30 = vpop.f32.mrb[27].mxu1  ;;  %v1494_v48 = vadd.f32 %v1487_v16, %v7017_v22  ;;  %v5156_v39 = vpack.c.bf16 %v1572_v26, %v1564_v41  ;;  %v1586_v16 = vld [vmem:[#allocation12 + $0x168] sm:$0xff] }
 0x321   :  { %v1493_v32 = vadd.f32 %v1418_v15, %v7013_v61  ;;  %v1495_v19 = vadd.f32 %v1489_v30, %v7023_v49  ;;  %v1588_v15 = vld [vmem:[#allocation12 + $0x178] sm:$0xff]  ;;  %v5094_v30 = vpack.c.bf16 %v1569_v60, %v1561_v57  ;;  %v1626_v41 = vld [vmem:[#allocation12 + $0x2a8] sm:$0xff] }
 0x322   :  { %v1496_v0 = vmul.f32 0.5, %v1492_v14  ;;  %v1580_v14 = vld [vmem:[#allocation12 + $0x138] sm:$0xff]  ;;  %v1634_v26 = vld [vmem:[#allocation12 + $0x2e8] sm:$0xff] }
 0x323   :  { %v1500_v38 = vmul.f32 0.5, %v1493_v32  ;;  %v1505_v1 = vmul.f32 0.5, %v1495_v19  ;;  %v5158_v32 = vpack.c.bf16 %v1571_v37, %v1563_v31  ;;  %v5160_v19 = vpack.c.bf16 %v1588_v15, %v1580_v14  ;;  %v1625_v31 = vld [vmem:[#allocation12 + $0x2a0] sm:$0xff]  ;;  %v1642_v14 = vld [vmem:[#allocation12 + $0x328] sm:$0xff] }
 0x324   :  { %6222 = vtanh.f32 %v1496_v0  ;;  %v1577_v0 = vld [vmem:[#allocation12 + $0x120] sm:$0xff]  ;;  %v1650_v15 = vld [vmem:[#allocation12 + $0x368] sm:$0xff] }
 0x325   :  { %6224 = vtanh.f32 %v1500_v38  ;;  %v1585_v38 = vld [vmem:[#allocation12 + $0x160] sm:$0xff] }
 0x326   :  { %6226 = vtanh.f32 %v1494_v48  ;;  %v5096_v48 = vpack.c.bf16 %v1586_v16, %v1578_v6  ;;  %v1633_v37 = vld [vmem:[#allocation12 + $0x2e0] sm:$0xff]  ;;  %v5108_v6 = vpack.c.bf16 %v1634_v26, %v1626_v41  ;;  %v1635_v16 = vld [vmem:[#allocation12 + $0x2f0] sm:$0xff] }
 0x327   :  { %6228 = vtanh.f32 %v1505_v1  ;;  %v1587_v1 = vld [vmem:[#allocation12 + $0x170] sm:$0xff] }
 0x328   :  { %6230 = vtanh.f32 %v1532_v2  ;;  %v1594_v2 = vld [vmem:[#allocation12 + $0x1a8] sm:$0xff]  ;;  %v1675_v41 = vld [vmem:[#allocation12 + $0x430] sm:$0xff] }
 0x329   :  { %6232 = vtanh.f32 %v7002_v45  ;;  %v1683_v26 = vld [vmem:[#allocation12 + $0x470] sm:$0xff] }
 0x32e   :  { %v6223_v3 = vpop.eup %6222 }
 0x32f   :  { %v6225_v9 = vpop.eup %6224  ;;  %v1498_v23 = vmul.f32 0.5, %v6223_v3  ;;  %v1602_v3 = vld [vmem:[#allocation12 + $0x1e8] sm:$0xff] }
 0x330   :  { %v1502_v55 = vmul.f32 0.5, %v6225_v9  ;;  %v6227_v33 = vpop.eup %6226  ;;  %v1596_v9 = vld [vmem:[#allocation12 + $0x1b8] sm:$0xff] }
 0x331   :  { %v1499_v47 = vadd.f32 0.5, %v1498_v23  ;;  %v6229_v58 = vpop.eup %6228  ;;  %v1604_v23 = vld [vmem:[#allocation12 + $0x1f8] sm:$0xff] }
 0x332   :  { %v1503_v27 = vadd.f32 0.5, %v1502_v55  ;;  %v6231_v11 = vpop.eup %6230  ;;  %v1507_v63 = vmul.f32 0.5, %v6229_v58  ;;  %v5098_v55 = vpack.c.bf16 %v1585_v38, %v1577_v0  ;;  %v1595_v58 = vld [vmem:[#allocation12 + $0x1b0] sm:$0xff]  ;;  %v5110_v0 = vpack.c.bf16 %v1633_v37, %v1625_v31 }
 0x333   :  { %v1510_v35 = vmul.f32 %v6227_v33, %v1499_v47  ;;  %v1534_v34 = vmul.f32 0.5, %v6231_v11  ;;  %v6233_v54 = vpop.eup %6232  ;;  %v5162_v47 = vpack.c.bf16 %v1587_v1, %v1579_v50  ;;  %v1593_v33 = vld [vmem:[#allocation12 + $0x1a0] sm:$0xff]  ;;  %v1603_v11 = vld [vmem:[#allocation12 + $0x1f0] sm:$0xff]  ;;  %v5112_v50 = vpack.c.bf16 %v1650_v15, %v1642_v14 }
 0x334   :  { %v1509_v44 = vmul.f32 0.0, %v1503_v27  ;;  %v1508_v51 = vadd.f32 0.5, %v1507_v63  ;;  %v1601_v27 = vld [vmem:[#allocation12 + $0x1e0] sm:$0xff]  ;;  %v1610_v63 = vld [vmem:[#allocation12 + $0x228] sm:$0xff]  ;;  %v5166_v17 = vpack.c.bf16 %v1603_v11, %v1595_v58  ;;  %v5186_v37 = vpack.c.bf16 %v1683_v26, %v1675_v41  ;;  %v1691_v14 = vld [vmem:[#allocation12 + $0x4b0] sm:$0xff] }
 0x335   :  { %v1535_v36 = vadd.f32 0.5, %v1534_v34  ;;  %v1618_v34 = vld [vmem:[#allocation12 + $0x268] sm:$0xff]  ;;  %v5102_v12 = vpack.c.bf16 %v1601_v27, %v1593_v33  ;;  %v1699_v15 = vld [vmem:[#allocation12 + $0x4f0] sm:$0xff] }
 0x336   :  { %v7028_v53 = vadd.f32 %v1510_v35, %v1509_v44  ;;  %v5100_v35 = vpack.c.bf16 %v1602_v3, %v1594_v2  ;;  %v5164_v44 = vpack.c.bf16 %v1604_v23, %v1596_v9  ;;  %v5104_v59 = vpack.c.bf16 %v1618_v34, %v1610_v63  ;;  %v1643_v2 = vld [vmem:[#allocation12 + $0x330] sm:$0xff]  ;;  %v1658_v9 = vld [vmem:[#allocation12 + $0x3a8] sm:$0xff] }
 0x337   :  { %v7034_v5 = vmul.f32 %v6233_v54, %v1535_v36  ;;  %v1609_v54 = vld [vmem:[#allocation12 + $0x220] sm:$0xff]  ;;  %v1611_v36 = vld [vmem:[#allocation12 + $0x230] sm:$0xff]  ;;  %v1666_v23 = vld [vmem:[#allocation12 + $0x3e8] sm:$0xff] }
 0x338   :  { %6234 = vtanh.f32 %v7028_v53  ;;  %v5170_v60 = vpack.c.bf16 %v1619_v4, %v1611_v36  ;;  %v1651_v3 = vld [vmem:[#allocation12 + $0x370] sm:$0xff]  ;;  %v5116_v58 = vpack.c.bf16 %v1666_v23, %v1658_v9 }
 0x339   :  { %v5178_v27 = vpack.c.bf16 %v1651_v3, %v1643_v2  ;;  %v1659_v63 = vld [vmem:[#allocation12 + $0x3b0] sm:$0xff] }
 0x33a   :  { %v1667_v34 = vld [vmem:[#allocation12 + $0x3f0] sm:$0xff] }
 0x33b   :  { %v1707_v9 = vld [vmem:[#allocation12 + $0x530] sm:$0xff] }
 0x33c   :  { %v1715_v23 = vld [vmem:[#allocation12 + $0x570] sm:$0xff] }
 0x342   :  { %v6235_v21 = vpop.eup %6234 }
 0x343   :  { %v7032_v56 = vmul.f32 %v6235_v21, %v1508_v51  ;;  %v1617_v51 = vld [vmem:[#allocation12 + $0x260] sm:$0xff]  ;;  %v5168_v21 = vpack.c.bf16 %v1620_v46, %v1612_v42  ;;  %v1674_v42 = vld [vmem:[#allocation12 + $0x428] sm:$0xff] }
 0x344   :  { %v5106_v57 = vpack.c.bf16 %v1617_v51, %v1609_v54  ;;  %v1682_v46 = vld [vmem:[#allocation12 + $0x468] sm:$0xff]  ;;  %v5182_v51 = vpack.c.bf16 %v1667_v34, %v1659_v63 }
 0x345   :  { %7473 = vst [vmem:[#allocation29_spill] sm:$0xff] %v7032_v56  ;;  %1861 = vmatprep.mubr.f32.mxu0 %v7032_v56  ;;  %1932 = vmatprep.mubr.f32.mxu1 %v7032_v56  ;;  %v5120_v36 = vpack.c.bf16 %v1682_v46, %v1674_v42  ;;  %v1723_v42 = vld [vmem:[#allocation12 + $0x5b0] sm:$0xff] }
 0x346   :  { %1862 = vmatmul.mubr.f32.vlgmr.msra.gmra.mrb[8].mxu0 %v7034_v5  ;;  %1933 = vmatmul.mubr.f32.vlgmr.msra.gmra.mrb[16].mxu1 %v7034_v5  ;;  %v1731_v46 = vld [vmem:[#allocation12 + $0x5f0] sm:$0xff] }
 0x347   :  { %5091 = vmatpush1.bf16.msra.mxu0 %v5090_v18  ;;  %5155 = vmatpush1.bf16.msra.mxu1 %v5154_v25  ;;  %v1628_v18 = vld [vmem:[#allocation12 + $0x2b8] sm:$0xff] }
 0x348   :  { %2003 = vmatprep.mubr.f32.mxu0 %v7032_v56  ;;  %2074 = vmatprep.mubr.f32.mxu1 %v7032_v56  ;;  %v1636_v25 = vld [vmem:[#allocation12 + $0x2f8] sm:$0xff] }
 0x349   :  { %5093 = vmatprep.subr.bf16.mxu0 %v5092_v28  ;;  %5157 = vmatprep.subr.bf16.mxu1 %v5156_v39  ;;  %v5172_v28 = vpack.c.bf16 %v1636_v25, %v1628_v18  ;;  %v1627_v39 = vld [vmem:[#allocation12 + $0x2b0] sm:$0xff]  ;;  %v1690_v18 = vld [vmem:[#allocation12 + $0x4a8] sm:$0xff]  ;;  %v3475_v56 = vld [vmem:[#allocation12 + $0x538] sm:$0xff] }
 0x34a   :  { %v5174_v38 = vpack.c.bf16 %v1635_v16, %v1627_v39  ;;  %v1698_v25 = vld [vmem:[#allocation12 + $0x4e8] sm:$0xff] }
 0x34b   :  { %5095 = vmatpush1.bf16.msra.mxu0 %v5094_v30  ;;  %5159 = vmatpush1.bf16.msra.mxu1 %v5158_v32  ;;  %v1644_v30 = vld [vmem:[#allocation12 + $0x338] sm:$0xff]  ;;  %v5124_v39 = vpack.c.bf16 %v1698_v25, %v1690_v18  ;;  %v1739_v18 = vld [vmem:[#allocation12 + $0x630] sm:$0xff] }
 0x34c   :  { %5097 = vmatprep.subr.bf16.mxu0 %v5096_v48  ;;  %5161 = vmatprep.subr.bf16.mxu1 %v5160_v19  ;;  %v1652_v32 = vld [vmem:[#allocation12 + $0x378] sm:$0xff]  ;;  %v1641_v48 = vld [vmem:[#allocation12 + $0x320] sm:$0xff]  ;;  %v1747_v25 = vld [vmem:[#allocation12 + $0x670] sm:$0xff] }
 0x34d   :  { %v1649_v19 = vld [vmem:[#allocation12 + $0x360] sm:$0xff]  ;;  %v5176_v1 = vpack.c.bf16 %v1652_v32, %v1644_v30  ;;  %v1706_v30 = vld [vmem:[#allocation12 + $0x528] sm:$0xff] }
 0x34e   :  { %v5114_v33 = vpack.c.bf16 %v1649_v19, %v1641_v48  ;;  %v1714_v32 = vld [vmem:[#allocation12 + $0x568] sm:$0xff]  ;;  %v5190_v19 = vpack.c.bf16 %v1699_v15, %v1691_v14 }
 0x34f   :  { %5099 = vmatpush1.bf16.msra.mxu0 %v5098_v55  ;;  %5163 = vmatpush1.bf16.msra.mxu1 %v5162_v47  ;;  %v1660_v55 = vld [vmem:[#allocation12 + $0x3b8] sm:$0xff]  ;;  %v5128_v2 = vpack.c.bf16 %v1714_v32, %v1706_v30  ;;  %v1755_v30 = vld [vmem:[#allocation12 + $0x6b0] sm:$0xff] }
 0x350   :  { %5101 = vmatprep.subr.bf16.mxu0 %v5100_v35  ;;  %5165 = vmatprep.subr.bf16.mxu1 %v5164_v44  ;;  %v1668_v47 = vld [vmem:[#allocation12 + $0x3f8] sm:$0xff]  ;;  %v1657_v35 = vld [vmem:[#allocation12 + $0x3a0] sm:$0xff]  ;;  %v1763_v32 = vld [vmem:[#allocation12 + $0x6f0] sm:$0xff] }
 0x351   :  { %v1665_v44 = vld [vmem:[#allocation12 + $0x3e0] sm:$0xff]  ;;  %v5180_v11 = vpack.c.bf16 %v1668_v47, %v1660_v55  ;;  %v1722_v55 = vld [vmem:[#allocation12 + $0x5a8] sm:$0xff] }
 0x352   :  { %v5118_v54 = vpack.c.bf16 %v1665_v44, %v1657_v35  ;;  %v1730_v47 = vld [vmem:[#allocation12 + $0x5e8] sm:$0xff]  ;;  %v5194_v44 = vpack.c.bf16 %v1715_v23, %v1707_v9 }
 0x353   :  { %5103 = vmatpush1.bf16.msra.mxu0 %v5102_v12  ;;  %5167 = vmatpush1.bf16.msra.mxu1 %v5166_v17  ;;  %v1676_v12 = vld [vmem:[#allocation12 + $0x438] sm:$0xff]  ;;  %v5132_v63 = vpack.c.bf16 %v1730_v47, %v1722_v55  ;;  %v1771_v55 = vld [vmem:[#allocation12 + $0x730] sm:$0xff] }
 0x354   :  { %5105 = vmatprep.subr.bf16.mxu0 %v5104_v59  ;;  %5169 = vmatprep.subr.bf16.mxu1 %v5168_v21  ;;  %v1684_v17 = vld [vmem:[#allocation12 + $0x478] sm:$0xff]  ;;  %v1673_v59 = vld [vmem:[#allocation12 + $0x420] sm:$0xff]  ;;  %v1779_v47 = vld [vmem:[#allocation12 + $0x770] sm:$0xff] }
 0x355   :  { %v1681_v21 = vld [vmem:[#allocation12 + $0x460] sm:$0xff]  ;;  %v5184_v4 = vpack.c.bf16 %v1684_v17, %v1676_v12  ;;  %v1738_v12 = vld [vmem:[#allocation12 + $0x628] sm:$0xff] }
 0x356   :  { %v5122_v31 = vpack.c.bf16 %v1681_v21, %v1673_v59  ;;  %v1746_v17 = vld [vmem:[#allocation12 + $0x668] sm:$0xff]  ;;  %v5198_v21 = vpack.c.bf16 %v1731_v46, %v1723_v42  ;;  %v1793_v46 = vld [vmem:[#allocation12 + $0x7e0] sm:$0xff] }
 0x357   :  { %5107 = vmatpush1.bf16.msra.mxu0 %v5106_v57  ;;  %5171 = vmatpush1.bf16.msra.mxu1 %v5170_v60  ;;  %v1692_v57 = vld [vmem:[#allocation12 + $0x4b8] sm:$0xff]  ;;  %v5136_v41 = vpack.c.bf16 %v1746_v17, %v1738_v12  ;;  %v1787_v12 = vld [vmem:[#allocation12 + $0x7b0] sm:$0xff] }
 0x358   :  { %5109 = vmatprep.subr.bf16.mxu0 %v5108_v6  ;;  %5173 = vmatprep.subr.bf16.mxu1 %v5172_v28  ;;  %v1700_v60 = vld [vmem:[#allocation12 + $0x4f8] sm:$0xff]  ;;  %v1689_v6 = vld [vmem:[#allocation12 + $0x4a0] sm:$0xff]  ;;  %v1795_v17 = vld [vmem:[#allocation12 + $0x7f0] sm:$0xff] }
 0x359   :  { %v1697_v28 = vld [vmem:[#allocation12 + $0x4e0] sm:$0xff]  ;;  %v5188_v16 = vpack.c.bf16 %v1700_v60, %v1692_v57  ;;  %v1754_v57 = vld [vmem:[#allocation12 + $0x6a8] sm:$0xff] }
 0x35a   :  { %v5126_v48 = vpack.c.bf16 %v1697_v28, %v1689_v6  ;;  %v1762_v60 = vld [vmem:[#allocation12 + $0x6e8] sm:$0xff]  ;;  %v5202_v28 = vpack.c.bf16 %v1747_v25, %v1739_v18  ;;  %v2138_v18 = vld [vmem:[#allocation12 + $0x40] sm:$0xff] }
 0x35b   :  { %5111 = vmatpush1.bf16.msra.mxu0 %v5110_v0  ;;  %5175 = vmatpush1.bf16.msra.mxu1 %v5174_v38  ;;  %v1708_v0 = vld [vmem:[#allocation12 + $0x538] sm:$0xff]  ;;  %v5140_v14 = vpack.c.bf16 %v1762_v60, %v1754_v57  ;;  %v2132_v60 = vld [vmem:[#allocation12 + $0x10] sm:$0xff] }
 0x35c   :  { %5113 = vmatprep.subr.bf16.mxu0 %v5112_v50  ;;  %5177 = vmatprep.subr.bf16.mxu1 %v5176_v1  ;;  %v1716_v38 = vld [vmem:[#allocation12 + $0x578] sm:$0xff]  ;;  %v1705_v50 = vld [vmem:[#allocation12 + $0x520] sm:$0xff] }
 0x35d   :  { %v1713_v1 = vld [vmem:[#allocation12 + $0x560] sm:$0xff]  ;;  %v5192_v3 = vpack.c.bf16 %v1716_v38, %v1708_v0  ;;  %v1770_v0 = vld [vmem:[#allocation12 + $0x728] sm:$0xff] }
 0x35e   :  { %v5130_v35 = vpack.c.bf16 %v1713_v1, %v1705_v50  ;;  %v1778_v38 = vld [vmem:[#allocation12 + $0x768] sm:$0xff]  ;;  %v5206_v1 = vpack.c.bf16 %v1763_v32, %v1755_v30  ;;  %v2154_v30 = vld [vmem:[#allocation12 + $0xc0] sm:$0xff]  ;;  %v2148_v32 = vld [vmem:[#allocation12 + $0x90] sm:$0xff] }
 0x35f   :  { %5115 = vmatpush1.bf16.msra.mxu0 %v5114_v33  ;;  %5179 = vmatpush1.bf16.msra.mxu1 %v5178_v27  ;;  %v1724_v33 = vld [vmem:[#allocation12 + $0x5b8] sm:$0xff]  ;;  %v5144_v9 = vpack.c.bf16 %v1778_v38, %v1770_v0  ;;  %v2156_v38 = vld [vmem:[#allocation12 + $0xd0] sm:$0xff] }
 0x360   :  { %5117 = vmatprep.subr.bf16.mxu0 %v5116_v58  ;;  %5181 = vmatprep.subr.bf16.mxu1 %v5180_v11  ;;  %v1732_v27 = vld [vmem:[#allocation12 + $0x5f8] sm:$0xff]  ;;  %v1721_v58 = vld [vmem:[#allocation12 + $0x5a0] sm:$0xff] }
 0x361   :  { %v1729_v11 = vld [vmem:[#allocation12 + $0x5e0] sm:$0xff]  ;;  %v5196_v34 = vpack.c.bf16 %v1732_v27, %v1724_v33  ;;  %v1786_v33 = vld [vmem:[#allocation12 + $0x7a8] sm:$0xff] }
 0x362   :  { %v5134_v59 = vpack.c.bf16 %v1729_v11, %v1721_v58  ;;  %v1794_v27 = vld [vmem:[#allocation12 + $0x7e8] sm:$0xff]  ;;  %v5210_v11 = vpack.c.bf16 %v1779_v47, %v1771_v55  ;;  %v2170_v55 = vld [vmem:[#allocation12 + $0x140] sm:$0xff]  ;;  %v2164_v47 = vld [vmem:[#allocation12 + $0x110] sm:$0xff] }
 0x363   :  { %5119 = vmatpush1.bf16.msra.mxu0 %v5118_v54  ;;  %5183 = vmatpush1.bf16.msra.mxu1 %v5182_v51  ;;  %v1740_v54 = vld [vmem:[#allocation12 + $0x638] sm:$0xff] }
 0x364   :  { %5121 = vmatprep.subr.bf16.mxu0 %v5120_v36  ;;  %5185 = vmatprep.subr.bf16.mxu1 %v5184_v4  ;;  %v1748_v51 = vld [vmem:[#allocation12 + $0x678] sm:$0xff]  ;;  %v1737_v36 = vld [vmem:[#allocation12 + $0x620] sm:$0xff] }
 0x365   :  { %v1745_v4 = vld [vmem:[#allocation12 + $0x660] sm:$0xff]  ;;  %v5200_v26 = vpack.c.bf16 %v1748_v51, %v1740_v54  ;;  %v5214_v51 = vpack.c.bf16 %v1795_v17, %v1787_v12  ;;  %v2180_v17 = vld [vmem:[#allocation12 + $0x190] sm:$0xff] }
 0x366   :  { %v5138_v6 = vpack.c.bf16 %v1745_v4, %v1737_v36  ;;  %v2133_v36 = vld [vmem:[#allocation12 + $0x18] sm:$0xff] }
 0x367   :  { %5123 = vmatpush1.bf16.msra.mxu0 %v5122_v31  ;;  %5187 = vmatpush1.bf16.msra.mxu1 %v5186_v37  ;;  %v1756_v31 = vld [vmem:[#allocation12 + $0x6b8] sm:$0xff] }
 0x368   :  { %5125 = vmatprep.subr.bf16.mxu0 %v5124_v39  ;;  %5189 = vmatprep.subr.bf16.mxu1 %v5188_v16  ;;  %v1764_v37 = vld [vmem:[#allocation12 + $0x6f8] sm:$0xff]  ;;  %v1753_v39 = vld [vmem:[#allocation12 + $0x6a0] sm:$0xff] }
 0x369   :  { %v1761_v16 = vld [vmem:[#allocation12 + $0x6e0] sm:$0xff]  ;;  %v5204_v15 = vpack.c.bf16 %v1764_v37, %v1756_v31  ;;  %v2140_v31 = vld [vmem:[#allocation12 + $0x50] sm:$0xff]  ;;  %v2147_v37 = vld [vmem:[#allocation12 + $0x88] sm:$0xff] }
 0x36a   :  { %v5142_v50 = vpack.c.bf16 %v1761_v16, %v1753_v39  ;;  %v2149_v39 = vld [vmem:[#allocation12 + $0x98] sm:$0xff] }
 0x36b   :  { %5127 = vmatpush1.bf16.msra.mxu0 %v5126_v48  ;;  %5191 = vmatpush1.bf16.msra.mxu1 %v5190_v19  ;;  %v1772_v48 = vld [vmem:[#allocation12 + $0x738] sm:$0xff] }
 0x36c   :  { %5129 = vmatprep.subr.bf16.mxu0 %v5128_v2  ;;  %5193 = vmatprep.subr.bf16.mxu1 %v5192_v3  ;;  %v1780_v19 = vld [vmem:[#allocation12 + $0x778] sm:$0xff]  ;;  %v1769_v2 = vld [vmem:[#allocation12 + $0x720] sm:$0xff] }
 0x36d   :  { %v1777_v3 = vld [vmem:[#allocation12 + $0x760] sm:$0xff]  ;;  %v5208_v23 = vpack.c.bf16 %v1780_v19, %v1772_v48  ;;  %v2157_v16 = vld [vmem:[#allocation12 + $0xd8] sm:$0xff]  ;;  %v2163_v48 = vld [vmem:[#allocation12 + $0x108] sm:$0xff] }
 0x36e   :  { %v5146_v58 = vpack.c.bf16 %v1777_v3, %v1769_v2  ;;  %v2171_v19 = vld [vmem:[#allocation12 + $0x148] sm:$0xff]  ;;  %v2165_v2 = vld [vmem:[#allocation12 + $0x118] sm:$0xff] }
 0x36f   :  { %5131 = vmatpush1.bf16.msra.mxu0 %v5130_v35  ;;  %5195 = vmatpush1.bf16.msra.mxu1 %v5194_v44  ;;  %v1788_v35 = vld [vmem:[#allocation12 + $0x7b8] sm:$0xff] }
 0x370   :  { %5133 = vmatprep.subr.bf16.mxu0 %v5132_v63  ;;  %5197 = vmatprep.subr.bf16.mxu1 %v5196_v34  ;;  %v1796_v44 = vld [vmem:[#allocation12 + $0x7f8] sm:$0xff]  ;;  %v1785_v63 = vld [vmem:[#allocation12 + $0x7a0] sm:$0xff]  ;;  %v5148_v34 = vpack.c.bf16 %v1794_v27, %v1786_v33  ;;  %v2172_v33 = vld [vmem:[#allocation12 + $0x150] sm:$0xff] }
 0x371   :  { %v5212_v42 = vpack.c.bf16 %v1796_v44, %v1788_v35  ;;  %v5150_v54 = vpack.c.bf16 %v1793_v46, %v1785_v63  ;;  %v2173_v3 = vld [vmem:[#allocation12 + $0x158] sm:$0xff]  ;;  %v2179_v35 = vld [vmem:[#allocation12 + $0x188] sm:$0xff]  ;;  %v2186_v46 = vld [vmem:[#allocation12 + $0x1c0] sm:$0xff] }
 0x372   :  { %v2187_v44 = vld [vmem:[#allocation12 + $0x1c8] sm:$0xff] }
 0x373   :  { %5135 = vmatpush1.bf16.msra.mxu0 %v5134_v59  ;;  %5199 = vmatpush1.bf16.msra.mxu1 %v5198_v21  ;;  %v2131_v59 = vld [vmem:[#allocation12 + $0x8] sm:$0xff]  ;;  %v5228_v63 = vpack.c.bf16 %v2187_v44, %v2179_v35 }
 0x374   :  { %5137 = vmatprep.subr.bf16.mxu0 %v5136_v41  ;;  %5201 = vmatprep.subr.bf16.mxu1 %v5200_v26  ;;  %v2139_v21 = vld [vmem:[#allocation12 + $0x48] sm:$0xff]  ;;  %v2141_v41 = vld [vmem:[#allocation12 + $0x58] sm:$0xff]  ;;  %v2130_v26 = vld [vmem:[#allocation12] sm:$0xff] }
 0x375   :  { %v5216_v4 = vpack.c.bf16 %v2139_v21, %v2131_v59  ;;  %v5280_v25 = vpack.c.bf16 %v2141_v41, %v2133_v36  ;;  %v5218_v57 = vpack.c.bf16 %v2138_v18, %v2130_v26  ;;  %v2203_v59 = vld [vmem:[#allocation12 + $0x248] sm:$0xff]  ;;  %v2197_v21 = vld [vmem:[#allocation12 + $0x218] sm:$0xff]  ;;  %v2194_v18 = vld [vmem:[#allocation12 + $0x200] sm:$0xff] }
 0x376   :  { %v2205_v36 = vld [vmem:[#allocation12 + $0x258] sm:$0xff] }
 0x377   :  { %5139 = vmatpush1.bf16.msra.mxu0 %v5138_v6  ;;  %5203 = vmatpush1.bf16.msra.mxu1 %v5202_v28  ;;  %v5282_v6 = vpack.c.bf16 %v2140_v31, %v2132_v60  ;;  %v2155_v28 = vld [vmem:[#allocation12 + $0xc8] sm:$0xff]  ;;  %v5296_v60 = vpack.c.bf16 %v2205_v36, %v2197_v21  ;;  %v2204_v31 = vld [vmem:[#allocation12 + $0x250] sm:$0xff] }
 0x378   :  { %5141 = vmatprep.subr.bf16.mxu0 %v5140_v14  ;;  %5205 = vmatprep.subr.bf16.mxu1 %v5204_v15  ;;  %v5284_v14 = vpack.c.bf16 %v2157_v16, %v2149_v39  ;;  %v2146_v15 = vld [vmem:[#allocation12 + $0x80] sm:$0xff]  ;;  %v2221_v39 = vld [vmem:[#allocation12 + $0x2d8] sm:$0xff]  ;;  %v2259_v36 = vld [vmem:[#allocation12 + $0x408] sm:$0xff] }
 0x379   :  { %v5222_v0 = vpack.c.bf16 %v2154_v30, %v2146_v15  ;;  %v2210_v15 = vld [vmem:[#allocation12 + $0x280] sm:$0xff] }
 0x37a   :  { %v2218_v30 = vld [vmem:[#allocation12 + $0x2c0] sm:$0xff] }
 0x37b   :  { %5143 = vmatpush1.bf16.msra.mxu0 %v5142_v50  ;;  %5207 = vmatpush1.bf16.msra.mxu1 %v5206_v1  ;;  %v5286_v50 = vpack.c.bf16 %v2156_v38, %v2148_v32  ;;  %v5224_v1 = vpack.c.bf16 %v2171_v19, %v2163_v48  ;;  %v2212_v32 = vld [vmem:[#allocation12 + $0x290] sm:$0xff]  ;;  %v2227_v48 = vld [vmem:[#allocation12 + $0x308] sm:$0xff] }
 0x37c   :  { %5145 = vmatprep.subr.bf16.mxu0 %v5144_v9  ;;  %5209 = vmatprep.subr.bf16.mxu1 %v5208_v23  ;;  %v2162_v9 = vld [vmem:[#allocation12 + $0x100] sm:$0xff]  ;;  %v5288_v23 = vpack.c.bf16 %v2173_v3, %v2165_v2  ;;  %v2220_v38 = vld [vmem:[#allocation12 + $0x2d0] sm:$0xff]  ;;  %v2235_v19 = vld [vmem:[#allocation12 + $0x348] sm:$0xff]  ;;  %v5238_v2 = vpack.c.bf16 %v2218_v30, %v2210_v15 }
 0x37d   :  { %v5226_v27 = vpack.c.bf16 %v2170_v55, %v2162_v9  ;;  %v5302_v3 = vpack.c.bf16 %v2220_v38, %v2212_v32  ;;  %v5240_v9 = vpack.c.bf16 %v2235_v19, %v2227_v48  ;;  %v2234_v55 = vld [vmem:[#allocation12 + $0x340] sm:$0xff]  ;;  %v2285_v15 = vld [vmem:[#allocation12 + $0x4d8] sm:$0xff]  ;;  %v2276_v48 = vld [vmem:[#allocation12 + $0x490] sm:$0xff] }
 0x37e   :  { %v2274_v30 = vld [vmem:[#allocation12 + $0x480] sm:$0xff]  ;;  %v2284_v19 = vld [vmem:[#allocation12 + $0x4d0] sm:$0xff] }
 0x37f   :  { %5147 = vmatpush1.bf16.msra.mxu0 %v5146_v58  ;;  %5211 = vmatpush1.bf16.msra.mxu1 %v5210_v11  ;;  %v2181_v58 = vld [vmem:[#allocation12 + $0x198] sm:$0xff]  ;;  %v5290_v11 = vpack.c.bf16 %v2172_v33, %v2164_v47  ;;  %v2228_v33 = vld [vmem:[#allocation12 + $0x310] sm:$0xff]  ;;  %v2282_v32 = vld [vmem:[#allocation12 + $0x4c0] sm:$0xff] }
 0x380   :  { %5149 = vmatprep.subr.bf16.mxu0 %v5148_v34  ;;  %5213 = vmatprep.subr.bf16.mxu1 %v5212_v42  ;;  %v2189_v34 = vld [vmem:[#allocation12 + $0x1d8] sm:$0xff]  ;;  %v2178_v42 = vld [vmem:[#allocation12 + $0x180] sm:$0xff]  ;;  %v5254_v38 = vpack.c.bf16 %v2282_v32, %v2274_v30 }
 0x381   :  { %v5292_v12 = vpack.c.bf16 %v2189_v34, %v2181_v58  ;;  %v2243_v58 = vld [vmem:[#allocation12 + $0x388] sm:$0xff]  ;;  %v2349_v30 = vld [vmem:[#allocation12 + $0x6d8] sm:$0xff]  ;;  %v2338_v32 = vld [vmem:[#allocation12 + $0x680] sm:$0xff] }
 0x383   :  { %5151 = vmatpush1.bf16.msra.mxu0 %v5150_v54  ;;  %5215 = vmatpush1.bf16.msra.mxu1 %v5214_v51  ;;  %v2188_v54 = vld [vmem:[#allocation12 + $0x1d0] sm:$0xff]  ;;  %v2195_v51 = vld [vmem:[#allocation12 + $0x208] sm:$0xff] }
 0x384   :  { %5217 = vmatprep.subr.bf16.mxu0 %v5216_v4  ;;  %5281 = vmatprep.subr.bf16.mxu1 %v5280_v25  ;;  %v5230_v4 = vpack.c.bf16 %v2186_v46, %v2178_v42  ;;  %v5294_v41 = vpack.c.bf16 %v2188_v54, %v2180_v17  ;;  %v5232_v26 = vpack.c.bf16 %v2203_v59, %v2195_v51  ;;  %v2202_v25 = vld [vmem:[#allocation12 + $0x240] sm:$0xff]  ;;  %v2253_v42 = vld [vmem:[#allocation12 + $0x3d8] sm:$0xff]  ;;  %v2244_v51 = vld [vmem:[#allocation12 + $0x390] sm:$0xff] }
 0x385   :  { %v5234_v16 = vpack.c.bf16 %v2202_v25, %v2194_v18  ;;  %v2242_v46 = vld [vmem:[#allocation12 + $0x380] sm:$0xff]  ;;  %v2252_v59 = vld [vmem:[#allocation12 + $0x3d0] sm:$0xff]  ;;  %v2269_v18 = vld [vmem:[#allocation12 + $0x458] sm:$0xff] }
 0x386   :  { %2004 = vmatmul.mubr.f32.vlgmr.msra.gmra.mrb[10].mxu0 %v7034_v5  ;;  %2075 = vmatmul.mubr.f32.vlgmr.msra.gmra.mrb[28].mxu1 %v7034_v5  ;;  %v5220_v5 = vpack.c.bf16 %v2155_v28, %v2147_v37  ;;  %v2211_v37 = vld [vmem:[#allocation12 + $0x288] sm:$0xff]  ;;  %v2213_v28 = vld [vmem:[#allocation12 + $0x298] sm:$0xff]  ;;  %v5310_v21 = vpack.c.bf16 %v2252_v59, %v2244_v51  ;;  %v2258_v25 = vld [vmem:[#allocation12 + $0x400] sm:$0xff] }
 0x387   :  { %5219 = vmatpush1.bf16.msra.mxu0 %v5218_v57  ;;  %5283 = vmatpush1.bf16.msra.mxu1 %v5282_v6  ;;  %v2196_v57 = vld [vmem:[#allocation12 + $0x210] sm:$0xff]  ;;  %v2219_v6 = vld [vmem:[#allocation12 + $0x2c8] sm:$0xff] }
 0x388   :  { %5221 = vmatprep.subr.bf16.mxu0 %v5220_v5  ;;  %5285 = vmatprep.subr.bf16.mxu1 %v5284_v14  ;;  %v5298_v5 = vpack.c.bf16 %v2204_v31, %v2196_v57  ;;  %v5236_v14 = vpack.c.bf16 %v2219_v6, %v2211_v37  ;;  %v2266_v57 = vld [vmem:[#allocation12 + $0x440] sm:$0xff]  ;;  %v2260_v37 = vld [vmem:[#allocation12 + $0x410] sm:$0xff] }
 0x389   :  { %v5250_v31 = vpack.c.bf16 %v2266_v57, %v2258_v25  ;;  %v2268_v6 = vld [vmem:[#allocation12 + $0x450] sm:$0xff]  ;;  %v2333_v25 = vld [vmem:[#allocation12 + $0x658] sm:$0xff]  ;;  %v2322_v57 = vld [vmem:[#allocation12 + $0x600] sm:$0xff] }
 0x38a   :  { %v2308_v59 = vld [vmem:[#allocation12 + $0x590] sm:$0xff] }
 0x38b   :  { %5223 = vmatpush1.bf16.msra.mxu0 %v5222_v0  ;;  %5287 = vmatpush1.bf16.msra.mxu1 %v5286_v50  ;;  %v5300_v0 = vpack.c.bf16 %v2221_v39, %v2213_v28  ;;  %v2229_v50 = vld [vmem:[#allocation12 + $0x318] sm:$0xff]  ;;  %v5314_v28 = vpack.c.bf16 %v2268_v6, %v2260_v37  ;;  %v2275_v39 = vld [vmem:[#allocation12 + $0x488] sm:$0xff]  ;;  %v2324_v6 = vld [vmem:[#allocation12 + $0x610] sm:$0xff] }
 0x38c   :  { %5225 = vmatprep.subr.bf16.mxu0 %v5224_v1  ;;  %5289 = vmatprep.subr.bf16.mxu1 %v5288_v23  ;;  %v2237_v1 = vld [vmem:[#allocation12 + $0x358] sm:$0xff]  ;;  %v2226_v23 = vld [vmem:[#allocation12 + $0x300] sm:$0xff] }
 0x38d   :  { %v5304_v47 = vpack.c.bf16 %v2237_v1, %v2229_v50  ;;  %v5242_v35 = vpack.c.bf16 %v2234_v55, %v2226_v23  ;;  %v5318_v50 = vpack.c.bf16 %v2284_v19, %v2276_v48  ;;  %v2291_v1 = vld [vmem:[#allocation12 + $0x508] sm:$0xff]  ;;  %v2301_v23 = vld [vmem:[#allocation12 + $0x558] sm:$0xff]  ;;  %v2290_v55 = vld [vmem:[#allocation12 + $0x500] sm:$0xff] }
 0x38e   :  { %v2340_v19 = vld [vmem:[#allocation12 + $0x690] sm:$0xff] }
 0x38f   :  { %5227 = vmatpush1.bf16.msra.mxu0 %v5226_v27  ;;  %5291 = vmatpush1.bf16.msra.mxu1 %v5290_v11  ;;  %v2236_v27 = vld [vmem:[#allocation12 + $0x350] sm:$0xff]  ;;  %v2251_v11 = vld [vmem:[#allocation12 + $0x3c8] sm:$0xff] }
 0x390   :  { %5229 = vmatprep.subr.bf16.mxu0 %v5228_v63  ;;  %5293 = vmatprep.subr.bf16.mxu1 %v5292_v12  ;;  %v5306_v44 = vpack.c.bf16 %v2236_v27, %v2228_v33  ;;  %v2245_v63 = vld [vmem:[#allocation12 + $0x398] sm:$0xff]  ;;  %v5244_v34 = vpack.c.bf16 %v2251_v11, %v2243_v58  ;;  %v2250_v12 = vld [vmem:[#allocation12 + $0x3c0] sm:$0xff]  ;;  %v2307_v11 = vld [vmem:[#allocation12 + $0x588] sm:$0xff] }
 0x391   :  { %v5308_v17 = vpack.c.bf16 %v2253_v42, %v2245_v63  ;;  %v5246_v54 = vpack.c.bf16 %v2250_v12, %v2242_v46  ;;  %v2315_v63 = vld [vmem:[#allocation12 + $0x5c8] sm:$0xff]  ;;  %v2317_v46 = vld [vmem:[#allocation12 + $0x5d8] sm:$0xff]  ;;  %v2306_v12 = vld [vmem:[#allocation12 + $0x580] sm:$0xff] }
 0x392   :  { %v5260_v42 = vpack.c.bf16 %v2315_v63, %v2307_v11  ;;  %v2371_v63 = vld [vmem:[#allocation12 + $0x788] sm:$0xff] }
 0x393   :  { %5231 = vmatpush1.bf16.msra.mxu0 %v5230_v4  ;;  %5295 = vmatpush1.bf16.msra.mxu1 %v5294_v41  ;;  %v2267_v4 = vld [vmem:[#allocation12 + $0x448] sm:$0xff]  ;;  %v2261_v41 = vld [vmem:[#allocation12 + $0x418] sm:$0xff] }
 0x394   :  { %5233 = vmatprep.subr.bf16.mxu0 %v5232_v26  ;;  %5297 = vmatprep.subr.bf16.mxu1 %v5296_v60  ;;  %v5248_v26 = vpack.c.bf16 %v2267_v4, %v2259_v36  ;;  %v5312_v60 = vpack.c.bf16 %v2269_v18, %v2261_v41  ;;  %v2323_v4 = vld [vmem:[#allocation12 + $0x608] sm:$0xff] }
 0x395   :  { %v2331_v41 = vld [vmem:[#allocation12 + $0x648] sm:$0xff] }
 0x396   :  { %v5264_v18 = vpack.c.bf16 %v2331_v41, %v2323_v4  ;;  %v2135_v41 = vld [vmem:[#allocation12 + $0x28] sm:$0xff] }
 0x397   :  { %5235 = vmatpush1.bf16.msra.mxu0 %v5234_v16  ;;  %5299 = vmatpush1.bf16.msra.mxu1 %v5298_v5  ;;  %v2283_v16 = vld [vmem:[#allocation12 + $0x4c8] sm:$0xff]  ;;  %v2277_v5 = vld [vmem:[#allocation12 + $0x498] sm:$0xff] }
 0x398   :  { %5237 = vmatprep.subr.bf16.mxu0 %v5236_v14  ;;  %5301 = vmatprep.subr.bf16.mxu1 %v5300_v0  ;;  %v5252_v14 = vpack.c.bf16 %v2283_v16, %v2275_v39  ;;  %v5316_v0 = vpack.c.bf16 %v2285_v15, %v2277_v5  ;;  %v2339_v16 = vld [vmem:[#allocation12 + $0x688] sm:$0xff] }
 0x399   :  { %v2347_v5 = vld [vmem:[#allocation12 + $0x6c8] sm:$0xff] }
 0x39a   :  { %v5268_v15 = vpack.c.bf16 %v2347_v5, %v2339_v16 }
 0x39b   :  { %5239 = vmatpush1.bf16.msra.mxu0 %v5238_v2  ;;  %5303 = vmatpush1.bf16.msra.mxu1 %v5302_v3  ;;  %v2299_v2 = vld [vmem:[#allocation12 + $0x548] sm:$0xff]  ;;  %v2293_v3 = vld [vmem:[#allocation12 + $0x518] sm:$0xff] }
 0x39c   :  { %5241 = vmatprep.subr.bf16.mxu0 %v5240_v9  ;;  %5305 = vmatprep.subr.bf16.mxu1 %v5304_v47  ;;  %v5256_v9 = vpack.c.bf16 %v2299_v2, %v2291_v1  ;;  %v2298_v47 = vld [vmem:[#allocation12 + $0x540] sm:$0xff]  ;;  %v5320_v33 = vpack.c.bf16 %v2301_v23, %v2293_v3  ;;  %v2355_v2 = vld [vmem:[#allocation12 + $0x708] sm:$0xff] }
 0x39d   :  { %v5258_v27 = vpack.c.bf16 %v2298_v47, %v2290_v55  ;;  %v2363_v3 = vld [vmem:[#allocation12 + $0x748] sm:$0xff]  ;;  %v2365_v55 = vld [vmem:[#allocation12 + $0x758] sm:$0xff]  ;;  %v2354_v47 = vld [vmem:[#allocation12 + $0x700] sm:$0xff] }
 0x39e   :  { %v5272_v23 = vpack.c.bf16 %v2363_v3, %v2355_v2 }
 0x39f   :  { %5243 = vmatpush1.bf16.msra.mxu0 %v5242_v35  ;;  %5307 = vmatpush1.bf16.msra.mxu1 %v5306_v44  ;;  %v2292_v35 = vld [vmem:[#allocation12 + $0x510] sm:$0xff] }
 0x3a0   :  { %5245 = vmatprep.subr.bf16.mxu0 %v5244_v34  ;;  %5309 = vmatprep.subr.bf16.mxu1 %v5308_v17  ;;  %v2300_v44 = vld [vmem:[#allocation12 + $0x550] sm:$0xff]  ;;  %v2309_v34 = vld [vmem:[#allocation12 + $0x598] sm:$0xff]  ;;  %v2314_v17 = vld [vmem:[#allocation12 + $0x5c0] sm:$0xff] }
 0x3a1   :  { %v5322_v58 = vpack.c.bf16 %v2300_v44, %v2292_v35  ;;  %v5262_v51 = vpack.c.bf16 %v2314_v17, %v2306_v12  ;;  %v2356_v44 = vld [vmem:[#allocation12 + $0x710] sm:$0xff]  ;;  %v2381_v12 = vld [vmem:[#allocation12 + $0x7d8] sm:$0xff]  ;;  %v2370_v17 = vld [vmem:[#allocation12 + $0x780] sm:$0xff] }
 0x3a3   :  { %5247 = vmatpush1.bf16.msra.mxu0 %v5246_v54  ;;  %5311 = vmatpush1.bf16.msra.mxu1 %v5310_v21  ;;  %v5324_v54 = vpack.c.bf16 %v2317_v46, %v2309_v34  ;;  %v2316_v21 = vld [vmem:[#allocation12 + $0x5d0] sm:$0xff]  ;;  %v2379_v34 = vld [vmem:[#allocation12 + $0x7c8] sm:$0xff] }
 0x3a4   :  { %5249 = vmatprep.subr.bf16.mxu0 %v5248_v26  ;;  %5313 = vmatprep.subr.bf16.mxu1 %v5312_v60  ;;  %v5326_v36 = vpack.c.bf16 %v2316_v21, %v2308_v59  ;;  %v2325_v26 = vld [vmem:[#allocation12 + $0x618] sm:$0xff]  ;;  %v2330_v60 = vld [vmem:[#allocation12 + $0x640] sm:$0xff]  ;;  %v5276_v46 = vpack.c.bf16 %v2379_v34, %v2371_v63  ;;  %v2372_v21 = vld [vmem:[#allocation12 + $0x790] sm:$0xff] }
 0x3a5   :  { %v5266_v37 = vpack.c.bf16 %v2330_v60, %v2322_v57  ;;  %v2145_v57 = vld [vmem:[#allocation12 + $0x78] sm:$0xff] }
 0x3a7   :  { %5251 = vmatpush1.bf16.msra.mxu0 %v5250_v31  ;;  %5315 = vmatpush1.bf16.msra.mxu1 %v5314_v28  ;;  %v5328_v31 = vpack.c.bf16 %v2333_v25, %v2325_v26  ;;  %v2332_v28 = vld [vmem:[#allocation12 + $0x650] sm:$0xff]  ;;  %v2143_v26 = vld [vmem:[#allocation12 + $0x68] sm:$0xff] }
 0x3a8   :  { %5253 = vmatprep.subr.bf16.mxu0 %v5252_v14  ;;  %5317 = vmatprep.subr.bf16.mxu1 %v5316_v0  ;;  %v5330_v39 = vpack.c.bf16 %v2332_v28, %v2324_v6  ;;  %v2341_v14 = vld [vmem:[#allocation12 + $0x698] sm:$0xff]  ;;  %v2346_v0 = vld [vmem:[#allocation12 + $0x6c0] sm:$0xff]  ;;  %v5344_v25 = vpack.c.bf16 %v2143_v26, %v2135_v41 }
 0x3a9   :  { %v5270_v48 = vpack.c.bf16 %v2346_v0, %v2338_v32 }
 0x3ab   :  { %5255 = vmatpush1.bf16.msra.mxu0 %v5254_v38  ;;  %5319 = vmatpush1.bf16.msra.mxu1 %v5318_v50  ;;  %v5332_v38 = vpack.c.bf16 %v2349_v30, %v2341_v14  ;;  %v2348_v50 = vld [vmem:[#allocation12 + $0x6d0] sm:$0xff] }
 0x3ac   :  { %5257 = vmatprep.subr.bf16.mxu0 %v5256_v9  ;;  %5321 = vmatprep.subr.bf16.mxu1 %v5320_v33  ;;  %v5334_v1 = vpack.c.bf16 %v2348_v50, %v2340_v19  ;;  %v2357_v9 = vld [vmem:[#allocation12 + $0x718] sm:$0xff]  ;;  %v2362_v33 = vld [vmem:[#allocation12 + $0x740] sm:$0xff] }
 0x3ad   :  { %v5274_v35 = vpack.c.bf16 %v2362_v33, %v2354_v47 }
 0x3af   :  { %5259 = vmatpush1.bf16.msra.mxu0 %v5258_v27  ;;  %5323 = vmatpush1.bf16.msra.mxu1 %v5322_v58  ;;  %v5336_v27 = vpack.c.bf16 %v2365_v55, %v2357_v9  ;;  %v2364_v58 = vld [vmem:[#allocation12 + $0x750] sm:$0xff] }
 0x3b0   :  { %5261 = vmatprep.subr.bf16.mxu0 %v5260_v42  ;;  %5325 = vmatprep.subr.bf16.mxu1 %v5324_v54  ;;  %v5338_v11 = vpack.c.bf16 %v2364_v58, %v2356_v44  ;;  %v2373_v42 = vld [vmem:[#allocation12 + $0x798] sm:$0xff]  ;;  %v2378_v54 = vld [vmem:[#allocation12 + $0x7c0] sm:$0xff] }
 0x3b1   :  { %v5278_v59 = vpack.c.bf16 %v2378_v54, %v2370_v17 }
 0x3b3   :  { %5263 = vmatpush1.bf16.msra.mxu0 %v5262_v51  ;;  %5327 = vmatpush1.bf16.msra.mxu1 %v5326_v36  ;;  %v5340_v51 = vpack.c.bf16 %v2381_v12, %v2373_v42  ;;  %v2380_v36 = vld [vmem:[#allocation12 + $0x7d0] sm:$0xff] }
 0x3b4   :  { %5265 = vmatprep.subr.bf16.mxu0 %v5264_v18  ;;  %5329 = vmatprep.subr.bf16.mxu1 %v5328_v31  ;;  %v5342_v4 = vpack.c.bf16 %v2380_v36, %v2372_v21  ;;  %v2137_v18 = vld [vmem:[#allocation12 + $0x38] sm:$0xff] }
 0x3b5   :  { %v5408_v60 = vpack.c.bf16 %v2145_v57, %v2137_v18  ;;  %v2134_v18 = vld [vmem:[#allocation12 + $0x20] sm:$0xff]  ;;  %v2136_v57 = vld [vmem:[#allocation12 + $0x30] sm:$0xff] }
 0x3b7   :  { %5267 = vmatpush1.bf16.msra.mxu0 %v5266_v37  ;;  %5331 = vmatpush1.bf16.msra.mxu1 %v5330_v39 }
 0x3b8   :  { %5269 = vmatprep.subr.bf16.mxu0 %v5268_v15  ;;  %5333 = vmatprep.subr.bf16.mxu1 %v5332_v38 }
 0x3bb   :  { %5271 = vmatpush1.bf16.msra.mxu0 %v5270_v48  ;;  %5335 = vmatpush1.bf16.msra.mxu1 %v5334_v1 }
 0x3bc   :  { %5273 = vmatprep.subr.bf16.mxu0 %v5272_v23  ;;  %5337 = vmatprep.subr.bf16.mxu1 %v5336_v27 }
 0x3bf   :  { %5275 = vmatpush1.bf16.msra.mxu0 %v5274_v35  ;;  %5339 = vmatpush1.bf16.msra.mxu1 %v5338_v11 }
 0x3c0   :  { %5277 = vmatprep.subr.bf16.mxu0 %v5276_v46  ;;  %5341 = vmatprep.subr.bf16.mxu1 %v5340_v51 }
 0x3c3   :  { %5279 = vmatpush1.bf16.msra.mxu0 %v5278_v59  ;;  %5343 = vmatpush1.bf16.msra.mxu1 %v5342_v4 }
 0x3c4   :  { %5345 = vmatprep.subr.bf16.mxu0 %v5344_v25  ;;  %5409 = vmatprep.subr.bf16.mxu1 %v5408_v60  ;;  %v2142_v25 = vld [vmem:[#allocation12 + $0x60] sm:$0xff]  ;;  %v2144_v60 = vld [vmem:[#allocation12 + $0x70] sm:$0xff] }
 0x419   :  { %v1863_v31 = vpop.f32.mrb[8].mxu0  ;;  %v1934_v37 = vpop.f32.mrb[16].mxu1 }
 0x41a   :  { %v2108_v6 = vadd.f32 %v1863_v31, %v6957_v7  ;;  %v1865_v28 = vpop.f32.mrb[9].mxu0  ;;  %v1936_v39 = vpop.f32.mrb[17].mxu1  ;;  %v6172_v15 = vadd.f32 %v1934_v37, %v6981_v8 }
 0x41b   :  { %v2109_v16 = vadd.f32 %v1865_v28, %v6961_v13 }
 0x41c   :  { %v2112_v5 = vmul.f32 0.5, %v2108_v6  ;;  %v2151_v6 = vld [vmem:[#allocation12 + $0xa8] sm:$0xff] }
 0x41d   :  { %v2116_v14 = vmul.f32 0.5, %v2109_v16  ;;  %v2153_v16 = vld [vmem:[#allocation12 + $0xb8] sm:$0xff] }
 0x41e   :  { %6236 = vtanh.f32 %v2112_v5  ;;  %v2161_v5 = vld [vmem:[#allocation12 + $0xf8] sm:$0xff] }
 0x41f   :  { %6238 = vtanh.f32 %v2116_v14 }
 0x420   :  { %6240 = vtanh.f32 %v6172_v15  ;;  %v5346_v15 = vpack.c.bf16 %v2142_v25, %v2134_v18  ;;  %v2209_v18 = vld [vmem:[#allocation12 + $0x278] sm:$0xff] }
 0x428   :  { %v6237_v30 = vpop.eup %6236 }
 0x429   :  { %v6239_v32 = vpop.eup %6238  ;;  %v2114_v0 = vmul.f32 0.5, %v6237_v30  ;;  %v5410_v30 = vpack.c.bf16 %v2144_v60, %v2136_v57  ;;  %v2198_v60 = vld [vmem:[#allocation12 + $0x220] sm:$0xff] }
 0x42a   :  { %v2118_v38 = vmul.f32 0.5, %v6239_v32  ;;  %v6241_v19 = vpop.eup %6240  ;;  %v2150_v32 = vld [vmem:[#allocation12 + $0xa0] sm:$0xff] }
 0x42b   :  { %v2115_v48 = vadd.f32 0.5, %v2114_v0  ;;  %v2158_v0 = vld [vmem:[#allocation12 + $0xe0] sm:$0xff] }
 0x42c   :  { %v2119_v50 = vadd.f32 0.5, %v2118_v38 }
 0x42d   :  { %v2126_v1 = vmul.f32 %v6241_v19, %v2115_v48  ;;  %v2152_v48 = vld [vmem:[#allocation12 + $0xb0] sm:$0xff] }
 0x42e   :  { %v2125_v7 = vmul.f32 %v2119_v50, %v7002_v45  ;;  %v6173_v45 = vadd.f32 %v1936_v39, %v6983_v40  ;;  %v2160_v19 = vld [vmem:[#allocation12 + $0xf0] sm:$0xff]  ;;  %v2167_v50 = vld [vmem:[#allocation12 + $0x128] sm:$0xff] }
 0x430   :  { %v7048_v2 = vadd.f32 %v2126_v1, %v2125_v7  ;;  %v2121_v11 = vmul.f32 0.5, %v6173_v45  ;;  %v5412_v7 = vpack.c.bf16 %v2161_v5, %v2153_v16  ;;  %v2176_v45 = vld [vmem:[#allocation12 + $0x170] sm:$0xff]  ;;  %v2223_v16 = vld [vmem:[#allocation12 + $0x2e8] sm:$0xff]  ;;  %v2217_v5 = vld [vmem:[#allocation12 + $0x2b8] sm:$0xff] }
 0x459   :  { %v2005_v13 = vpop.f32.mrb[10].mxu0  ;;  %v2076_v3 = vpop.f32.mrb[28].mxu1 }
 0x45a   :  { %v2081_v9 = vadd.f32 %v2005_v13, %v7009_v52  ;;  %v2007_v23 = vpop.f32.mrb[11].mxu0  ;;  %v2078_v55 = vpop.f32.mrb[29].mxu1  ;;  %v2083_v35 = vadd.f32 %v2076_v3, %v7017_v22  ;;  %v2175_v13 = vld [vmem:[#allocation12 + $0x168] sm:$0xff]  ;;  %v2169_v3 = vld [vmem:[#allocation12 + $0x138] sm:$0xff] }
 0x45b   :  { %v2082_v47 = vadd.f32 %v2007_v23, %v7013_v61  ;;  %v2084_v44 = vadd.f32 %v2078_v55, %v7023_v49  ;;  %v5350_v23 = vpack.c.bf16 %v2158_v0, %v2150_v32  ;;  %v5414_v55 = vpack.c.bf16 %v2160_v19, %v2152_v48  ;;  %v2214_v0 = vld [vmem:[#allocation12 + $0x2a0] sm:$0xff] }
 0x45c   :  { %v2085_v33 = vmul.f32 0.5, %v2081_v9  ;;  %v2177_v9 = vld [vmem:[#allocation12 + $0x178] sm:$0xff]  ;;  %v2222_v48 = vld [vmem:[#allocation12 + $0x2e0] sm:$0xff] }
 0x45d   :  { %v2089_v27 = vmul.f32 0.5, %v2082_v47  ;;  %v2094_v58 = vmul.f32 0.5, %v2084_v44  ;;  %v2166_v47 = vld [vmem:[#allocation12 + $0x120] sm:$0xff]  ;;  %v2168_v44 = vld [vmem:[#allocation12 + $0x130] sm:$0xff] }
 0x45e   :  { %6242 = vtanh.f32 %v2085_v33  ;;  %v2174_v33 = vld [vmem:[#allocation12 + $0x160] sm:$0xff] }
 0x45f   :  { %6244 = vtanh.f32 %v2089_v27  ;;  %v5352_v27 = vpack.c.bf16 %v2175_v13, %v2167_v50  ;;  %v2231_v13 = vld [vmem:[#allocation12 + $0x328] sm:$0xff] }
 0x460   :  { %6246 = vtanh.f32 %v2083_v35  ;;  %v5416_v35 = vpack.c.bf16 %v2177_v9, %v2169_v3  ;;  %v2239_v3 = vld [vmem:[#allocation12 + $0x368] sm:$0xff]  ;;  %v2233_v9 = vld [vmem:[#allocation12 + $0x338] sm:$0xff] }
 0x461   :  { %6248 = vtanh.f32 %v2094_v58  ;;  %v2183_v58 = vld [vmem:[#allocation12 + $0x1a8] sm:$0xff] }
 0x462   :  { %6250 = vtanh.f32 %v2121_v11  ;;  %v2191_v11 = vld [vmem:[#allocation12 + $0x1e8] sm:$0xff] }
 0x463   :  { %6252 = vtanh.f32 %v7048_v2 }
 0x468   :  { %v6243_v63 = vpop.eup %6242 }
 0x469   :  { %v6245_v34 = vpop.eup %6244  ;;  %v2087_v42 = vmul.f32 0.5, %v6243_v63  ;;  %v2185_v63 = vld [vmem:[#allocation12 + $0x1b8] sm:$0xff] }
 0x46a   :  { %v2091_v46 = vmul.f32 0.5, %v6245_v34  ;;  %v6247_v17 = vpop.eup %6246  ;;  %v2193_v34 = vld [vmem:[#allocation12 + $0x1f8] sm:$0xff] }
 0x46b   :  { %v2088_v12 = vadd.f32 0.5, %v2087_v42  ;;  %v6249_v36 = vpop.eup %6248  ;;  %v5354_v42 = vpack.c.bf16 %v2174_v33, %v2166_v47  ;;  %v2230_v33 = vld [vmem:[#allocation12 + $0x320] sm:$0xff] }
 0x46c   :  { %v2092_v54 = vadd.f32 0.5, %v2091_v46  ;;  %v6251_v4 = vpop.eup %6250  ;;  %v2096_v41 = vmul.f32 0.5, %v6249_v36  ;;  %v5418_v46 = vpack.c.bf16 %v2176_v45, %v2168_v44  ;;  %v2192_v36 = vld [vmem:[#allocation12 + $0x1f0] sm:$0xff] }
 0x46d   :  { %v2099_v51 = vmul.f32 %v6247_v17, %v2088_v12  ;;  %v2123_v26 = vmul.f32 0.5, %v6251_v4  ;;  %v6253_v31 = vpop.eup %6252  ;;  %v2182_v12 = vld [vmem:[#allocation12 + $0x1a0] sm:$0xff]  ;;  %v2199_v4 = vld [vmem:[#allocation12 + $0x228] sm:$0xff]  ;;  %v2232_v45 = vld [vmem:[#allocation12 + $0x330] sm:$0xff] }
 0x46e   :  { %v2098_v59 = vmul.f32 %v2092_v54, %v7028_v53  ;;  %v2097_v37 = vadd.f32 0.5, %v2096_v41  ;;  %v2159_v53 = vld [vmem:[#allocation12 + $0xe8] sm:$0xff]  ;;  %v2190_v17 = vld [vmem:[#allocation12 + $0x1e0] sm:$0xff]  ;;  %v5356_v54 = vpack.c.bf16 %v2191_v11, %v2183_v58  ;;  %v2240_v58 = vld [vmem:[#allocation12 + $0x370] sm:$0xff] }
 0x46f   :  { %v2124_v39 = vadd.f32 0.5, %v2123_v26  ;;  %v5348_v1 = vpack.c.bf16 %v2159_v53, %v2151_v6  ;;  %v2207_v41 = vld [vmem:[#allocation12 + $0x268] sm:$0xff]  ;;  %v2201_v26 = vld [vmem:[#allocation12 + $0x238] sm:$0xff]  ;;  %v5358_v25 = vpack.c.bf16 %v2190_v17, %v2182_v12  ;;  %v5434_v12 = vpack.c.bf16 %v2240_v58, %v2232_v45  ;;  %v2246_v17 = vld [vmem:[#allocation12 + $0x3a0] sm:$0xff] }
 0x470   :  { %v7056_v21 = vadd.f32 %v2099_v51, %v2098_v59  ;;  %v5420_v51 = vpack.c.bf16 %v2193_v34, %v2185_v63  ;;  %v2184_v59 = vld [vmem:[#allocation12 + $0x1b0] sm:$0xff]  ;;  %v5424_v6 = vpack.c.bf16 %v2209_v18, %v2201_v26  ;;  %v2215_v53 = vld [vmem:[#allocation12 + $0x2a8] sm:$0xff]  ;;  %v2249_v34 = vld [vmem:[#allocation12 + $0x3b8] sm:$0xff] }
 0x471   :  { %v7062_v38 = vmul.f32 %v6253_v31, %v2124_v39  ;;  %v5422_v57 = vpack.c.bf16 %v2192_v36, %v2184_v59  ;;  %v2206_v31 = vld [vmem:[#allocation12 + $0x260] sm:$0xff]  ;;  %v2208_v39 = vld [vmem:[#allocation12 + $0x270] sm:$0xff]  ;;  %v5364_v19 = vpack.c.bf16 %v2223_v16, %v2215_v53  ;;  %v2247_v11 = vld [vmem:[#allocation12 + $0x3a8] sm:$0xff] }
 0x472   :  { %6254 = vtanh.f32 %v7056_v21  ;;  %v2255_v63 = vld [vmem:[#allocation12 + $0x3e8] sm:$0xff]  ;;  %v2248_v36 = vld [vmem:[#allocation12 + $0x3b0] sm:$0xff]  ;;  %v2265_v18 = vld [vmem:[#allocation12 + $0x438] sm:$0xff] }
 0x473   :  { %v2271_v26 = vld [vmem:[#allocation12 + $0x468] sm:$0xff]  ;;  %v2272_v53 = vld [vmem:[#allocation12 + $0x470] sm:$0xff] }
 0x474   :  { %v2279_v16 = vld [vmem:[#allocation12 + $0x4a8] sm:$0xff]  ;;  %v2296_v58 = vld [vmem:[#allocation12 + $0x530] sm:$0xff] }
 0x47c   :  { %v6255_v28 = vpop.eup %6254 }
 0x47d   :  { %v7060_v14 = vmul.f32 %v6255_v28, %v2097_v37  ;;  %v5360_v37 = vpack.c.bf16 %v2207_v41, %v2199_v4  ;;  %v2200_v28 = vld [vmem:[#allocation12 + $0x230] sm:$0xff]  ;;  %v2263_v41 = vld [vmem:[#allocation12 + $0x428] sm:$0xff] }
 0x47e   :  { %v5426_v32 = vpack.c.bf16 %v2208_v39, %v2200_v28  ;;  %v2256_v4 = vld [vmem:[#allocation12 + $0x3f0] sm:$0xff] }
 0x47f   :  { %7474 = vst [vmem:[#allocation30_spill] sm:$0xff] %v7060_v14  ;;  %2450 = vmatprep.mubr.f32.mxu0 %v7060_v14  ;;  %2521 = vmatprep.mubr.f32.mxu1 %v7060_v14  ;;  %v2264_v39 = vld [vmem:[#allocation12 + $0x430] sm:$0xff] }
 0x480   :  { %2451 = vmatmul.mubr.f32.vlgmr.msra.gmra.mrb[12].mxu0 %v7062_v38  ;;  %2522 = vmatmul.mubr.f32.vlgmr.msra.gmra.mrb[18].mxu1 %v7062_v38 }
 0x481   :  { %5347 = vmatpush1.bf16.msra.mxu0 %v5346_v15  ;;  %5411 = vmatpush1.bf16.msra.mxu1 %v5410_v30  ;;  %v2225_v15 = vld [vmem:[#allocation12 + $0x2f8] sm:$0xff]  ;;  %v5362_v30 = vpack.c.bf16 %v2206_v31, %v2198_v60  ;;  %v5438_v60 = vpack.c.bf16 %v2256_v4, %v2248_v36  ;;  %v2262_v31 = vld [vmem:[#allocation12 + $0x420] sm:$0xff]  ;;  %v2312_v4 = vld [vmem:[#allocation12 + $0x5b0] sm:$0xff] }
 0x482   :  { %2592 = vmatprep.mubr.f32.mxu0 %v7060_v14  ;;  %2663 = vmatprep.mubr.f32.mxu1 %v7060_v14  ;;  %v5428_v50 = vpack.c.bf16 %v2225_v15, %v2217_v5  ;;  %v2287_v5 = vld [vmem:[#allocation12 + $0x4e8] sm:$0xff]  ;;  %v2281_v15 = vld [vmem:[#allocation12 + $0x4b8] sm:$0xff] }
 0x483   :  { %5349 = vmatprep.subr.bf16.mxu0 %v5348_v1  ;;  %5413 = vmatprep.subr.bf16.mxu1 %v5412_v7  ;;  %v2216_v1 = vld [vmem:[#allocation12 + $0x2b0] sm:$0xff]  ;;  %v3481_v14 = vld [vmem:[#allocation12 + $0x568] sm:$0xff] }
 0x484   :  { %v2224_v7 = vld [vmem:[#allocation12 + $0x2f0] sm:$0xff] }
 0x485   :  { %5351 = vmatpush1.bf16.msra.mxu0 %v5350_v23  ;;  %5415 = vmatpush1.bf16.msra.mxu1 %v5414_v55  ;;  %v2241_v23 = vld [vmem:[#allocation12 + $0x378] sm:$0xff]  ;;  %v5366_v55 = vpack.c.bf16 %v2222_v48, %v2214_v0  ;;  %v5430_v47 = vpack.c.bf16 %v2224_v7, %v2216_v1  ;;  %v5442_v0 = vpack.c.bf16 %v2272_v53, %v2264_v39  ;;  %v2278_v48 = vld [vmem:[#allocation12 + $0x4a0] sm:$0xff]  ;;  %v2280_v7 = vld [vmem:[#allocation12 + $0x4b0] sm:$0xff] }
 0x486   :  { %5353 = vmatprep.subr.bf16.mxu0 %v5352_v27  ;;  %5417 = vmatprep.subr.bf16.mxu1 %v5416_v35  ;;  %v2238_v27 = vld [vmem:[#allocation12 + $0x360] sm:$0xff]  ;;  %v5368_v35 = vpack.c.bf16 %v2239_v3, %v2231_v13  ;;  %v5432_v44 = vpack.c.bf16 %v2241_v23, %v2233_v9  ;;  %v2288_v13 = vld [vmem:[#allocation12 + $0x4f0] sm:$0xff]  ;;  %v2295_v3 = vld [vmem:[#allocation12 + $0x528] sm:$0xff] }
 0x487   :  { %v2303_v9 = vld [vmem:[#allocation12 + $0x568] sm:$0xff]  ;;  %v2297_v23 = vld [vmem:[#allocation12 + $0x538] sm:$0xff]  ;;  %v2328_v53 = vld [vmem:[#allocation12 + $0x630] sm:$0xff] }
 0x489   :  { %5355 = vmatpush1.bf16.msra.mxu0 %v5354_v42  ;;  %5419 = vmatpush1.bf16.msra.mxu1 %v5418_v46  ;;  %v2257_v42 = vld [vmem:[#allocation12 + $0x3f8] sm:$0xff]  ;;  %v5370_v46 = vpack.c.bf16 %v2238_v27, %v2230_v33  ;;  %v5446_v33 = vpack.c.bf16 %v2288_v13, %v2280_v7  ;;  %v2294_v27 = vld [vmem:[#allocation12 + $0x520] sm:$0xff]  ;;  %v2344_v13 = vld [vmem:[#allocation12 + $0x6b0] sm:$0xff] }
 0x48a   :  { %5357 = vmatprep.subr.bf16.mxu0 %v5356_v54  ;;  %5421 = vmatprep.subr.bf16.mxu1 %v5420_v51  ;;  %v2254_v54 = vld [vmem:[#allocation12 + $0x3e0] sm:$0xff]  ;;  %v5372_v51 = vpack.c.bf16 %v2255_v63, %v2247_v11  ;;  %v5436_v59 = vpack.c.bf16 %v2257_v42, %v2249_v34  ;;  %v2304_v11 = vld [vmem:[#allocation12 + $0x570] sm:$0xff]  ;;  %v2311_v63 = vld [vmem:[#allocation12 + $0x5a8] sm:$0xff] }
 0x48b   :  { %v2319_v34 = vld [vmem:[#allocation12 + $0x5e8] sm:$0xff]  ;;  %v2313_v42 = vld [vmem:[#allocation12 + $0x5b8] sm:$0xff] }
 0x48d   :  { %5359 = vmatpush1.bf16.msra.mxu0 %v5358_v25  ;;  %5423 = vmatpush1.bf16.msra.mxu1 %v5422_v57  ;;  %v2273_v25 = vld [vmem:[#allocation12 + $0x478] sm:$0xff]  ;;  %v5374_v57 = vpack.c.bf16 %v2254_v54, %v2246_v17  ;;  %v5450_v17 = vpack.c.bf16 %v2304_v11, %v2296_v58  ;;  %v2310_v54 = vld [vmem:[#allocation12 + $0x5a0] sm:$0xff]  ;;  %v2360_v11 = vld [vmem:[#allocation12 + $0x730] sm:$0xff] }
 0x48e   :  { %5361 = vmatprep.subr.bf16.mxu0 %v5360_v37  ;;  %5425 = vmatprep.subr.bf16.mxu1 %v5424_v6  ;;  %v2270_v37 = vld [vmem:[#allocation12 + $0x460] sm:$0xff]  ;;  %v5376_v6 = vpack.c.bf16 %v2271_v26, %v2263_v41  ;;  %v5440_v28 = vpack.c.bf16 %v2273_v25, %v2265_v18  ;;  %v2320_v41 = vld [vmem:[#allocation12 + $0x5f0] sm:$0xff]  ;;  %v2327_v26 = vld [vmem:[#allocation12 + $0x628] sm:$0xff] }
 0x48f   :  { %v2335_v18 = vld [vmem:[#allocation12 + $0x668] sm:$0xff]  ;;  %v2329_v25 = vld [vmem:[#allocation12 + $0x638] sm:$0xff] }
 0x491   :  { %5363 = vmatpush1.bf16.msra.mxu0 %v5362_v30  ;;  %5427 = vmatpush1.bf16.msra.mxu1 %v5426_v32  ;;  %v2289_v30 = vld [vmem:[#allocation12 + $0x4f8] sm:$0xff]  ;;  %v5378_v32 = vpack.c.bf16 %v2270_v37, %v2262_v31  ;;  %v5454_v31 = vpack.c.bf16 %v2320_v41, %v2312_v4  ;;  %v2326_v37 = vld [vmem:[#allocation12 + $0x620] sm:$0xff]  ;;  %v2376_v41 = vld [vmem:[#allocation12 + $0x7b0] sm:$0xff] }
 0x492   :  { %5365 = vmatprep.subr.bf16.mxu0 %v5364_v19  ;;  %5429 = vmatprep.subr.bf16.mxu1 %v5428_v50  ;;  %v2286_v19 = vld [vmem:[#allocation12 + $0x4e0] sm:$0xff]  ;;  %v5380_v50 = vpack.c.bf16 %v2287_v5, %v2279_v16  ;;  %v5444_v1 = vpack.c.bf16 %v2289_v30, %v2281_v15  ;;  %v2336_v16 = vld [vmem:[#allocation12 + $0x670] sm:$0xff]  ;;  %v2343_v5 = vld [vmem:[#allocation12 + $0x6a8] sm:$0xff] }
 0x493   :  { %v2351_v15 = vld [vmem:[#allocation12 + $0x6e8] sm:$0xff]  ;;  %v2345_v30 = vld [vmem:[#allocation12 + $0x6b8] sm:$0xff]  ;;  %v2382_v4 = vld [vmem:[#allocation12 + $0x7e0] sm:$0xff] }
 0x495   :  { %5367 = vmatpush1.bf16.msra.mxu0 %v5366_v55  ;;  %5431 = vmatpush1.bf16.msra.mxu1 %v5430_v47  ;;  %v2305_v55 = vld [vmem:[#allocation12 + $0x578] sm:$0xff]  ;;  %v5382_v47 = vpack.c.bf16 %v2286_v19, %v2278_v48  ;;  %v5458_v48 = vpack.c.bf16 %v2336_v16, %v2328_v53  ;;  %v2342_v19 = vld [vmem:[#allocation12 + $0x6a0] sm:$0xff] }
 0x496   :  { %5369 = vmatprep.subr.bf16.mxu0 %v5368_v35  ;;  %5433 = vmatprep.subr.bf16.mxu1 %v5432_v44  ;;  %v2302_v35 = vld [vmem:[#allocation12 + $0x560] sm:$0xff]  ;;  %v5384_v44 = vpack.c.bf16 %v2303_v9, %v2295_v3  ;;  %v5448_v45 = vpack.c.bf16 %v2305_v55, %v2297_v23  ;;  %v2352_v3 = vld [vmem:[#allocation12 + $0x6f0] sm:$0xff]  ;;  %v2359_v9 = vld [vmem:[#allocation12 + $0x728] sm:$0xff] }
 0x497   :  { %v2367_v23 = vld [vmem:[#allocation12 + $0x768] sm:$0xff]  ;;  %v2361_v55 = vld [vmem:[#allocation12 + $0x738] sm:$0xff] }
 0x499   :  { %5371 = vmatpush1.bf16.msra.mxu0 %v5370_v46  ;;  %5435 = vmatpush1.bf16.msra.mxu1 %v5434_v12  ;;  %v2321_v46 = vld [vmem:[#allocation12 + $0x5f8] sm:$0xff]  ;;  %v5386_v12 = vpack.c.bf16 %v2302_v35, %v2294_v27  ;;  %v5462_v27 = vpack.c.bf16 %v2352_v3, %v2344_v13  ;;  %v2358_v35 = vld [vmem:[#allocation12 + $0x720] sm:$0xff]  ;;  %v2737_v13 = vld [vmem:[#allocation12 + $0x90] sm:$0xff] }
 0x49a   :  { %5373 = vmatprep.subr.bf16.mxu0 %v5372_v51  ;;  %5437 = vmatprep.subr.bf16.mxu1 %v5436_v59  ;;  %v2318_v51 = vld [vmem:[#allocation12 + $0x5e0] sm:$0xff]  ;;  %v5388_v59 = vpack.c.bf16 %v2319_v34, %v2311_v63  ;;  %v5452_v36 = vpack.c.bf16 %v2321_v46, %v2313_v42  ;;  %v2368_v63 = vld [vmem:[#allocation12 + $0x770] sm:$0xff]  ;;  %v2375_v34 = vld [vmem:[#allocation12 + $0x7a8] sm:$0xff] }
 0x49b   :  { %v2383_v42 = vld [vmem:[#allocation12 + $0x7e8] sm:$0xff]  ;;  %v2377_v46 = vld [vmem:[#allocation12 + $0x7b8] sm:$0xff] }
 0x49d   :  { %5375 = vmatpush1.bf16.msra.mxu0 %v5374_v57  ;;  %5439 = vmatpush1.bf16.msra.mxu1 %v5438_v60  ;;  %v2337_v57 = vld [vmem:[#allocation12 + $0x678] sm:$0xff]  ;;  %v5390_v60 = vpack.c.bf16 %v2318_v51, %v2310_v54  ;;  %v5466_v54 = vpack.c.bf16 %v2368_v63, %v2360_v11  ;;  %v2374_v51 = vld [vmem:[#allocation12 + $0x7a0] sm:$0xff]  ;;  %v2753_v11 = vld [vmem:[#allocation12 + $0x110] sm:$0xff] }
 0x49e   :  { %5377 = vmatprep.subr.bf16.mxu0 %v5376_v6  ;;  %5441 = vmatprep.subr.bf16.mxu1 %v5440_v28  ;;  %v2334_v6 = vld [vmem:[#allocation12 + $0x660] sm:$0xff]  ;;  %v5392_v28 = vpack.c.bf16 %v2335_v18, %v2327_v26  ;;  %v5456_v39 = vpack.c.bf16 %v2337_v57, %v2329_v25  ;;  %v2384_v26 = vld [vmem:[#allocation12 + $0x7f0] sm:$0xff]  ;;  %v5406_v18 = vpack.c.bf16 %v2382_v4, %v2374_v51  ;;  %v2720_v57 = vld [vmem:[#allocation12 + $0x8] sm:$0xff] }
 0x49f   :  { %v5470_v25 = vpack.c.bf16 %v2384_v26, %v2376_v41  ;;  %v2761_v63 = vld [vmem:[#allocation12 + $0x150] sm:$0xff]  ;;  %v2778_v51 = vld [vmem:[#allocation12 + $0x1d8] sm:$0xff] }
 0x4a0   :  { %v2769_v41 = vld [vmem:[#allocation12 + $0x190] sm:$0xff] }
 0x4a1   :  { %5379 = vmatpush1.bf16.msra.mxu0 %v5378_v32  ;;  %5443 = vmatpush1.bf16.msra.mxu1 %v5442_v0  ;;  %v2353_v32 = vld [vmem:[#allocation12 + $0x6f8] sm:$0xff]  ;;  %v5394_v0 = vpack.c.bf16 %v2334_v6, %v2326_v37  ;;  %v2777_v26 = vld [vmem:[#allocation12 + $0x1d0] sm:$0xff] }
 0x4a2   :  { %5381 = vmatprep.subr.bf16.mxu0 %v5380_v50  ;;  %5445 = vmatprep.subr.bf16.mxu1 %v5444_v1  ;;  %v2350_v50 = vld [vmem:[#allocation12 + $0x6e0] sm:$0xff]  ;;  %v5396_v1 = vpack.c.bf16 %v2351_v15, %v2343_v5  ;;  %v5460_v7 = vpack.c.bf16 %v2353_v32, %v2345_v30  ;;  %v2730_v6 = vld [vmem:[#allocation12 + $0x58] sm:$0xff]  ;;  %v2721_v5 = vld [vmem:[#allocation12 + $0x10] sm:$0xff] }
 0x4a3   :  { %v2729_v15 = vld [vmem:[#allocation12 + $0x50] sm:$0xff]  ;;  %v2736_v30 = vld [vmem:[#allocation12 + $0x88] sm:$0xff] }
 0x4a4   :  { %v5538_v32 = vpack.c.bf16 %v2729_v15, %v2721_v5  ;;  %v2793_v5 = vld [vmem:[#allocation12 + $0x250] sm:$0xff]  ;;  %v2800_v15 = vld [vmem:[#allocation12 + $0x288] sm:$0xff] }
 0x4a5   :  { %5383 = vmatpush1.bf16.msra.mxu0 %v5382_v47  ;;  %5447 = vmatpush1.bf16.msra.mxu1 %v5446_v33  ;;  %v2369_v47 = vld [vmem:[#allocation12 + $0x778] sm:$0xff]  ;;  %v5398_v33 = vpack.c.bf16 %v2350_v50, %v2342_v19 }
 0x4a6   :  { %5385 = vmatprep.subr.bf16.mxu0 %v5384_v44  ;;  %5449 = vmatprep.subr.bf16.mxu1 %v5448_v45  ;;  %v2366_v44 = vld [vmem:[#allocation12 + $0x760] sm:$0xff]  ;;  %v5400_v45 = vpack.c.bf16 %v2367_v23, %v2359_v9  ;;  %v5464_v58 = vpack.c.bf16 %v2369_v47, %v2361_v55  ;;  %v2746_v19 = vld [vmem:[#allocation12 + $0xd8] sm:$0xff]  ;;  %v2745_v9 = vld [vmem:[#allocation12 + $0xd0] sm:$0xff] }
 0x4a7   :  { %v2752_v23 = vld [vmem:[#allocation12 + $0x108] sm:$0xff]  ;;  %v5542_v47 = vpack.c.bf16 %v2745_v9, %v2737_v13 }
 0x4a8   :  { %v2760_v55 = vld [vmem:[#allocation12 + $0x148] sm:$0xff] }
 0x4a9   :  { %5387 = vmatpush1.bf16.msra.mxu0 %v5386_v12  ;;  %5451 = vmatpush1.bf16.msra.mxu1 %v5450_v17  ;;  %v2385_v12 = vld [vmem:[#allocation12 + $0x7f8] sm:$0xff]  ;;  %v5402_v17 = vpack.c.bf16 %v2366_v44, %v2358_v35  ;;  %v2751_v44 = vld [vmem:[#allocation12 + $0x100] sm:$0xff]  ;;  %v2816_v9 = vld [vmem:[#allocation12 + $0x308] sm:$0xff] }
 0x4aa   :  { %5389 = vmatprep.subr.bf16.mxu0 %v5388_v59  ;;  %5453 = vmatprep.subr.bf16.mxu1 %v5452_v36  ;;  %v5404_v59 = vpack.c.bf16 %v2383_v42, %v2375_v34  ;;  %v5468_v36 = vpack.c.bf16 %v2385_v12, %v2377_v46  ;;  %v2762_v35 = vld [vmem:[#allocation12 + $0x158] sm:$0xff]  ;;  %v2768_v42 = vld [vmem:[#allocation12 + $0x188] sm:$0xff] }
 0x4ab   :  { %v2776_v46 = vld [vmem:[#allocation12 + $0x1c8] sm:$0xff]  ;;  %v2770_v12 = vld [vmem:[#allocation12 + $0x198] sm:$0xff] }
 0x4ac   :  { %v5548_v4 = vpack.c.bf16 %v2778_v51, %v2770_v12  ;;  %v2840_v12 = vld [vmem:[#allocation12 + $0x3c8] sm:$0xff]  ;;  %v2842_v51 = vld [vmem:[#allocation12 + $0x3d8] sm:$0xff] }
 0x4ad   :  { %5391 = vmatpush1.bf16.msra.mxu0 %v5390_v60  ;;  %5455 = vmatpush1.bf16.msra.mxu1 %v5454_v31  ;;  %v2728_v60 = vld [vmem:[#allocation12 + $0x48] sm:$0xff]  ;;  %v2722_v31 = vld [vmem:[#allocation12 + $0x18] sm:$0xff] }
 0x4ae   :  { %5393 = vmatprep.subr.bf16.mxu0 %v5392_v28  ;;  %5457 = vmatprep.subr.bf16.mxu1 %v5456_v39  ;;  %v5472_v37 = vpack.c.bf16 %v2728_v60, %v2720_v57  ;;  %v2719_v28 = vld [vmem:[#allocation12] sm:$0xff]  ;;  %v5536_v53 = vpack.c.bf16 %v2730_v6, %v2722_v31  ;;  %v2786_v57 = vld [vmem:[#allocation12 + $0x218] sm:$0xff] }
 0x4af   :  { %v2727_v39 = vld [vmem:[#allocation12 + $0x40] sm:$0xff]  ;;  %v2794_v60 = vld [vmem:[#allocation12 + $0x258] sm:$0xff] }
 0x4b0   :  { %v5474_v16 = vpack.c.bf16 %v2727_v39, %v2719_v28  ;;  %v2783_v28 = vld [vmem:[#allocation12 + $0x200] sm:$0xff] }
 0x4b1   :  { %5395 = vmatpush1.bf16.msra.mxu0 %v5394_v0  ;;  %5459 = vmatpush1.bf16.msra.mxu1 %v5458_v48  ;;  %v2744_v0 = vld [vmem:[#allocation12 + $0xc8] sm:$0xff]  ;;  %v2738_v48 = vld [vmem:[#allocation12 + $0x98] sm:$0xff]  ;;  %v2791_v39 = vld [vmem:[#allocation12 + $0x240] sm:$0xff] }
 0x4b2   :  { %5397 = vmatprep.subr.bf16.mxu0 %v5396_v1  ;;  %5461 = vmatprep.subr.bf16.mxu1 %v5460_v7  ;;  %v5540_v50 = vpack.c.bf16 %v2746_v19, %v2738_v48  ;;  %v2735_v1 = vld [vmem:[#allocation12 + $0x80] sm:$0xff]  ;;  %v5490_v48 = vpack.c.bf16 %v2791_v39, %v2783_v28 }
 0x4b3   :  { %v2743_v7 = vld [vmem:[#allocation12 + $0xc0] sm:$0xff] }
 0x4b4   :  { %v5478_v3 = vpack.c.bf16 %v2743_v7, %v2735_v1  ;;  %v2807_v1 = vld [vmem:[#allocation12 + $0x2c0] sm:$0xff]  ;;  %v2801_v7 = vld [vmem:[#allocation12 + $0x290] sm:$0xff] }
 0x4b5   :  { %5399 = vmatpush1.bf16.msra.mxu0 %v5398_v33  ;;  %5463 = vmatpush1.bf16.msra.mxu1 %v5462_v27  ;;  %v5480_v33 = vpack.c.bf16 %v2760_v55, %v2752_v23  ;;  %v2754_v27 = vld [vmem:[#allocation12 + $0x118] sm:$0xff]  ;;  %v2824_v23 = vld [vmem:[#allocation12 + $0x348] sm:$0xff]  ;;  %v2847_v28 = vld [vmem:[#allocation12 + $0x400] sm:$0xff] }
 0x4b6   :  { %5401 = vmatprep.subr.bf16.mxu0 %v5400_v45  ;;  %5465 = vmatprep.subr.bf16.mxu1 %v5464_v58  ;;  %v5544_v45 = vpack.c.bf16 %v2762_v35, %v2754_v27  ;;  %v2759_v58 = vld [vmem:[#allocation12 + $0x140] sm:$0xff]  ;;  %v2818_v55 = vld [vmem:[#allocation12 + $0x318] sm:$0xff]  ;;  %v5496_v35 = vpack.c.bf16 %v2824_v23, %v2816_v9  ;;  %v2873_v9 = vld [vmem:[#allocation12 + $0x4d0] sm:$0xff] }
 0x4b7   :  { %v5482_v34 = vpack.c.bf16 %v2759_v58, %v2751_v44  ;;  %v2815_v44 = vld [vmem:[#allocation12 + $0x300] sm:$0xff] }
 0x4b8   :  { %v2855_v39 = vld [vmem:[#allocation12 + $0x440] sm:$0xff] }
 0x4b9   :  { %5403 = vmatpush1.bf16.msra.mxu0 %v5402_v17  ;;  %5467 = vmatpush1.bf16.msra.mxu1 %v5466_v54  ;;  %v5546_v17 = vpack.c.bf16 %v2761_v63, %v2753_v11  ;;  %v5484_v54 = vpack.c.bf16 %v2776_v46, %v2768_v42  ;;  %v2817_v11 = vld [vmem:[#allocation12 + $0x310] sm:$0xff]  ;;  %v2832_v46 = vld [vmem:[#allocation12 + $0x388] sm:$0xff] }
 0x4ba   :  { %5405 = vmatprep.subr.bf16.mxu0 %v5404_v59  ;;  %5469 = vmatprep.subr.bf16.mxu1 %v5468_v36  ;;  %v2767_v59 = vld [vmem:[#allocation12 + $0x180] sm:$0xff]  ;;  %v2825_v63 = vld [vmem:[#allocation12 + $0x350] sm:$0xff] }
 0x4bb   :  { %v2775_v36 = vld [vmem:[#allocation12 + $0x1c0] sm:$0xff]  ;;  %v5562_v42 = vpack.c.bf16 %v2825_v63, %v2817_v11  ;;  %v2881_v63 = vld [vmem:[#allocation12 + $0x510] sm:$0xff] }
 0x4bc   :  { %v5486_v31 = vpack.c.bf16 %v2775_v36, %v2767_v59  ;;  %v2831_v59 = vld [vmem:[#allocation12 + $0x380] sm:$0xff] }
 0x4bd   :  { %5407 = vmatpush1.bf16.msra.mxu0 %v5406_v18  ;;  %5471 = vmatpush1.bf16.msra.mxu1 %v5470_v25  ;;  %v2784_v18 = vld [vmem:[#allocation12 + $0x208] sm:$0xff]  ;;  %v2839_v36 = vld [vmem:[#allocation12 + $0x3c0] sm:$0xff] }
 0x4be   :  { %5473 = vmatprep.subr.bf16.mxu0 %v5472_v37  ;;  %5537 = vmatprep.subr.bf16.mxu1 %v5536_v53  ;;  %v2792_v25 = vld [vmem:[#allocation12 + $0x248] sm:$0xff]  ;;  %v5550_v37 = vpack.c.bf16 %v2777_v26, %v2769_v41  ;;  %v2785_v53 = vld [vmem:[#allocation12 + $0x210] sm:$0xff]  ;;  %v5502_v41 = vpack.c.bf16 %v2839_v36, %v2831_v59  ;;  %v2895_v59 = vld [vmem:[#allocation12 + $0x580] sm:$0xff] }
 0x4bf   :  { %v5488_v6 = vpack.c.bf16 %v2792_v25, %v2784_v18  ;;  %v5554_v19 = vpack.c.bf16 %v2793_v5, %v2785_v53  ;;  %v2833_v26 = vld [vmem:[#allocation12 + $0x390] sm:$0xff]  ;;  %v2903_v36 = vld [vmem:[#allocation12 + $0x5c0] sm:$0xff] }
 0x4c0   :  { %2593 = vmatmul.mubr.f32.vlgmr.msra.gmra.mrb[14].mxu0 %v7062_v38  ;;  %2664 = vmatmul.mubr.f32.vlgmr.msra.gmra.mrb[30].mxu1 %v7062_v38  ;;  %v5476_v38 = vpack.c.bf16 %v2744_v0, %v2736_v30  ;;  %v2808_v30 = vld [vmem:[#allocation12 + $0x2c8] sm:$0xff]  ;;  %v2810_v0 = vld [vmem:[#allocation12 + $0x2d8] sm:$0xff]  ;;  %v2841_v18 = vld [vmem:[#allocation12 + $0x3d0] sm:$0xff] }
 0x4c1   :  { %5475 = vmatpush1.bf16.msra.mxu0 %v5474_v16  ;;  %5539 = vmatpush1.bf16.msra.mxu1 %v5538_v32  ;;  %v5552_v16 = vpack.c.bf16 %v2794_v60, %v2786_v57  ;;  %v2802_v32 = vld [vmem:[#allocation12 + $0x298] sm:$0xff]  ;;  %v5566_v25 = vpack.c.bf16 %v2841_v18, %v2833_v26  ;;  %v2848_v57 = vld [vmem:[#allocation12 + $0x408] sm:$0xff]  ;;  %v2849_v5 = vld [vmem:[#allocation12 + $0x410] sm:$0xff] }
 0x4c2   :  { %5477 = vmatprep.subr.bf16.mxu0 %v5476_v38  ;;  %5541 = vmatprep.subr.bf16.mxu1 %v5540_v50  ;;  %v5492_v38 = vpack.c.bf16 %v2808_v30, %v2800_v15  ;;  %v2799_v50 = vld [vmem:[#allocation12 + $0x280] sm:$0xff]  ;;  %v5556_v13 = vpack.c.bf16 %v2810_v0, %v2802_v32  ;;  %v2856_v60 = vld [vmem:[#allocation12 + $0x448] sm:$0xff]  ;;  %v2857_v15 = vld [vmem:[#allocation12 + $0x450] sm:$0xff] }
 0x4c3   :  { %v5570_v30 = vpack.c.bf16 %v2857_v15, %v2849_v5  ;;  %v2864_v32 = vld [vmem:[#allocation12 + $0x488] sm:$0xff]  ;;  %v2897_v26 = vld [vmem:[#allocation12 + $0x590] sm:$0xff] }
 0x4c4   :  { %v2872_v0 = vld [vmem:[#allocation12 + $0x4c8] sm:$0xff]  ;;  %v2905_v18 = vld [vmem:[#allocation12 + $0x5d0] sm:$0xff] }
 0x4c5   :  { %5479 = vmatpush1.bf16.msra.mxu0 %v5478_v3  ;;  %5543 = vmatpush1.bf16.msra.mxu1 %v5542_v47  ;;  %v2809_v3 = vld [vmem:[#allocation12 + $0x2d0] sm:$0xff]  ;;  %v2826_v47 = vld [vmem:[#allocation12 + $0x358] sm:$0xff] }
 0x4c6   :  { %5481 = vmatprep.subr.bf16.mxu0 %v5480_v33  ;;  %5545 = vmatprep.subr.bf16.mxu1 %v5544_v45  ;;  %v5494_v33 = vpack.c.bf16 %v2807_v1, %v2799_v50  ;;  %v5558_v27 = vpack.c.bf16 %v2809_v3, %v2801_v7  ;;  %v2823_v45 = vld [vmem:[#allocation12 + $0x340] sm:$0xff]  ;;  %v5560_v58 = vpack.c.bf16 %v2826_v47, %v2818_v55  ;;  %v2865_v3 = vld [vmem:[#allocation12 + $0x490] sm:$0xff]  ;;  %v2880_v55 = vld [vmem:[#allocation12 + $0x508] sm:$0xff] }
 0x4c7   :  { %v2863_v50 = vld [vmem:[#allocation12 + $0x480] sm:$0xff]  ;;  %v5574_v23 = vpack.c.bf16 %v2873_v9, %v2865_v3  ;;  %v2888_v47 = vld [vmem:[#allocation12 + $0x548] sm:$0xff]  ;;  %v2913_v5 = vld [vmem:[#allocation12 + $0x610] sm:$0xff] }
 0x4c8   :  { %v2871_v1 = vld [vmem:[#allocation12 + $0x4c0] sm:$0xff]  ;;  %v2921_v15 = vld [vmem:[#allocation12 + $0x650] sm:$0xff] }
 0x4c9   :  { %5483 = vmatpush1.bf16.msra.mxu0 %v5482_v34  ;;  %5547 = vmatpush1.bf16.msra.mxu1 %v5546_v17  ;;  %v5498_v34 = vpack.c.bf16 %v2823_v45, %v2815_v44  ;;  %v2834_v17 = vld [vmem:[#allocation12 + $0x398] sm:$0xff]  ;;  %v2879_v44 = vld [vmem:[#allocation12 + $0x500] sm:$0xff]  ;;  %v2929_v3 = vld [vmem:[#allocation12 + $0x690] sm:$0xff] }
 0x4ca   :  { %5485 = vmatprep.subr.bf16.mxu0 %v5484_v54  ;;  %5549 = vmatprep.subr.bf16.mxu1 %v5548_v4  ;;  %v5500_v54 = vpack.c.bf16 %v2840_v12, %v2832_v46  ;;  %v5564_v4 = vpack.c.bf16 %v2842_v51, %v2834_v17  ;;  %v2887_v45 = vld [vmem:[#allocation12 + $0x540] sm:$0xff]  ;;  %v2896_v46 = vld [vmem:[#allocation12 + $0x588] sm:$0xff]  ;;  %v2898_v17 = vld [vmem:[#allocation12 + $0x598] sm:$0xff] }
 0x4cb   :  { %v5514_v11 = vpack.c.bf16 %v2887_v45, %v2879_v44  ;;  %v2904_v12 = vld [vmem:[#allocation12 + $0x5c8] sm:$0xff]  ;;  %v2906_v51 = vld [vmem:[#allocation12 + $0x5d8] sm:$0xff]  ;;  %v2937_v9 = vld [vmem:[#allocation12 + $0x6d0] sm:$0xff] }
 0x4cc   :  { %v2943_v44 = vld [vmem:[#allocation12 + $0x700] sm:$0xff] }
 0x4cd   :  { %5487 = vmatpush1.bf16.msra.mxu0 %v5486_v31  ;;  %5551 = vmatpush1.bf16.msra.mxu1 %v5550_v37  ;;  %v2850_v31 = vld [vmem:[#allocation12 + $0x418] sm:$0xff]  ;;  %v5504_v37 = vpack.c.bf16 %v2856_v60, %v2848_v57  ;;  %v2912_v57 = vld [vmem:[#allocation12 + $0x608] sm:$0xff]  ;;  %v2951_v45 = vld [vmem:[#allocation12 + $0x740] sm:$0xff] }
 0x4ce   :  { %5489 = vmatprep.subr.bf16.mxu0 %v5488_v6  ;;  %5553 = vmatprep.subr.bf16.mxu1 %v5552_v16  ;;  %v2858_v6 = vld [vmem:[#allocation12 + $0x458] sm:$0xff]  ;;  %v5506_v16 = vpack.c.bf16 %v2855_v39, %v2847_v28  ;;  %v2920_v60 = vld [vmem:[#allocation12 + $0x648] sm:$0xff]  ;;  %v2911_v28 = vld [vmem:[#allocation12 + $0x600] sm:$0xff] }
 0x4cf   :  { %v5568_v53 = vpack.c.bf16 %v2858_v6, %v2850_v31  ;;  %v2914_v31 = vld [vmem:[#allocation12 + $0x618] sm:$0xff]  ;;  %v2919_v39 = vld [vmem:[#allocation12 + $0x640] sm:$0xff] }
 0x4d0   :  { %v2922_v6 = vld [vmem:[#allocation12 + $0x658] sm:$0xff] }
 0x4d1   :  { %5491 = vmatpush1.bf16.msra.mxu0 %v5490_v48  ;;  %5555 = vmatpush1.bf16.msra.mxu1 %v5554_v19  ;;  %v2866_v48 = vld [vmem:[#allocation12 + $0x498] sm:$0xff]  ;;  %v5508_v19 = vpack.c.bf16 %v2872_v0, %v2864_v32  ;;  %v2928_v32 = vld [vmem:[#allocation12 + $0x688] sm:$0xff] }
 0x4d2   :  { %5493 = vmatprep.subr.bf16.mxu0 %v5492_v38  ;;  %5557 = vmatprep.subr.bf16.mxu1 %v5556_v13  ;;  %v2874_v38 = vld [vmem:[#allocation12 + $0x4d8] sm:$0xff]  ;;  %v5510_v13 = vpack.c.bf16 %v2871_v1, %v2863_v50  ;;  %v2936_v0 = vld [vmem:[#allocation12 + $0x6c8] sm:$0xff]  ;;  %v2927_v50 = vld [vmem:[#allocation12 + $0x680] sm:$0xff] }
 0x4d3   :  { %v5572_v7 = vpack.c.bf16 %v2874_v38, %v2866_v48  ;;  %v2930_v48 = vld [vmem:[#allocation12 + $0x698] sm:$0xff]  ;;  %v2935_v1 = vld [vmem:[#allocation12 + $0x6c0] sm:$0xff] }
 0x4d4   :  { %v2938_v38 = vld [vmem:[#allocation12 + $0x6d8] sm:$0xff] }
 0x4d5   :  { %5495 = vmatpush1.bf16.msra.mxu0 %v5494_v33  ;;  %5559 = vmatpush1.bf16.msra.mxu1 %v5558_v27  ;;  %v2882_v33 = vld [vmem:[#allocation12 + $0x518] sm:$0xff]  ;;  %v5512_v27 = vpack.c.bf16 %v2888_v47, %v2880_v55  ;;  %v2944_v55 = vld [vmem:[#allocation12 + $0x708] sm:$0xff] }
 0x4d6   :  { %5497 = vmatprep.subr.bf16.mxu0 %v5496_v35  ;;  %5561 = vmatprep.subr.bf16.mxu1 %v5560_v58  ;;  %v2890_v35 = vld [vmem:[#allocation12 + $0x558] sm:$0xff]  ;;  %v2952_v47 = vld [vmem:[#allocation12 + $0x748] sm:$0xff] }
 0x4d7   :  { %v5576_v58 = vpack.c.bf16 %v2890_v35, %v2882_v33  ;;  %v2946_v33 = vld [vmem:[#allocation12 + $0x718] sm:$0xff] }
 0x4d8   :  { %v2954_v35 = vld [vmem:[#allocation12 + $0x758] sm:$0xff] }
 0x4d9   :  { %5499 = vmatpush1.bf16.msra.mxu0 %v5498_v34  ;;  %5563 = vmatpush1.bf16.msra.mxu1 %v5562_v42  ;;  %v2889_v34 = vld [vmem:[#allocation12 + $0x550] sm:$0xff] }
 0x4da   :  { %5501 = vmatprep.subr.bf16.mxu0 %v5500_v54  ;;  %5565 = vmatprep.subr.bf16.mxu1 %v5564_v4  ;;  %v5578_v42 = vpack.c.bf16 %v2889_v34, %v2881_v63  ;;  %v5516_v54 = vpack.c.bf16 %v2904_v12, %v2896_v46  ;;  %v5580_v4 = vpack.c.bf16 %v2906_v51, %v2898_v17  ;;  %v2945_v63 = vld [vmem:[#allocation12 + $0x710] sm:$0xff]  ;;  %v2960_v46 = vld [vmem:[#allocation12 + $0x788] sm:$0xff]  ;;  %v2962_v17 = vld [vmem:[#allocation12 + $0x798] sm:$0xff] }
 0x4db   :  { %v2953_v34 = vld [vmem:[#allocation12 + $0x750] sm:$0xff]  ;;  %v2968_v12 = vld [vmem:[#allocation12 + $0x7c8] sm:$0xff]  ;;  %v2970_v51 = vld [vmem:[#allocation12 + $0x7d8] sm:$0xff] }
 0x4dd   :  { %5503 = vmatpush1.bf16.msra.mxu0 %v5502_v41  ;;  %5567 = vmatpush1.bf16.msra.mxu1 %v5566_v25  ;;  %v5518_v41 = vpack.c.bf16 %v2903_v36, %v2895_v59  ;;  %v5582_v25 = vpack.c.bf16 %v2905_v18, %v2897_v26  ;;  %v2959_v59 = vld [vmem:[#allocation12 + $0x780] sm:$0xff]  ;;  %v2961_v26 = vld [vmem:[#allocation12 + $0x790] sm:$0xff] }
 0x4de   :  { %5505 = vmatprep.subr.bf16.mxu0 %v5504_v37  ;;  %5569 = vmatprep.subr.bf16.mxu1 %v5568_v53  ;;  %v5520_v37 = vpack.c.bf16 %v2920_v60, %v2912_v57  ;;  %v5584_v53 = vpack.c.bf16 %v2922_v6, %v2914_v31  ;;  %v2967_v36 = vld [vmem:[#allocation12 + $0x7c0] sm:$0xff]  ;;  %v2969_v18 = vld [vmem:[#allocation12 + $0x7d0] sm:$0xff]  ;;  %v2724_v57 = vld [vmem:[#allocation12 + $0x28] sm:$0xff] }
 0x4df   :  { %v2732_v60 = vld [vmem:[#allocation12 + $0x68] sm:$0xff]  ;;  %v2726_v31 = vld [vmem:[#allocation12 + $0x38] sm:$0xff] }
 0x4e0   :  { %v2734_v6 = vld [vmem:[#allocation12 + $0x78] sm:$0xff] }
 0x4e1   :  { %5507 = vmatpush1.bf16.msra.mxu0 %v5506_v16  ;;  %5571 = vmatpush1.bf16.msra.mxu1 %v5570_v30  ;;  %v5522_v16 = vpack.c.bf16 %v2919_v39, %v2911_v28  ;;  %v5586_v30 = vpack.c.bf16 %v2921_v15, %v2913_v5  ;;  %v5664_v28 = vpack.c.bf16 %v2734_v6, %v2726_v31  ;;  %v2731_v31 = vld [vmem:[#allocation12 + $0x60] sm:$0xff]  ;;  %v2733_v6 = vld [vmem:[#allocation12 + $0x70] sm:$0xff] }
 0x4e2   :  { %5509 = vmatprep.subr.bf16.mxu0 %v5508_v19  ;;  %5573 = vmatprep.subr.bf16.mxu1 %v5572_v7  ;;  %v5524_v19 = vpack.c.bf16 %v2936_v0, %v2928_v32  ;;  %v5588_v7 = vpack.c.bf16 %v2938_v38, %v2930_v48 }
 0x4e5   :  { %5511 = vmatpush1.bf16.msra.mxu0 %v5510_v13  ;;  %5575 = vmatpush1.bf16.msra.mxu1 %v5574_v23  ;;  %v5526_v13 = vpack.c.bf16 %v2935_v1, %v2927_v50  ;;  %v5590_v23 = vpack.c.bf16 %v2937_v9, %v2929_v3 }
 0x4e6   :  { %5513 = vmatprep.subr.bf16.mxu0 %v5512_v27  ;;  %5577 = vmatprep.subr.bf16.mxu1 %v5576_v58  ;;  %v5528_v27 = vpack.c.bf16 %v2952_v47, %v2944_v55  ;;  %v5592_v58 = vpack.c.bf16 %v2954_v35, %v2946_v33 }
 0x4e9   :  { %5515 = vmatpush1.bf16.msra.mxu0 %v5514_v11  ;;  %5579 = vmatpush1.bf16.msra.mxu1 %v5578_v42  ;;  %v5530_v11 = vpack.c.bf16 %v2951_v45, %v2943_v44  ;;  %v5594_v42 = vpack.c.bf16 %v2953_v34, %v2945_v63 }
 0x4ea   :  { %5517 = vmatprep.subr.bf16.mxu0 %v5516_v54  ;;  %5581 = vmatprep.subr.bf16.mxu1 %v5580_v4  ;;  %v5532_v54 = vpack.c.bf16 %v2968_v12, %v2960_v46  ;;  %v5596_v4 = vpack.c.bf16 %v2970_v51, %v2962_v17 }
 0x4ed   :  { %5519 = vmatpush1.bf16.msra.mxu0 %v5518_v41  ;;  %5583 = vmatpush1.bf16.msra.mxu1 %v5582_v25  ;;  %v5534_v41 = vpack.c.bf16 %v2967_v36, %v2959_v59  ;;  %v5598_v25 = vpack.c.bf16 %v2969_v18, %v2961_v26 }
 0x4ee   :  { %5521 = vmatprep.subr.bf16.mxu0 %v5520_v37  ;;  %5585 = vmatprep.subr.bf16.mxu1 %v5584_v53  ;;  %v5600_v37 = vpack.c.bf16 %v2732_v60, %v2724_v57  ;;  %v2723_v60 = vld [vmem:[#allocation12 + $0x20] sm:$0xff] }
 0x4f1   :  { %5523 = vmatpush1.bf16.msra.mxu0 %v5522_v16  ;;  %5587 = vmatpush1.bf16.msra.mxu1 %v5586_v30 }
 0x4f2   :  { %5525 = vmatprep.subr.bf16.mxu0 %v5524_v19  ;;  %5589 = vmatprep.subr.bf16.mxu1 %v5588_v7 }
 0x4f5   :  { %5527 = vmatpush1.bf16.msra.mxu0 %v5526_v13  ;;  %5591 = vmatpush1.bf16.msra.mxu1 %v5590_v23 }
 0x4f6   :  { %5529 = vmatprep.subr.bf16.mxu0 %v5528_v27  ;;  %5593 = vmatprep.subr.bf16.mxu1 %v5592_v58 }
 0x4f9   :  { %5531 = vmatpush1.bf16.msra.mxu0 %v5530_v11  ;;  %5595 = vmatpush1.bf16.msra.mxu1 %v5594_v42 }
 0x4fa   :  { %5533 = vmatprep.subr.bf16.mxu0 %v5532_v54  ;;  %5597 = vmatprep.subr.bf16.mxu1 %v5596_v4 }
 0x4fd   :  { %5535 = vmatpush1.bf16.msra.mxu0 %v5534_v41  ;;  %5599 = vmatpush1.bf16.msra.mxu1 %v5598_v25 }
 0x4fe   :  { %5601 = vmatprep.subr.bf16.mxu0 %v5600_v37  ;;  %5665 = vmatprep.subr.bf16.mxu1 %v5664_v28  ;;  %v2725_v37 = vld [vmem:[#allocation12 + $0x30] sm:$0xff] }
 0x553   :  { %v2452_v39 = vpop.f32.mrb[12].mxu0  ;;  %v2523_v53 = vpop.f32.mrb[18].mxu1 }
 0x554   :  { %v2697_v16 = vadd.f32 %v2452_v39, %v6963_v43  ;;  %v2454_v5 = vpop.f32.mrb[13].mxu0  ;;  %v2525_v15 = vpop.f32.mrb[19].mxu1  ;;  %v6174_v48 = vadd.f32 %v2523_v53, %v6981_v8  ;;  %v2740_v53 = vld [vmem:[#allocation12 + $0xa8] sm:$0xff] }
 0x555   :  { %v2698_v30 = vadd.f32 %v2454_v5, %v6965_v10 }
 0x556   :  { %v2701_v32 = vmul.f32 0.5, %v2697_v16 }
 0x557   :  { %v2705_v0 = vmul.f32 0.5, %v2698_v30  ;;  %v2750_v30 = vld [vmem:[#allocation12 + $0xf8] sm:$0xff] }
 0x558   :  { %6256 = vtanh.f32 %v2701_v32 }
 0x559   :  { %6258 = vtanh.f32 %v2705_v0  ;;  %v5602_v0 = vpack.c.bf16 %v2731_v31, %v2723_v60 }
 0x55a   :  { %6260 = vtanh.f32 %v6174_v48  ;;  %v5666_v48 = vpack.c.bf16 %v2733_v6, %v2725_v37  ;;  %v2787_v37 = vld [vmem:[#allocation12 + $0x220] sm:$0xff] }
 0x55b   :  { %v2795_v6 = vld [vmem:[#allocation12 + $0x260] sm:$0xff] }
 0x562   :  { %v6257_v19 = vpop.eup %6256 }
 0x563   :  { %v6259_v38 = vpop.eup %6258  ;;  %v2703_v50 = vmul.f32 0.5, %v6257_v19  ;;  %v2739_v19 = vld [vmem:[#allocation12 + $0xa0] sm:$0xff] }
 0x564   :  { %v2707_v1 = vmul.f32 0.5, %v6259_v38  ;;  %v6261_v13 = vpop.eup %6260  ;;  %v2747_v38 = vld [vmem:[#allocation12 + $0xe0] sm:$0xff] }
 0x565   :  { %v2704_v7 = vadd.f32 0.5, %v2703_v50 }
 0x566   :  { %v2708_v3 = vadd.f32 0.5, %v2707_v1  ;;  %v2741_v1 = vld [vmem:[#allocation12 + $0xb0] sm:$0xff] }
 0x567   :  { %v2715_v9 = vmul.f32 %v6261_v13, %v2704_v7  ;;  %v2749_v7 = vld [vmem:[#allocation12 + $0xf0] sm:$0xff]  ;;  %v2756_v13 = vld [vmem:[#allocation12 + $0x128] sm:$0xff] }
 0x568   :  { %v2714_v43 = vmul.f32 %v2708_v3, %v7048_v2  ;;  %v6175_v2 = vadd.f32 %v2525_v15, %v6983_v40  ;;  %v2742_v15 = vld [vmem:[#allocation12 + $0xb8] sm:$0xff] }
 0x56a   :  { %v7076_v23 = vadd.f32 %v2715_v9, %v2714_v43  ;;  %v2710_v34 = vmul.f32 0.5, %v6175_v2  ;;  %v5668_v9 = vpack.c.bf16 %v2750_v30, %v2742_v15  ;;  %v2764_v43 = vld [vmem:[#allocation12 + $0x168] sm:$0xff]  ;;  %v2806_v15 = vld [vmem:[#allocation12 + $0x2b8] sm:$0xff] }
 0x56b   :  { %v2772_v2 = vld [vmem:[#allocation12 + $0x1a8] sm:$0xff]  ;;  %v2814_v30 = vld [vmem:[#allocation12 + $0x2f8] sm:$0xff] }
 0x593   :  { %v2594_v10 = vpop.f32.mrb[14].mxu0  ;;  %v2665_v55 = vpop.f32.mrb[30].mxu1 }
 0x594   :  { %v2670_v47 = vadd.f32 %v2594_v10, %v7009_v52  ;;  %v2596_v33 = vpop.f32.mrb[15].mxu0  ;;  %v2667_v27 = vpop.f32.mrb[31].mxu1  ;;  %v2672_v58 = vadd.f32 %v2665_v55, %v7017_v22  ;;  %v2758_v10 = vld [vmem:[#allocation12 + $0x138] sm:$0xff] }
 0x595   :  { %v2671_v35 = vadd.f32 %v2596_v33, %v7013_v61  ;;  %v2673_v11 = vadd.f32 %v2667_v27, %v7023_v49  ;;  %v2766_v55 = vld [vmem:[#allocation12 + $0x178] sm:$0xff]  ;;  %v5670_v33 = vpack.c.bf16 %v2749_v7, %v2741_v1  ;;  %v2755_v27 = vld [vmem:[#allocation12 + $0x120] sm:$0xff]  ;;  %v5684_v7 = vpack.c.bf16 %v2814_v30, %v2806_v15 }
 0x596   :  { %v2674_v44 = vmul.f32 0.5, %v2670_v47  ;;  %v5606_v47 = vpack.c.bf16 %v2747_v38, %v2739_v19  ;;  %v2803_v19 = vld [vmem:[#allocation12 + $0x2a0] sm:$0xff]  ;;  %v2870_v15 = vld [vmem:[#allocation12 + $0x4b8] sm:$0xff] }
 0x597   :  { %v2678_v45 = vmul.f32 0.5, %v2671_v35  ;;  %v2683_v63 = vmul.f32 0.5, %v2673_v11  ;;  %v2763_v35 = vld [vmem:[#allocation12 + $0x160] sm:$0xff]  ;;  %v2765_v11 = vld [vmem:[#allocation12 + $0x170] sm:$0xff]  ;;  %v2878_v30 = vld [vmem:[#allocation12 + $0x4f8] sm:$0xff] }
 0x598   :  { %6262 = vtanh.f32 %v2674_v44  ;;  %v5608_v44 = vpack.c.bf16 %v2764_v43, %v2756_v13  ;;  %v2811_v38 = vld [vmem:[#allocation12 + $0x2e0] sm:$0xff]  ;;  %v2805_v13 = vld [vmem:[#allocation12 + $0x2b0] sm:$0xff]  ;;  %v2828_v43 = vld [vmem:[#allocation12 + $0x368] sm:$0xff] }
 0x599   :  { %6264 = vtanh.f32 %v2678_v45  ;;  %v5672_v45 = vpack.c.bf16 %v2766_v55, %v2758_v10  ;;  %v2822_v10 = vld [vmem:[#allocation12 + $0x338] sm:$0xff] }
 0x59a   :  { %6266 = vtanh.f32 %v2672_v58  ;;  %v2757_v58 = vld [vmem:[#allocation12 + $0x130] sm:$0xff]  ;;  %v2830_v55 = vld [vmem:[#allocation12 + $0x378] sm:$0xff] }
 0x59b   :  { %6268 = vtanh.f32 %v2683_v63  ;;  %v2780_v63 = vld [vmem:[#allocation12 + $0x1e8] sm:$0xff] }
 0x59c   :  { %6270 = vtanh.f32 %v2710_v34  ;;  %v2774_v34 = vld [vmem:[#allocation12 + $0x1b8] sm:$0xff] }
 0x59d   :  { %6272 = vtanh.f32 %v7076_v23 }
 0x5a2   :  { %v6263_v42 = vpop.eup %6262 }
 0x5a3   :  { %v6265_v46 = vpop.eup %6264  ;;  %v2676_v12 = vmul.f32 0.5, %v6263_v42  ;;  %v2782_v42 = vld [vmem:[#allocation12 + $0x1f8] sm:$0xff] }
 0x5a4   :  { %v2680_v17 = vmul.f32 0.5, %v6265_v46  ;;  %v6267_v51 = vpop.eup %6266  ;;  %v5610_v46 = vpack.c.bf16 %v2763_v35, %v2755_v27  ;;  %v2819_v27 = vld [vmem:[#allocation12 + $0x320] sm:$0xff] }
 0x5a5   :  { %v2677_v54 = vadd.f32 0.5, %v2676_v12  ;;  %v6269_v26 = vpop.eup %6268  ;;  %v5674_v12 = vpack.c.bf16 %v2765_v11, %v2757_v58  ;;  %v2827_v35 = vld [vmem:[#allocation12 + $0x360] sm:$0xff]  ;;  %v2821_v58 = vld [vmem:[#allocation12 + $0x330] sm:$0xff] }
 0x5a6   :  { %v2681_v59 = vadd.f32 0.5, %v2680_v17  ;;  %v6271_v18 = vpop.eup %6270  ;;  %v2685_v25 = vmul.f32 0.5, %v6269_v26  ;;  %v2771_v17 = vld [vmem:[#allocation12 + $0x1a0] sm:$0xff]  ;;  %v2788_v26 = vld [vmem:[#allocation12 + $0x228] sm:$0xff]  ;;  %v2829_v11 = vld [vmem:[#allocation12 + $0x370] sm:$0xff] }
 0x5a7   :  { %v2688_v36 = vmul.f32 %v6267_v51, %v2677_v54  ;;  %v2712_v57 = vmul.f32 0.5, %v6271_v18  ;;  %v6273_v28 = vpop.eup %6272  ;;  %v2779_v54 = vld [vmem:[#allocation12 + $0x1e0] sm:$0xff]  ;;  %v5612_v51 = vpack.c.bf16 %v2780_v63, %v2772_v2  ;;  %v2796_v18 = vld [vmem:[#allocation12 + $0x268] sm:$0xff] }
 0x5a8   :  { %v2687_v4 = vmul.f32 %v2681_v59, %v7056_v21  ;;  %v2686_v39 = vadd.f32 0.5, %v2685_v25  ;;  %v2748_v21 = vld [vmem:[#allocation12 + $0xe8] sm:$0xff]  ;;  %v5676_v59 = vpack.c.bf16 %v2782_v42, %v2774_v34  ;;  %v2790_v25 = vld [vmem:[#allocation12 + $0x238] sm:$0xff]  ;;  %v5614_v60 = vpack.c.bf16 %v2779_v54, %v2771_v17  ;;  %v2835_v17 = vld [vmem:[#allocation12 + $0x3a0] sm:$0xff] }
 0x5a9   :  { %v2713_v5 = vadd.f32 0.5, %v2712_v57  ;;  %v5604_v3 = vpack.c.bf16 %v2748_v21, %v2740_v53  ;;  %v2798_v57 = vld [vmem:[#allocation12 + $0x278] sm:$0xff]  ;;  %v2789_v53 = vld [vmem:[#allocation12 + $0x230] sm:$0xff]  ;;  %v2812_v21 = vld [vmem:[#allocation12 + $0x2e8] sm:$0xff] }
 0x5aa   :  { %v7084_v41 = vadd.f32 %v2688_v36, %v2687_v4  ;;  %v2773_v36 = vld [vmem:[#allocation12 + $0x1b0] sm:$0xff]  ;;  %v2836_v2 = vld [vmem:[#allocation12 + $0x3a8] sm:$0xff]  ;;  %v2838_v34 = vld [vmem:[#allocation12 + $0x3b8] sm:$0xff] }
 0x5ab   :  { %v7090_v50 = vmul.f32 %v6273_v28, %v2713_v5  ;;  %v2781_v4 = vld [vmem:[#allocation12 + $0x1f0] sm:$0xff]  ;;  %v5616_v28 = vpack.c.bf16 %v2796_v18, %v2788_v26  ;;  %v2804_v5 = vld [vmem:[#allocation12 + $0x2a8] sm:$0xff]  ;;  %v2846_v42 = vld [vmem:[#allocation12 + $0x3f8] sm:$0xff] }
 0x5ac   :  { %6274 = vtanh.f32 %v7084_v41  ;;  %v5678_v31 = vpack.c.bf16 %v2781_v4, %v2773_v36  ;;  %v5620_v1 = vpack.c.bf16 %v2812_v21, %v2804_v5  ;;  %v2844_v63 = vld [vmem:[#allocation12 + $0x3e8] sm:$0xff]  ;;  %v2843_v54 = vld [vmem:[#allocation12 + $0x3e0] sm:$0xff]  ;;  %v2837_v36 = vld [vmem:[#allocation12 + $0x3b0] sm:$0xff] }
 0x5ad   :  { %v2845_v4 = vld [vmem:[#allocation12 + $0x3f0] sm:$0xff]  ;;  %v2852_v26 = vld [vmem:[#allocation12 + $0x428] sm:$0xff] }
 0x5ae   :  { %v2860_v18 = vld [vmem:[#allocation12 + $0x468] sm:$0xff] }
 0x5af   :  { %v2868_v5 = vld [vmem:[#allocation12 + $0x4a8] sm:$0xff] }
 0x5b0   :  { %v2876_v21 = vld [vmem:[#allocation12 + $0x4e8] sm:$0xff] }
 0x5b6   :  { %v6275_v16 = vpop.eup %6274 }
 0x5b7   :  { %v7088_v32 = vmul.f32 %v6275_v16, %v2686_v39  ;;  %v5680_v39 = vpack.c.bf16 %v2798_v57, %v2790_v25  ;;  %v2797_v16 = vld [vmem:[#allocation12 + $0x270] sm:$0xff]  ;;  %v2854_v25 = vld [vmem:[#allocation12 + $0x438] sm:$0xff] }
 0x5b8   :  { %v2862_v57 = vld [vmem:[#allocation12 + $0x478] sm:$0xff] }
 0x5b9   :  { %7475 = vst [vmem:[#allocation31_spill] sm:$0xff] %v7088_v32  ;;  %3039 = vmatprep.mubr.f32.mxu0 %v7088_v32  ;;  %3110 = vmatprep.mubr.f32.mxu1 %v7088_v32 }
 0x5ba   :  { %3040 = vmatmul.mubr.f32.vlgmr.msra.gmra.mrb[16].mxu0 %v7090_v50  ;;  %3111 = vmatmul.mubr.f32.vlgmr.msra.gmra.mrb[20].mxu1 %v7090_v50 }
 0x5bb   :  { %5603 = vmatpush1.bf16.msra.mxu0 %v5602_v0  ;;  %5667 = vmatpush1.bf16.msra.mxu1 %v5666_v48  ;;  %v5618_v0 = vpack.c.bf16 %v2795_v6, %v2787_v37  ;;  %v5682_v48 = vpack.c.bf16 %v2797_v16, %v2789_v53  ;;  %v2851_v37 = vld [vmem:[#allocation12 + $0x420] sm:$0xff]  ;;  %v2853_v53 = vld [vmem:[#allocation12 + $0x430] sm:$0xff] }
 0x5bc   :  { %3181 = vmatprep.mubr.f32.mxu0 %v7088_v32  ;;  %3252 = vmatprep.mubr.f32.mxu1 %v7088_v32  ;;  %v2859_v6 = vld [vmem:[#allocation12 + $0x460] sm:$0xff]  ;;  %v2861_v16 = vld [vmem:[#allocation12 + $0x470] sm:$0xff]  ;;  %v3473_v32 = vld [vmem:[#allocation12 + $0x528] sm:$0xff] }
 0x5bd   :  { %5605 = vmatprep.subr.bf16.mxu0 %v5604_v3  ;;  %5669 = vmatprep.subr.bf16.mxu1 %v5668_v9  ;;  %v2813_v3 = vld [vmem:[#allocation12 + $0x2f0] sm:$0xff]  ;;  %v2820_v9 = vld [vmem:[#allocation12 + $0x328] sm:$0xff] }
 0x5bf   :  { %5607 = vmatpush1.bf16.msra.mxu0 %v5606_v47  ;;  %5671 = vmatpush1.bf16.msra.mxu1 %v5670_v33  ;;  %v5622_v47 = vpack.c.bf16 %v2811_v38, %v2803_v19  ;;  %v5686_v33 = vpack.c.bf16 %v2813_v3, %v2805_v13  ;;  %v2867_v19 = vld [vmem:[#allocation12 + $0x4a0] sm:$0xff]  ;;  %v2869_v13 = vld [vmem:[#allocation12 + $0x4b0] sm:$0xff] }
 0x5c0   :  { %5609 = vmatprep.subr.bf16.mxu0 %v5608_v44  ;;  %5673 = vmatprep.subr.bf16.mxu1 %v5672_v45  ;;  %v5624_v44 = vpack.c.bf16 %v2828_v43, %v2820_v9  ;;  %v5688_v45 = vpack.c.bf16 %v2830_v55, %v2822_v10  ;;  %v2875_v38 = vld [vmem:[#allocation12 + $0x4e0] sm:$0xff]  ;;  %v2877_v3 = vld [vmem:[#allocation12 + $0x4f0] sm:$0xff]  ;;  %v2884_v9 = vld [vmem:[#allocation12 + $0x528] sm:$0xff] }
 0x5c1   :  { %v2892_v43 = vld [vmem:[#allocation12 + $0x568] sm:$0xff]  ;;  %v2886_v10 = vld [vmem:[#allocation12 + $0x538] sm:$0xff] }
 0x5c2   :  { %v2894_v55 = vld [vmem:[#allocation12 + $0x578] sm:$0xff] }
 0x5c3   :  { %5611 = vmatpush1.bf16.msra.mxu0 %v5610_v46  ;;  %5675 = vmatpush1.bf16.msra.mxu1 %v5674_v12  ;;  %v5626_v46 = vpack.c.bf16 %v2827_v35, %v2819_v27  ;;  %v5690_v12 = vpack.c.bf16 %v2829_v11, %v2821_v58  ;;  %v2883_v27 = vld [vmem:[#allocation12 + $0x520] sm:$0xff]  ;;  %v2885_v58 = vld [vmem:[#allocation12 + $0x530] sm:$0xff] }
 0x5c4   :  { %5613 = vmatprep.subr.bf16.mxu0 %v5612_v51  ;;  %5677 = vmatprep.subr.bf16.mxu1 %v5676_v59  ;;  %v5628_v51 = vpack.c.bf16 %v2844_v63, %v2836_v2  ;;  %v5692_v59 = vpack.c.bf16 %v2846_v42, %v2838_v34  ;;  %v2891_v35 = vld [vmem:[#allocation12 + $0x560] sm:$0xff]  ;;  %v2893_v11 = vld [vmem:[#allocation12 + $0x570] sm:$0xff]  ;;  %v2900_v2 = vld [vmem:[#allocation12 + $0x5a8] sm:$0xff] }
 0x5c5   :  { %v2908_v63 = vld [vmem:[#allocation12 + $0x5e8] sm:$0xff]  ;;  %v2902_v34 = vld [vmem:[#allocation12 + $0x5b8] sm:$0xff] }
 0x5c6   :  { %v2910_v42 = vld [vmem:[#allocation12 + $0x5f8] sm:$0xff] }
 0x5c7   :  { %5615 = vmatpush1.bf16.msra.mxu0 %v5614_v60  ;;  %5679 = vmatpush1.bf16.msra.mxu1 %v5678_v31  ;;  %v5630_v60 = vpack.c.bf16 %v2843_v54, %v2835_v17  ;;  %v5694_v31 = vpack.c.bf16 %v2845_v4, %v2837_v36  ;;  %v2899_v17 = vld [vmem:[#allocation12 + $0x5a0] sm:$0xff]  ;;  %v2901_v36 = vld [vmem:[#allocation12 + $0x5b0] sm:$0xff] }
 0x5c8   :  { %5617 = vmatprep.subr.bf16.mxu0 %v5616_v28  ;;  %5681 = vmatprep.subr.bf16.mxu1 %v5680_v39  ;;  %v5632_v28 = vpack.c.bf16 %v2860_v18, %v2852_v26  ;;  %v5696_v39 = vpack.c.bf16 %v2862_v57, %v2854_v25  ;;  %v2907_v54 = vld [vmem:[#allocation12 + $0x5e0] sm:$0xff]  ;;  %v2909_v4 = vld [vmem:[#allocation12 + $0x5f0] sm:$0xff]  ;;  %v2916_v26 = vld [vmem:[#allocation12 + $0x628] sm:$0xff] }
 0x5c9   :  { %v2924_v18 = vld [vmem:[#allocation12 + $0x668] sm:$0xff]  ;;  %v2918_v25 = vld [vmem:[#allocation12 + $0x638] sm:$0xff] }
 0x5ca   :  { %v2926_v57 = vld [vmem:[#allocation12 + $0x678] sm:$0xff] }
 0x5cb   :  { %5619 = vmatpush1.bf16.msra.mxu0 %v5618_v0  ;;  %5683 = vmatpush1.bf16.msra.mxu1 %v5682_v48  ;;  %v5634_v0 = vpack.c.bf16 %v2859_v6, %v2851_v37  ;;  %v5698_v48 = vpack.c.bf16 %v2861_v16, %v2853_v53  ;;  %v2915_v37 = vld [vmem:[#allocation12 + $0x620] sm:$0xff]  ;;  %v2917_v53 = vld [vmem:[#allocation12 + $0x630] sm:$0xff] }
 0x5cc   :  { %5621 = vmatprep.subr.bf16.mxu0 %v5620_v1  ;;  %5685 = vmatprep.subr.bf16.mxu1 %v5684_v7  ;;  %v5636_v1 = vpack.c.bf16 %v2876_v21, %v2868_v5  ;;  %v5700_v7 = vpack.c.bf16 %v2878_v30, %v2870_v15  ;;  %v2923_v6 = vld [vmem:[#allocation12 + $0x660] sm:$0xff]  ;;  %v2925_v16 = vld [vmem:[#allocation12 + $0x670] sm:$0xff]  ;;  %v2932_v5 = vld [vmem:[#allocation12 + $0x6a8] sm:$0xff] }
 0x5cd   :  { %v2940_v21 = vld [vmem:[#allocation12 + $0x6e8] sm:$0xff]  ;;  %v2934_v15 = vld [vmem:[#allocation12 + $0x6b8] sm:$0xff] }
 0x5ce   :  { %v2942_v30 = vld [vmem:[#allocation12 + $0x6f8] sm:$0xff] }
 0x5cf   :  { %5623 = vmatpush1.bf16.msra.mxu0 %v5622_v47  ;;  %5687 = vmatpush1.bf16.msra.mxu1 %v5686_v33  ;;  %v5638_v47 = vpack.c.bf16 %v2875_v38, %v2867_v19  ;;  %v5702_v33 = vpack.c.bf16 %v2877_v3, %v2869_v13  ;;  %v2931_v19 = vld [vmem:[#allocation12 + $0x6a0] sm:$0xff]  ;;  %v2933_v13 = vld [vmem:[#allocation12 + $0x6b0] sm:$0xff] }
 0x5d0   :  { %5625 = vmatprep.subr.bf16.mxu0 %v5624_v44  ;;  %5689 = vmatprep.subr.bf16.mxu1 %v5688_v45  ;;  %v5640_v44 = vpack.c.bf16 %v2892_v43, %v2884_v9  ;;  %v5704_v45 = vpack.c.bf16 %v2894_v55, %v2886_v10  ;;  %v2939_v38 = vld [vmem:[#allocation12 + $0x6e0] sm:$0xff]  ;;  %v2941_v3 = vld [vmem:[#allocation12 + $0x6f0] sm:$0xff]  ;;  %v2948_v9 = vld [vmem:[#allocation12 + $0x728] sm:$0xff] }
 0x5d1   :  { %v2956_v43 = vld [vmem:[#allocation12 + $0x768] sm:$0xff]  ;;  %v2950_v10 = vld [vmem:[#allocation12 + $0x738] sm:$0xff] }
 0x5d2   :  { %v2958_v55 = vld [vmem:[#allocation12 + $0x778] sm:$0xff] }
 0x5d3   :  { %5627 = vmatpush1.bf16.msra.mxu0 %v5626_v46  ;;  %5691 = vmatpush1.bf16.msra.mxu1 %v5690_v12  ;;  %v5642_v46 = vpack.c.bf16 %v2891_v35, %v2883_v27  ;;  %v5706_v12 = vpack.c.bf16 %v2893_v11, %v2885_v58  ;;  %v2947_v27 = vld [vmem:[#allocation12 + $0x720] sm:$0xff]  ;;  %v2949_v58 = vld [vmem:[#allocation12 + $0x730] sm:$0xff] }
 0x5d4   :  { %5629 = vmatprep.subr.bf16.mxu0 %v5628_v51  ;;  %5693 = vmatprep.subr.bf16.mxu1 %v5692_v59  ;;  %v5644_v51 = vpack.c.bf16 %v2908_v63, %v2900_v2  ;;  %v5708_v59 = vpack.c.bf16 %v2910_v42, %v2902_v34  ;;  %v2955_v35 = vld [vmem:[#allocation12 + $0x760] sm:$0xff]  ;;  %v2957_v11 = vld [vmem:[#allocation12 + $0x770] sm:$0xff]  ;;  %v2964_v2 = vld [vmem:[#allocation12 + $0x7a8] sm:$0xff] }
 0x5d5   :  { %v2972_v63 = vld [vmem:[#allocation12 + $0x7e8] sm:$0xff]  ;;  %v2966_v34 = vld [vmem:[#allocation12 + $0x7b8] sm:$0xff] }
 0x5d6   :  { %v2974_v42 = vld [vmem:[#allocation12 + $0x7f8] sm:$0xff] }
 0x5d7   :  { %5631 = vmatpush1.bf16.msra.mxu0 %v5630_v60  ;;  %5695 = vmatpush1.bf16.msra.mxu1 %v5694_v31  ;;  %v5646_v60 = vpack.c.bf16 %v2907_v54, %v2899_v17  ;;  %v5710_v31 = vpack.c.bf16 %v2909_v4, %v2901_v36  ;;  %v2963_v17 = vld [vmem:[#allocation12 + $0x7a0] sm:$0xff]  ;;  %v5660_v54 = vpack.c.bf16 %v2972_v63, %v2964_v2  ;;  %v2965_v36 = vld [vmem:[#allocation12 + $0x7b0] sm:$0xff]  ;;  %v3357_v2 = vld [vmem:[#allocation12 + $0x188] sm:$0xff] }
 0x5d8   :  { %5633 = vmatprep.subr.bf16.mxu0 %v5632_v28  ;;  %5697 = vmatprep.subr.bf16.mxu1 %v5696_v39  ;;  %v5648_v28 = vpack.c.bf16 %v2924_v18, %v2916_v26  ;;  %v5712_v39 = vpack.c.bf16 %v2926_v57, %v2918_v25  ;;  %v2973_v4 = vld [vmem:[#allocation12 + $0x7f0] sm:$0xff]  ;;  %v3309_v25 = vld [vmem:[#allocation12 + $0x8] sm:$0xff] }
 0x5d9   :  { %v5726_v18 = vpack.c.bf16 %v2973_v4, %v2965_v36  ;;  %v3317_v57 = vld [vmem:[#allocation12 + $0x48] sm:$0xff]  ;;  %v3366_v36 = vld [vmem:[#allocation12 + $0x1d0] sm:$0xff] }
 0x5da   :  { %v3365_v63 = vld [vmem:[#allocation12 + $0x1c8] sm:$0xff] }
 0x5db   :  { %5635 = vmatpush1.bf16.msra.mxu0 %v5634_v0  ;;  %5699 = vmatpush1.bf16.msra.mxu1 %v5698_v48  ;;  %v5650_v0 = vpack.c.bf16 %v2923_v6, %v2915_v37  ;;  %v5714_v48 = vpack.c.bf16 %v2925_v16, %v2917_v53  ;;  %v3319_v37 = vld [vmem:[#allocation12 + $0x58] sm:$0xff]  ;;  %v3308_v6 = vld [vmem:[#allocation12] sm:$0xff]  ;;  %v3310_v16 = vld [vmem:[#allocation12 + $0x10] sm:$0xff] }
 0x5dc   :  { %5637 = vmatprep.subr.bf16.mxu0 %v5636_v1  ;;  %5701 = vmatprep.subr.bf16.mxu1 %v5700_v7  ;;  %v5652_v1 = vpack.c.bf16 %v2940_v21, %v2932_v5  ;;  %v5716_v7 = vpack.c.bf16 %v2942_v30, %v2934_v15  ;;  %v3318_v5 = vld [vmem:[#allocation12 + $0x50] sm:$0xff]  ;;  %v3325_v21 = vld [vmem:[#allocation12 + $0x88] sm:$0xff] }
 0x5dd   :  { %v5794_v15 = vpack.c.bf16 %v3318_v5, %v3310_v16  ;;  %v3333_v30 = vld [vmem:[#allocation12 + $0xc8] sm:$0xff] }
 0x5de   :  { %v3373_v4 = vld [vmem:[#allocation12 + $0x208] sm:$0xff] }
 0x5df   :  { %5639 = vmatpush1.bf16.msra.mxu0 %v5638_v47  ;;  %5703 = vmatpush1.bf16.msra.mxu1 %v5702_v33  ;;  %v5654_v47 = vpack.c.bf16 %v2939_v38, %v2931_v19  ;;  %v5718_v33 = vpack.c.bf16 %v2941_v3, %v2933_v13  ;;  %v3324_v38 = vld [vmem:[#allocation12 + $0x80] sm:$0xff]  ;;  %v3334_v3 = vld [vmem:[#allocation12 + $0xd0] sm:$0xff]  ;;  %v3389_v16 = vld [vmem:[#allocation12 + $0x288] sm:$0xff] }
 0x5e0   :  { %5641 = vmatprep.subr.bf16.mxu0 %v5640_v44  ;;  %5705 = vmatprep.subr.bf16.mxu1 %v5704_v45  ;;  %v5656_v44 = vpack.c.bf16 %v2956_v43, %v2948_v9  ;;  %v5720_v45 = vpack.c.bf16 %v2958_v55, %v2950_v10  ;;  %v3341_v9 = vld [vmem:[#allocation12 + $0x108] sm:$0xff] }
 0x5e1   :  { %v3349_v43 = vld [vmem:[#allocation12 + $0x148] sm:$0xff] }
 0x5e2   :  { %v5736_v55 = vpack.c.bf16 %v3349_v43, %v3341_v9  ;;  %v3397_v5 = vld [vmem:[#allocation12 + $0x2c8] sm:$0xff]  ;;  %v3407_v9 = vld [vmem:[#allocation12 + $0x318] sm:$0xff] }
 0x5e3   :  { %5643 = vmatpush1.bf16.msra.mxu0 %v5642_v46  ;;  %5707 = vmatpush1.bf16.msra.mxu1 %v5706_v12  ;;  %v5658_v46 = vpack.c.bf16 %v2955_v35, %v2947_v27  ;;  %v5722_v12 = vpack.c.bf16 %v2957_v11, %v2949_v58  ;;  %v3340_v27 = vld [vmem:[#allocation12 + $0x100] sm:$0xff]  ;;  %v3350_v58 = vld [vmem:[#allocation12 + $0x150] sm:$0xff]  ;;  %v3415_v43 = vld [vmem:[#allocation12 + $0x358] sm:$0xff] }
 0x5e4   :  { %5645 = vmatprep.subr.bf16.mxu0 %v5644_v51  ;;  %5709 = vmatprep.subr.bf16.mxu1 %v5708_v59  ;;  %v5724_v51 = vpack.c.bf16 %v2974_v42, %v2966_v34  ;;  %v2971_v59 = vld [vmem:[#allocation12 + $0x7e0] sm:$0xff]  ;;  %v3359_v34 = vld [vmem:[#allocation12 + $0x198] sm:$0xff] }
 0x5e5   :  { %v5662_v26 = vpack.c.bf16 %v2971_v59, %v2963_v17  ;;  %v3356_v17 = vld [vmem:[#allocation12 + $0x180] sm:$0xff]  ;;  %v3358_v59 = vld [vmem:[#allocation12 + $0x190] sm:$0xff] }
 0x5e7   :  { %5647 = vmatpush1.bf16.msra.mxu0 %v5646_v60  ;;  %5711 = vmatpush1.bf16.msra.mxu1 %v5710_v31  ;;  %v3311_v60 = vld [vmem:[#allocation12 + $0x18] sm:$0xff]  ;;  %v5728_v31 = vpack.c.bf16 %v3317_v57, %v3309_v25 }
 0x5e8   :  { %5649 = vmatprep.subr.bf16.mxu0 %v5648_v28  ;;  %5713 = vmatprep.subr.bf16.mxu1 %v5712_v39  ;;  %v3316_v28 = vld [vmem:[#allocation12 + $0x40] sm:$0xff]  ;;  %v5792_v39 = vpack.c.bf16 %v3319_v37, %v3311_v60  ;;  %v3383_v25 = vld [vmem:[#allocation12 + $0x258] sm:$0xff]  ;;  %v5806_v60 = vpack.c.bf16 %v3366_v36, %v3358_v59  ;;  %v3422_v59 = vld [vmem:[#allocation12 + $0x390] sm:$0xff] }
 0x5e9   :  { %v5730_v53 = vpack.c.bf16 %v3316_v28, %v3308_v6  ;;  %v3372_v37 = vld [vmem:[#allocation12 + $0x200] sm:$0xff]  ;;  %v3374_v28 = vld [vmem:[#allocation12 + $0x210] sm:$0xff] }
 0x5ea   :  { %v3380_v6 = vld [vmem:[#allocation12 + $0x240] sm:$0xff]  ;;  %v3430_v36 = vld [vmem:[#allocation12 + $0x3d0] sm:$0xff] }
 0x5eb   :  { %5651 = vmatpush1.bf16.msra.mxu0 %v5650_v0  ;;  %5715 = vmatpush1.bf16.msra.mxu1 %v5714_v48  ;;  %v3327_v0 = vld [vmem:[#allocation12 + $0x98] sm:$0xff] }
 0x5ec   :  { %5653 = vmatprep.subr.bf16.mxu0 %v5652_v1  ;;  %5717 = vmatprep.subr.bf16.mxu1 %v5716_v7  ;;  %v3335_v48 = vld [vmem:[#allocation12 + $0xd8] sm:$0xff]  ;;  %v3332_v1 = vld [vmem:[#allocation12 + $0xc0] sm:$0xff]  ;;  %v3326_v7 = vld [vmem:[#allocation12 + $0x90] sm:$0xff] }
 0x5ed   :  { %v5796_v19 = vpack.c.bf16 %v3335_v48, %v3327_v0  ;;  %v5734_v13 = vpack.c.bf16 %v3332_v1, %v3324_v38  ;;  %v5798_v10 = vpack.c.bf16 %v3334_v3, %v3326_v7  ;;  %v5748_v48 = vpack.c.bf16 %v3397_v5, %v3389_v16  ;;  %v3390_v38 = vld [vmem:[#allocation12 + $0x290] sm:$0xff]  ;;  %v3413_v3 = vld [vmem:[#allocation12 + $0x348] sm:$0xff] }
 0x5ee   :  { %v3398_v7 = vld [vmem:[#allocation12 + $0x2d0] sm:$0xff]  ;;  %v3453_v5 = vld [vmem:[#allocation12 + $0x488] sm:$0xff] }
 0x5ef   :  { %5655 = vmatpush1.bf16.msra.mxu0 %v5654_v47  ;;  %5719 = vmatpush1.bf16.msra.mxu1 %v5718_v33  ;;  %v3343_v47 = vld [vmem:[#allocation12 + $0x118] sm:$0xff] }
 0x5f0   :  { %5657 = vmatprep.subr.bf16.mxu0 %v5656_v44  ;;  %5721 = vmatprep.subr.bf16.mxu1 %v5720_v45  ;;  %v3351_v33 = vld [vmem:[#allocation12 + $0x158] sm:$0xff]  ;;  %v3348_v44 = vld [vmem:[#allocation12 + $0x140] sm:$0xff]  ;;  %v3342_v45 = vld [vmem:[#allocation12 + $0x110] sm:$0xff] }
 0x5f1   :  { %v5800_v35 = vpack.c.bf16 %v3351_v33, %v3343_v47  ;;  %v5738_v11 = vpack.c.bf16 %v3348_v44, %v3340_v27  ;;  %v5802_v42 = vpack.c.bf16 %v3350_v58, %v3342_v45  ;;  %v3404_v33 = vld [vmem:[#allocation12 + $0x300] sm:$0xff]  ;;  %v3406_v44 = vld [vmem:[#allocation12 + $0x310] sm:$0xff] }
 0x5f2   :  { %v3412_v27 = vld [vmem:[#allocation12 + $0x340] sm:$0xff]  ;;  %v3414_v45 = vld [vmem:[#allocation12 + $0x350] sm:$0xff] }
 0x5f3   :  { %5659 = vmatpush1.bf16.msra.mxu0 %v5658_v46  ;;  %5723 = vmatpush1.bf16.msra.mxu1 %v5722_v12  ;;  %v5740_v46 = vpack.c.bf16 %v3365_v63, %v3357_v2  ;;  %v3367_v12 = vld [vmem:[#allocation12 + $0x1d8] sm:$0xff]  ;;  %v5754_v58 = vpack.c.bf16 %v3412_v27, %v3404_v33  ;;  %v3421_v2 = vld [vmem:[#allocation12 + $0x388] sm:$0xff]  ;;  %v3476_v33 = vld [vmem:[#allocation12 + $0x540] sm:$0xff] }
 0x5f4   :  { %5661 = vmatprep.subr.bf16.mxu0 %v5660_v54  ;;  %5725 = vmatprep.subr.bf16.mxu1 %v5724_v51  ;;  %v3364_v54 = vld [vmem:[#allocation12 + $0x1c0] sm:$0xff]  ;;  %v5804_v51 = vpack.c.bf16 %v3367_v12, %v3359_v34  ;;  %v3429_v63 = vld [vmem:[#allocation12 + $0x3c8] sm:$0xff]  ;;  %v3423_v34 = vld [vmem:[#allocation12 + $0x398] sm:$0xff] }
 0x5f5   :  { %v5742_v57 = vpack.c.bf16 %v3364_v54, %v3356_v17  ;;  %v3420_v12 = vld [vmem:[#allocation12 + $0x380] sm:$0xff] }
 0x5f6   :  { %v3428_v17 = vld [vmem:[#allocation12 + $0x3c0] sm:$0xff] }
 0x5f7   :  { %5663 = vmatpush1.bf16.msra.mxu0 %v5662_v26  ;;  %5727 = vmatpush1.bf16.msra.mxu1 %v5726_v18  ;;  %v3381_v26 = vld [vmem:[#allocation12 + $0x248] sm:$0xff]  ;;  %v3375_v18 = vld [vmem:[#allocation12 + $0x218] sm:$0xff] }
 0x5f8   :  { %5729 = vmatprep.subr.bf16.mxu0 %v5728_v31  ;;  %5793 = vmatprep.subr.bf16.mxu1 %v5792_v39  ;;  %v5744_v31 = vpack.c.bf16 %v3381_v26, %v3373_v4  ;;  %v5808_v39 = vpack.c.bf16 %v3383_v25, %v3375_v18  ;;  %v5822_v4 = vpack.c.bf16 %v3430_v36, %v3422_v59  ;;  %v3437_v26 = vld [vmem:[#allocation12 + $0x408] sm:$0xff]  ;;  %v3439_v25 = vld [vmem:[#allocation12 + $0x418] sm:$0xff]  ;;  %v3494_v59 = vld [vmem:[#allocation12 + $0x5d0] sm:$0xff] }
 0x5f9   :  { %v3445_v18 = vld [vmem:[#allocation12 + $0x448] sm:$0xff] }
 0x5fa   :  { %3182 = vmatmul.mubr.f32.vlgmr.msra.gmra.mrb[18].mxu0 %v7090_v50  ;;  %3253 = vmatmul.mubr.f32.vlgmr.msra.gmra.mrb[32].mxu1 %v7090_v50  ;;  %v5732_v50 = vpack.c.bf16 %v3333_v30, %v3325_v21  ;;  %v3391_v21 = vld [vmem:[#allocation12 + $0x298] sm:$0xff]  ;;  %v5746_v30 = vpack.c.bf16 %v3380_v6, %v3372_v37  ;;  %v3444_v37 = vld [vmem:[#allocation12 + $0x440] sm:$0xff] }
 0x5fb   :  { %5731 = vmatpush1.bf16.msra.mxu0 %v5730_v53  ;;  %5795 = vmatpush1.bf16.msra.mxu1 %v5794_v15  ;;  %v3382_v53 = vld [vmem:[#allocation12 + $0x250] sm:$0xff]  ;;  %v3399_v15 = vld [vmem:[#allocation12 + $0x2d8] sm:$0xff] }
 0x5fc   :  { %5733 = vmatprep.subr.bf16.mxu0 %v5732_v50  ;;  %5797 = vmatprep.subr.bf16.mxu1 %v5796_v19  ;;  %v5810_v0 = vpack.c.bf16 %v3382_v53, %v3374_v28  ;;  %v3388_v50 = vld [vmem:[#allocation12 + $0x280] sm:$0xff]  ;;  %v5812_v1 = vpack.c.bf16 %v3399_v15, %v3391_v21  ;;  %v3446_v53 = vld [vmem:[#allocation12 + $0x450] sm:$0xff]  ;;  %v3461_v21 = vld [vmem:[#allocation12 + $0x4c8] sm:$0xff] }
 0x5fd   :  { %v3396_v19 = vld [vmem:[#allocation12 + $0x2c0] sm:$0xff]  ;;  %v3455_v15 = vld [vmem:[#allocation12 + $0x498] sm:$0xff] }
 0x5ff   :  { %5735 = vmatpush1.bf16.msra.mxu0 %v5734_v13  ;;  %5799 = vmatpush1.bf16.msra.mxu1 %v5798_v10  ;;  %v3405_v13 = vld [vmem:[#allocation12 + $0x308] sm:$0xff]  ;;  %v5750_v10 = vpack.c.bf16 %v3396_v19, %v3388_v50  ;;  %v3460_v50 = vld [vmem:[#allocation12 + $0x4c0] sm:$0xff] }
 0x600   :  { %5737 = vmatprep.subr.bf16.mxu0 %v5736_v55  ;;  %5801 = vmatprep.subr.bf16.mxu1 %v5800_v35  ;;  %v5814_v55 = vpack.c.bf16 %v3398_v7, %v3390_v38  ;;  %v5752_v47 = vpack.c.bf16 %v3413_v3, %v3405_v13  ;;  %v5816_v35 = vpack.c.bf16 %v3415_v43, %v3407_v9  ;;  %v3462_v7 = vld [vmem:[#allocation12 + $0x4d0] sm:$0xff]  ;;  %v3469_v3 = vld [vmem:[#allocation12 + $0x508] sm:$0xff]  ;;  %v3471_v43 = vld [vmem:[#allocation12 + $0x518] sm:$0xff] }
 0x601   :  { %v3477_v9 = vld [vmem:[#allocation12 + $0x548] sm:$0xff] }
 0x603   :  { %5739 = vmatpush1.bf16.msra.mxu0 %v5738_v11  ;;  %5803 = vmatpush1.bf16.msra.mxu1 %v5802_v42  ;;  %v5818_v11 = vpack.c.bf16 %v3414_v45, %v3406_v44  ;;  %v5756_v42 = vpack.c.bf16 %v3429_v63, %v3421_v2  ;;  %v3470_v44 = vld [vmem:[#allocation12 + $0x510] sm:$0xff]  ;;  %v3493_v2 = vld [vmem:[#allocation12 + $0x5c8] sm:$0xff]  ;;  %v3487_v63 = vld [vmem:[#allocation12 + $0x598] sm:$0xff] }
 0x604   :  { %5741 = vmatprep.subr.bf16.mxu0 %v5740_v46  ;;  %5805 = vmatprep.subr.bf16.mxu1 %v5804_v51  ;;  %v3431_v46 = vld [vmem:[#allocation12 + $0x3d8] sm:$0xff]  ;;  %v5758_v51 = vpack.c.bf16 %v3428_v17, %v3420_v12  ;;  %v3478_v45 = vld [vmem:[#allocation12 + $0x550] sm:$0xff]  ;;  %v3492_v12 = vld [vmem:[#allocation12 + $0x5c0] sm:$0xff] }
 0x605   :  { %v5820_v54 = vpack.c.bf16 %v3431_v46, %v3423_v34  ;;  %v3484_v46 = vld [vmem:[#allocation12 + $0x580] sm:$0xff] }
 0x607   :  { %5743 = vmatpush1.bf16.msra.mxu0 %v5742_v57  ;;  %5807 = vmatpush1.bf16.msra.mxu1 %v5806_v60  ;;  %v5760_v57 = vpack.c.bf16 %v3445_v18, %v3437_v26  ;;  %v3447_v60 = vld [vmem:[#allocation12 + $0x458] sm:$0xff]  ;;  %v3509_v26 = vld [vmem:[#allocation12 + $0x648] sm:$0xff] }
 0x608   :  { %5745 = vmatprep.subr.bf16.mxu0 %v5744_v31  ;;  %5809 = vmatprep.subr.bf16.mxu1 %v5808_v39  ;;  %v3436_v31 = vld [vmem:[#allocation12 + $0x400] sm:$0xff]  ;;  %v5824_v6 = vpack.c.bf16 %v3447_v60, %v3439_v25  ;;  %v3438_v39 = vld [vmem:[#allocation12 + $0x410] sm:$0xff]  ;;  %v3503_v18 = vld [vmem:[#allocation12 + $0x618] sm:$0xff] }
 0x609   :  { %v5762_v28 = vpack.c.bf16 %v3444_v37, %v3436_v31  ;;  %v5826_v16 = vpack.c.bf16 %v3446_v53, %v3438_v39  ;;  %v3500_v60 = vld [vmem:[#allocation12 + $0x600] sm:$0xff]  ;;  %v3510_v39 = vld [vmem:[#allocation12 + $0x650] sm:$0xff] }
 0x60a   :  { %v3508_v31 = vld [vmem:[#allocation12 + $0x640] sm:$0xff] }
 0x60b   :  { %5747 = vmatpush1.bf16.msra.mxu0 %v5746_v30  ;;  %5811 = vmatpush1.bf16.msra.mxu1 %v5810_v0  ;;  %v5764_v30 = vpack.c.bf16 %v3461_v21, %v3453_v5  ;;  %v3463_v0 = vld [vmem:[#allocation12 + $0x4d8] sm:$0xff]  ;;  %v3525_v5 = vld [vmem:[#allocation12 + $0x6c8] sm:$0xff] }
 0x60c   :  { %5749 = vmatprep.subr.bf16.mxu0 %v5748_v48  ;;  %5813 = vmatprep.subr.bf16.mxu1 %v5812_v1  ;;  %v3452_v48 = vld [vmem:[#allocation12 + $0x480] sm:$0xff]  ;;  %v5828_v19 = vpack.c.bf16 %v3463_v0, %v3455_v15  ;;  %v3454_v1 = vld [vmem:[#allocation12 + $0x490] sm:$0xff]  ;;  %v3519_v21 = vld [vmem:[#allocation12 + $0x698] sm:$0xff] }
 0x60d   :  { %v5766_v38 = vpack.c.bf16 %v3460_v50, %v3452_v48  ;;  %v5830_v13 = vpack.c.bf16 %v3462_v7, %v3454_v1  ;;  %v3516_v0 = vld [vmem:[#allocation12 + $0x680] sm:$0xff]  ;;  %v3526_v1 = vld [vmem:[#allocation12 + $0x6d0] sm:$0xff] }
 0x60e   :  { %v3524_v48 = vld [vmem:[#allocation12 + $0x6c0] sm:$0xff] }
 0x60f   :  { %5751 = vmatpush1.bf16.msra.mxu0 %v5750_v10  ;;  %5815 = vmatpush1.bf16.msra.mxu1 %v5814_v55  ;;  %v5768_v10 = vpack.c.bf16 %v3477_v9, %v3469_v3  ;;  %v3479_v55 = vld [vmem:[#allocation12 + $0x558] sm:$0xff]  ;;  %v3541_v3 = vld [vmem:[#allocation12 + $0x748] sm:$0xff] }
 0x610   :  { %5753 = vmatprep.subr.bf16.mxu0 %v5752_v47  ;;  %5817 = vmatprep.subr.bf16.mxu1 %v5816_v35  ;;  %v3468_v47 = vld [vmem:[#allocation12 + $0x500] sm:$0xff]  ;;  %v5832_v27 = vpack.c.bf16 %v3479_v55, %v3471_v43  ;;  %v3535_v9 = vld [vmem:[#allocation12 + $0x718] sm:$0xff] }
 0x611   :  { %v5770_v35 = vpack.c.bf16 %v3476_v33, %v3468_v47  ;;  %v3532_v55 = vld [vmem:[#allocation12 + $0x700] sm:$0xff] }
 0x612   :  { %v3540_v47 = vld [vmem:[#allocation12 + $0x740] sm:$0xff] }
 0x613   :  { %5755 = vmatpush1.bf16.msra.mxu0 %v5754_v58  ;;  %5819 = vmatpush1.bf16.msra.mxu1 %v5818_v11  ;;  %v5834_v58 = vpack.c.bf16 %v3478_v45, %v3470_v44  ;;  %v3485_v11 = vld [vmem:[#allocation12 + $0x588] sm:$0xff]  ;;  %v3542_v44 = vld [vmem:[#allocation12 + $0x750] sm:$0xff] }
 0x614   :  { %5757 = vmatprep.subr.bf16.mxu0 %v5756_v42  ;;  %5821 = vmatprep.subr.bf16.mxu1 %v5820_v54  ;;  %v5772_v34 = vpack.c.bf16 %v3493_v2, %v3485_v11  ;;  %v3495_v42 = vld [vmem:[#allocation12 + $0x5d8] sm:$0xff]  ;;  %v5774_v54 = vpack.c.bf16 %v3492_v12, %v3484_v46  ;;  %v3557_v11 = vld [vmem:[#allocation12 + $0x7c8] sm:$0xff]  ;;  %v3556_v46 = vld [vmem:[#allocation12 + $0x7c0] sm:$0xff] }
 0x615   :  { %v5836_v17 = vpack.c.bf16 %v3495_v42, %v3487_v63  ;;  %v3551_v2 = vld [vmem:[#allocation12 + $0x798] sm:$0xff]  ;;  %v3548_v42 = vld [vmem:[#allocation12 + $0x780] sm:$0xff] }
 0x617   :  { %5759 = vmatpush1.bf16.msra.mxu0 %v5758_v51  ;;  %5823 = vmatpush1.bf16.msra.mxu1 %v5822_v4  ;;  %v3486_v51 = vld [vmem:[#allocation12 + $0x590] sm:$0xff]  ;;  %v3501_v4 = vld [vmem:[#allocation12 + $0x608] sm:$0xff] }
 0x618   :  { %5761 = vmatprep.subr.bf16.mxu0 %v5760_v57  ;;  %5825 = vmatprep.subr.bf16.mxu1 %v5824_v6  ;;  %v5838_v36 = vpack.c.bf16 %v3494_v59, %v3486_v51  ;;  %v5776_v25 = vpack.c.bf16 %v3509_v26, %v3501_v4  ;;  %v3511_v57 = vld [vmem:[#allocation12 + $0x658] sm:$0xff]  ;;  %v5778_v6 = vpack.c.bf16 %v3508_v31, %v3500_v60  ;;  %v3558_v51 = vld [vmem:[#allocation12 + $0x7d0] sm:$0xff]  ;;  %v3321_v4 = vld [vmem:[#allocation12 + $0x68] sm:$0xff] }
 0x619   :  { %v5840_v37 = vpack.c.bf16 %v3511_v57, %v3503_v18  ;;  %v3315_v26 = vld [vmem:[#allocation12 + $0x38] sm:$0xff] }
 0x61b   :  { %5763 = vmatpush1.bf16.msra.mxu0 %v5762_v28  ;;  %5827 = vmatpush1.bf16.msra.mxu1 %v5826_v16  ;;  %v3502_v28 = vld [vmem:[#allocation12 + $0x610] sm:$0xff]  ;;  %v3517_v16 = vld [vmem:[#allocation12 + $0x688] sm:$0xff] }
 0x61c   :  { %5765 = vmatprep.subr.bf16.mxu0 %v5764_v30  ;;  %5829 = vmatprep.subr.bf16.mxu1 %v5828_v19  ;;  %v5842_v53 = vpack.c.bf16 %v3510_v39, %v3502_v28  ;;  %v5780_v15 = vpack.c.bf16 %v3525_v5, %v3517_v16  ;;  %v3527_v30 = vld [vmem:[#allocation12 + $0x6d8] sm:$0xff]  ;;  %v5782_v19 = vpack.c.bf16 %v3524_v48, %v3516_v0 }
 0x61d   :  { %v5844_v50 = vpack.c.bf16 %v3527_v30, %v3519_v21 }
 0x61f   :  { %5767 = vmatpush1.bf16.msra.mxu0 %v5766_v38  ;;  %5831 = vmatpush1.bf16.msra.mxu1 %v5830_v13  ;;  %v3518_v38 = vld [vmem:[#allocation12 + $0x690] sm:$0xff]  ;;  %v3533_v13 = vld [vmem:[#allocation12 + $0x708] sm:$0xff] }
 0x620   :  { %5769 = vmatprep.subr.bf16.mxu0 %v5768_v10  ;;  %5833 = vmatprep.subr.bf16.mxu1 %v5832_v27  ;;  %v5846_v7 = vpack.c.bf16 %v3526_v1, %v3518_v38  ;;  %v5784_v43 = vpack.c.bf16 %v3541_v3, %v3533_v13  ;;  %v3543_v10 = vld [vmem:[#allocation12 + $0x758] sm:$0xff]  ;;  %v5786_v27 = vpack.c.bf16 %v3540_v47, %v3532_v55 }
 0x621   :  { %v5848_v33 = vpack.c.bf16 %v3543_v10, %v3535_v9 }
 0x623   :  { %5771 = vmatpush1.bf16.msra.mxu0 %v5770_v35  ;;  %5835 = vmatpush1.bf16.msra.mxu1 %v5834_v58  ;;  %v3534_v35 = vld [vmem:[#allocation12 + $0x710] sm:$0xff]  ;;  %v3549_v58 = vld [vmem:[#allocation12 + $0x788] sm:$0xff] }
 0x624   :  { %5773 = vmatprep.subr.bf16.mxu0 %v5772_v34  ;;  %5837 = vmatprep.subr.bf16.mxu1 %v5836_v17  ;;  %v5850_v45 = vpack.c.bf16 %v3542_v44, %v3534_v35  ;;  %v5788_v63 = vpack.c.bf16 %v3557_v11, %v3549_v58  ;;  %v3559_v34 = vld [vmem:[#allocation12 + $0x7d8] sm:$0xff]  ;;  %v5790_v17 = vpack.c.bf16 %v3556_v46, %v3548_v42 }
 0x625   :  { %v5852_v12 = vpack.c.bf16 %v3559_v34, %v3551_v2 }
 0x627   :  { %5775 = vmatpush1.bf16.msra.mxu0 %v5774_v54  ;;  %5839 = vmatpush1.bf16.msra.mxu1 %v5838_v36  ;;  %v3550_v54 = vld [vmem:[#allocation12 + $0x790] sm:$0xff]  ;;  %v3313_v36 = vld [vmem:[#allocation12 + $0x28] sm:$0xff] }
 0x628   :  { %5777 = vmatprep.subr.bf16.mxu0 %v5776_v25  ;;  %5841 = vmatprep.subr.bf16.mxu1 %v5840_v37  ;;  %v5854_v59 = vpack.c.bf16 %v3558_v51, %v3550_v54  ;;  %v7100_v18 = vpack.c.bf16 %v3321_v4, %v3313_v36  ;;  %v3323_v25 = vld [vmem:[#allocation12 + $0x78] sm:$0xff]  ;;  %v3312_v36 = vld [vmem:[#allocation12 + $0x20] sm:$0xff] }
 0x629   :  { %v7102_v57 = vpack.c.bf16 %v3323_v25, %v3315_v26  ;;  %v3320_v4 = vld [vmem:[#allocation12 + $0x60] sm:$0xff]  ;;  %v3314_v26 = vld [vmem:[#allocation12 + $0x30] sm:$0xff] }
 0x62a   :  { %v3322_v25 = vld [vmem:[#allocation12 + $0x70] sm:$0xff] }
 0x62b   :  { %5779 = vmatpush1.bf16.msra.mxu0 %v5778_v6  ;;  %5843 = vmatpush1.bf16.msra.mxu1 %v5842_v53 }
 0x62c   :  { %5781 = vmatprep.subr.bf16.mxu0 %v5780_v15  ;;  %5845 = vmatprep.subr.bf16.mxu1 %v5844_v50 }
 0x62f   :  { %5783 = vmatpush1.bf16.msra.mxu0 %v5782_v19  ;;  %5847 = vmatpush1.bf16.msra.mxu1 %v5846_v7 }
 0x630   :  { %5785 = vmatprep.subr.bf16.mxu0 %v5784_v43  ;;  %5849 = vmatprep.subr.bf16.mxu1 %v5848_v33 }
 0x633   :  { %5787 = vmatpush1.bf16.msra.mxu0 %v5786_v27  ;;  %5851 = vmatpush1.bf16.msra.mxu1 %v5850_v45 }
 0x634   :  { %5789 = vmatprep.subr.bf16.mxu0 %v5788_v63  ;;  %5853 = vmatprep.subr.bf16.mxu1 %v5852_v12 }
 0x637   :  { %5791 = vmatpush1.bf16.msra.mxu0 %v5790_v17  ;;  %5855 = vmatpush1.bf16.msra.mxu1 %v5854_v59 }
 0x638   :  { %5857 = vmatprep.subr.bf16.mxu0 %v7100_v18  ;;  %5921 = vmatprep.subr.bf16.mxu1 %v7102_v57 }
 0x68d   :  { %v3041_v60 = vpop.f32.mrb[16].mxu0  ;;  %v3112_v31 = vpop.f32.mrb[20].mxu1 }
 0x68e   :  { %v3286_v37 = vadd.f32 %v3041_v60, %v6967_v62  ;;  %v3043_v6 = vpop.f32.mrb[17].mxu0  ;;  %v3114_v28 = vpop.f32.mrb[21].mxu1  ;;  %v6176_v5 = vadd.f32 %v3112_v31, %v6981_v8  ;;  %v3507_v8 = vld [vmem:[#allocation12 + $0x638] sm:$0xff] }
 0x68f   :  { %v3287_v39 = vadd.f32 %v3043_v6, %v6969_v24 }
 0x690   :  { %v3290_v53 = vmul.f32 0.5, %v3286_v37  ;;  %v3329_v37 = vld [vmem:[#allocation12 + $0xa8] sm:$0xff] }
 0x691   :  { %v3294_v16 = vmul.f32 0.5, %v3287_v39  ;;  %v3331_v39 = vld [vmem:[#allocation12 + $0xb8] sm:$0xff] }
 0x692   :  { %6276 = vtanh.f32 %v3290_v53  ;;  %v3339_v53 = vld [vmem:[#allocation12 + $0xf8] sm:$0xff] }
 0x693   :  { %6278 = vtanh.f32 %v3294_v16 }
 0x694   :  { %6280 = vtanh.f32 %v6176_v5  ;;  %v7124_v5 = vpack.c.bf16 %v3320_v4, %v3312_v36  ;;  %v3387_v36 = vld [vmem:[#allocation12 + $0x278] sm:$0xff] }
 0x69c   :  { %v6277_v21 = vpop.eup %6276 }
 0x69d   :  { %v6279_v15 = vpop.eup %6278  ;;  %v3292_v30 = vmul.f32 0.5, %v6277_v21  ;;  %v7126_v21 = vpack.c.bf16 %v3322_v25, %v3314_v26  ;;  %v3376_v25 = vld [vmem:[#allocation12 + $0x220] sm:$0xff] }
 0x69e   :  { %v3296_v0 = vmul.f32 0.5, %v6279_v15  ;;  %v6281_v50 = vpop.eup %6280  ;;  %v3328_v15 = vld [vmem:[#allocation12 + $0xa0] sm:$0xff] }
 0x69f   :  { %v3293_v48 = vadd.f32 0.5, %v3292_v30  ;;  %v3336_v30 = vld [vmem:[#allocation12 + $0xe0] sm:$0xff] }
 0x6a0   :  { %v3297_v19 = vadd.f32 0.5, %v3296_v0 }
 0x6a1   :  { %v3304_v38 = vmul.f32 %v6281_v50, %v3293_v48  ;;  %v3330_v48 = vld [vmem:[#allocation12 + $0xb0] sm:$0xff] }
 0x6a2   :  { %v3303_v62 = vmul.f32 %v3297_v19, %v7076_v23  ;;  %v6177_v23 = vadd.f32 %v3114_v28, %v6983_v40  ;;  %v3338_v50 = vld [vmem:[#allocation12 + $0xf0] sm:$0xff]  ;;  %v3345_v19 = vld [vmem:[#allocation12 + $0x128] sm:$0xff] }
 0x6a3   :  { %v3513_v40 = vld [vmem:[#allocation12 + $0x668] sm:$0xff] }
 0x6a4   :  { %v7110_v1 = vadd.f32 %v3304_v38, %v3303_v62  ;;  %v3299_v35 = vmul.f32 0.5, %v6177_v23  ;;  %v7134_v62 = vpack.c.bf16 %v3339_v53, %v3331_v39  ;;  %v3354_v23 = vld [vmem:[#allocation12 + $0x170] sm:$0xff]  ;;  %v3401_v39 = vld [vmem:[#allocation12 + $0x2e8] sm:$0xff]  ;;  %v3395_v53 = vld [vmem:[#allocation12 + $0x2b8] sm:$0xff] }
 0x6a6   :  { %7476 = vst [vmem:[#allocation32_spill] sm:$0xff] %v7110_v1 }
 0x6cd   :  { %v3183_v24 = vpop.f32.mrb[18].mxu0  ;;  %v3254_v7 = vpop.f32.mrb[32].mxu1 }
 0x6ce   :  { %v3259_v13 = vadd.f32 %v3183_v24, %v7009_v52  ;;  %v3185_v3 = vpop.f32.mrb[19].mxu0  ;;  %v3256_v9 = vpop.f32.mrb[33].mxu1  ;;  %v3261_v47 = vadd.f32 %v3254_v7, %v7017_v22  ;;  %v3353_v24 = vld [vmem:[#allocation12 + $0x168] sm:$0xff]  ;;  %v3347_v7 = vld [vmem:[#allocation12 + $0x138] sm:$0xff] }
 0x6cf   :  { %v3260_v43 = vadd.f32 %v3185_v3, %v7013_v61  ;;  %v3262_v33 = vadd.f32 %v3256_v9, %v7023_v49  ;;  %v7140_v3 = vpack.c.bf16 %v3336_v30, %v3328_v15  ;;  %v7142_v9 = vpack.c.bf16 %v3338_v50, %v3330_v48  ;;  %v3403_v15 = vld [vmem:[#allocation12 + $0x2f8] sm:$0xff]  ;;  %v3392_v50 = vld [vmem:[#allocation12 + $0x2a0] sm:$0xff]  ;;  %v3489_v49 = vld [vmem:[#allocation12 + $0x5a8] sm:$0xff] }
 0x6d0   :  { %v3263_v10 = vmul.f32 0.5, %v3259_v13  ;;  %v3355_v13 = vld [vmem:[#allocation12 + $0x178] sm:$0xff]  ;;  %v3497_v22 = vld [vmem:[#allocation12 + $0x5e8] sm:$0xff] }
 0x6d1   :  { %v3267_v55 = vmul.f32 0.5, %v3260_v43  ;;  %v3272_v27 = vmul.f32 0.5, %v3262_v33  ;;  %v3344_v43 = vld [vmem:[#allocation12 + $0x120] sm:$0xff]  ;;  %v3346_v33 = vld [vmem:[#allocation12 + $0x130] sm:$0xff]  ;;  %v3491_v61 = vld [vmem:[#allocation12 + $0x5b8] sm:$0xff] }
 0x6d2   :  { %6282 = vtanh.f32 %v3263_v10  ;;  %v3352_v10 = vld [vmem:[#allocation12 + $0x160] sm:$0xff]  ;;  %v3499_v52 = vld [vmem:[#allocation12 + $0x5f8] sm:$0xff] }
 0x6d3   :  { %6284 = vtanh.f32 %v3267_v55  ;;  %v7146_v55 = vpack.c.bf16 %v3353_v24, %v3345_v19  ;;  %v3400_v19 = vld [vmem:[#allocation12 + $0x2e0] sm:$0xff] }
 0x6d4   :  { %6286 = vtanh.f32 %v3261_v47  ;;  %v7148_v47 = vpack.c.bf16 %v3355_v13, %v3347_v7  ;;  %v7186_v7 = vpack.c.bf16 %v3403_v15, %v3395_v53  ;;  %v3394_v13 = vld [vmem:[#allocation12 + $0x2b0] sm:$0xff] }
 0x6d5   :  { %6288 = vtanh.f32 %v3272_v27  ;;  %v3361_v27 = vld [vmem:[#allocation12 + $0x1a8] sm:$0xff]  ;;  %v3426_v15 = vld [vmem:[#allocation12 + $0x3b0] sm:$0xff] }
 0x6d6   :  { %6290 = vtanh.f32 %v3299_v35  ;;  %v3369_v35 = vld [vmem:[#allocation12 + $0x1e8] sm:$0xff] }
 0x6d7   :  { %6292 = vtanh.f32 %v7110_v1  ;;  %v3505_v1 = vld [vmem:[#allocation12 + $0x628] sm:$0xff] }
 0x6dc   :  { %v6283_v44 = vpop.eup %6282 }
 0x6dd   :  { %v6285_v45 = vpop.eup %6284  ;;  %v3265_v58 = vmul.f32 0.5, %v6283_v44  ;;  %v3363_v44 = vld [vmem:[#allocation12 + $0x1b8] sm:$0xff] }
 0x6de   :  { %v3269_v11 = vmul.f32 0.5, %v6285_v45  ;;  %v6287_v63 = vpop.eup %6286  ;;  %v3371_v45 = vld [vmem:[#allocation12 + $0x1f8] sm:$0xff] }
 0x6df   :  { %v3266_v2 = vadd.f32 0.5, %v3265_v58  ;;  %v6289_v17 = vpop.eup %6288  ;;  %v7154_v58 = vpack.c.bf16 %v3352_v10, %v3344_v43  ;;  %v3402_v43 = vld [vmem:[#allocation12 + $0x2f0] sm:$0xff]  ;;  %v3409_v10 = vld [vmem:[#allocation12 + $0x328] sm:$0xff] }
 0x6e0   :  { %v3270_v34 = vadd.f32 0.5, %v3269_v11  ;;  %v6291_v54 = vpop.eup %6290  ;;  %v3274_v51 = vmul.f32 0.5, %v6289_v17  ;;  %v7156_v11 = vpack.c.bf16 %v3354_v23, %v3346_v33  ;;  %v3370_v17 = vld [vmem:[#allocation12 + $0x1f0] sm:$0xff]  ;;  %v3417_v33 = vld [vmem:[#allocation12 + $0x368] sm:$0xff]  ;;  %v3411_v23 = vld [vmem:[#allocation12 + $0x338] sm:$0xff] }
 0x6e1   :  { %v3277_v42 = vmul.f32 %v6287_v63, %v3266_v2  ;;  %v3301_v59 = vmul.f32 0.5, %v6291_v54  ;;  %v6293_v60 = vpop.eup %6292  ;;  %v3360_v2 = vld [vmem:[#allocation12 + $0x1a0] sm:$0xff]  ;;  %v3377_v54 = vld [vmem:[#allocation12 + $0x228] sm:$0xff] }
 0x6e2   :  { %v3276_v46 = vmul.f32 %v3270_v34, %v7084_v41  ;;  %v3275_v31 = vadd.f32 0.5, %v3274_v51  ;;  %v3337_v41 = vld [vmem:[#allocation12 + $0xe8] sm:$0xff]  ;;  %v3368_v63 = vld [vmem:[#allocation12 + $0x1e0] sm:$0xff]  ;;  %v7160_v34 = vpack.c.bf16 %v3369_v35, %v3361_v27  ;;  %v3419_v27 = vld [vmem:[#allocation12 + $0x378] sm:$0xff]  ;;  %v7190_v35 = vpack.c.bf16 %v3400_v19, %v3392_v50 }
 0x6e3   :  { %v3302_v28 = vadd.f32 0.5, %v3301_v59  ;;  %v7132_v38 = vpack.c.bf16 %v3337_v41, %v3329_v37  ;;  %v3385_v51 = vld [vmem:[#allocation12 + $0x268] sm:$0xff]  ;;  %v3379_v59 = vld [vmem:[#allocation12 + $0x238] sm:$0xff]  ;;  %v7166_v4 = vpack.c.bf16 %v3368_v63, %v3360_v2  ;;  %v3416_v2 = vld [vmem:[#allocation12 + $0x360] sm:$0xff]  ;;  %v7196_v63 = vpack.c.bf16 %v3417_v33, %v3409_v10 }
 0x6e4   :  { %v7118_v12 = vadd.f32 %v3277_v42, %v3276_v46  ;;  %v7162_v42 = vpack.c.bf16 %v3371_v45, %v3363_v44  ;;  %v3362_v46 = vld [vmem:[#allocation12 + $0x1b0] sm:$0xff]  ;;  %v7174_v37 = vpack.c.bf16 %v3387_v36, %v3379_v59  ;;  %v3393_v41 = vld [vmem:[#allocation12 + $0x2a8] sm:$0xff]  ;;  %v7192_v44 = vpack.c.bf16 %v3402_v43, %v3394_v13  ;;  %v3408_v45 = vld [vmem:[#allocation12 + $0x320] sm:$0xff] }
 0x6e5   :  { %v7128_v0 = vmul.f32 %v6293_v60, %v3302_v28  ;;  %v7168_v26 = vpack.c.bf16 %v3370_v17, %v3362_v46  ;;  %v3384_v60 = vld [vmem:[#allocation12 + $0x260] sm:$0xff]  ;;  %v3386_v28 = vld [vmem:[#allocation12 + $0x270] sm:$0xff]  ;;  %v7184_v24 = vpack.c.bf16 %v3401_v39, %v3393_v41  ;;  %v7198_v46 = vpack.c.bf16 %v3419_v27, %v3411_v23  ;;  %v3433_v59 = vld [vmem:[#allocation12 + $0x3e8] sm:$0xff] }
 0x6e6   :  { %7477 = vst [vmem:[#allocation33_spill] sm:$0xff] %v7118_v12  ;;  %6294 = vtanh.f32 %v7118_v12  ;;  %v7178_v30 = vpack.c.bf16 %v3384_v60, %v3376_v25  ;;  %v3410_v17 = vld [vmem:[#allocation12 + $0x330] sm:$0xff]  ;;  %v3427_v36 = vld [vmem:[#allocation12 + $0x3b8] sm:$0xff]  ;;  %v7202_v60 = vpack.c.bf16 %v3416_v2, %v3408_v45  ;;  %v3432_v41 = vld [vmem:[#allocation12 + $0x3e0] sm:$0xff] }
 0x6e7   :  { %v3435_v25 = vld [vmem:[#allocation12 + $0x3f8] sm:$0xff]  ;;  %v3434_v50 = vld [vmem:[#allocation12 + $0x3f0] sm:$0xff]  ;;  %v3441_v19 = vld [vmem:[#allocation12 + $0x428] sm:$0xff] }
 0x6e8   :  { %v7210_v53 = vpack.c.bf16 %v3435_v25, %v3427_v36  ;;  %v3449_v13 = vld [vmem:[#allocation12 + $0x468] sm:$0xff]  ;;  %v3443_v43 = vld [vmem:[#allocation12 + $0x438] sm:$0xff]  ;;  %v7216_v23 = vpack.c.bf16 %v3434_v50, %v3426_v15  ;;  %v3440_v27 = vld [vmem:[#allocation12 + $0x420] sm:$0xff] }
 0x6e9   :  { %v3451_v10 = vld [vmem:[#allocation12 + $0x478] sm:$0xff]  ;;  %v3448_v45 = vld [vmem:[#allocation12 + $0x460] sm:$0xff]  ;;  %v7220_v2 = vpack.c.bf16 %v3449_v13, %v3441_v19  ;;  %v3465_v36 = vld [vmem:[#allocation12 + $0x4e8] sm:$0xff] }
 0x6ea   :  { %v3459_v25 = vld [vmem:[#allocation12 + $0x4b8] sm:$0xff]  ;;  %v3456_v15 = vld [vmem:[#allocation12 + $0x4a0] sm:$0xff] }
 0x6eb   :  { %v3464_v50 = vld [vmem:[#allocation12 + $0x4e0] sm:$0xff]  ;;  %v3483_v12 = vld [vmem:[#allocation12 + $0x578] sm:$0xff] }
 0x6f0   :  { %v6295_v6 = vpop.eup %6294 }
 0x6f1   :  { %v7122_v16 = vmul.f32 %v6295_v6, %v3275_v31  ;;  %v7172_v31 = vpack.c.bf16 %v3385_v51, %v3377_v54  ;;  %v3378_v6 = vld [vmem:[#allocation12 + $0x230] sm:$0xff]  ;;  %v3425_v51 = vld [vmem:[#allocation12 + $0x3a8] sm:$0xff] }
 0x6f2   :  { %v7180_v48 = vpack.c.bf16 %v3386_v28, %v3378_v6  ;;  %v3418_v54 = vld [vmem:[#allocation12 + $0x370] sm:$0xff]  ;;  %v3424_v28 = vld [vmem:[#allocation12 + $0x3a0] sm:$0xff]  ;;  %v7208_v39 = vpack.c.bf16 %v3433_v59, %v3425_v51  ;;  %v3457_v59 = vld [vmem:[#allocation12 + $0x4a8] sm:$0xff] }
 0x6f3   :  { %7478 = vst [vmem:[#allocation34_spill] sm:$0xff] %v7122_v16  ;;  %3628 = vmatprep.mubr.f32.mxu0 %v7122_v16  ;;  %3699 = vmatprep.mubr.f32.mxu1 %v7122_v16  ;;  %v7204_v6 = vpack.c.bf16 %v3418_v54, %v3410_v17  ;;  %v7214_v33 = vpack.c.bf16 %v3432_v41, %v3424_v28  ;;  %v3442_v54 = vld [vmem:[#allocation12 + $0x430] sm:$0xff] }
 0x6f4   :  { %3629 = vmatmul.mubr.f32.vlgmr.msra.gmra.mrb[20].mxu0 %v7128_v0  ;;  %3700 = vmatmul.mubr.f32.vlgmr.msra.gmra.mrb[22].mxu1 %v7128_v0  ;;  %v7222_v17 = vpack.c.bf16 %v3451_v10, %v3443_v43  ;;  %v3450_v51 = vld [vmem:[#allocation12 + $0x470] sm:$0xff]  ;;  %v7226_v28 = vpack.c.bf16 %v3448_v45, %v3440_v27  ;;  %v7232_v19 = vpack.c.bf16 %v3465_v36, %v3457_v59 }
 0x6f5   :  { %5859 = vmatpush1.bf16.msra.mxu0 %v7124_v5  ;;  %5923 = vmatpush1.bf16.msra.mxu1 %v7126_v21  ;;  %v7228_v41 = vpack.c.bf16 %v3450_v51, %v3442_v54  ;;  %v3458_v43 = vld [vmem:[#allocation12 + $0x4b0] sm:$0xff]  ;;  %v7238_v27 = vpack.c.bf16 %v3464_v50, %v3456_v15  ;;  %v3472_v54 = vld [vmem:[#allocation12 + $0x520] sm:$0xff]  ;;  %v7246_v59 = vpack.c.bf16 %v3483_v12, %v3475_v56 }
 0x6f6   :  { %3770 = vmatprep.mubr.f32.mxu0 %v7122_v16  ;;  %3841 = vmatprep.mubr.f32.mxu1 %v7122_v16  ;;  %v3467_v16 = vld [vmem:[#allocation12 + $0x4f8] sm:$0xff]  ;;  %v3466_v10 = vld [vmem:[#allocation12 + $0x4f0] sm:$0xff]  ;;  %v3480_v51 = vld [vmem:[#allocation12 + $0x560] sm:$0xff]  ;;  %v7256_v56 = vpack.c.bf16 %v3497_v22, %v3489_v49 }
 0x6f7   :  { %5861 = vmatprep.subr.bf16.mxu0 %v7132_v38  ;;  %5925 = vmatprep.subr.bf16.mxu1 %v7134_v62  ;;  %v7234_v13 = vpack.c.bf16 %v3467_v16, %v3459_v25  ;;  %v7240_v45 = vpack.c.bf16 %v3466_v10, %v3458_v43  ;;  %v7244_v16 = vpack.c.bf16 %v3481_v14, %v3473_v32  ;;  %v3474_v36 = vld [vmem:[#allocation12 + $0x530] sm:$0xff]  ;;  %v3488_v43 = vld [vmem:[#allocation12 + $0x5a0] sm:$0xff] }
 0x6f8   :  { %7479 = vst [vmem:[#allocation35_spill] sm:$0xff] %v7246_v59  ;;  %v3482_v25 = vld [vmem:[#allocation12 + $0x570] sm:$0xff]  ;;  %v7250_v15 = vpack.c.bf16 %v3480_v51, %v3472_v54  ;;  %v3496_v10 = vld [vmem:[#allocation12 + $0x5e0] sm:$0xff]  ;;  %7482 = vst [vmem:[#allocation38_spill] sm:$0xff] %v7256_v56  ;;  %v7258_v14 = vpack.c.bf16 %v3499_v52, %v3491_v61  ;;  %v7268_v52 = vpack.c.bf16 %v3513_v40, %v3505_v1 }
 0x6f9   :  { %5863 = vmatpush1.bf16.msra.mxu0 %v7140_v3  ;;  %5927 = vmatpush1.bf16.msra.mxu1 %v7142_v9  ;;  %v7252_v50 = vpack.c.bf16 %v3482_v25, %v3474_v36  ;;  %v3490_v32 = vld [vmem:[#allocation12 + $0x5b0] sm:$0xff]  ;;  %v7262_v54 = vpack.c.bf16 %v3496_v10, %v3488_v43  ;;  %v3504_v36 = vld [vmem:[#allocation12 + $0x620] sm:$0xff]  ;;  %v7270_v61 = vpack.c.bf16 %v3515_v29, %v3507_v8 }
 0x6fa   :  { %5865 = vmatprep.subr.bf16.mxu0 %v7146_v55  ;;  %5929 = vmatprep.subr.bf16.mxu1 %v7148_v47  ;;  %7480 = vst [vmem:[#allocation36_spill] sm:$0xff] %v7250_v15  ;;  %7483 = vst [vmem:[#allocation39_spill] sm:$0xff] %v7258_v14  ;;  %v3498_v12 = vld [vmem:[#allocation12 + $0x5f0] sm:$0xff]  ;;  %v3512_v25 = vld [vmem:[#allocation12 + $0x660] sm:$0xff] }
 0x6fb   :  { %7481 = vst [vmem:[#allocation37_spill] sm:$0xff] %v7252_v50  ;;  %7484 = vst [vmem:[#allocation40_spill] sm:$0xff] %v7262_v54  ;;  %v7264_v51 = vpack.c.bf16 %v3498_v12, %v3490_v32  ;;  %v3506_v22 = vld [vmem:[#allocation12 + $0x630] sm:$0xff]  ;;  %v7274_v43 = vpack.c.bf16 %v3512_v25, %v3504_v36  ;;  %v3520_v32 = vld [vmem:[#allocation12 + $0x6a0] sm:$0xff] }
 0x6fc   :  { %7486 = vst [vmem:[#allocation42_spill] sm:$0xff] %v7268_v52  ;;  %7487 = vst [vmem:[#allocation43_spill] sm:$0xff] %v7270_v61  ;;  %v3514_v49 = vld [vmem:[#allocation12 + $0x670] sm:$0xff]  ;;  %v3528_v12 = vld [vmem:[#allocation12 + $0x6e0] sm:$0xff] }
 0x6fd   :  { %5867 = vmatpush1.bf16.msra.mxu0 %v7154_v58  ;;  %5931 = vmatpush1.bf16.msra.mxu1 %v7156_v11  ;;  %7485 = vst [vmem:[#allocation41_spill] sm:$0xff] %v7264_v51  ;;  %7488 = vst [vmem:[#allocation44_spill] sm:$0xff] %v7274_v43  ;;  %v7276_v10 = vpack.c.bf16 %v3514_v49, %v3506_v22  ;;  %v3522_v40 = vld [vmem:[#allocation12 + $0x6b0] sm:$0xff]  ;;  %v7286_v36 = vpack.c.bf16 %v3528_v12, %v3520_v32  ;;  %v3536_v22 = vld [vmem:[#allocation12 + $0x720] sm:$0xff] }
 0x6fe   :  { %5869 = vmatprep.subr.bf16.mxu0 %v7160_v34  ;;  %5933 = vmatprep.subr.bf16.mxu1 %v7162_v42  ;;  %v3530_v1 = vld [vmem:[#allocation12 + $0x6f0] sm:$0xff]  ;;  %v3544_v49 = vld [vmem:[#allocation12 + $0x760] sm:$0xff] }
 0x6ff   :  { %7489 = vst [vmem:[#allocation45_spill] sm:$0xff] %v7276_v10  ;;  %v7288_v25 = vpack.c.bf16 %v3530_v1, %v3522_v40  ;;  %v7298_v32 = vpack.c.bf16 %v3544_v49, %v3536_v22  ;;  %v3552_v40 = vld [vmem:[#allocation12 + $0x7a0] sm:$0xff]  ;;  %v3562_v1 = vld [vmem:[#allocation12 + $0x7f0] sm:$0xff] }
 0x701   :  { %5871 = vmatpush1.bf16.msra.mxu0 %v7166_v4  ;;  %5935 = vmatpush1.bf16.msra.mxu1 %v7168_v26 }
 0x702   :  { %5873 = vmatprep.subr.bf16.mxu0 %v7172_v31  ;;  %5937 = vmatprep.subr.bf16.mxu1 %v7174_v37 }
 0x705   :  { %5875 = vmatpush1.bf16.msra.mxu0 %v7178_v30  ;;  %5939 = vmatpush1.bf16.msra.mxu1 %v7180_v48 }
 0x706   :  { %5877 = vmatprep.subr.bf16.mxu0 %v7184_v24  ;;  %5941 = vmatprep.subr.bf16.mxu1 %v7186_v7 }
 0x709   :  { %5879 = vmatpush1.bf16.msra.mxu0 %v7190_v35  ;;  %5943 = vmatpush1.bf16.msra.mxu1 %v7192_v44 }
 0x70a   :  { %5881 = vmatprep.subr.bf16.mxu0 %v7196_v63  ;;  %5945 = vmatprep.subr.bf16.mxu1 %v7198_v46 }
 0x70d   :  { %5883 = vmatpush1.bf16.msra.mxu0 %v7202_v60  ;;  %5947 = vmatpush1.bf16.msra.mxu1 %v7204_v6 }
 0x70e   :  { %5885 = vmatprep.subr.bf16.mxu0 %v7208_v39  ;;  %5949 = vmatprep.subr.bf16.mxu1 %v7210_v53 }
 0x711   :  { %5887 = vmatpush1.bf16.msra.mxu0 %v7214_v33  ;;  %5951 = vmatpush1.bf16.msra.mxu1 %v7216_v23 }
 0x712   :  { %5889 = vmatprep.subr.bf16.mxu0 %v7220_v2  ;;  %5953 = vmatprep.subr.bf16.mxu1 %v7222_v17 }
 0x715   :  { %5891 = vmatpush1.bf16.msra.mxu0 %v7226_v28  ;;  %5955 = vmatpush1.bf16.msra.mxu1 %v7228_v41 }
 0x716   :  { %5893 = vmatprep.subr.bf16.mxu0 %v7232_v19  ;;  %5957 = vmatprep.subr.bf16.mxu1 %v7234_v13 }
 0x719   :  { %5895 = vmatpush1.bf16.msra.mxu0 %v7238_v27  ;;  %5959 = vmatpush1.bf16.msra.mxu1 %v7240_v45 }
 0x71a   :  { %5897 = vmatprep.subr.bf16.mxu0 %v7244_v16  ;;  %5961 = vmatprep.subr.bf16.mxu1 %v7246_v59  ;;  %v3523_v59 = vld [vmem:[#allocation12 + $0x6b8] sm:$0xff] }
 0x71d   :  { %5899 = vmatpush1.bf16.msra.mxu0 %v7250_v15  ;;  %5963 = vmatpush1.bf16.msra.mxu1 %v7252_v50  ;;  %v3529_v15 = vld [vmem:[#allocation12 + $0x6e8] sm:$0xff]  ;;  %v3531_v50 = vld [vmem:[#allocation12 + $0x6f8] sm:$0xff] }
 0x71e   :  { %5901 = vmatprep.subr.bf16.mxu0 %v7256_v56  ;;  %5965 = vmatprep.subr.bf16.mxu1 %v7258_v14  ;;  %v7280_v29 = vpack.c.bf16 %v3529_v15, %v3521_v20  ;;  %v7282_v8 = vpack.c.bf16 %v3531_v50, %v3523_v59  ;;  %v3537_v14 = vld [vmem:[#allocation12 + $0x728] sm:$0xff]  ;;  %v3539_v56 = vld [vmem:[#allocation12 + $0x738] sm:$0xff]  ;;  %v3538_v15 = vld [vmem:[#allocation12 + $0x730] sm:$0xff] }
 0x71f   :  { %v3546_v50 = vld [vmem:[#allocation12 + $0x770] sm:$0xff] }
 0x720   :  { %v7300_v12 = vpack.c.bf16 %v3546_v50, %v3538_v15 }
 0x721   :  { %5903 = vmatpush1.bf16.msra.mxu0 %v7262_v54  ;;  %5967 = vmatpush1.bf16.msra.mxu1 %v7264_v51  ;;  %v3545_v54 = vld [vmem:[#allocation12 + $0x768] sm:$0xff]  ;;  %v3547_v51 = vld [vmem:[#allocation12 + $0x778] sm:$0xff] }
 0x722   :  { %5905 = vmatprep.subr.bf16.mxu0 %v7268_v52  ;;  %5969 = vmatprep.subr.bf16.mxu1 %v7270_v61  ;;  %v7292_v20 = vpack.c.bf16 %v3545_v54, %v3537_v14  ;;  %v7294_v59 = vpack.c.bf16 %v3547_v51, %v3539_v56  ;;  %v3553_v61 = vld [vmem:[#allocation12 + $0x7a8] sm:$0xff]  ;;  %v3555_v52 = vld [vmem:[#allocation12 + $0x7b8] sm:$0xff]  ;;  %v3560_v54 = vld [vmem:[#allocation12 + $0x7e0] sm:$0xff] }
 0x723   :  { %v3554_v51 = vld [vmem:[#allocation12 + $0x7b0] sm:$0xff]  ;;  %v7310_v22 = vpack.c.bf16 %v3560_v54, %v3552_v40 }
 0x724   :  { %v7312_v49 = vpack.c.bf16 %v3562_v1, %v3554_v51 }
 0x725   :  { %5907 = vmatpush1.bf16.msra.mxu0 %v7274_v43  ;;  %5971 = vmatpush1.bf16.msra.mxu1 %v7276_v10  ;;  %v3561_v43 = vld [vmem:[#allocation12 + $0x7e8] sm:$0xff]  ;;  %v3563_v10 = vld [vmem:[#allocation12 + $0x7f8] sm:$0xff] }
 0x726   :  { %5909 = vmatprep.subr.bf16.mxu0 %v7280_v29  ;;  %5973 = vmatprep.subr.bf16.mxu1 %v7282_v8  ;;  %v7304_v56 = vpack.c.bf16 %v3561_v43, %v3553_v61  ;;  %v7306_v14 = vpack.c.bf16 %v3563_v10, %v3555_v52 }
 0x729   :  { %5911 = vmatpush1.bf16.msra.mxu0 %v7286_v36  ;;  %5975 = vmatpush1.bf16.msra.mxu1 %v7288_v25 }
 0x72a   :  { %5913 = vmatprep.subr.bf16.mxu0 %v7292_v20  ;;  %5977 = vmatprep.subr.bf16.mxu1 %v7294_v59 }
 0x72d   :  { %5915 = vmatpush1.bf16.msra.mxu0 %v7298_v32  ;;  %5979 = vmatpush1.bf16.msra.mxu1 %v7300_v12 }
 0x72e   :  { %5917 = vmatprep.subr.bf16.mxu0 %v7304_v56  ;;  %5981 = vmatprep.subr.bf16.mxu1 %v7306_v14 }
 0x731   :  { %5919 = vmatpush1.bf16.msra.mxu0 %v7310_v22  ;;  %5983 = vmatpush1.bf16.msra.mxu1 %v7312_v49 }
 0x732   :  { %5985 = vmatprep.subr.bf16.mxu0 %v7100_v18  ;;  %6049 = vmatprep.subr.bf16.mxu1 %v7102_v57  ;;  %v7490_v18 = vld [vmem:[#allocation35_spill] sm:$0xff]  ;;  %v7491_v57 = vld [vmem:[#allocation36_spill] sm:$0xff] }
 0x734   :  { %3771 = vmatmul.mubr.f32.vlgmr.msra.gmra.mrb[22].mxu0 %v7128_v0  ;;  %3842 = vmatmul.mubr.f32.vlgmr.msra.gmra.mrb[34].mxu1 %v7128_v0  ;;  %v7494_v0 = vld [vmem:[#allocation39_spill] sm:$0xff] }
 0x735   :  { %5987 = vmatpush1.bf16.msra.mxu0 %v7124_v5  ;;  %6051 = vmatpush1.bf16.msra.mxu1 %v7126_v21  ;;  %v7492_v5 = vld [vmem:[#allocation37_spill] sm:$0xff]  ;;  %v7493_v21 = vld [vmem:[#allocation38_spill] sm:$0xff] }
 0x736   :  { %5989 = vmatprep.subr.bf16.mxu0 %v7132_v38  ;;  %6053 = vmatprep.subr.bf16.mxu1 %v7134_v62  ;;  %v7495_v38 = vld [vmem:[#allocation40_spill] sm:$0xff]  ;;  %v7496_v62 = vld [vmem:[#allocation41_spill] sm:$0xff] }
 0x739   :  { %5991 = vmatpush1.bf16.msra.mxu0 %v7140_v3  ;;  %6055 = vmatpush1.bf16.msra.mxu1 %v7142_v9  ;;  %v7497_v3 = vld [vmem:[#allocation42_spill] sm:$0xff]  ;;  %v7498_v9 = vld [vmem:[#allocation43_spill] sm:$0xff] }
 0x73a   :  { %5993 = vmatprep.subr.bf16.mxu0 %v7146_v55  ;;  %6057 = vmatprep.subr.bf16.mxu1 %v7148_v47  ;;  %v7499_v55 = vld [vmem:[#allocation44_spill] sm:$0xff]  ;;  %v7500_v47 = vld [vmem:[#allocation45_spill] sm:$0xff] }
 0x73d   :  { %5995 = vmatpush1.bf16.msra.mxu0 %v7154_v58  ;;  %6059 = vmatpush1.bf16.msra.mxu1 %v7156_v11  ;;  %v4196_v58 = vld [vmem:[#allocation13] sm:$0xff]  ;;  %v4197_v11 = vld [vmem:[#allocation13 + $0x8] sm:$0xff] }
 0x73e   :  { %5997 = vmatprep.subr.bf16.mxu0 %v7160_v34  ;;  %6061 = vmatprep.subr.bf16.mxu1 %v7162_v42  ;;  %v7384_v34 = vpack.c.bf16 %v4197_v11, %v4196_v58  ;;  %v4199_v58 = vld [vmem:[#allocation13 + $0x18] sm:$0xff] }
 0x741   :  { %5999 = vmatpush1.bf16.msra.mxu0 %v7166_v4  ;;  %6063 = vmatpush1.bf16.msra.mxu1 %v7168_v26  ;;  %v7501_v26 = vld [vmem:[#allocation21_spill] sm:$0xff] }
 0x742   :  { %6001 = vmatprep.subr.bf16.mxu0 %v7172_v31  ;;  %6065 = vmatprep.subr.bf16.mxu1 %v7174_v37 }
 0x745   :  { %6003 = vmatpush1.bf16.msra.mxu0 %v7178_v30  ;;  %6067 = vmatpush1.bf16.msra.mxu1 %v7180_v48  ;;  %v7502_v48 = vld [vmem:[#allocation22_spill] sm:$0xff] }
 0x746   :  { %6005 = vmatprep.subr.bf16.mxu0 %v7184_v24  ;;  %6069 = vmatprep.subr.bf16.mxu1 %v7186_v7 }
 0x749   :  { %6007 = vmatpush1.bf16.msra.mxu0 %v7190_v35  ;;  %6071 = vmatpush1.bf16.msra.mxu1 %v7192_v44  ;;  %v7503_v44 = vld [vmem:[#allocation23_spill] sm:$0xff] }
 0x74a   :  { %6009 = vmatprep.subr.bf16.mxu0 %v7196_v63  ;;  %6073 = vmatprep.subr.bf16.mxu1 %v7198_v46  ;;  %v7504_v46 = vld [vmem:[#allocation24_spill] sm:$0xff] }
 0x74d   :  { %6011 = vmatpush1.bf16.msra.mxu0 %v7202_v60  ;;  %6075 = vmatpush1.bf16.msra.mxu1 %v7204_v6 }
 0x74e   :  { %6013 = vmatprep.subr.bf16.mxu0 %v7208_v39  ;;  %6077 = vmatprep.subr.bf16.mxu1 %v7210_v53 }
 0x751   :  { %6015 = vmatpush1.bf16.msra.mxu0 %v7214_v33  ;;  %6079 = vmatpush1.bf16.msra.mxu1 %v7216_v23 }
 0x752   :  { %6017 = vmatprep.subr.bf16.mxu0 %v7220_v2  ;;  %6081 = vmatprep.subr.bf16.mxu1 %v7222_v17 }
 0x755   :  { %6019 = vmatpush1.bf16.msra.mxu0 %v7226_v28  ;;  %6083 = vmatpush1.bf16.msra.mxu1 %v7228_v41 }
 0x756   :  { %6021 = vmatprep.subr.bf16.mxu0 %v7232_v19  ;;  %6085 = vmatprep.subr.bf16.mxu1 %v7234_v13  ;;  %v7505_v19 = vld [vmem:[#allocation32_spill] sm:$0xff] }
 0x759   :  { %6023 = vmatpush1.bf16.msra.mxu0 %v7238_v27  ;;  %6087 = vmatpush1.bf16.msra.mxu1 %v7240_v45 }
 0x75a   :  { %6025 = vmatprep.subr.bf16.mxu0 %v7244_v16  ;;  %6089 = vmatprep.subr.bf16.mxu1 %v7490_v18 }
 0x75d   :  { %6027 = vmatpush1.bf16.msra.mxu0 %v7491_v57  ;;  %6091 = vmatpush1.bf16.msra.mxu1 %v7492_v5 }
 0x75e   :  { %6029 = vmatprep.subr.bf16.mxu0 %v7493_v21  ;;  %6093 = vmatprep.subr.bf16.mxu1 %v7494_v0  ;;  %v7510_v0 = vld [vmem:[#allocation33_spill] sm:$0xff] }
 0x761   :  { %6031 = vmatpush1.bf16.msra.mxu0 %v7495_v38  ;;  %6095 = vmatpush1.bf16.msra.mxu1 %v7496_v62 }
 0x762   :  { %6033 = vmatprep.subr.bf16.mxu0 %v7497_v3  ;;  %6097 = vmatprep.subr.bf16.mxu1 %v7498_v9 }
 0x765   :  { %6035 = vmatpush1.bf16.msra.mxu0 %v7499_v55  ;;  %6099 = vmatpush1.bf16.msra.mxu1 %v7500_v47  ;;  %v4198_v47 = vld [vmem:[#allocation13 + $0x10] sm:$0xff] }
 0x766   :  { %6037 = vmatprep.subr.bf16.mxu0 %v7280_v29  ;;  %6101 = vmatprep.subr.bf16.mxu1 %v7282_v8  ;;  %v7506_v8 = vld [vmem:[#allocation25_spill] sm:$0xff] }
 0x769   :  { %6039 = vmatpush1.bf16.msra.mxu0 %v7286_v36  ;;  %6103 = vmatpush1.bf16.msra.mxu1 %v7288_v25 }
 0x76a   :  { %6041 = vmatprep.subr.bf16.mxu0 %v7292_v20  ;;  %6105 = vmatprep.subr.bf16.mxu1 %v7294_v59  ;;  %v7507_v59 = vld [vmem:[#allocation26_spill] sm:$0xff] }
 0x76d   :  { %6043 = vmatpush1.bf16.msra.mxu0 %v7298_v32  ;;  %6107 = vmatpush1.bf16.msra.mxu1 %v7300_v12  ;;  %v7508_v12 = vld [vmem:[#allocation27_spill] sm:$0xff] }
 0x76e   :  { %6045 = vmatprep.subr.bf16.mxu0 %v7304_v56  ;;  %6109 = vmatprep.subr.bf16.mxu1 %v7306_v14  ;;  %v7509_v56 = vld [vmem:[#allocation28_spill] sm:$0xff] }
 0x771   :  { %6047 = vmatpush1.bf16.msra.mxu0 %v7310_v22  ;;  %6111 = vmatpush1.bf16.msra.mxu1 %v7312_v49 }
 0x772   :  { %6113 = vmatprep.subr.bf16.mxu0 %v7384_v34 }
 0x7c7   :  { %v3630_v42 = vpop.f32.mrb[20].mxu0  ;;  %v3701_v4 = vpop.f32.mrb[22].mxu1 }
 0x7c8   :  { %v3875_v31 = vadd.f32 %v3630_v42, %v7501_v26  ;;  %v3632_v37 = vpop.f32.mrb[21].mxu0  ;;  %v3703_v30 = vpop.f32.mrb[23].mxu1  ;;  %v6178_v63 = vadd.f32 %v3701_v4, %v7503_v44  ;;  %v6116_v4 = vpack.c.bf16 %v4199_v58, %v4198_v47  ;;  %v4200_v26 = vld [vmem:[#allocation13 + $0x20] sm:$0xff]  ;;  %v4205_v44 = vld [vmem:[#allocation13 + $0x48] sm:$0xff] }
 0x7c9   :  { %v3876_v24 = vadd.f32 %v3632_v37, %v7502_v48  ;;  %v6179_v60 = vadd.f32 %v3703_v30, %v7504_v46  ;;  %v7511_v37 = vld [vmem:[#allocation29_spill] sm:$0xff] }
 0x7ca   :  { %v3879_v7 = vmul.f32 0.5, %v3875_v31  ;;  %v4201_v31 = vld [vmem:[#allocation13 + $0x28] sm:$0xff]  ;;  %v4202_v48 = vld [vmem:[#allocation13 + $0x30] sm:$0xff] }
 0x7cb   :  { %v3883_v35 = vmul.f32 0.5, %v3876_v24  ;;  %v3888_v6 = vmul.f32 0.5, %v6179_v60  ;;  %v6120_v30 = vpack.c.bf16 %v4201_v31, %v4200_v26  ;;  %v4203_v24 = vld [vmem:[#allocation13 + $0x38] sm:$0xff]  ;;  %v4206_v46 = vld [vmem:[#allocation13 + $0x50] sm:$0xff] }
 0x7cc   :  { %6296 = vtanh.f32 %v3879_v7  ;;  %v6124_v7 = vpack.c.bf16 %v4203_v24, %v4202_v48  ;;  %v4207_v60 = vld [vmem:[#allocation13 + $0x58] sm:$0xff] }
 0x7cd   :  { %6298 = vtanh.f32 %v3883_v35  ;;  %v4204_v35 = vld [vmem:[#allocation13 + $0x40] sm:$0xff] }
 0x7ce   :  { %6300 = vtanh.f32 %v6178_v63  ;;  %v6128_v63 = vpack.c.bf16 %v4205_v44, %v4204_v35 }
 0x7cf   :  { %6302 = vtanh.f32 %v3888_v6  ;;  %v6132_v6 = vpack.c.bf16 %v4207_v60, %v4206_v46 }
 0x7d6   :  { %v6297_v39 = vpop.eup %6296 }
 0x7d7   :  { %v6299_v53 = vpop.eup %6298  ;;  %v3881_v33 = vmul.f32 0.5, %v6297_v39  ;;  %v4209_v39 = vld [vmem:[#allocation13 + $0x68] sm:$0xff] }
 0x7d8   :  { %v3885_v23 = vmul.f32 0.5, %v6299_v53  ;;  %v6301_v17 = vpop.eup %6300 }
 0x7d9   :  { %v3882_v2 = vadd.f32 0.5, %v3881_v33  ;;  %v6303_v45 = vpop.eup %6302  ;;  %v4210_v33 = vld [vmem:[#allocation13 + $0x70] sm:$0xff] }
 0x7da   :  { %v3886_v28 = vadd.f32 0.5, %v3885_v23  ;;  %v3890_v16 = vmul.f32 0.5, %v6303_v45  ;;  %v4211_v23 = vld [vmem:[#allocation13 + $0x78] sm:$0xff] }
 0x7db   :  { %v3893_v41 = vmul.f32 %v6301_v17, %v3882_v2  ;;  %v6140_v2 = vpack.c.bf16 %v4211_v23, %v4210_v33  ;;  %v7512_v17 = vld [vmem:[#allocation30_spill] sm:$0xff] }
 0x7dc   :  { %v3892_v13 = vmul.f32 %v3886_v28, %v7505_v19  ;;  %v3891_v52 = vadd.f32 0.5, %v3890_v16  ;;  %v7513_v28 = vld [vmem:[#allocation31_spill] sm:$0xff] }
 0x7de   :  { %v3894_v27 = vadd.f32 %v3893_v41, %v3892_v13  ;;  %v7514_v41 = vld [vmem:[#allocation34_spill] sm:$0xff] }
 0x7e0   :  { %6304 = vtanh.f32 %v3894_v27 }
 0x7ea   :  { %v6305_v61 = vpop.eup %6304 }
 0x7eb   :  { %v3896_v43 = vmul.f32 %v6305_v61, %v3891_v52 }
 0x807   :  { %v3772_v10 = vpop.f32.mrb[22].mxu0  ;;  %v3843_v29 = vpop.f32.mrb[34].mxu1 }
 0x808   :  { %v3848_v36 = vadd.f32 %v3772_v10, %v7506_v8  ;;  %v3774_v25 = vpop.f32.mrb[23].mxu0  ;;  %v3845_v20 = vpop.f32.mrb[35].mxu1  ;;  %v3850_v40 = vadd.f32 %v3843_v29, %v7508_v12 }
 0x809   :  { %v3849_v15 = vadd.f32 %v3774_v25, %v7507_v59  ;;  %v3851_v14 = vadd.f32 %v3845_v20, %v7509_v56 }
 0x80a   :  { %v3852_v50 = vmul.f32 0.5, %v3848_v36 }
 0x80b   :  { %v3856_v32 = vmul.f32 0.5, %v3849_v15  ;;  %v3861_v54 = vmul.f32 0.5, %v3851_v14 }
 0x80c   :  { %6306 = vtanh.f32 %v3852_v50 }
 0x80d   :  { %6308 = vtanh.f32 %v3856_v32 }
 0x80e   :  { %6310 = vtanh.f32 %v3850_v40 }
 0x80f   :  { %6312 = vtanh.f32 %v3861_v54 }
 0x816   :  { %v6307_v51 = vpop.eup %6306 }
 0x817   :  { %v6309_v1 = vpop.eup %6308  ;;  %v3854_v22 = vmul.f32 0.5, %v6307_v51 }
 0x818   :  { %v3858_v49 = vmul.f32 0.5, %v6309_v1  ;;  %v6311_v57 = vpop.eup %6310 }
 0x819   :  { %v3855_v18 = vadd.f32 0.5, %v3854_v22  ;;  %v6313_v3 = vpop.eup %6312 }
 0x81a   :  { %v3859_v5 = vadd.f32 0.5, %v3858_v49  ;;  %v3863_v9 = vmul.f32 0.5, %v6313_v3 }
 0x81b   :  { %v3866_v21 = vmul.f32 %v6311_v57, %v3855_v18 }
 0x81c   :  { %v3865_v38 = vmul.f32 %v3859_v5, %v7510_v0  ;;  %v3864_v55 = vadd.f32 0.5, %v3863_v9 }
 0x81e   :  { %v7397_v62 = vadd.f32 %v3866_v21, %v3865_v38 }
 0x820   :  { %6314 = vtanh.f32 %v7397_v62 }
 0x82a   :  { %v6315_v11 = vpop.eup %6314 }
 0x82b   :  { %v3869_v42 = vmul.f32 %v6315_v11, %v3864_v55 }
 0x82d   :  { %4089 = vmatprep.mubr.f32.mxu0 %v3869_v42  ;;  %4160 = vmatprep.mubr.f32.mxu1 %v3869_v42 }
 0x82e   :  { %4090 = vmatmul.mubr.f32.vlgmr.msra.gmra.mrb[24].mxu0 %v3896_v43  ;;  %4161 = vmatmul.mubr.f32.vlgmr.msra.gmra.mrb[36].mxu1 %v3896_v43 }
 0x82f   :  { %6115 = vmatpush3.bf16.msra.mxu0 %v7384_v34  ;;  %4407 = vmatprep.mubr.f32.mxu0 %v7511_v37  ;;  %v4208_v34 = vld [vmem:[#allocation13 + $0x60] sm:$0xff] }
 0x830   :  { %6117 = vmatprep.subr.bf16.mxu0 %v6116_v4  ;;  %v6136_v53 = vpack.c.bf16 %v4209_v39, %v4208_v34 }
 0x833   :  { %6119 = vmatpush3.bf16.msra.mxu0 %v6116_v4 }
 0x834   :  { %6121 = vmatprep.subr.bf16.mxu0 %v6120_v30 }
 0x837   :  { %6123 = vmatpush3.bf16.msra.mxu0 %v6120_v30 }
 0x838   :  { %6125 = vmatprep.subr.bf16.mxu0 %v6124_v7 }
 0x83b   :  { %6127 = vmatpush3.bf16.msra.mxu0 %v6124_v7 }
 0x83c   :  { %6129 = vmatprep.subr.bf16.mxu0 %v6128_v63 }
 0x83f   :  { %6131 = vmatpush3.bf16.msra.mxu0 %v6128_v63 }
 0x840   :  { %6133 = vmatprep.subr.bf16.mxu0 %v6132_v6 }
 0x843   :  { %6135 = vmatpush3.bf16.msra.mxu0 %v6132_v6 }
 0x844   :  { %6137 = vmatprep.subr.bf16.mxu0 %v6136_v53 }
 0x847   :  { %6139 = vmatpush3.bf16.msra.mxu0 %v6136_v53 }
 0x848   :  { %6141 = vmatprep.subr.bf16.mxu0 %v6140_v2 }
 0x84b   :  { %6143 = vmatpush3.bf16.msra.mxu0 %v6140_v2 }
 0x84e   :  { %4408 = vmatmul.mubr.f32.vlgmr.msra.gmra.mrb[26].mxu0 %v7512_v17 }
 0x84f   :  { %4410 = vmatprep.mubr.f32.mxu0 %v7513_v28 }
 0x852   :  { %4411 = vmatmul.mubr.f32.gmra.mrb[28].mxu0 %v7514_v41 }
 0x853   :  { %4413 = vmatprep.mubr.f32.mxu0 %v3869_v42 }
 0x901   :  { %v4091_v19 = vpop.f32.mrb[24].mxu0  ;;  %v4162_v13 = vpop.f32.mrb[36].mxu1 }
 0x902   :  { %v4167_v27 = vadd.f32 %v4091_v19, %v7506_v8  ;;  %v4093_v45 = vpop.f32.mrb[25].mxu0  ;;  %v4164_v16 = vpop.f32.mrb[37].mxu1  ;;  %v4169_v10 = vadd.f32 %v4162_v13, %v7508_v12 }
 0x903   :  { %v4168_v52 = vadd.f32 %v4093_v45, %v7507_v59  ;;  %v4170_v29 = vadd.f32 %v4164_v16, %v7509_v56  ;;  %v4352_v56 = vld [vmem:[%s7436_s8] ss:$0 sm:$0xff]  ;;  %s6458_s8 = scalar_lea.vmem %s4326_s25, 768 }
 0x904   :  { %v4171_v61 = vmul.f32 0.5, %v4167_v27  ;;  %p6459_p6 = scmp.ne.s32.totalorder %s4326_s25, %s6458_s8  ;;  %p6464_p8 = scmp.lt.s32.totalorder %s6458_s8, %s6458_s8 }
 0x905   :  { %v4175_v43 = vmul.f32 0.5, %v4168_v52  ;;  %v4180_v36 = vmul.f32 0.5, %v4170_v29 }
 0x906   :  { %6316 = vtanh.f32 %v4171_v61  ;;  %p6465_p9 = por %p6464_p8, %p6463_p7 }
 0x907   :  { %6318 = vtanh.f32 %v4175_v43 }
 0x908   :  { %6320 = vtanh.f32 %v4169_v10  ;;  %p6466_p10 = pnand %p6465_p9, %p6459_p6 }
 0x909   :  { %6322 = vtanh.f32 %v4180_v36 }
 0x910   :  { %v6317_v25 = vpop.eup %6316 }
 0x911   :  { %v6319_v20 = vpop.eup %6318  ;;  %v4173_v15 = vmul.f32 0.5, %v6317_v25 }
 0x912   :  { %v4177_v50 = vmul.f32 0.5, %v6319_v20  ;;  %v6321_v32 = vpop.eup %6320 }
 0x913   :  { %v4174_v8 = vadd.f32 0.5, %v4173_v15  ;;  %v6323_v51 = vpop.eup %6322 }
 0x914   :  { %v4178_v40 = vadd.f32 0.5, %v4177_v50  ;;  %v4182_v12 = vmul.f32 0.5, %v6323_v51 }
 0x915   :  { %v4185_v14 = vmul.f32 %v6321_v32, %v4174_v8 }
 0x916   :  { %v4184_v59 = vmul.f32 %v4178_v40, %v7397_v62  ;;  %v4183_v18 = vadd.f32 0.5, %v4182_v12 }
 0x918   :  { %v4186_v54 = vadd.f32 %v4185_v14, %v4184_v59 }
 0x91a   :  { %6324 = vtanh.f32 %v4186_v54 }
 0x921   :  { %v4409_v1 = vpop.f32.mrb[26].mxu0 }
 0x922   :  { %v4291_v22 = vadd.f32 %v4409_v1, %v4352_v56  ;;  %v4285_v49 = vpop.f32.mrb[27].mxu0 }
 0x923   :  { %v4286_v57 = vadd.f32 %v4352_v56, %v4285_v49 }
 0x924   :  { %v6325_v5 = vpop.eup %6324  ;;  %4315 = vst [vmem:[#allocation15 + $0x8] sm:$0xff] %v4291_v22 }
 0x925   :  { %4314 = vst [vmem:[#allocation15] sm:$0xff] %v4286_v57  ;;  %v4412_v21 = vpop.f32.mrb[28].mxu0  ;;  %v4188_v0 = vmul.f32 %v6325_v5, %v4183_v18 }
 0x926   :  { %v4301_v38 = vadd.f32 %v4412_v21, %v4352_v56  ;;  %v4295_v62 = vpop.f32.mrb[29].mxu0 }
 0x927   :  { %v4296_v3 = vadd.f32 %v4352_v56, %v4295_v62  ;;  %4414 = vmatmul.mubr.f32.gmra.mrb[30].mxu0 %v4188_v0 }
 0x928   :  { %4317 = vst [vmem:[#allocation15 + $0x18] sm:$0xff] %v4301_v38 }
 0x929   :  { %4316 = vst [vmem:[#allocation15 + $0x10] sm:$0xff] %v4296_v3 }
 0x9fa   :  { %v4415_v9 = vpop.f32.mrb[30].mxu0 }
 0x9fb   :  { %v4311_v55 = vadd.f32 %v4415_v9, %v4352_v56  ;;  %v4305_v47 = vpop.f32.mrb[31].mxu0 }
 0x9fc   :  { %v4306_v58 = vadd.f32 %v4352_v56, %v4305_v47 }
 0x9fd   :  { %4319 = vst [vmem:[#allocation15 + $0x28] sm:$0xff] %v4311_v55 }
 0x9fe   :  { %4318 = vst [vmem:[#allocation15 + $0x20] sm:$0xff] %v4306_v58 }
 0x9ff   :  { %6469 = shalt.err (!%p6466_p10)
}
 0xa00   :  { %s6470_s29 = scalar_lea.hbm %s7437_s9, 768 }
 0xa01   :  { %p6471_p11 = scmp.ne.s32.totalorder %s7437_s9, %s6470_s29  ;;  %p6474_p12 = scmp.lt.u32.totalorder %s6470_s29, %s7437_s9 }
 0xa03   :  { %p6476_p13 = pnand %p6474_p12, %p6471_p11 }
 0xa05   :  { %6479 = shalt.err (!%p6476_p13)
}
 0xa06   :  { %4331 = dma.vmem_to_hbm [thread:$0]  %s4326_s25, 768, %s7437_s9, [#allocation6], %s6495_s3, %s6495_s3, %s6496_s22  }
 0xa07   :  { %6488 = dma.done.wait [#allocation6], 768  }
 0xa08   :  { %6489 = vsyncadd [#allocation6], 4294966528 }
 0xa09   :  { %4335 = vsyncpa [#allocation5], 1 }
 0xa0a   :  { %4336 = vsyncpa [#allocation8], 1 }
 0xa0b   :  { %4337 = vsyncpa [#allocation11], 1 }
 0xa0c   :  { %4338 = vsyncpa [#allocation14], 1 }
 0xa0d   :  { %4339 = vsyncpa [#allocation6], 1 }

</bundles_post_ra>
